<compile_context>
chip_gen: v7x
topology: tpu7x:2x2x1
jax: 0.10.0
libtpu: 0.0.40
codegen_flags: <defaults>
</compile_context>

<pallas_src>
import jax
import jax.numpy as jnp
from jax.experimental import pallas as pl
from jax.experimental.pallas import tpu as pltpu

EPS = 1e-5

# (depthwise stride, pointwise channel multiplier) for blocks 2..14
BLOCKS = [
    (1, 2),  # block 2:   8 ->  16
    (2, 2),  # block 3:  16 ->  32
    (1, 1),  # block 4
    (2, 2),  # block 5:  32 ->  64
    (1, 1),  # block 6
    (2, 2),  # block 7:  64 -> 128
    (1, 1),  # block 8
    (1, 1),  # block 9
    (1, 1),  # block 10
    (1, 1),  # block 11
    (1, 1),  # block 12
    (2, 2),  # block 13: 128 -> 256
    (1, 1),  # block 14
]


# ---------------------------------------------------------------------------
# Pallas kernels
# ---------------------------------------------------------------------------
def matmul_relu_kernel(x_ref, w_ref, s_ref, o_ref):
    """out = relu(x @ w + s).  BN scale/shift and conv bias pre-folded into w/s."""
    acc = jnp.dot(x_ref[...], w_ref[...], preferred_element_type=jnp.float32)
    o_ref[...] = jnp.maximum(acc + s_ref[...], 0.0)


def dw_pw_block_kernel(x_ref, dww_ref, dwb_ref, pww_ref, pwb_ref, o_ref):
    """Fused depthwise 3x3 (stride 1, pad pre-applied) + ReLU + pointwise 1x1 + ReLU.

    x_ref  : (1, H+2, W+2, Cin) padded input, one image per grid step
    dww_ref: (9, 1, Cin)   depthwise weights (BN scale folded in)
    dwb_ref: (1, Cin)      folded depthwise bias + BN shift
    pww_ref: (Cin, Cout)   pointwise weights (BN scale folded in)
    pwb_ref: (1, Cout)     folded pointwise bias + BN shift
    o_ref  : (1, H, W, Cout)
    """
    _, H, W, Cout = o_ref.shape
    Cin = x_ref.shape[3]
    dww = dww_ref[...]          # (9, 1, Cin)   hoisted out of the loops
    dwb = dwb_ref[...]          # (1, Cin)
    pww = pww_ref[...]          # (Cin, Cout)
    pwb = pwb_ref[...]          # (1, Cout)
    for h in range(H):          # static unroll; H is small for this config
        acc = jnp.zeros((W, Cin), jnp.float32)
        for ky in range(3):
            for kx in range(3):
                acc = acc + x_ref[0, h + ky, kx:kx + W, :] * dww[ky * 3 + kx]
        dw = jnp.maximum(acc + dwb, 0.0)                              # VMEM resident
        y = jnp.dot(dw, pww, preferred_element_type=jnp.float32)      # MXU
        o_ref[0, h] = jnp.maximum(y + pwb, 0.0)


def dw_pw_head_kernel(x_ref, dww_ref, dwb_ref, pww_ref, pwb_ref,
                      fcw_ref, fcb_ref, o_ref):
    """Last block fused with AdaptiveAvgPool((1,1)) + Linear + Softmax.

    Same operands as dw_pw_block_kernel plus fcw:(Cout, nc), fcb:(1, nc).
    o_ref: (1, 1, num_classes).
    """
    _, Hp, Wp, Cin = x_ref.shape
    H, W = Hp - 2, Wp - 2
    Cout = pww_ref.shape[1]
    dww = dww_ref[...]
    dwb = dwb_ref[...]
    pww = pww_ref[...]
    pwb = pwb_ref[...]
    pooled = jnp.zeros((1, Cout), jnp.float32)
    for h in range(H):
        acc = jnp.zeros((W, Cin), jnp.float32)
        for ky in range(3):
            for kx in range(3):
                acc = acc + x_ref[0, h + ky, kx:kx + W, :] * dww[ky * 3 + kx]
        dw = jnp.maximum(acc + dwb, 0.0)
        y = jnp.maximum(jnp.dot(dw, pww, preferred_element_type=jnp.float32) + pwb, 0.0)
        pooled = pooled + jnp.sum(y, axis=0, keepdims=True)
    pooled = pooled * (1.0 / float(H * W))                             # avgpool
    logits = jnp.dot(pooled, fcw_ref[...], preferred_element_type=jnp.float32) + fcb_ref[...]
    m = jnp.max(logits, axis=-1, keepdims=True)
    e = jnp.exp(logits - m)
    o_ref[0] = e / jnp.sum(e, axis=-1, keepdims=True)                  # softmax


# ---------------------------------------------------------------------------
# Layer wrappers (glue around pallas_call)
# ---------------------------------------------------------------------------
def conv1_bn_relu(x, w_hwio, shift, stride=2, pad=1, tm=128):
    """Standard 3x3 conv (im2col in glue, M-tiled matmul in Pallas).
    x: (N,H,W,Cin), w: (3,3,Cin,Cout) with BN folded, shift: (1,Cout)."""
    N, H, W, Cin = x.shape
    kh, kw, _, Cout = w_hwio.shape
    Ho = (H + 2 * pad - kh) // stride + 1
    Wo = (W + 2 * pad - kw) // stride + 1
    xp = jnp.pad(x, ((0, 0), (pad, pad), (pad, pad), (0, 0)))
    cols = []
    for ky in range(kh):
        for kx in range(kw):
            cols.append(xp[:, ky:ky + stride * Ho:stride, kx:kx + stride * Wo:stride, :])
    patches = jnp.stack(cols, axis=3).reshape(N * Ho * Wo, kh * kw * Cin)   # (M, K)
    wm = w_hwio.reshape(kh * kw * Cin, Cout)                                 # (K, Cout)
    K = kh * kw * Cin
    M = N * Ho * Wo
    Mp = ((M + tm - 1) // tm) * tm
    if Mp != M:
        patches = jnp.pad(patches, ((0, Mp - M), (0, 0)))
    out = pl.pallas_call(
        matmul_relu_kernel,
        out_shape=jax.ShapeDtypeStruct((Mp, Cout), jnp.float32),
        grid_spec=pltpu.PrefetchScalarGridSpec(
            num_scalar_prefetch=0,
            grid=(Mp // tm,),
            in_specs=[
                pl.BlockSpec((tm, K), lambda i: (i, 0)),
                pl.BlockSpec((K, Cout), lambda i: (0, 0)),     # weights resident
                pl.BlockSpec((1, Cout), lambda i: (0, 0)),
            ],
            out_specs=pl.BlockSpec((tm, Cout), lambda i: (i, 0)),
        ),
        compiler_params=pltpu.CompilerParams(dimension_semantics=("parallel",)),
    )(patches, wm, shift)
    return out[:M].reshape(N, Ho, Wo, Cout)


def fused_block(x, dww, dwb, pww, pwb, stride):
    """One MobileNet block (dw3x3+BN+ReLU, pw1x1+BN+ReLU) in a single pallas_call.
    Depthwise is computed at stride 1; stride-2 blocks subsample afterwards in glue
    (identical values, tiny tensors at those layers for this config)."""
    N, H, W, Cin = x.shape
    Cout = pww.shape[1]
    xp = jnp.pad(x, ((0, 0), (1, 1), (1, 1), (0, 0)))
    Hp, Wp = H + 2, W + 2
    out = pl.pallas_call(
        dw_pw_block_kernel,
        out_shape=jax.ShapeDtypeStruct((N, H, W, Cout), jnp.float32),
        grid_spec=pltpu.PrefetchScalarGridSpec(
            num_scalar_prefetch=0,
            grid=(N,),
            in_specs=[
                pl.BlockSpec((1, Hp, Wp, Cin), lambda n: (n, 0, 0, 0)),
                pl.BlockSpec((9, 1, Cin), lambda n: (0, 0, 0)),
                pl.BlockSpec((1, Cin), lambda n: (0, 0)),
                pl.BlockSpec((Cin, Cout), lambda n: (0, 0)),
                pl.BlockSpec((1, Cout), lambda n: (0, 0)),
            ],
            out_specs=pl.BlockSpec((1, H, W, Cout), lambda n: (n, 0, 0, 0)),
        ),
        compiler_params=pltpu.CompilerParams(dimension_semantics=("parallel",)),
    )(xp, dww, dwb, pww, pwb)
    if stride == 2:
        out = out[:, ::2, ::2, :]
    return out


def fused_block_head(x, dww, dwb, pww, pwb, fcw, fcb):
    """Last block + avgpool + dense + softmax in a single pallas_call (stride 1)."""
    N, H, W, Cin = x.shape
    Cout = pww.shape[1]
    nc = fcw.shape[1]
    xp = jnp.pad(x, ((0, 0), (1, 1), (1, 1), (0, 0)))
    Hp, Wp = H + 2, W + 2
    out = pl.pallas_call(
        dw_pw_head_kernel,
        out_shape=jax.ShapeDtypeStruct((N, 1, nc), jnp.float32),
        grid_spec=pltpu.PrefetchScalarGridSpec(
            num_scalar_prefetch=0,
            grid=(N,),
            in_specs=[
                pl.BlockSpec((1, Hp, Wp, Cin), lambda n: (n, 0, 0, 0)),
                pl.BlockSpec((9, 1, Cin), lambda n: (0, 0, 0)),
                pl.BlockSpec((1, Cin), lambda n: (0, 0)),
                pl.BlockSpec((Cin, Cout), lambda n: (0, 0)),
                pl.BlockSpec((1, Cout), lambda n: (0, 0)),
                pl.BlockSpec((Cout, nc), lambda n: (0, 0)),
                pl.BlockSpec((1, nc), lambda n: (0, 0)),
            ],
            out_specs=pl.BlockSpec((1, 1, nc), lambda n: (n, 0, 0)),
        ),
        compiler_params=pltpu.CompilerParams(dimension_semantics=("parallel",)),
    )(xp, dww, dwb, pww, pwb, fcw, fcb)
    return out.reshape(N, nc)


# ---------------------------------------------------------------------------
# Parameters (kaiming-uniform-like init) + BN/bias folding
# ---------------------------------------------------------------------------
def _kaiming_uniform(key, shape, fan_in):
    bound = (6.0 / fan_in) ** 0.5
    return jax.random.uniform(key, shape, jnp.float32, -bound, bound)


def _bn_raw(c):
    return {
        "gamma": jnp.ones((c,), jnp.float32),
        "beta": jnp.zeros((c,), jnp.float32),
        "mean": jnp.zeros((c,), jnp.float32),
        "var": jnp.ones((c,), jnp.float32),
    }


def init_params(key, num_classes=2, num_filters=8):
    keys = iter(jax.random.split(key, 2 * len(BLOCKS) + 2))
    params = {}
    nf = num_filters
    params["conv1"] = {
        "w": _kaiming_uniform(next(keys), (3, 3, 3, nf), fan_in=3 * 3 * 3),
        "b": jnp.zeros((nf,), jnp.float32),
        "bn": _bn_raw(nf),
    }
    blocks = []
    for _stride, mult in BLOCKS:
        c_in, c_out = nf, nf * mult
        blocks.append({
            "dw_w": _kaiming_uniform(next(keys), (3, 3, c_in), fan_in=9),
            "dw_b": jnp.zeros((c_in,), jnp.float32),
            "dw_bn": _bn_raw(c_in),
            "pw_w": _kaiming_uniform(next(keys), (c_in, c_out), fan_in=c_in),
            "pw_b": jnp.zeros((c_out,), jnp.float32),
            "pw_bn": _bn_raw(c_out),
        })
        nf = c_out
    params["blocks"] = blocks
    params["dense"] = {
        "w": _kaiming_uniform(next(keys), (nf, num_classes), fan_in=nf),
        "b": jnp.zeros((num_classes,), jnp.float32),
    }
    return params


def _fold(w, b, bn):
    """Fold BN (inference stats) + conv bias into the conv weights/shift."""
    scale = bn["gamma"] / jnp.sqrt(bn["var"] + EPS)      # per output channel
    shift = bn["beta"] - bn["mean"] * scale
    return w * scale, (b * scale + shift).reshape(1, -1)


def fold_params(params):
    fp = {}
    c1 = params["conv1"]
    w, s = _fold(c1["w"], c1["b"], c1["bn"])
    fp["conv1"] = {"w": w, "s": s}
    fblocks = []
    for blk in params["blocks"]:
        dw_w, dw_s = _fold(blk["dw_w"], blk["dw_b"], blk["dw_bn"])
        pw_w, pw_s = _fold(blk["pw_w"], blk["pw_b"], blk["pw_bn"])
        c_in = blk["dw_w"].shape[-1]
        fblocks.append({
            "dw_w": dw_w.reshape(9, 1, c_in),
            "dw_s": dw_s,
            "pw_w": pw_w,
            "pw_s": pw_s,
        })
    fp["blocks"] = fblocks
    fp["dense"] = {"w": params["dense"]["w"],
                   "b": params["dense"]["b"].reshape(1, -1)}
    return fp


# ---------------------------------------------------------------------------
# Forward
# ---------------------------------------------------------------------------
@jax.jit
def mobilenet_v1_forward(x_nchw, fparams):
    # NCHW (PyTorch) -> NHWC (channels -> TPU lanes)
    x = jnp.transpose(x_nchw, (0, 2, 3, 1)).astype(jnp.float32)
    c1 = fparams["conv1"]
    x = conv1_bn_relu(x, c1["w"], c1["s"], stride=2, pad=1)
    blocks = fparams["blocks"]
    for (stride, _mult), blk in zip(BLOCKS[:-1], blocks[:-1]):
        x = fused_block(x, blk["dw_w"], blk["dw_s"], blk["pw_w"], blk["pw_s"], stride)
    # last block (stride 1) fused with avgpool + dense + softmax
    last = blocks[-1]
    d = fparams["dense"]
    return fused_block_head(x, last["dw_w"], last["dw_s"],
                            last["pw_w"], last["pw_s"], d["w"], d["b"])


if __name__ == "__main__":
    key = jax.random.PRNGKey(0)
    k_in, k_p = jax.random.split(key)
    x = jax.random.normal(k_in, (2, 3, 16, 16), jnp.float32)  # NCHW, like PyTorch
    params = init_params(k_p, num_classes=2, num_filters=8)
    fparams = fold_params(params)
    out = mobilenet_v1_forward(x, fparams)
    out = jax.block_until_ready(out)
    assert out.shape == (2, 2)
    assert bool(jnp.all(jnp.isfinite(out)))
    # rows of softmax sum to 1
    assert bool(jnp.allclose(jnp.sum(out, axis=1), 1.0, atol=1e-5))
    print("KERNEL_OK")
</pallas_src>

<mosaic_0001>
module attributes {stable_mosaic.version = 11 : i64} {
  func.func @matmul_relu_kernel(%arg0: i32, %arg1: memref<128x27xf32, #tpu.memory_space<vmem>>, %arg2: memref<27x8xf32, #tpu.memory_space<vmem>>, %arg3: memref<1x8xf32, #tpu.memory_space<vmem>>, %arg4: memref<128x8xf32, #tpu.memory_space<vmem>>) attributes {dimension_semantics = [#tpu.dimension_semantics<parallel>], iteration_bounds = array<i64: 1>, scalar_prefetch = 0 : i64, scratch_operands = 0 : i64, tpu.core_type = #tpu.core_type<tc>, window_params = [{transform_indices = @transform_0, window_bounds = array<i64: 128, 27>}, {pipeline_mode = #tpu.pipeline_mode<synchronous>, transform_indices = @transform_1, window_bounds = array<i64: 27, 8>}, {pipeline_mode = #tpu.pipeline_mode<synchronous>, transform_indices = @transform_2, window_bounds = array<i64: 1, 8>}, {transform_indices = @transform_3, window_bounds = array<i64: 128, 8>}]} {
    %c0 = arith.constant 0 : index
    %c0_0 = arith.constant 0 : index
    %0 = vector.load %arg1[%c0, %c0_0] : memref<128x27xf32, #tpu.memory_space<vmem>>, vector<128x27xf32>
    %c0_1 = arith.constant 0 : index
    %c0_2 = arith.constant 0 : index
    %1 = vector.load %arg2[%c0_1, %c0_2] : memref<27x8xf32, #tpu.memory_space<vmem>>, vector<27x8xf32>
    %cst = arith.constant dense<0.000000e+00> : vector<128x8xf32>
    %2 = tpu.matmul %0, %1, %cst {dimension_numbers = #tpu.dot_dimension_numbers<[1], [0], [0], [1], [0, 0, 1, 1], [], []>} : vector<128x27xf32>, vector<27x8xf32>, vector<128x8xf32> -> vector<128x8xf32>
    %c0_3 = arith.constant 0 : index
    %c0_4 = arith.constant 0 : index
    %3 = vector.load %arg3[%c0_3, %c0_4] : memref<1x8xf32, #tpu.memory_space<vmem>>, vector<1x8xf32>
    %4 = vector.broadcast %3 : vector<1x8xf32> to vector<128x8xf32>
    %5 = arith.addf %2, %4 : vector<128x8xf32>
    %cst_5 = arith.constant 0.000000e+00 : f32
    %6 = vector.broadcast %cst_5 : f32 to vector<128x8xf32>
    %7 = arith.maximumf %5, %6 : vector<128x8xf32>
    %c0_6 = arith.constant 0 : index
    %c0_7 = arith.constant 0 : index
    %8 = vector.load %arg4[%c0_6, %c0_7] : memref<128x8xf32, #tpu.memory_space<vmem>>, vector<128x8xf32>
    tpu.vector_store %arg4[%c0_6, %c0_7], %7 {strides = array<i32>} : memref<128x8xf32, #tpu.memory_space<vmem>>, vector<128x8xf32>,
    return
  }
  func.func @transform_0(%arg0: i32) -> (i32, i32) {
    %c0_i32 = arith.constant 0 : i32
    %c0_i32_0 = arith.constant 0 : i32
    return %arg0, %c0_i32 : i32, i32
  }
  func.func @transform_1(%arg0: i32) -> (i32, i32) {
    %c0_i32 = arith.constant 0 : i32
    %c0_i32_0 = arith.constant 0 : i32
    %c0_i32_1 = arith.constant 0 : i32
    return %c0_i32, %c0_i32_0 : i32, i32
  }
  func.func @transform_2(%arg0: i32) -> (i32, i32) {
    %c0_i32 = arith.constant 0 : i32
    %c0_i32_0 = arith.constant 0 : i32
    %c0_i32_1 = arith.constant 0 : i32
    return %c0_i32, %c0_i32_0 : i32, i32
  }
  func.func @transform_3(%arg0: i32) -> (i32, i32) {
    %c0_i32 = arith.constant 0 : i32
    %c0_i32_0 = arith.constant 0 : i32
    return %arg0, %c0_i32 : i32, i32
  }
}

module attributes {stable_mosaic.version = 11 : i64} {
  func.func @dw_pw_block_kernel(%arg0: i32, %arg1: memref<1x10x10x8xf32, #tpu.memory_space<vmem>>, %arg2: memref<9x1x8xf32, #tpu.memory_space<vmem>>, %arg3: memref<1x8xf32, #tpu.memory_space<vmem>>, %arg4: memref<8x16xf32, #tpu.memory_space<vmem>>, %arg5: memref<1x16xf32, #tpu.memory_space<vmem>>, %arg6: memref<1x8x8x16xf32, #tpu.memory_space<vmem>>) attributes {dimension_semantics = [#tpu.dimension_semantics<parallel>], iteration_bounds = array<i64: 2>, scalar_prefetch = 0 : i64, scratch_operands = 0 : i64, tpu.core_type = #tpu.core_type<tc>, window_params = [{transform_indices = @transform_0, window_bounds = array<i64: 1, 10, 10, 8>}, {pipeline_mode = #tpu.pipeline_mode<synchronous>, transform_indices = @transform_1, window_bounds = array<i64: 9, 1, 8>}, {pipeline_mode = #tpu.pipeline_mode<synchronous>, transform_indices = @transform_2, window_bounds = array<i64: 1, 8>}, {pipeline_mode = #tpu.pipeline_mode<synchronous>, transform_indices = @transform_3, window_bounds = array<i64: 8, 16>}, {pipeline_mode = #tpu.pipeline_mode<synchronous>, transform_indices = @transform_4, window_bounds = array<i64: 1, 16>}, {transform_indices = @transform_5, window_bounds = array<i64: 1, 8, 8, 16>}]} {
    %c0 = arith.constant 0 : index
    %c0_0 = arith.constant 0 : index
    %c0_1 = arith.constant 0 : index
    %0 = vector.load %arg2[%c0, %c0_0, %c0_1] : memref<9x1x8xf32, #tpu.memory_space<vmem>>, vector<9x1x8xf32>
    %c0_2 = arith.constant 0 : index
    %c0_3 = arith.constant 0 : index
    %1 = vector.load %arg3[%c0_2, %c0_3] : memref<1x8xf32, #tpu.memory_space<vmem>>, vector<1x8xf32>
    %c0_4 = arith.constant 0 : index
    %c0_5 = arith.constant 0 : index
    %2 = vector.load %arg4[%c0_4, %c0_5] : memref<8x16xf32, #tpu.memory_space<vmem>>, vector<8x16xf32>
    %c0_6 = arith.constant 0 : index
    %c0_7 = arith.constant 0 : index
    %3 = vector.load %arg5[%c0_6, %c0_7] : memref<1x16xf32, #tpu.memory_space<vmem>>, vector<1x16xf32>
    %cst = arith.constant 0.000000e+00 : f32
    %4 = vector.broadcast %cst : f32 to vector<8x8xf32>
    %c0_8 = arith.constant 0 : index
    %c0_9 = arith.constant 0 : index
    %c0_10 = arith.constant 0 : index
    %c0_11 = arith.constant 0 : index
    %5 = vector.load %arg1[%c0_8, %c0_9, %c0_10, %c0_11] : memref<1x10x10x8xf32, #tpu.memory_space<vmem>>, vector<1x1x8x8xf32>
    %6 = vector.shape_cast %5 : vector<1x1x8x8xf32> to vector<8x8xf32>
    %7 = vector.extract_strided_slice %0 {offsets = [0, 0, 0], sizes = [1, 1, 8], strides = [1, 1, 1]} : vector<9x1x8xf32> to vector<1x1x8xf32>
    %8 = vector.shape_cast %7 : vector<1x1x8xf32> to vector<1x8xf32>
    %9 = vector.broadcast %8 : vector<1x8xf32> to vector<8x8xf32>
    %10 = arith.mulf %6, %9 : vector<8x8xf32>
    %11 = arith.addf %4, %10 : vector<8x8xf32>
    %c0_12 = arith.constant 0 : index
    %c0_13 = arith.constant 0 : index
    %c1 = arith.constant 1 : index
    %c0_14 = arith.constant 0 : index
    %12 = vector.load %arg1[%c0_12, %c0_13, %c1, %c0_14] : memref<1x10x10x8xf32, #tpu.memory_space<vmem>>, vector<1x1x8x8xf32>
    %13 = vector.shape_cast %12 : vector<1x1x8x8xf32> to vector<8x8xf32>
    %14 = vector.extract_strided_slice %0 {offsets = [1, 0, 0], sizes = [1, 1, 8], strides = [1, 1, 1]} : vector<9x1x8xf32> to vector<1x1x8xf32>
    %15 = vector.shape_cast %14 : vector<1x1x8xf32> to vector<1x8xf32>
    %16 = vector.broadcast %15 : vector<1x8xf32> to vector<8x8xf32>
    %17 = arith.mulf %13, %16 : vector<8x8xf32>
    %18 = arith.addf %11, %17 : vector<8x8xf32>
    %c0_15 = arith.constant 0 : index
    %c0_16 = arith.constant 0 : index
    %c2 = arith.constant 2 : index
    %c0_17 = arith.constant 0 : index
    %19 = vector.load %arg1[%c0_15, %c0_16, %c2, %c0_17] : memref<1x10x10x8xf32, #tpu.memory_space<vmem>>, vector<1x1x8x8xf32>
    %20 = vector.shape_cast %19 : vector<1x1x8x8xf32> to vector<8x8xf32>
    %21 = vector.extract_strided_slice %0 {offsets = [2, 0, 0], sizes = [1, 1, 8], strides = [1, 1, 1]} : vector<9x1x8xf32> to vector<1x1x8xf32>
    %22 = vector.shape_cast %21 : vector<1x1x8xf32> to vector<1x8xf32>
    %23 = vector.broadcast %22 : vector<1x8xf32> to vector<8x8xf32>
    %24 = arith.mulf %20, %23 : vector<8x8xf32>
    %25 = arith.addf %18, %24 : vector<8x8xf32>
    %c0_18 = arith.constant 0 : index
    %c1_19 = arith.constant 1 : index
    %c0_20 = arith.constant 0 : index
    %c0_21 = arith.constant 0 : index
    %26 = vector.load %arg1[%c0_18, %c1_19, %c0_20, %c0_21] : memref<1x10x10x8xf32, #tpu.memory_space<vmem>>, vector<1x1x8x8xf32>
    %27 = vector.shape_cast %26 : vector<1x1x8x8xf32> to vector<8x8xf32>
    %28 = vector.extract_strided_slice %0 {offsets = [3, 0, 0], sizes = [1, 1, 8], strides = [1, 1, 1]} : vector<9x1x8xf32> to vector<1x1x8xf32>
    %29 = vector.shape_cast %28 : vector<1x1x8xf32> to vector<1x8xf32>
    %30 = vector.broadcast %29 : vector<1x8xf32> to vector<8x8xf32>
    %31 = arith.mulf %27, %30 : vector<8x8xf32>
    %32 = arith.addf %25, %31 : vector<8x8xf32>
    %c0_22 = arith.constant 0 : index
    %c1_23 = arith.constant 1 : index
    %c1_24 = arith.constant 1 : index
    %c0_25 = arith.constant 0 : index
    %33 = vector.load %arg1[%c0_22, %c1_23, %c1_24, %c0_25] : memref<1x10x10x8xf32, #tpu.memory_space<vmem>>, vector<1x1x8x8xf32>
    %34 = vector.shape_cast %33 : vector<1x1x8x8xf32> to vector<8x8xf32>
    %35 = vector.extract_strided_slice %0 {offsets = [4, 0, 0], sizes = [1, 1, 8], strides = [1, 1, 1]} : vector<9x1x8xf32> to vector<1x1x8xf32>
    %36 = vector.shape_cast %35 : vector<1x1x8xf32> to vector<1x8xf32>
    %37 = vector.broadcast %36 : vector<1x8xf32> to vector<8x8xf32>
    %38 = arith.mulf %34, %37 : vector<8x8xf32>
    %39 = arith.addf %32, %38 : vector<8x8xf32>
    %c0_26 = arith.constant 0 : index
    %c1_27 = arith.constant 1 : index
    %c2_28 = arith.constant 2 : index
    %c0_29 = arith.constant 0 : index
    %40 = vector.load %arg1[%c0_26, %c1_27, %c2_28, %c0_29] : memref<1x10x10x8xf32, #tpu.memory_space<vmem>>, vector<1x1x8x8xf32>
    %41 = vector.shape_cast %40 : vector<1x1x8x8xf32> to vector<8x8xf32>
    %42 = vector.extract_strided_slice %0 {offsets = [5, 0, 0], sizes = [1, 1, 8], strides = [1, 1, 1]} : vector<9x1x8xf32> to vector<1x1x8xf32>
    %43 = vector.shape_cast %42 : vector<1x1x8xf32> to vector<1x8xf32>
    %44 = vector.broadcast %43 : vector<1x8xf32> to vector<8x8xf32>
    %45 = arith.mulf %41, %44 : vector<8x8xf32>
    %46 = arith.addf %39, %45 : vector<8x8xf32>
    %c0_30 = arith.constant 0 : index
    %c2_31 = arith.constant 2 : index
    %c0_32 = arith.constant 0 : index
    %c0_33 = arith.constant 0 : index
    %47 = vector.load %arg1[%c0_30, %c2_31, %c0_32, %c0_33] : memref<1x10x10x8xf32, #tpu.memory_space<vmem>>, vector<1x1x8x8xf32>
    %48 = vector.shape_cast %47 : vector<1x1x8x8xf32> to vector<8x8xf32>
    %49 = vector.extract_strided_slice %0 {offsets = [6, 0, 0], sizes = [1, 1, 8], strides = [1, 1, 1]} : vector<9x1x8xf32> to vector<1x1x8xf32>
    %50 = vector.shape_cast %49 : vector<1x1x8xf32> to vector<1x8xf32>
    %51 = vector.broadcast %50 : vector<1x8xf32> to vector<8x8xf32>
    %52 = arith.mulf %48, %51 : vector<8x8xf32>
    %53 = arith.addf %46, %52 : vector<8x8xf32>
    %c0_34 = arith.constant 0 : index
    %c2_35 = arith.constant 2 : index
    %c1_36 = arith.constant 1 : index
    %c0_37 = arith.constant 0 : index
    %54 = vector.load %arg1[%c0_34, %c2_35, %c1_36, %c0_37] : memref<1x10x10x8xf32, #tpu.memory_space<vmem>>, vector<1x1x8x8xf32>
    %55 = vector.shape_cast %54 : vector<1x1x8x8xf32> to vector<8x8xf32>
    %56 = vector.extract_strided_slice %0 {offsets = [7, 0, 0], sizes = [1, 1, 8], strides = [1, 1, 1]} : vector<9x1x8xf32> to vector<1x1x8xf32>
    %57 = vector.shape_cast %56 : vector<1x1x8xf32> to vector<1x8xf32>
    %58 = vector.broadcast %57 : vector<1x8xf32> to vector<8x8xf32>
    %59 = arith.mulf %55, %58 : vector<8x8xf32>
    %60 = arith.addf %53, %59 : vector<8x8xf32>
    %c0_38 = arith.constant 0 : index
    %c2_39 = arith.constant 2 : index
    %c2_40 = arith.constant 2 : index
    %c0_41 = arith.constant 0 : index
    %61 = vector.load %arg1[%c0_38, %c2_39, %c2_40, %c0_41] : memref<1x10x10x8xf32, #tpu.memory_space<vmem>>, vector<1x1x8x8xf32>
    %62 = vector.shape_cast %61 : vector<1x1x8x8xf32> to vector<8x8xf32>
    %63 = vector.extract_strided_slice %0 {offsets = [8, 0, 0], sizes = [1, 1, 8], strides = [1, 1, 1]} : vector<9x1x8xf32> to vector<1x1x8xf32>
    %64 = vector.shape_cast %63 : vector<1x1x8xf32> to vector<1x8xf32>
    %65 = vector.broadcast %64 : vector<1x8xf32> to vector<8x8xf32>
    %66 = arith.mulf %62, %65 : vector<8x8xf32>
    %67 = arith.addf %60, %66 : vector<8x8xf32>
    %68 = vector.broadcast %1 : vector<1x8xf32> to vector<8x8xf32>
    %69 = arith.addf %67, %68 : vector<8x8xf32>
    %cst_42 = arith.constant 0.000000e+00 : f32
    %70 = vector.broadcast %cst_42 : f32 to vector<8x8xf32>
    %71 = arith.maximumf %69, %70 : vector<8x8xf32>
    %cst_43 = arith.constant dense<0.000000e+00> : vector<8x16xf32>
    %72 = tpu.matmul %71, %2, %cst_43 {dimension_numbers = #tpu.dot_dimension_numbers<[1], [0], [0], [1], [0, 0, 1, 1], [], []>} : vector<8x8xf32>, vector<8x16xf32>, vector<8x16xf32> -> vector<8x16xf32>
    %73 = vector.broadcast %3 : vector<1x16xf32> to vector<8x16xf32>
    %74 = arith.addf %72, %73 : vector<8x16xf32>
    %cst_44 = arith.constant 0.000000e+00 : f32
    %75 = vector.broadcast %cst_44 : f32 to vector<8x16xf32>
    %76 = arith.maximumf %74, %75 : vector<8x16xf32>
    %c0_45 = arith.constant 0 : index
    %c0_46 = arith.constant 0 : index
    %c0_47 = arith.constant 0 : index
    %c0_48 = arith.constant 0 : index
    %77 = vector.load %arg6[%c0_45, %c0_46, %c0_47, %c0_48] : memref<1x8x8x16xf32, #tpu.memory_space<vmem>>, vector<1x1x8x16xf32>
    %78 = vector.shape_cast %77 : vector<1x1x8x16xf32> to vector<8x16xf32>
    %79 = vector.shape_cast %76 : vector<8x16xf32> to vector<1x1x8x16xf32>
    tpu.vector_store %arg6[%c0_45, %c0_46, %c0_47, %c0_48], %79 {strides = array<i32>} : memref<1x8x8x16xf32, #tpu.memory_space<vmem>>, vector<1x1x8x16xf32>,
    %cst_49 = arith.constant 0.000000e+00 : f32
    %80 = vector.broadcast %cst_49 : f32 to vector<8x8xf32>
    %c0_50 = arith.constant 0 : index
    %c1_51 = arith.constant 1 : index
    %c0_52 = arith.constant 0 : index
    %c0_53 = arith.constant 0 : index
    %81 = vector.load %arg1[%c0_50, %c1_51, %c0_52, %c0_53] : memref<1x10x10x8xf32, #tpu.memory_space<vmem>>, vector<1x1x8x8xf32>
    %82 = vector.shape_cast %81 : vector<1x1x8x8xf32> to vector<8x8xf32>
    %83 = vector.extract_strided_slice %0 {offsets = [0, 0, 0], sizes = [1, 1, 8], strides = [1, 1, 1]} : vector<9x1x8xf32> to vector<1x1x8xf32>
    %84 = vector.shape_cast %83 : vector<1x1x8xf32> to vector<1x8xf32>
    %85 = vector.broadcast %84 : vector<1x8xf32> to vector<8x8xf32>
    %86 = arith.mulf %82, %85 : vector<8x8xf32>
    %87 = arith.addf %80, %86 : vector<8x8xf32>
    %c0_54 = arith.constant 0 : index
    %c1_55 = arith.constant 1 : index
    %c1_56 = arith.constant 1 : index
    %c0_57 = arith.constant 0 : index
    %88 = vector.load %arg1[%c0_54, %c1_55, %c1_56, %c0_57] : memref<1x10x10x8xf32, #tpu.memory_space<vmem>>, vector<1x1x8x8xf32>
    %89 = vector.shape_cast %88 : vector<1x1x8x8xf32> to vector<8x8xf32>
    %90 = vector.extract_strided_slice %0 {offsets = [1, 0, 0], sizes = [1, 1, 8], strides = [1, 1, 1]} : vector<9x1x8xf32> to vector<1x1x8xf32>
    %91 = vector.shape_cast %90 : vector<1x1x8xf32> to vector<1x8xf32>
    %92 = vector.broadcast %91 : vector<1x8xf32> to vector<8x8xf32>
    %93 = arith.mulf %89, %92 : vector<8x8xf32>
    %94 = arith.addf %87, %93 : vector<8x8xf32>
    %c0_58 = arith.constant 0 : index
    %c1_59 = arith.constant 1 : index
    %c2_60 = arith.constant 2 : index
    %c0_61 = arith.constant 0 : index
    %95 = vector.load %arg1[%c0_58, %c1_59, %c2_60, %c0_61] : memref<1x10x10x8xf32, #tpu.memory_space<vmem>>, vector<1x1x8x8xf32>
    %96 = vector.shape_cast %95 : vector<1x1x8x8xf32> to vector<8x8xf32>
    %97 = vector.extract_strided_slice %0 {offsets = [2, 0, 0], sizes = [1, 1, 8], strides = [1, 1, 1]} : vector<9x1x8xf32> to vector<1x1x8xf32>
    %98 = vector.shape_cast %97 : vector<1x1x8xf32> to vector<1x8xf32>
    %99 = vector.broadcast %98 : vector<1x8xf32> to vector<8x8xf32>
    %100 = arith.mulf %96, %99 : vector<8x8xf32>
    %101 = arith.addf %94, %100 : vector<8x8xf32>
    %c0_62 = arith.constant 0 : index
    %c2_63 = arith.constant 2 : index
    %c0_64 = arith.constant 0 : index
    %c0_65 = arith.constant 0 : index
    %102 = vector.load %arg1[%c0_62, %c2_63, %c0_64, %c0_65] : memref<1x10x10x8xf32, #tpu.memory_space<vmem>>, vector<1x1x8x8xf32>
    %103 = vector.shape_cast %102 : vector<1x1x8x8xf32> to vector<8x8xf32>
    %104 = vector.extract_strided_slice %0 {offsets = [3, 0, 0], sizes = [1, 1, 8], strides = [1, 1, 1]} : vector<9x1x8xf32> to vector<1x1x8xf32>
    %105 = vector.shape_cast %104 : vector<1x1x8xf32> to vector<1x8xf32>
    %106 = vector.broadcast %105 : vector<1x8xf32> to vector<8x8xf32>
    %107 = arith.mulf %103, %106 : vector<8x8xf32>
    %108 = arith.addf %101, %107 : vector<8x8xf32>
    %c0_66 = arith.constant 0 : index
    %c2_67 = arith.constant 2 : index
    %c1_68 = arith.constant 1 : index
    %c0_69 = arith.constant 0 : index
    %109 = vector.load %arg1[%c0_66, %c2_67, %c1_68, %c0_69] : memref<1x10x10x8xf32, #tpu.memory_space<vmem>>, vector<1x1x8x8xf32>
    %110 = vector.shape_cast %109 : vector<1x1x8x8xf32> to vector<8x8xf32>
    %111 = vector.extract_strided_slice %0 {offsets = [4, 0, 0], sizes = [1, 1, 8], strides = [1, 1, 1]} : vector<9x1x8xf32> to vector<1x1x8xf32>
    %112 = vector.shape_cast %111 : vector<1x1x8xf32> to vector<1x8xf32>
    %113 = vector.broadcast %112 : vector<1x8xf32> to vector<8x8xf32>
    %114 = arith.mulf %110, %113 : vector<8x8xf32>
    %115 = arith.addf %108, %114 : vector<8x8xf32>
    %c0_70 = arith.constant 0 : index
    %c2_71 = arith.constant 2 : index
    %c2_72 = arith.constant 2 : index
    %c0_73 = arith.constant 0 : index
    %116 = vector.load %arg1[%c0_70, %c2_71, %c2_72, %c0_73] : memref<1x10x10x8xf32, #tpu.memory_space<vmem>>, vector<1x1x8x8xf32>
    %117 = vector.shape_cast %116 : vector<1x1x8x8xf32> to vector<8x8xf32>
    %118 = vector.extract_strided_slice %0 {offsets = [5, 0, 0], sizes = [1, 1, 8], strides = [1, 1, 1]} : vector<9x1x8xf32> to vector<1x1x8xf32>
    %119 = vector.shape_cast %118 : vector<1x1x8xf32> to vector<1x8xf32>
    %120 = vector.broadcast %119 : vector<1x8xf32> to vector<8x8xf32>
    %121 = arith.mulf %117, %120 : vector<8x8xf32>
    %122 = arith.addf %115, %121 : vector<8x8xf32>
    %c0_74 = arith.constant 0 : index
    %c3 = arith.constant 3 : index
    %c0_75 = arith.constant 0 : index
    %c0_76 = arith.constant 0 : index
    %123 = vector.load %arg1[%c0_74, %c3, %c0_75, %c0_76] : memref<1x10x10x8xf32, #tpu.memory_space<vmem>>, vector<1x1x8x8xf32>
    %124 = vector.shape_cast %123 : vector<1x1x8x8xf32> to vector<8x8xf32>
    %125 = vector.extract_strided_slice %0 {offsets = [6, 0, 0], sizes = [1, 1, 8], strides = [1, 1, 1]} : vector<9x1x8xf32> to vector<1x1x8xf32>
    %126 = vector.shape_cast %125 : vector<1x1x8xf32> to vector<1x8xf32>
    %127 = vector.broadcast %126 : vector<1x8xf32> to vector<8x8xf32>
    %128 = arith.mulf %124, %127 : vector<8x8xf32>
    %129 = arith.addf %122, %128 : vector<8x8xf32>
    %c0_77 = arith.constant 0 : index
    %c3_78 = arith.constant 3 : index
    %c1_79 = arith.constant 1 : index
    %c0_80 = arith.constant 0 : index
    %130 = vector.load %arg1[%c0_77, %c3_78, %c1_79, %c0_80] : memref<1x10x10x8xf32, #tpu.memory_space<vmem>>, vector<1x1x8x8xf32>
    %131 = vector.shape_cast %130 : vector<1x1x8x8xf32> to vector<8x8xf32>
    %132 = vector.extract_strided_slice %0 {offsets = [7, 0, 0], sizes = [1, 1, 8], strides = [1, 1, 1]} : vector<9x1x8xf32> to vector<1x1x8xf32>
    %133 = vector.shape_cast %132 : vector<1x1x8xf32> to vector<1x8xf32>
    %134 = vector.broadcast %133 : vector<1x8xf32> to vector<8x8xf32>
    %135 = arith.mulf %131, %134 : vector<8x8xf32>
    %136 = arith.addf %129, %135 : vector<8x8xf32>
    %c0_81 = arith.constant 0 : index
    %c3_82 = arith.constant 3 : index
    %c2_83 = arith.constant 2 : index
    %c0_84 = arith.constant 0 : index
    %137 = vector.load %arg1[%c0_81, %c3_82, %c2_83, %c0_84] : memref<1x10x10x8xf32, #tpu.memory_space<vmem>>, vector<1x1x8x8xf32>
    %138 = vector.shape_cast %137 : vector<1x1x8x8xf32> to vector<8x8xf32>
    %139 = vector.extract_strided_slice %0 {offsets = [8, 0, 0], sizes = [1, 1, 8], strides = [1, 1, 1]} : vector<9x1x8xf32> to vector<1x1x8xf32>
    %140 = vector.shape_cast %139 : vector<1x1x8xf32> to vector<1x8xf32>
    %141 = vector.broadcast %140 : vector<1x8xf32> to vector<8x8xf32>
    %142 = arith.mulf %138, %141 : vector<8x8xf32>
    %143 = arith.addf %136, %142 : vector<8x8xf32>
    %144 = vector.broadcast %1 : vector<1x8xf32> to vector<8x8xf32>
    %145 = arith.addf %143, %144 : vector<8x8xf32>
    %cst_85 = arith.constant 0.000000e+00 : f32
    %146 = vector.broadcast %cst_85 : f32 to vector<8x8xf32>
    %147 = arith.maximumf %145, %146 : vector<8x8xf32>
    %cst_86 = arith.constant dense<0.000000e+00> : vector<8x16xf32>
    %148 = tpu.matmul %147, %2, %cst_86 {dimension_numbers = #tpu.dot_dimension_numbers<[1], [0], [0], [1], [0, 0, 1, 1], [], []>} : vector<8x8xf32>, vector<8x16xf32>, vector<8x16xf32> -> vector<8x16xf32>
    %149 = vector.broadcast %3 : vector<1x16xf32> to vector<8x16xf32>
    %150 = arith.addf %148, %149 : vector<8x16xf32>
    %cst_87 = arith.constant 0.000000e+00 : f32
    %151 = vector.broadcast %cst_87 : f32 to vector<8x16xf32>
    %152 = arith.maximumf %150, %151 : vector<8x16xf32>
    %c0_88 = arith.constant 0 : index
    %c1_89 = arith.constant 1 : index
    %c0_90 = arith.constant 0 : index
    %c0_91 = arith.constant 0 : index
    %153 = vector.load %arg6[%c0_88, %c1_89, %c0_90, %c0_91] : memref<1x8x8x16xf32, #tpu.memory_space<vmem>>, vector<1x1x8x16xf32>
    %154 = vector.shape_cast %153 : vector<1x1x8x16xf32> to vector<8x16xf32>
    %155 = vector.shape_cast %152 : vector<8x16xf32> to vector<1x1x8x16xf32>
    tpu.vector_store %arg6[%c0_88, %c1_89, %c0_90, %c0_91], %155 {strides = array<i32>} : memref<1x8x8x16xf32, #tpu.memory_space<vmem>>, vector<1x1x8x16xf32>,
    %cst_92 = arith.constant 0.000000e+00 : f32
    %156 = vector.broadcast %cst_92 : f32 to vector<8x8xf32>
    %c0_93 = arith.constant 0 : index
    %c2_94 = arith.constant 2 : index
    %c0_95 = arith.constant 0 : index
    %c0_96 = arith.constant 0 : index
    %157 = vector.load %arg1[%c0_93, %c2_94, %c0_95, %c0_96] : memref<1x10x10x8xf32, #tpu.memory_space<vmem>>, vector<1x1x8x8xf32>
    %158 = vector.shape_cast %157 : vector<1x1x8x8xf32> to vector<8x8xf32>
    %159 = vector.extract_strided_slice %0 {offsets = [0, 0, 0], sizes = [1, 1, 8], strides = [1, 1, 1]} : vector<9x1x8xf32> to vector<1x1x8xf32>
    %160 = vector.shape_cast %159 : vector<1x1x8xf32> to vector<1x8xf32>
    %161 = vector.broadcast %160 : vector<1x8xf32> to vector<8x8xf32>
    %162 = arith.mulf %158, %161 : vector<8x8xf32>
    %163 = arith.addf %156, %162 : vector<8x8xf32>
    %c0_97 = arith.constant 0 : index
    %c2_98 = arith.constant 2 : index
    %c1_99 = arith.constant 1 : index
    %c0_100 = arith.constant 0 : index
    %164 = vector.load %arg1[%c0_97, %c2_98, %c1_99, %c0_100] : memref<1x10x10x8xf32, #tpu.memory_space<vmem>>, vector<1x1x8x8xf32>
    %165 = vector.shape_cast %164 : vector<1x1x8x8xf32> to vector<8x8xf32>
    %166 = vector.extract_strided_slice %0 {offsets = [1, 0, 0], sizes = [1, 1, 8], strides = [1, 1, 1]} : vector<9x1x8xf32> to vector<1x1x8xf32>
    %167 = vector.shape_cast %166 : vector<1x1x8xf32> to vector<1x8xf32>
    %168 = vector.broadcast %167 : vector<1x8xf32> to vector<8x8xf32>
    %169 = arith.mulf %165, %168 : vector<8x8xf32>
    %170 = arith.addf %163, %169 : vector<8x8xf32>
    %c0_101 = arith.constant 0 : index
    %c2_102 = arith.constant 2 : index
    %c2_103 = arith.constant 2 : index
    %c0_104 = arith.constant 0 : index
    %171 = vector.load %arg1[%c0_101, %c2_102, %c2_103, %c0_104] : memref<1x10x10x8xf32, #tpu.memory_space<vmem>>, vector<1x1x8x8xf32>
    %172 = vector.shape_cast %171 : vector<1x1x8x8xf32> to vector<8x8xf32>
    %173 = vector.extract_strided_slice %0 {offsets = [2, 0, 0], sizes = [1, 1, 8], strides = [1, 1, 1]} : vector<9x1x8xf32> to vector<1x1x8xf32>
    %174 = vector.shape_cast %173 : vector<1x1x8xf32> to vector<1x8xf32>
    %175 = vector.broadcast %174 : vector<1x8xf32> to vector<8x8xf32>
    %176 = arith.mulf %172, %175 : vector<8x8xf32>
    %177 = arith.addf %170, %176 : vector<8x8xf32>
    %c0_105 = arith.constant 0 : index
    %c3_106 = arith.constant 3 : index
    %c0_107 = arith.constant 0 : index
    %c0_108 = arith.constant 0 : index
    %178 = vector.load %arg1[%c0_105, %c3_106, %c0_107, %c0_108] : memref<1x10x10x8xf32, #tpu.memory_space<vmem>>, vector<1x1x8x8xf32>
    %179 = vector.shape_cast %178 : vector<1x1x8x8xf32> to vector<8x8xf32>
    %180 = vector.extract_strided_slice %0 {offsets = [3, 0, 0], sizes = [1, 1, 8], strides = [1, 1, 1]} : vector<9x1x8xf32> to vector<1x1x8xf32>
    %181 = vector.shape_cast %180 : vector<1x1x8xf32> to vector<1x8xf32>
    %182 = vector.broadcast %181 : vector<1x8xf32> to vector<8x8xf32>
    %183 = arith.mulf %179, %182 : vector<8x8xf32>
    %184 = arith.addf %177, %183 : vector<8x8xf32>
    %c0_109 = arith.constant 0 : index
    %c3_110 = arith.constant 3 : index
    %c1_111 = arith.constant 1 : index
    %c0_112 = arith.constant 0 : index
    %185 = vector.load %arg1[%c0_109, %c3_110, %c1_111, %c0_112] : memref<1x10x10x8xf32, #tpu.memory_space<vmem>>, vector<1x1x8x8xf32>
    %186 = vector.shape_cast %185 : vector<1x1x8x8xf32> to vector<8x8xf32>
    %187 = vector.extract_strided_slice %0 {offsets = [4, 0, 0], sizes = [1, 1, 8], strides = [1, 1, 1]} : vector<9x1x8xf32> to vector<1x1x8xf32>
    %188 = vector.shape_cast %187 : vector<1x1x8xf32> to vector<1x8xf32>
    %189 = vector.broadcast %188 : vector<1x8xf32> to vector<8x8xf32>
    %190 = arith.mulf %186, %189 : vector<8x8xf32>
    %191 = arith.addf %184, %190 : vector<8x8xf32>
    %c0_113 = arith.constant 0 : index
    %c3_114 = arith.constant 3 : index
    %c2_115 = arith.constant 2 : index
    %c0_116 = arith.constant 0 : index
    %192 = vector.load %arg1[%c0_113, %c3_114, %c2_115, %c0_116] : memref<1x10x10x8xf32, #tpu.memory_space<vmem>>, vector<1x1x8x8xf32>
    %193 = vector.shape_cast %192 : vector<1x1x8x8xf32> to vector<8x8xf32>
    %194 = vector.extract_strided_slice %0 {offsets = [5, 0, 0], sizes = [1, 1, 8], strides = [1, 1, 1]} : vector<9x1x8xf32> to vector<1x1x8xf32>
    %195 = vector.shape_cast %194 : vector<1x1x8xf32> to vector<1x8xf32>
    %196 = vector.broadcast %195 : vector<1x8xf32> to vector<8x8xf32>
    %197 = arith.mulf %193, %196 : vector<8x8xf32>
    %198 = arith.addf %191, %197 : vector<8x8xf32>
    %c0_117 = arith.constant 0 : index
    %c4 = arith.constant 4 : index
    %c0_118 = arith.constant 0 : index
    %c0_119 = arith.constant 0 : index
    %199 = vector.load %arg1[%c0_117, %c4, %c0_118, %c0_119] : memref<1x10x10x8xf32, #tpu.memory_space<vmem>>, vector<1x1x8x8xf32>
    %200 = vector.shape_cast %199 : vector<1x1x8x8xf32> to vector<8x8xf32>
    %201 = vector.extract_strided_slice %0 {offsets = [6, 0, 0], sizes = [1, 1, 8], strides = [1, 1, 1]} : vector<9x1x8xf32> to vector<1x1x8xf32>
    %202 = vector.shape_cast %201 : vector<1x1x8xf32> to vector<1x8xf32>
    %203 = vector.broadcast %202 : vector<1x8xf32> to vector<8x8xf32>
    %204 = arith.mulf %200, %203 : vector<8x8xf32>
    %205 = arith.addf %198, %204 : vector<8x8xf32>
    %c0_120 = arith.constant 0 : index
    %c4_121 = arith.constant 4 : index
    %c1_122 = arith.constant 1 : index
    %c0_123 = arith.constant 0 : index
    %206 = vector.load %arg1[%c0_120, %c4_121, %c1_122, %c0_123] : memref<1x10x10x8xf32, #tpu.memory_space<vmem>>, vector<1x1x8x8xf32>
    %207 = vector.shape_cast %206 : vector<1x1x8x8xf32> to vector<8x8xf32>
    %208 = vector.extract_strided_slice %0 {offsets = [7, 0, 0], sizes = [1, 1, 8], strides = [1, 1, 1]} : vector<9x1x8xf32> to vector<1x1x8xf32>
    %209 = vector.shape_cast %208 : vector<1x1x8xf32> to vector<1x8xf32>
    %210 = vector.broadcast %209 : vector<1x8xf32> to vector<8x8xf32>
    %211 = arith.mulf %207, %210 : vector<8x8xf32>
    %212 = arith.addf %205, %211 : vector<8x8xf32>
    %c0_124 = arith.constant 0 : index
    %c4_125 = arith.constant 4 : index
    %c2_126 = arith.constant 2 : index
    %c0_127 = arith.constant 0 : index
    %213 = vector.load %arg1[%c0_124, %c4_125, %c2_126, %c0_127] : memref<1x10x10x8xf32, #tpu.memory_space<vmem>>, vector<1x1x8x8xf32>
    %214 = vector.shape_cast %213 : vector<1x1x8x8xf32> to vector<8x8xf32>
    %215 = vector.extract_strided_slice %0 {offsets = [8, 0, 0], sizes = [1, 1, 8], strides = [1, 1, 1]} : vector<9x1x8xf32> to vector<1x1x8xf32>
    %216 = vector.shape_cast %215 : vector<1x1x8xf32> to vector<1x8xf32>
    %217 = vector.broadcast %216 : vector<1x8xf32> to vector<8x8xf32>
    %218 = arith.mulf %214, %217 : vector<8x8xf32>
    %219 = arith.addf %212, %218 : vector<8x8xf32>
    %220 = vector.broadcast %1 : vector<1x8xf32> to vector<8x8xf32>
    %221 = arith.addf %219, %220 : vector<8x8xf32>
    %cst_128 = arith.constant 0.000000e+00 : f32
    %222 = vector.broadcast %cst_128 : f32 to vector<8x8xf32>
    %223 = arith.maximumf %221, %222 : vector<8x8xf32>
    %cst_129 = arith.constant dense<0.000000e+00> : vector<8x16xf32>
    %224 = tpu.matmul %223, %2, %cst_129 {dimension_numbers = #tpu.dot_dimension_numbers<[1], [0], [0], [1], [0, 0, 1, 1], [], []>} : vector<8x8xf32>, vector<8x16xf32>, vector<8x16xf32> -> vector<8x16xf32>
    %225 = vector.broadcast %3 : vector<1x16xf32> to vector<8x16xf32>
    %226 = arith.addf %224, %225 : vector<8x16xf32>
    %cst_130 = arith.constant 0.000000e+00 : f32
    %227 = vector.broadcast %cst_130 : f32 to vector<8x16xf32>
    %228 = arith.maximumf %226, %227 : vector<8x16xf32>
    %c0_131 = arith.constant 0 : index
    %c2_132 = arith.constant 2 : index
    %c0_133 = arith.constant 0 : index
    %c0_134 = arith.constant 0 : index
    %229 = vector.load %arg6[%c0_131, %c2_132, %c0_133, %c0_134] : memref<1x8x8x16xf32, #tpu.memory_space<vmem>>, vector<1x1x8x16xf32>
    %230 = vector.shape_cast %229 : vector<1x1x8x16xf32> to vector<8x16xf32>
    %231 = vector.shape_cast %228 : vector<8x16xf32> to vector<1x1x8x16xf32>
    tpu.vector_store %arg6[%c0_131, %c2_132, %c0_133, %c0_134], %231 {strides = array<i32>} : memref<1x8x8x16xf32, #tpu.memory_space<vmem>>, vector<1x1x8x16xf32>,
    %cst_135 = arith.constant 0.000000e+00 : f32
    %232 = vector.broadcast %cst_135 : f32 to vector<8x8xf32>
    %c0_136 = arith.constant 0 : index
    %c3_137 = arith.constant 3 : index
    %c0_138 = arith.constant 0 : index
    %c0_139 = arith.constant 0 : index
    %233 = vector.load %arg1[%c0_136, %c3_137, %c0_138, %c0_139] : memref<1x10x10x8xf32, #tpu.memory_space<vmem>>, vector<1x1x8x8xf32>
    %234 = vector.shape_cast %233 : vector<1x1x8x8xf32> to vector<8x8xf32>
    %235 = vector.extract_strided_slice %0 {offsets = [0, 0, 0], sizes = [1, 1, 8], strides = [1, 1, 1]} : vector<9x1x8xf32> to vector<1x1x8xf32>
    %236 = vector.shape_cast %235 : vector<1x1x8xf32> to vector<1x8xf32>
    %237 = vector.broadcast %236 : vector<1x8xf32> to vector<8x8xf32>
    %238 = arith.mulf %234, %237 : vector<8x8xf32>
    %239 = arith.addf %232, %238 : vector<8x8xf32>
    %c0_140 = arith.constant 0 : index
    %c3_141 = arith.constant 3 : index
    %c1_142 = arith.constant 1 : index
    %c0_143 = arith.constant 0 : index
    %240 = vector.load %arg1[%c0_140, %c3_141, %c1_142, %c0_143] : memref<1x10x10x8xf32, #tpu.memory_space<vmem>>, vector<1x1x8x8xf32>
    %241 = vector.shape_cast %240 : vector<1x1x8x8xf32> to vector<8x8xf32>
    %242 = vector.extract_strided_slice %0 {offsets = [1, 0, 0], sizes = [1, 1, 8], strides = [1, 1, 1]} : vector<9x1x8xf32> to vector<1x1x8xf32>
    %243 = vector.shape_cast %242 : vector<1x1x8xf32> to vector<1x8xf32>
    %244 = vector.broadcast %243 : vector<1x8xf32> to vector<8x8xf32>
    %245 = arith.mulf %241, %244 : vector<8x8xf32>
    %246 = arith.addf %239, %245 : vector<8x8xf32>
    %c0_144 = arith.constant 0 : index
    %c3_145 = arith.constant 3 : index
    %c2_146 = arith.constant 2 : index
    %c0_147 = arith.constant 0 : index
    %247 = vector.load %arg1[%c0_144, %c3_145, %c2_146, %c0_147] : memref<1x10x10x8xf32, #tpu.memory_space<vmem>>, vector<1x1x8x8xf32>
    %248 = vector.shape_cast %247 : vector<1x1x8x8xf32> to vector<8x8xf32>
    %249 = vector.extract_strided_slice %0 {offsets = [2, 0, 0], sizes = [1, 1, 8], strides = [1, 1, 1]} : vector<9x1x8xf32> to vector<1x1x8xf32>
    %250 = vector.shape_cast %249 : vector<1x1x8xf32> to vector<1x8xf32>
    %251 = vector.broadcast %250 : vector<1x8xf32> to vector<8x8xf32>
    %252 = arith.mulf %248, %251 : vector<8x8xf32>
    %253 = arith.addf %246, %252 : vector<8x8xf32>
    %c0_148 = arith.constant 0 : index
    %c4_149 = arith.constant 4 : index
    %c0_150 = arith.constant 0 : index
    %c0_151 = arith.constant 0 : index
    %254 = vector.load %arg1[%c0_148, %c4_149, %c0_150, %c0_151] : memref<1x10x10x8xf32, #tpu.memory_space<vmem>>, vector<1x1x8x8xf32>
    %255 = vector.shape_cast %254 : vector<1x1x8x8xf32> to vector<8x8xf32>
    %256 = vector.extract_strided_slice %0 {offsets = [3, 0, 0], sizes = [1, 1, 8], strides = [1, 1, 1]} : vector<9x1x8xf32> to vector<1x1x8xf32>
    %257 = vector.shape_cast %256 : vector<1x1x8xf32> to vector<1x8xf32>
    %258 = vector.broadcast %257 : vector<1x8xf32> to vector<8x8xf32>
    %259 = arith.mulf %255, %258 : vector<8x8xf32>
    %260 = arith.addf %253, %259 : vector<8x8xf32>
    %c0_152 = arith.constant 0 : index
    %c4_153 = arith.constant 4 : index
    %c1_154 = arith.constant 1 : index
    %c0_155 = arith.constant 0 : index
    %261 = vector.load %arg1[%c0_152, %c4_153, %c1_154, %c0_155] : memref<1x10x10x8xf32, #tpu.memory_space<vmem>>, vector<1x1x8x8xf32>
    %262 = vector.shape_cast %261 : vector<1x1x8x8xf32> to vector<8x8xf32>
    %263 = vector.extract_strided_slice %0 {offsets = [4, 0, 0], sizes = [1, 1, 8], strides = [1, 1, 1]} : vector<9x1x8xf32> to vector<1x1x8xf32>
    %264 = vector.shape_cast %263 : vector<1x1x8xf32> to vector<1x8xf32>
    %265 = vector.broadcast %264 : vector<1x8xf32> to vector<8x8xf32>
    %266 = arith.mulf %262, %265 : vector<8x8xf32>
    %267 = arith.addf %260, %266 : vector<8x8xf32>
    %c0_156 = arith.constant 0 : index
    %c4_157 = arith.constant 4 : index
    %c2_158 = arith.constant 2 : index
    %c0_159 = arith.constant 0 : index
    %268 = vector.load %arg1[%c0_156, %c4_157, %c2_158, %c0_159] : memref<1x10x10x8xf32, #tpu.memory_space<vmem>>, vector<1x1x8x8xf32>
    %269 = vector.shape_cast %268 : vector<1x1x8x8xf32> to vector<8x8xf32>
    %270 = vector.extract_strided_slice %0 {offsets = [5, 0, 0], sizes = [1, 1, 8], strides = [1, 1, 1]} : vector<9x1x8xf32> to vector<1x1x8xf32>
    %271 = vector.shape_cast %270 : vector<1x1x8xf32> to vector<1x8xf32>
    %272 = vector.broadcast %271 : vector<1x8xf32> to vector<8x8xf32>
    %273 = arith.mulf %269, %272 : vector<8x8xf32>
    %274 = arith.addf %267, %273 : vector<8x8xf32>
    %c0_160 = arith.constant 0 : index
    %c5 = arith.constant 5 : index
    %c0_161 = arith.constant 0 : index
    %c0_162 = arith.constant 0 : index
    %275 = vector.load %arg1[%c0_160, %c5, %c0_161, %c0_162] : memref<1x10x10x8xf32, #tpu.memory_space<vmem>>, vector<1x1x8x8xf32>
    %276 = vector.shape_cast %275 : vector<1x1x8x8xf32> to vector<8x8xf32>
    %277 = vector.extract_strided_slice %0 {offsets = [6, 0, 0], sizes = [1, 1, 8], strides = [1, 1, 1]} : vector<9x1x8xf32> to vector<1x1x8xf32>
    %278 = vector.shape_cast %277 : vector<1x1x8xf32> to vector<1x8xf32>
    %279 = vector.broadcast %278 : vector<1x8xf32> to vector<8x8xf32>
    %280 = arith.mulf %276, %279 : vector<8x8xf32>
    %281 = arith.addf %274, %280 : vector<8x8xf32>
    %c0_163 = arith.constant 0 : index
    %c5_164 = arith.constant 5 : index
    %c1_165 = arith.constant 1 : index
    %c0_166 = arith.constant 0 : index
    %282 = vector.load %arg1[%c0_163, %c5_164, %c1_165, %c0_166] : memref<1x10x10x8xf32, #tpu.memory_space<vmem>>, vector<1x1x8x8xf32>
    %283 = vector.shape_cast %282 : vector<1x1x8x8xf32> to vector<8x8xf32>
    %284 = vector.extract_strided_slice %0 {offsets = [7, 0, 0], sizes = [1, 1, 8], strides = [1, 1, 1]} : vector<9x1x8xf32> to vector<1x1x8xf32>
    %285 = vector.shape_cast %284 : vector<1x1x8xf32> to vector<1x8xf32>
    %286 = vector.broadcast %285 : vector<1x8xf32> to vector<8x8xf32>
    %287 = arith.mulf %283, %286 : vector<8x8xf32>
    %288 = arith.addf %281, %287 : vector<8x8xf32>
    %c0_167 = arith.constant 0 : index
    %c5_168 = arith.constant 5 : index
    %c2_169 = arith.constant 2 : index
    %c0_170 = arith.constant 0 : index
    %289 = vector.load %arg1[%c0_167, %c5_168, %c2_169, %c0_170] : memref<1x10x10x8xf32, #tpu.memory_space<vmem>>, vector<1x1x8x8xf32>
    %290 = vector.shape_cast %289 : vector<1x1x8x8xf32> to vector<8x8xf32>
    %291 = vector.extract_strided_slice %0 {offsets = [8, 0, 0], sizes = [1, 1, 8], strides = [1, 1, 1]} : vector<9x1x8xf32> to vector<1x1x8xf32>
    %292 = vector.shape_cast %291 : vector<1x1x8xf32> to vector<1x8xf32>
    %293 = vector.broadcast %292 : vector<1x8xf32> to vector<8x8xf32>
    %294 = arith.mulf %290, %293 : vector<8x8xf32>
    %295 = arith.addf %288, %294 : vector<8x8xf32>
    %296 = vector.broadcast %1 : vector<1x8xf32> to vector<8x8xf32>
    %297 = arith.addf %295, %296 : vector<8x8xf32>
    %cst_171 = arith.constant 0.000000e+00 : f32
    %298 = vector.broadcast %cst_171 : f32 to vector<8x8xf32>
    %299 = arith.maximumf %297, %298 : vector<8x8xf32>
    %cst_172 = arith.constant dense<0.000000e+00> : vector<8x16xf32>
    %300 = tpu.matmul %299, %2, %cst_172 {dimension_numbers = #tpu.dot_dimension_numbers<[1], [0], [0], [1], [0, 0, 1, 1], [], []>} : vector<8x8xf32>, vector<8x16xf32>, vector<8x16xf32> -> vector<8x16xf32>
    %301 = vector.broadcast %3 : vector<1x16xf32> to vector<8x16xf32>
    %302 = arith.addf %300, %301 : vector<8x16xf32>
    %cst_173 = arith.constant 0.000000e+00 : f32
    %303 = vector.broadcast %cst_173 : f32 to vector<8x16xf32>
    %304 = arith.maximumf %302, %303 : vector<8x16xf32>
    %c0_174 = arith.constant 0 : index
    %c3_175 = arith.constant 3 : index
    %c0_176 = arith.constant 0 : index
    %c0_177 = arith.constant 0 : index
    %305 = vector.load %arg6[%c0_174, %c3_175, %c0_176, %c0_177] : memref<1x8x8x16xf32, #tpu.memory_space<vmem>>, vector<1x1x8x16xf32>
    %306 = vector.shape_cast %305 : vector<1x1x8x16xf32> to vector<8x16xf32>
    %307 = vector.shape_cast %304 : vector<8x16xf32> to vector<1x1x8x16xf32>
    tpu.vector_store %arg6[%c0_174, %c3_175, %c0_176, %c0_177], %307 {strides = array<i32>} : memref<1x8x8x16xf32, #tpu.memory_space<vmem>>, vector<1x1x8x16xf32>,
    %cst_178 = arith.constant 0.000000e+00 : f32
    %308 = vector.broadcast %cst_178 : f32 to vector<8x8xf32>
    %c0_179 = arith.constant 0 : index
    %c4_180 = arith.constant 4 : index
    %c0_181 = arith.constant 0 : index
    %c0_182 = arith.constant 0 : index
    %309 = vector.load %arg1[%c0_179, %c4_180, %c0_181, %c0_182] : memref<1x10x10x8xf32, #tpu.memory_space<vmem>>, vector<1x1x8x8xf32>
    %310 = vector.shape_cast %309 : vector<1x1x8x8xf32> to vector<8x8xf32>
    %311 = vector.extract_strided_slice %0 {offsets = [0, 0, 0], sizes = [1, 1, 8], strides = [1, 1, 1]} : vector<9x1x8xf32> to vector<1x1x8xf32>
    %312 = vector.shape_cast %311 : vector<1x1x8xf32> to vector<1x8xf32>
    %313 = vector.broadcast %312 : vector<1x8xf32> to vector<8x8xf32>
    %314 = arith.mulf %310, %313 : vector<8x8xf32>
    %315 = arith.addf %308, %314 : vector<8x8xf32>
    %c0_183 = arith.constant 0 : index
    %c4_184 = arith.constant 4 : index
    %c1_185 = arith.constant 1 : index
    %c0_186 = arith.constant 0 : index
    %316 = vector.load %arg1[%c0_183, %c4_184, %c1_185, %c0_186] : memref<1x10x10x8xf32, #tpu.memory_space<vmem>>, vector<1x1x8x8xf32>
    %317 = vector.shape_cast %316 : vector<1x1x8x8xf32> to vector<8x8xf32>
    %318 = vector.extract_strided_slice %0 {offsets = [1, 0, 0], sizes = [1, 1, 8], strides = [1, 1, 1]} : vector<9x1x8xf32> to vector<1x1x8xf32>
    %319 = vector.shape_cast %318 : vector<1x1x8xf32> to vector<1x8xf32>
    %320 = vector.broadcast %319 : vector<1x8xf32> to vector<8x8xf32>
    %321 = arith.mulf %317, %320 : vector<8x8xf32>
    %322 = arith.addf %315, %321 : vector<8x8xf32>
    %c0_187 = arith.constant 0 : index
    %c4_188 = arith.constant 4 : index
    %c2_189 = arith.constant 2 : index
    %c0_190 = arith.constant 0 : index
    %323 = vector.load %arg1[%c0_187, %c4_188, %c2_189, %c0_190] : memref<1x10x10x8xf32, #tpu.memory_space<vmem>>, vector<1x1x8x8xf32>
    %324 = vector.shape_cast %323 : vector<1x1x8x8xf32> to vector<8x8xf32>
    %325 = vector.extract_strided_slice %0 {offsets = [2, 0, 0], sizes = [1, 1, 8], strides = [1, 1, 1]} : vector<9x1x8xf32> to vector<1x1x8xf32>
    %326 = vector.shape_cast %325 : vector<1x1x8xf32> to vector<1x8xf32>
    %327 = vector.broadcast %326 : vector<1x8xf32> to vector<8x8xf32>
    %328 = arith.mulf %324, %327 : vector<8x8xf32>
    %329 = arith.addf %322, %328 : vector<8x8xf32>
    %c0_191 = arith.constant 0 : index
    %c5_192 = arith.constant 5 : index
    %c0_193 = arith.constant 0 : index
    %c0_194 = arith.constant 0 : index
    %330 = vector.load %arg1[%c0_191, %c5_192, %c0_193, %c0_194] : memref<1x10x10x8xf32, #tpu.memory_space<vmem>>, vector<1x1x8x8xf32>
    %331 = vector.shape_cast %330 : vector<1x1x8x8xf32> to vector<8x8xf32>
    %332 = vector.extract_strided_slice %0 {offsets = [3, 0, 0], sizes = [1, 1, 8], strides = [1, 1, 1]} : vector<9x1x8xf32> to vector<1x1x8xf32>
    %333 = vector.shape_cast %332 : vector<1x1x8xf32> to vector<1x8xf32>
    %334 = vector.broadcast %333 : vector<1x8xf32> to vector<8x8xf32>
    %335 = arith.mulf %331, %334 : vector<8x8xf32>
    %336 = arith.addf %329, %335 : vector<8x8xf32>
    %c0_195 = arith.constant 0 : index
    %c5_196 = arith.constant 5 : index
    %c1_197 = arith.constant 1 : index
    %c0_198 = arith.constant 0 : index
    %337 = vector.load %arg1[%c0_195, %c5_196, %c1_197, %c0_198] : memref<1x10x10x8xf32, #tpu.memory_space<vmem>>, vector<1x1x8x8xf32>
    %338 = vector.shape_cast %337 : vector<1x1x8x8xf32> to vector<8x8xf32>
    %339 = vector.extract_strided_slice %0 {offsets = [4, 0, 0], sizes = [1, 1, 8], strides = [1, 1, 1]} : vector<9x1x8xf32> to vector<1x1x8xf32>
    %340 = vector.shape_cast %339 : vector<1x1x8xf32> to vector<1x8xf32>
    %341 = vector.broadcast %340 : vector<1x8xf32> to vector<8x8xf32>
    %342 = arith.mulf %338, %341 : vector<8x8xf32>
    %343 = arith.addf %336, %342 : vector<8x8xf32>
    %c0_199 = arith.constant 0 : index
    %c5_200 = arith.constant 5 : index
    %c2_201 = arith.constant 2 : index
    %c0_202 = arith.constant 0 : index
    %344 = vector.load %arg1[%c0_199, %c5_200, %c2_201, %c0_202] : memref<1x10x10x8xf32, #tpu.memory_space<vmem>>, vector<1x1x8x8xf32>
    %345 = vector.shape_cast %344 : vector<1x1x8x8xf32> to vector<8x8xf32>
    %346 = vector.extract_strided_slice %0 {offsets = [5, 0, 0], sizes = [1, 1, 8], strides = [1, 1, 1]} : vector<9x1x8xf32> to vector<1x1x8xf32>
    %347 = vector.shape_cast %346 : vector<1x1x8xf32> to vector<1x8xf32>
    %348 = vector.broadcast %347 : vector<1x8xf32> to vector<8x8xf32>
    %349 = arith.mulf %345, %348 : vector<8x8xf32>
    %350 = arith.addf %343, %349 : vector<8x8xf32>
    %c0_203 = arith.constant 0 : index
    %c6 = arith.constant 6 : index
    %c0_204 = arith.constant 0 : index
    %c0_205 = arith.constant 0 : index
    %351 = vector.load %arg1[%c0_203, %c6, %c0_204, %c0_205] : memref<1x10x10x8xf32, #tpu.memory_space<vmem>>, vector<1x1x8x8xf32>
    %352 = vector.shape_cast %351 : vector<1x1x8x8xf32> to vector<8x8xf32>
    %353 = vector.extract_strided_slice %0 {offsets = [6, 0, 0], sizes = [1, 1, 8], strides = [1, 1, 1]} : vector<9x1x8xf32> to vector<1x1x8xf32>
    %354 = vector.shape_cast %353 : vector<1x1x8xf32> to vector<1x8xf32>
    %355 = vector.broadcast %354 : vector<1x8xf32> to vector<8x8xf32>
    %356 = arith.mulf %352, %355 : vector<8x8xf32>
    %357 = arith.addf %350, %356 : vector<8x8xf32>
    %c0_206 = arith.constant 0 : index
    %c6_207 = arith.constant 6 : index
    %c1_208 = arith.constant 1 : index
    %c0_209 = arith.constant 0 : index
    %358 = vector.load %arg1[%c0_206, %c6_207, %c1_208, %c0_209] : memref<1x10x10x8xf32, #tpu.memory_space<vmem>>, vector<1x1x8x8xf32>
    %359 = vector.shape_cast %358 : vector<1x1x8x8xf32> to vector<8x8xf32>
    %360 = vector.extract_strided_slice %0 {offsets = [7, 0, 0], sizes = [1, 1, 8], strides = [1, 1, 1]} : vector<9x1x8xf32> to vector<1x1x8xf32>
    %361 = vector.shape_cast %360 : vector<1x1x8xf32> to vector<1x8xf32>
    %362 = vector.broadcast %361 : vector<1x8xf32> to vector<8x8xf32>
    %363 = arith.mulf %359, %362 : vector<8x8xf32>
    %364 = arith.addf %357, %363 : vector<8x8xf32>
    %c0_210 = arith.constant 0 : index
    %c6_211 = arith.constant 6 : index
    %c2_212 = arith.constant 2 : index
    %c0_213 = arith.constant 0 : index
    %365 = vector.load %arg1[%c0_210, %c6_211, %c2_212, %c0_213] : memref<1x10x10x8xf32, #tpu.memory_space<vmem>>, vector<1x1x8x8xf32>
    %366 = vector.shape_cast %365 : vector<1x1x8x8xf32> to vector<8x8xf32>
    %367 = vector.extract_strided_slice %0 {offsets = [8, 0, 0], sizes = [1, 1, 8], strides = [1, 1, 1]} : vector<9x1x8xf32> to vector<1x1x8xf32>
    %368 = vector.shape_cast %367 : vector<1x1x8xf32> to vector<1x8xf32>
    %369 = vector.broadcast %368 : vector<1x8xf32> to vector<8x8xf32>
    %370 = arith.mulf %366, %369 : vector<8x8xf32>
    %371 = arith.addf %364, %370 : vector<8x8xf32>
    %372 = vector.broadcast %1 : vector<1x8xf32> to vector<8x8xf32>
    %373 = arith.addf %371, %372 : vector<8x8xf32>
    %cst_214 = arith.constant 0.000000e+00 : f32
    %374 = vector.broadcast %cst_214 : f32 to vector<8x8xf32>
    %375 = arith.maximumf %373, %374 : vector<8x8xf32>
    %cst_215 = arith.constant dense<0.000000e+00> : vector<8x16xf32>
    %376 = tpu.matmul %375, %2, %cst_215 {dimension_numbers = #tpu.dot_dimension_numbers<[1], [0], [0], [1], [0, 0, 1, 1], [], []>} : vector<8x8xf32>, vector<8x16xf32>, vector<8x16xf32> -> vector<8x16xf32>
    %377 = vector.broadcast %3 : vector<1x16xf32> to vector<8x16xf32>
    %378 = arith.addf %376, %377 : vector<8x16xf32>
    %cst_216 = arith.constant 0.000000e+00 : f32
    %379 = vector.broadcast %cst_216 : f32 to vector<8x16xf32>
    %380 = arith.maximumf %378, %379 : vector<8x16xf32>
    %c0_217 = arith.constant 0 : index
    %c4_218 = arith.constant 4 : index
    %c0_219 = arith.constant 0 : index
    %c0_220 = arith.constant 0 : index
    %381 = vector.load %arg6[%c0_217, %c4_218, %c0_219, %c0_220] : memref<1x8x8x16xf32, #tpu.memory_space<vmem>>, vector<1x1x8x16xf32>
    %382 = vector.shape_cast %381 : vector<1x1x8x16xf32> to vector<8x16xf32>
    %383 = vector.shape_cast %380 : vector<8x16xf32> to vector<1x1x8x16xf32>
    tpu.vector_store %arg6[%c0_217, %c4_218, %c0_219, %c0_220], %383 {strides = array<i32>} : memref<1x8x8x16xf32, #tpu.memory_space<vmem>>, vector<1x1x8x16xf32>,
    %cst_221 = arith.constant 0.000000e+00 : f32
    %384 = vector.broadcast %cst_221 : f32 to vector<8x8xf32>
    %c0_222 = arith.constant 0 : index
    %c5_223 = arith.constant 5 : index
    %c0_224 = arith.constant 0 : index
    %c0_225 = arith.constant 0 : index
    %385 = vector.load %arg1[%c0_222, %c5_223, %c0_224, %c0_225] : memref<1x10x10x8xf32, #tpu.memory_space<vmem>>, vector<1x1x8x8xf32>
    %386 = vector.shape_cast %385 : vector<1x1x8x8xf32> to vector<8x8xf32>
    %387 = vector.extract_strided_slice %0 {offsets = [0, 0, 0], sizes = [1, 1, 8], strides = [1, 1, 1]} : vector<9x1x8xf32> to vector<1x1x8xf32>
    %388 = vector.shape_cast %387 : vector<1x1x8xf32> to vector<1x8xf32>
    %389 = vector.broadcast %388 : vector<1x8xf32> to vector<8x8xf32>
    %390 = arith.mulf %386, %389 : vector<8x8xf32>
    %391 = arith.addf %384, %390 : vector<8x8xf32>
    %c0_226 = arith.constant 0 : index
    %c5_227 = arith.constant 5 : index
    %c1_228 = arith.constant 1 : index
    %c0_229 = arith.constant 0 : index
    %392 = vector.load %arg1[%c0_226, %c5_227, %c1_228, %c0_229] : memref<1x10x10x8xf32, #tpu.memory_space<vmem>>, vector<1x1x8x8xf32>
    %393 = vector.shape_cast %392 : vector<1x1x8x8xf32> to vector<8x8xf32>
    %394 = vector.extract_strided_slice %0 {offsets = [1, 0, 0], sizes = [1, 1, 8], strides = [1, 1, 1]} : vector<9x1x8xf32> to vector<1x1x8xf32>
    %395 = vector.shape_cast %394 : vector<1x1x8xf32> to vector<1x8xf32>
    %396 = vector.broadcast %395 : vector<1x8xf32> to vector<8x8xf32>
    %397 = arith.mulf %393, %396 : vector<8x8xf32>
    %398 = arith.addf %391, %397 : vector<8x8xf32>
    %c0_230 = arith.constant 0 : index
    %c5_231 = arith.constant 5 : index
    %c2_232 = arith.constant 2 : index
    %c0_233 = arith.constant 0 : index
    %399 = vector.load %arg1[%c0_230, %c5_231, %c2_232, %c0_233] : memref<1x10x10x8xf32, #tpu.memory_space<vmem>>, vector<1x1x8x8xf32>
    %400 = vector.shape_cast %399 : vector<1x1x8x8xf32> to vector<8x8xf32>
    %401 = vector.extract_strided_slice %0 {offsets = [2, 0, 0], sizes = [1, 1, 8], strides = [1, 1, 1]} : vector<9x1x8xf32> to vector<1x1x8xf32>
    %402 = vector.shape_cast %401 : vector<1x1x8xf32> to vector<1x8xf32>
    %403 = vector.broadcast %402 : vector<1x8xf32> to vector<8x8xf32>
    %404 = arith.mulf %400, %403 : vector<8x8xf32>
    %405 = arith.addf %398, %404 : vector<8x8xf32>
    %c0_234 = arith.constant 0 : index
    %c6_235 = arith.constant 6 : index
    %c0_236 = arith.constant 0 : index
    %c0_237 = arith.constant 0 : index
    %406 = vector.load %arg1[%c0_234, %c6_235, %c0_236, %c0_237] : memref<1x10x10x8xf32, #tpu.memory_space<vmem>>, vector<1x1x8x8xf32>
    %407 = vector.shape_cast %406 : vector<1x1x8x8xf32> to vector<8x8xf32>
    %408 = vector.extract_strided_slice %0 {offsets = [3, 0, 0], sizes = [1, 1, 8], strides = [1, 1, 1]} : vector<9x1x8xf32> to vector<1x1x8xf32>
    %409 = vector.shape_cast %408 : vector<1x1x8xf32> to vector<1x8xf32>
    %410 = vector.broadcast %409 : vector<1x8xf32> to vector<8x8xf32>
    %411 = arith.mulf %407, %410 : vector<8x8xf32>
    %412 = arith.addf %405, %411 : vector<8x8xf32>
    %c0_238 = arith.constant 0 : index
    %c6_239 = arith.constant 6 : index
    %c1_240 = arith.constant 1 : index
    %c0_241 = arith.constant 0 : index
    %413 = vector.load %arg1[%c0_238, %c6_239, %c1_240, %c0_241] : memref<1x10x10x8xf32, #tpu.memory_space<vmem>>, vector<1x1x8x8xf32>
    %414 = vector.shape_cast %413 : vector<1x1x8x8xf32> to vector<8x8xf32>
    %415 = vector.extract_strided_slice %0 {offsets = [4, 0, 0], sizes = [1, 1, 8], strides = [1, 1, 1]} : vector<9x1x8xf32> to vector<1x1x8xf32>
    %416 = vector.shape_cast %415 : vector<1x1x8xf32> to vector<1x8xf32>
    %417 = vector.broadcast %416 : vector<1x8xf32> to vector<8x8xf32>
    %418 = arith.mulf %414, %417 : vector<8x8xf32>
    %419 = arith.addf %412, %418 : vector<8x8xf32>
    %c0_242 = arith.constant 0 : index
    %c6_243 = arith.constant 6 : index
    %c2_244 = arith.constant 2 : index
    %c0_245 = arith.constant 0 : index
    %420 = vector.load %arg1[%c0_242, %c6_243, %c2_244, %c0_245] : memref<1x10x10x8xf32, #tpu.memory_space<vmem>>, vector<1x1x8x8xf32>
    %421 = vector.shape_cast %420 : vector<1x1x8x8xf32> to vector<8x8xf32>
    %422 = vector.extract_strided_slice %0 {offsets = [5, 0, 0], sizes = [1, 1, 8], strides = [1, 1, 1]} : vector<9x1x8xf32> to vector<1x1x8xf32>
    %423 = vector.shape_cast %422 : vector<1x1x8xf32> to vector<1x8xf32>
    %424 = vector.broadcast %423 : vector<1x8xf32> to vector<8x8xf32>
    %425 = arith.mulf %421, %424 : vector<8x8xf32>
    %426 = arith.addf %419, %425 : vector<8x8xf32>
    %c0_246 = arith.constant 0 : index
    %c7 = arith.constant 7 : index
    %c0_247 = arith.constant 0 : index
    %c0_248 = arith.constant 0 : index
    %427 = vector.load %arg1[%c0_246, %c7, %c0_247, %c0_248] : memref<1x10x10x8xf32, #tpu.memory_space<vmem>>, vector<1x1x8x8xf32>
    %428 = vector.shape_cast %427 : vector<1x1x8x8xf32> to vector<8x8xf32>
    %429 = vector.extract_strided_slice %0 {offsets = [6, 0, 0], sizes = [1, 1, 8], strides = [1, 1, 1]} : vector<9x1x8xf32> to vector<1x1x8xf32>
    %430 = vector.shape_cast %429 : vector<1x1x8xf32> to vector<1x8xf32>
    %431 = vector.broadcast %430 : vector<1x8xf32> to vector<8x8xf32>
    %432 = arith.mulf %428, %431 : vector<8x8xf32>
    %433 = arith.addf %426, %432 : vector<8x8xf32>
    %c0_249 = arith.constant 0 : index
    %c7_250 = arith.constant 7 : index
    %c1_251 = arith.constant 1 : index
    %c0_252 = arith.constant 0 : index
    %434 = vector.load %arg1[%c0_249, %c7_250, %c1_251, %c0_252] : memref<1x10x10x8xf32, #tpu.memory_space<vmem>>, vector<1x1x8x8xf32>
    %435 = vector.shape_cast %434 : vector<1x1x8x8xf32> to vector<8x8xf32>
    %436 = vector.extract_strided_slice %0 {offsets = [7, 0, 0], sizes = [1, 1, 8], strides = [1, 1, 1]} : vector<9x1x8xf32> to vector<1x1x8xf32>
    %437 = vector.shape_cast %436 : vector<1x1x8xf32> to vector<1x8xf32>
    %438 = vector.broadcast %437 : vector<1x8xf32> to vector<8x8xf32>
    %439 = arith.mulf %435, %438 : vector<8x8xf32>
    %440 = arith.addf %433, %439 : vector<8x8xf32>
    %c0_253 = arith.constant 0 : index
    %c7_254 = arith.constant 7 : index
    %c2_255 = arith.constant 2 : index
    %c0_256 = arith.constant 0 : index
    %441 = vector.load %arg1[%c0_253, %c7_254, %c2_255, %c0_256] : memref<1x10x10x8xf32, #tpu.memory_space<vmem>>, vector<1x1x8x8xf32>
    %442 = vector.shape_cast %441 : vector<1x1x8x8xf32> to vector<8x8xf32>
    %443 = vector.extract_strided_slice %0 {offsets = [8, 0, 0], sizes = [1, 1, 8], strides = [1, 1, 1]} : vector<9x1x8xf32> to vector<1x1x8xf32>
    %444 = vector.shape_cast %443 : vector<1x1x8xf32> to vector<1x8xf32>
    %445 = vector.broadcast %444 : vector<1x8xf32> to vector<8x8xf32>
    %446 = arith.mulf %442, %445 : vector<8x8xf32>
    %447 = arith.addf %440, %446 : vector<8x8xf32>
    %448 = vector.broadcast %1 : vector<1x8xf32> to vector<8x8xf32>
    %449 = arith.addf %447, %448 : vector<8x8xf32>
    %cst_257 = arith.constant 0.000000e+00 : f32
    %450 = vector.broadcast %cst_257 : f32 to vector<8x8xf32>
    %451 = arith.maximumf %449, %450 : vector<8x8xf32>
    %cst_258 = arith.constant dense<0.000000e+00> : vector<8x16xf32>
    %452 = tpu.matmul %451, %2, %cst_258 {dimension_numbers = #tpu.dot_dimension_numbers<[1], [0], [0], [1], [0, 0, 1, 1], [], []>} : vector<8x8xf32>, vector<8x16xf32>, vector<8x16xf32> -> vector<8x16xf32>
    %453 = vector.broadcast %3 : vector<1x16xf32> to vector<8x16xf32>
    %454 = arith.addf %452, %453 : vector<8x16xf32>
    %cst_259 = arith.constant 0.000000e+00 : f32
    %455 = vector.broadcast %cst_259 : f32 to vector<8x16xf32>
    %456 = arith.maximumf %454, %455 : vector<8x16xf32>
    %c0_260 = arith.constant 0 : index
    %c5_261 = arith.constant 5 : index
    %c0_262 = arith.constant 0 : index
    %c0_263 = arith.constant 0 : index
    %457 = vector.load %arg6[%c0_260, %c5_261, %c0_262, %c0_263] : memref<1x8x8x16xf32, #tpu.memory_space<vmem>>, vector<1x1x8x16xf32>
    %458 = vector.shape_cast %457 : vector<1x1x8x16xf32> to vector<8x16xf32>
    %459 = vector.shape_cast %456 : vector<8x16xf32> to vector<1x1x8x16xf32>
    tpu.vector_store %arg6[%c0_260, %c5_261, %c0_262, %c0_263], %459 {strides = array<i32>} : memref<1x8x8x16xf32, #tpu.memory_space<vmem>>, vector<1x1x8x16xf32>,
    %cst_264 = arith.constant 0.000000e+00 : f32
    %460 = vector.broadcast %cst_264 : f32 to vector<8x8xf32>
    %c0_265 = arith.constant 0 : index
    %c6_266 = arith.constant 6 : index
    %c0_267 = arith.constant 0 : index
    %c0_268 = arith.constant 0 : index
    %461 = vector.load %arg1[%c0_265, %c6_266, %c0_267, %c0_268] : memref<1x10x10x8xf32, #tpu.memory_space<vmem>>, vector<1x1x8x8xf32>
    %462 = vector.shape_cast %461 : vector<1x1x8x8xf32> to vector<8x8xf32>
    %463 = vector.extract_strided_slice %0 {offsets = [0, 0, 0], sizes = [1, 1, 8], strides = [1, 1, 1]} : vector<9x1x8xf32> to vector<1x1x8xf32>
    %464 = vector.shape_cast %463 : vector<1x1x8xf32> to vector<1x8xf32>
    %465 = vector.broadcast %464 : vector<1x8xf32> to vector<8x8xf32>
    %466 = arith.mulf %462, %465 : vector<8x8xf32>
    %467 = arith.addf %460, %466 : vector<8x8xf32>
    %c0_269 = arith.constant 0 : index
    %c6_270 = arith.constant 6 : index
    %c1_271 = arith.constant 1 : index
    %c0_272 = arith.constant 0 : index
    %468 = vector.load %arg1[%c0_269, %c6_270, %c1_271, %c0_272] : memref<1x10x10x8xf32, #tpu.memory_space<vmem>>, vector<1x1x8x8xf32>
    %469 = vector.shape_cast %468 : vector<1x1x8x8xf32> to vector<8x8xf32>
    %470 = vector.extract_strided_slice %0 {offsets = [1, 0, 0], sizes = [1, 1, 8], strides = [1, 1, 1]} : vector<9x1x8xf32> to vector<1x1x8xf32>
    %471 = vector.shape_cast %470 : vector<1x1x8xf32> to vector<1x8xf32>
    %472 = vector.broadcast %471 : vector<1x8xf32> to vector<8x8xf32>
    %473 = arith.mulf %469, %472 : vector<8x8xf32>
    %474 = arith.addf %467, %473 : vector<8x8xf32>
    %c0_273 = arith.constant 0 : index
    %c6_274 = arith.constant 6 : index
    %c2_275 = arith.constant 2 : index
    %c0_276 = arith.constant 0 : index
    %475 = vector.load %arg1[%c0_273, %c6_274, %c2_275, %c0_276] : memref<1x10x10x8xf32, #tpu.memory_space<vmem>>, vector<1x1x8x8xf32>
    %476 = vector.shape_cast %475 : vector<1x1x8x8xf32> to vector<8x8xf32>
    %477 = vector.extract_strided_slice %0 {offsets = [2, 0, 0], sizes = [1, 1, 8], strides = [1, 1, 1]} : vector<9x1x8xf32> to vector<1x1x8xf32>
    %478 = vector.shape_cast %477 : vector<1x1x8xf32> to vector<1x8xf32>
    %479 = vector.broadcast %478 : vector<1x8xf32> to vector<8x8xf32>
    %480 = arith.mulf %476, %479 : vector<8x8xf32>
    %481 = arith.addf %474, %480 : vector<8x8xf32>
    %c0_277 = arith.constant 0 : index
    %c7_278 = arith.constant 7 : index
    %c0_279 = arith.constant 0 : index
    %c0_280 = arith.constant 0 : index
    %482 = vector.load %arg1[%c0_277, %c7_278, %c0_279, %c0_280] : memref<1x10x10x8xf32, #tpu.memory_space<vmem>>, vector<1x1x8x8xf32>
    %483 = vector.shape_cast %482 : vector<1x1x8x8xf32> to vector<8x8xf32>
    %484 = vector.extract_strided_slice %0 {offsets = [3, 0, 0], sizes = [1, 1, 8], strides = [1, 1, 1]} : vector<9x1x8xf32> to vector<1x1x8xf32>
    %485 = vector.shape_cast %484 : vector<1x1x8xf32> to vector<1x8xf32>
    %486 = vector.broadcast %485 : vector<1x8xf32> to vector<8x8xf32>
    %487 = arith.mulf %483, %486 : vector<8x8xf32>
    %488 = arith.addf %481, %487 : vector<8x8xf32>
    %c0_281 = arith.constant 0 : index
    %c7_282 = arith.constant 7 : index
    %c1_283 = arith.constant 1 : index
    %c0_284 = arith.constant 0 : index
    %489 = vector.load %arg1[%c0_281, %c7_282, %c1_283, %c0_284] : memref<1x10x10x8xf32, #tpu.memory_space<vmem>>, vector<1x1x8x8xf32>
    %490 = vector.shape_cast %489 : vector<1x1x8x8xf32> to vector<8x8xf32>
    %491 = vector.extract_strided_slice %0 {offsets = [4, 0, 0], sizes = [1, 1, 8], strides = [1, 1, 1]} : vector<9x1x8xf32> to vector<1x1x8xf32>
    %492 = vector.shape_cast %491 : vector<1x1x8xf32> to vector<1x8xf32>
    %493 = vector.broadcast %492 : vector<1x8xf32> to vector<8x8xf32>
    %494 = arith.mulf %490, %493 : vector<8x8xf32>
    %495 = arith.addf %488, %494 : vector<8x8xf32>
    %c0_285 = arith.constant 0 : index
    %c7_286 = arith.constant 7 : index
    %c2_287 = arith.constant 2 : index
    %c0_288 = arith.constant 0 : index
    %496 = vector.load %arg1[%c0_285, %c7_286, %c2_287, %c0_288] : memref<1x10x10x8xf32, #tpu.memory_space<vmem>>, vector<1x1x8x8xf32>
    %497 = vector.shape_cast %496 : vector<1x1x8x8xf32> to vector<8x8xf32>
    %498 = vector.extract_strided_slice %0 {offsets = [5, 0, 0], sizes = [1, 1, 8], strides = [1, 1, 1]} : vector<9x1x8xf32> to vector<1x1x8xf32>
    %499 = vector.shape_cast %498 : vector<1x1x8xf32> to vector<1x8xf32>
    %500 = vector.broadcast %499 : vector<1x8xf32> to vector<8x8xf32>
    %501 = arith.mulf %497, %500 : vector<8x8xf32>
    %502 = arith.addf %495, %501 : vector<8x8xf32>
    %c0_289 = arith.constant 0 : index
    %c8 = arith.constant 8 : index
    %c0_290 = arith.constant 0 : index
    %c0_291 = arith.constant 0 : index
    %503 = vector.load %arg1[%c0_289, %c8, %c0_290, %c0_291] : memref<1x10x10x8xf32, #tpu.memory_space<vmem>>, vector<1x1x8x8xf32>
    %504 = vector.shape_cast %503 : vector<1x1x8x8xf32> to vector<8x8xf32>
    %505 = vector.extract_strided_slice %0 {offsets = [6, 0, 0], sizes = [1, 1, 8], strides = [1, 1, 1]} : vector<9x1x8xf32> to vector<1x1x8xf32>
    %506 = vector.shape_cast %505 : vector<1x1x8xf32> to vector<1x8xf32>
    %507 = vector.broadcast %506 : vector<1x8xf32> to vector<8x8xf32>
    %508 = arith.mulf %504, %507 : vector<8x8xf32>
    %509 = arith.addf %502, %508 : vector<8x8xf32>
    %c0_292 = arith.constant 0 : index
    %c8_293 = arith.constant 8 : index
    %c1_294 = arith.constant 1 : index
    %c0_295 = arith.constant 0 : index
    %510 = vector.load %arg1[%c0_292, %c8_293, %c1_294, %c0_295] : memref<1x10x10x8xf32, #tpu.memory_space<vmem>>, vector<1x1x8x8xf32>
    %511 = vector.shape_cast %510 : vector<1x1x8x8xf32> to vector<8x8xf32>
    %512 = vector.extract_strided_slice %0 {offsets = [7, 0, 0], sizes = [1, 1, 8], strides = [1, 1, 1]} : vector<9x1x8xf32> to vector<1x1x8xf32>
    %513 = vector.shape_cast %512 : vector<1x1x8xf32> to vector<1x8xf32>
    %514 = vector.broadcast %513 : vector<1x8xf32> to vector<8x8xf32>
    %515 = arith.mulf %511, %514 : vector<8x8xf32>
    %516 = arith.addf %509, %515 : vector<8x8xf32>
    %c0_296 = arith.constant 0 : index
    %c8_297 = arith.constant 8 : index
    %c2_298 = arith.constant 2 : index
    %c0_299 = arith.constant 0 : index
    %517 = vector.load %arg1[%c0_296, %c8_297, %c2_298, %c0_299] : memref<1x10x10x8xf32, #tpu.memory_space<vmem>>, vector<1x1x8x8xf32>
    %518 = vector.shape_cast %517 : vector<1x1x8x8xf32> to vector<8x8xf32>
    %519 = vector.extract_strided_slice %0 {offsets = [8, 0, 0], sizes = [1, 1, 8], strides = [1, 1, 1]} : vector<9x1x8xf32> to vector<1x1x8xf32>
    %520 = vector.shape_cast %519 : vector<1x1x8xf32> to vector<1x8xf32>
    %521 = vector.broadcast %520 : vector<1x8xf32> to vector<8x8xf32>
    %522 = arith.mulf %518, %521 : vector<8x8xf32>
    %523 = arith.addf %516, %522 : vector<8x8xf32>
    %524 = vector.broadcast %1 : vector<1x8xf32> to vector<8x8xf32>
    %525 = arith.addf %523, %524 : vector<8x8xf32>
    %cst_300 = arith.constant 0.000000e+00 : f32
    %526 = vector.broadcast %cst_300 : f32 to vector<8x8xf32>
    %527 = arith.maximumf %525, %526 : vector<8x8xf32>
    %cst_301 = arith.constant dense<0.000000e+00> : vector<8x16xf32>
    %528 = tpu.matmul %527, %2, %cst_301 {dimension_numbers = #tpu.dot_dimension_numbers<[1], [0], [0], [1], [0, 0, 1, 1], [], []>} : vector<8x8xf32>, vector<8x16xf32>, vector<8x16xf32> -> vector<8x16xf32>
    %529 = vector.broadcast %3 : vector<1x16xf32> to vector<8x16xf32>
    %530 = arith.addf %528, %529 : vector<8x16xf32>
    %cst_302 = arith.constant 0.000000e+00 : f32
    %531 = vector.broadcast %cst_302 : f32 to vector<8x16xf32>
    %532 = arith.maximumf %530, %531 : vector<8x16xf32>
    %c0_303 = arith.constant 0 : index
    %c6_304 = arith.constant 6 : index
    %c0_305 = arith.constant 0 : index
    %c0_306 = arith.constant 0 : index
    %533 = vector.load %arg6[%c0_303, %c6_304, %c0_305, %c0_306] : memref<1x8x8x16xf32, #tpu.memory_space<vmem>>, vector<1x1x8x16xf32>
    %534 = vector.shape_cast %533 : vector<1x1x8x16xf32> to vector<8x16xf32>
    %535 = vector.shape_cast %532 : vector<8x16xf32> to vector<1x1x8x16xf32>
    tpu.vector_store %arg6[%c0_303, %c6_304, %c0_305, %c0_306], %535 {strides = array<i32>} : memref<1x8x8x16xf32, #tpu.memory_space<vmem>>, vector<1x1x8x16xf32>,
    %cst_307 = arith.constant 0.000000e+00 : f32
    %536 = vector.broadcast %cst_307 : f32 to vector<8x8xf32>
    %c0_308 = arith.constant 0 : index
    %c7_309 = arith.constant 7 : index
    %c0_310 = arith.constant 0 : index
    %c0_311 = arith.constant 0 : index
    %537 = vector.load %arg1[%c0_308, %c7_309, %c0_310, %c0_311] : memref<1x10x10x8xf32, #tpu.memory_space<vmem>>, vector<1x1x8x8xf32>
    %538 = vector.shape_cast %537 : vector<1x1x8x8xf32> to vector<8x8xf32>
    %539 = vector.extract_strided_slice %0 {offsets = [0, 0, 0], sizes = [1, 1, 8], strides = [1, 1, 1]} : vector<9x1x8xf32> to vector<1x1x8xf32>
    %540 = vector.shape_cast %539 : vector<1x1x8xf32> to vector<1x8xf32>
    %541 = vector.broadcast %540 : vector<1x8xf32> to vector<8x8xf32>
    %542 = arith.mulf %538, %541 : vector<8x8xf32>
    %543 = arith.addf %536, %542 : vector<8x8xf32>
    %c0_312 = arith.constant 0 : index
    %c7_313 = arith.constant 7 : index
    %c1_314 = arith.constant 1 : index
    %c0_315 = arith.constant 0 : index
    %544 = vector.load %arg1[%c0_312, %c7_313, %c1_314, %c0_315] : memref<1x10x10x8xf32, #tpu.memory_space<vmem>>, vector<1x1x8x8xf32>
    %545 = vector.shape_cast %544 : vector<1x1x8x8xf32> to vector<8x8xf32>
    %546 = vector.extract_strided_slice %0 {offsets = [1, 0, 0], sizes = [1, 1, 8], strides = [1, 1, 1]} : vector<9x1x8xf32> to vector<1x1x8xf32>
    %547 = vector.shape_cast %546 : vector<1x1x8xf32> to vector<1x8xf32>
    %548 = vector.broadcast %547 : vector<1x8xf32> to vector<8x8xf32>
    %549 = arith.mulf %545, %548 : vector<8x8xf32>
    %550 = arith.addf %543, %549 : vector<8x8xf32>
    %c0_316 = arith.constant 0 : index
    %c7_317 = arith.constant 7 : index
    %c2_318 = arith.constant 2 : index
    %c0_319 = arith.constant 0 : index
    %551 = vector.load %arg1[%c0_316, %c7_317, %c2_318, %c0_319] : memref<1x10x10x8xf32, #tpu.memory_space<vmem>>, vector<1x1x8x8xf32>
    %552 = vector.shape_cast %551 : vector<1x1x8x8xf32> to vector<8x8xf32>
    %553 = vector.extract_strided_slice %0 {offsets = [2, 0, 0], sizes = [1, 1, 8], strides = [1, 1, 1]} : vector<9x1x8xf32> to vector<1x1x8xf32>
    %554 = vector.shape_cast %553 : vector<1x1x8xf32> to vector<1x8xf32>
    %555 = vector.broadcast %554 : vector<1x8xf32> to vector<8x8xf32>
    %556 = arith.mulf %552, %555 : vector<8x8xf32>
    %557 = arith.addf %550, %556 : vector<8x8xf32>
    %c0_320 = arith.constant 0 : index
    %c8_321 = arith.constant 8 : index
    %c0_322 = arith.constant 0 : index
    %c0_323 = arith.constant 0 : index
    %558 = vector.load %arg1[%c0_320, %c8_321, %c0_322, %c0_323] : memref<1x10x10x8xf32, #tpu.memory_space<vmem>>, vector<1x1x8x8xf32>
    %559 = vector.shape_cast %558 : vector<1x1x8x8xf32> to vector<8x8xf32>
    %560 = vector.extract_strided_slice %0 {offsets = [3, 0, 0], sizes = [1, 1, 8], strides = [1, 1, 1]} : vector<9x1x8xf32> to vector<1x1x8xf32>
    %561 = vector.shape_cast %560 : vector<1x1x8xf32> to vector<1x8xf32>
    %562 = vector.broadcast %561 : vector<1x8xf32> to vector<8x8xf32>
    %563 = arith.mulf %559, %562 : vector<8x8xf32>
    %564 = arith.addf %557, %563 : vector<8x8xf32>
    %c0_324 = arith.constant 0 : index
    %c8_325 = arith.constant 8 : index
    %c1_326 = arith.constant 1 : index
    %c0_327 = arith.constant 0 : index
    %565 = vector.load %arg1[%c0_324, %c8_325, %c1_326, %c0_327] : memref<1x10x10x8xf32, #tpu.memory_space<vmem>>, vector<1x1x8x8xf32>
    %566 = vector.shape_cast %565 : vector<1x1x8x8xf32> to vector<8x8xf32>
    %567 = vector.extract_strided_slice %0 {offsets = [4, 0, 0], sizes = [1, 1, 8], strides = [1, 1, 1]} : vector<9x1x8xf32> to vector<1x1x8xf32>
    %568 = vector.shape_cast %567 : vector<1x1x8xf32> to vector<1x8xf32>
    %569 = vector.broadcast %568 : vector<1x8xf32> to vector<8x8xf32>
    %570 = arith.mulf %566, %569 : vector<8x8xf32>
    %571 = arith.addf %564, %570 : vector<8x8xf32>
    %c0_328 = arith.constant 0 : index
    %c8_329 = arith.constant 8 : index
    %c2_330 = arith.constant 2 : index
    %c0_331 = arith.constant 0 : index
    %572 = vector.load %arg1[%c0_328, %c8_329, %c2_330, %c0_331] : memref<1x10x10x8xf32, #tpu.memory_space<vmem>>, vector<1x1x8x8xf32>
    %573 = vector.shape_cast %572 : vector<1x1x8x8xf32> to vector<8x8xf32>
    %574 = vector.extract_strided_slice %0 {offsets = [5, 0, 0], sizes = [1, 1, 8], strides = [1, 1, 1]} : vector<9x1x8xf32> to vector<1x1x8xf32>
    %575 = vector.shape_cast %574 : vector<1x1x8xf32> to vector<1x8xf32>
    %576 = vector.broadcast %575 : vector<1x8xf32> to vector<8x8xf32>
    %577 = arith.mulf %573, %576 : vector<8x8xf32>
    %578 = arith.addf %571, %577 : vector<8x8xf32>
    %c0_332 = arith.constant 0 : index
    %c9 = arith.constant 9 : index
    %c0_333 = arith.constant 0 : index
    %c0_334 = arith.constant 0 : index
    %579 = vector.load %arg1[%c0_332, %c9, %c0_333, %c0_334] : memref<1x10x10x8xf32, #tpu.memory_space<vmem>>, vector<1x1x8x8xf32>
    %580 = vector.shape_cast %579 : vector<1x1x8x8xf32> to vector<8x8xf32>
    %581 = vector.extract_strided_slice %0 {offsets = [6, 0, 0], sizes = [1, 1, 8], strides = [1, 1, 1]} : vector<9x1x8xf32> to vector<1x1x8xf32>
    %582 = vector.shape_cast %581 : vector<1x1x8xf32> to vector<1x8xf32>
    %583 = vector.broadcast %582 : vector<1x8xf32> to vector<8x8xf32>
    %584 = arith.mulf %580, %583 : vector<8x8xf32>
    %585 = arith.addf %578, %584 : vector<8x8xf32>
    %c0_335 = arith.constant 0 : index
    %c9_336 = arith.constant 9 : index
    %c1_337 = arith.constant 1 : index
    %c0_338 = arith.constant 0 : index
    %586 = vector.load %arg1[%c0_335, %c9_336, %c1_337, %c0_338] : memref<1x10x10x8xf32, #tpu.memory_space<vmem>>, vector<1x1x8x8xf32>
    %587 = vector.shape_cast %586 : vector<1x1x8x8xf32> to vector<8x8xf32>
    %588 = vector.extract_strided_slice %0 {offsets = [7, 0, 0], sizes = [1, 1, 8], strides = [1, 1, 1]} : vector<9x1x8xf32> to vector<1x1x8xf32>
    %589 = vector.shape_cast %588 : vector<1x1x8xf32> to vector<1x8xf32>
    %590 = vector.broadcast %589 : vector<1x8xf32> to vector<8x8xf32>
    %591 = arith.mulf %587, %590 : vector<8x8xf32>
    %592 = arith.addf %585, %591 : vector<8x8xf32>
    %c0_339 = arith.constant 0 : index
    %c9_340 = arith.constant 9 : index
    %c2_341 = arith.constant 2 : index
    %c0_342 = arith.constant 0 : index
    %593 = vector.load %arg1[%c0_339, %c9_340, %c2_341, %c0_342] : memref<1x10x10x8xf32, #tpu.memory_space<vmem>>, vector<1x1x8x8xf32>
    %594 = vector.shape_cast %593 : vector<1x1x8x8xf32> to vector<8x8xf32>
    %595 = vector.extract_strided_slice %0 {offsets = [8, 0, 0], sizes = [1, 1, 8], strides = [1, 1, 1]} : vector<9x1x8xf32> to vector<1x1x8xf32>
    %596 = vector.shape_cast %595 : vector<1x1x8xf32> to vector<1x8xf32>
    %597 = vector.broadcast %596 : vector<1x8xf32> to vector<8x8xf32>
    %598 = arith.mulf %594, %597 : vector<8x8xf32>
    %599 = arith.addf %592, %598 : vector<8x8xf32>
    %600 = vector.broadcast %1 : vector<1x8xf32> to vector<8x8xf32>
    %601 = arith.addf %599, %600 : vector<8x8xf32>
    %cst_343 = arith.constant 0.000000e+00 : f32
    %602 = vector.broadcast %cst_343 : f32 to vector<8x8xf32>
    %603 = arith.maximumf %601, %602 : vector<8x8xf32>
    %cst_344 = arith.constant dense<0.000000e+00> : vector<8x16xf32>
    %604 = tpu.matmul %603, %2, %cst_344 {dimension_numbers = #tpu.dot_dimension_numbers<[1], [0], [0], [1], [0, 0, 1, 1], [], []>} : vector<8x8xf32>, vector<8x16xf32>, vector<8x16xf32> -> vector<8x16xf32>
    %605 = vector.broadcast %3 : vector<1x16xf32> to vector<8x16xf32>
    %606 = arith.addf %604, %605 : vector<8x16xf32>
    %cst_345 = arith.constant 0.000000e+00 : f32
    %607 = vector.broadcast %cst_345 : f32 to vector<8x16xf32>
    %608 = arith.maximumf %606, %607 : vector<8x16xf32>
    %c0_346 = arith.constant 0 : index
    %c7_347 = arith.constant 7 : index
    %c0_348 = arith.constant 0 : index
    %c0_349 = arith.constant 0 : index
    %609 = vector.load %arg6[%c0_346, %c7_347, %c0_348, %c0_349] : memref<1x8x8x16xf32, #tpu.memory_space<vmem>>, vector<1x1x8x16xf32>
    %610 = vector.shape_cast %609 : vector<1x1x8x16xf32> to vector<8x16xf32>
    %611 = vector.shape_cast %608 : vector<8x16xf32> to vector<1x1x8x16xf32>
    tpu.vector_store %arg6[%c0_346, %c7_347, %c0_348, %c0_349], %611 {strides = array<i32>} : memref<1x8x8x16xf32, #tpu.memory_space<vmem>>, vector<1x1x8x16xf32>,
    return
  }
  func.func @transform_0(%arg0: i32) -> (i32, i32, i32, i32) {
    %c0_i32 = arith.constant 0 : i32
    %c0_i32_0 = arith.constant 0 : i32
    %c0_i32_1 = arith.constant 0 : i32
    %c0_i32_2 = arith.constant 0 : i32
    return %arg0, %c0_i32, %c0_i32_0, %c0_i32_1 : i32, i32, i32, i32
  }
  func.func @transform_1(%arg0: i32) -> (i32, i32, i32) {
    %c0_i32 = arith.constant 0 : i32
    %c0_i32_0 = arith.constant 0 : i32
    %c0_i32_1 = arith.constant 0 : i32
    %c0_i32_2 = arith.constant 0 : i32
    return %c0_i32, %c0_i32_0, %c0_i32_1 : i32, i32, i32
  }
  func.func @transform_2(%arg0: i32) -> (i32, i32) {
    %c0_i32 = arith.constant 0 : i32
    %c0_i32_0 = arith.constant 0 : i32
    %c0_i32_1 = arith.constant 0 : i32
    return %c0_i32, %c0_i32_0 : i32, i32
  }
  func.func @transform_3(%arg0: i32) -> (i32, i32) {
    %c0_i32 = arith.constant 0 : i32
    %c0_i32_0 = arith.constant 0 : i32
    %c0_i32_1 = arith.constant 0 : i32
    return %c0_i32, %c0_i32_0 : i32, i32
  }
  func.func @transform_4(%arg0: i32) -> (i32, i32) {
    %c0_i32 = arith.constant 0 : i32
    %c0_i32_0 = arith.constant 0 : i32
    %c0_i32_1 = arith.constant 0 : i32
    return %c0_i32, %c0_i32_0 : i32, i32
  }
  func.func @transform_5(%arg0: i32) -> (i32, i32, i32, i32) {
    %c0_i32 = arith.constant 0 : i32
    %c0_i32_0 = arith.constant 0 : i32
    %c0_i32_1 = arith.constant 0 : i32
    %c0_i32_2 = arith.constant 0 : i32
    return %arg0, %c0_i32, %c0_i32_0, %c0_i32_1 : i32, i32, i32, i32
  }
}

module attributes {stable_mosaic.version = 11 : i64} {
  func.func @dw_pw_block_kernel(%arg0: i32, %arg1: memref<1x10x10x16xf32, #tpu.memory_space<vmem>>, %arg2: memref<9x1x16xf32, #tpu.memory_space<vmem>>, %arg3: memref<1x16xf32, #tpu.memory_space<vmem>>, %arg4: memref<16x32xf32, #tpu.memory_space<vmem>>, %arg5: memref<1x32xf32, #tpu.memory_space<vmem>>, %arg6: memref<1x8x8x32xf32, #tpu.memory_space<vmem>>) attributes {dimension_semantics = [#tpu.dimension_semantics<parallel>], iteration_bounds = array<i64: 2>, scalar_prefetch = 0 : i64, scratch_operands = 0 : i64, tpu.core_type = #tpu.core_type<tc>, window_params = [{transform_indices = @transform_0, window_bounds = array<i64: 1, 10, 10, 16>}, {pipeline_mode = #tpu.pipeline_mode<synchronous>, transform_indices = @transform_1, window_bounds = array<i64: 9, 1, 16>}, {pipeline_mode = #tpu.pipeline_mode<synchronous>, transform_indices = @transform_2, window_bounds = array<i64: 1, 16>}, {pipeline_mode = #tpu.pipeline_mode<synchronous>, transform_indices = @transform_3, window_bounds = array<i64: 16, 32>}, {pipeline_mode = #tpu.pipeline_mode<synchronous>, transform_indices = @transform_4, window_bounds = array<i64: 1, 32>}, {transform_indices = @transform_5, window_bounds = array<i64: 1, 8, 8, 32>}]} {
    %c0 = arith.constant 0 : index
    %c0_0 = arith.constant 0 : index
    %c0_1 = arith.constant 0 : index
    %0 = vector.load %arg2[%c0, %c0_0, %c0_1] : memref<9x1x16xf32, #tpu.memory_space<vmem>>, vector<9x1x16xf32>
    %c0_2 = arith.constant 0 : index
    %c0_3 = arith.constant 0 : index
    %1 = vector.load %arg3[%c0_2, %c0_3] : memref<1x16xf32, #tpu.memory_space<vmem>>, vector<1x16xf32>
    %c0_4 = arith.constant 0 : index
    %c0_5 = arith.constant 0 : index
    %2 = vector.load %arg4[%c0_4, %c0_5] : memref<16x32xf32, #tpu.memory_space<vmem>>, vector<16x32xf32>
    %c0_6 = arith.constant 0 : index
    %c0_7 = arith.constant 0 : index
    %3 = vector.load %arg5[%c0_6, %c0_7] : memref<1x32xf32, #tpu.memory_space<vmem>>, vector<1x32xf32>
    %cst = arith.constant 0.000000e+00 : f32
    %4 = vector.broadcast %cst : f32 to vector<8x16xf32>
    %c0_8 = arith.constant 0 : index
    %c0_9 = arith.constant 0 : index
    %c0_10 = arith.constant 0 : index
    %c0_11 = arith.constant 0 : index
    %5 = vector.load %arg1[%c0_8, %c0_9, %c0_10, %c0_11] : memref<1x10x10x16xf32, #tpu.memory_space<vmem>>, vector<1x1x8x16xf32>
    %6 = vector.shape_cast %5 : vector<1x1x8x16xf32> to vector<8x16xf32>
    %7 = vector.extract_strided_slice %0 {offsets = [0, 0, 0], sizes = [1, 1, 16], strides = [1, 1, 1]} : vector<9x1x16xf32> to vector<1x1x16xf32>
    %8 = vector.shape_cast %7 : vector<1x1x16xf32> to vector<1x16xf32>
    %9 = vector.broadcast %8 : vector<1x16xf32> to vector<8x16xf32>
    %10 = arith.mulf %6, %9 : vector<8x16xf32>
    %11 = arith.addf %4, %10 : vector<8x16xf32>
    %c0_12 = arith.constant 0 : index
    %c0_13 = arith.constant 0 : index
    %c1 = arith.constant 1 : index
    %c0_14 = arith.constant 0 : index
    %12 = vector.load %arg1[%c0_12, %c0_13, %c1, %c0_14] : memref<1x10x10x16xf32, #tpu.memory_space<vmem>>, vector<1x1x8x16xf32>
    %13 = vector.shape_cast %12 : vector<1x1x8x16xf32> to vector<8x16xf32>
    %14 = vector.extract_strided_slice %0 {offsets = [1, 0, 0], sizes = [1, 1, 16], strides = [1, 1, 1]} : vector<9x1x16xf32> to vector<1x1x16xf32>
    %15 = vector.shape_cast %14 : vector<1x1x16xf32> to vector<1x16xf32>
    %16 = vector.broadcast %15 : vector<1x16xf32> to vector<8x16xf32>
    %17 = arith.mulf %13, %16 : vector<8x16xf32>
    %18 = arith.addf %11, %17 : vector<8x16xf32>
    %c0_15 = arith.constant 0 : index
    %c0_16 = arith.constant 0 : index
    %c2 = arith.constant 2 : index
    %c0_17 = arith.constant 0 : index
    %19 = vector.load %arg1[%c0_15, %c0_16, %c2, %c0_17] : memref<1x10x10x16xf32, #tpu.memory_space<vmem>>, vector<1x1x8x16xf32>
    %20 = vector.shape_cast %19 : vector<1x1x8x16xf32> to vector<8x16xf32>
    %21 = vector.extract_strided_slice %0 {offsets = [2, 0, 0], sizes = [1, 1, 16], strides = [1, 1, 1]} : vector<9x1x16xf32> to vector<1x1x16xf32>
    %22 = vector.shape_cast %21 : vector<1x1x16xf32> to vector<1x16xf32>
    %23 = vector.broadcast %22 : vector<1x16xf32> to vector<8x16xf32>
    %24 = arith.mulf %20, %23 : vector<8x16xf32>
    %25 = arith.addf %18, %24 : vector<8x16xf32>
    %c0_18 = arith.constant 0 : index
    %c1_19 = arith.constant 1 : index
    %c0_20 = arith.constant 0 : index
    %c0_21 = arith.constant 0 : index
    %26 = vector.load %arg1[%c0_18, %c1_19, %c0_20, %c0_21] : memref<1x10x10x16xf32, #tpu.memory_space<vmem>>, vector<1x1x8x16xf32>
    %27 = vector.shape_cast %26 : vector<1x1x8x16xf32> to vector<8x16xf32>
    %28 = vector.extract_strided_slice %0 {offsets = [3, 0, 0], sizes = [1, 1, 16], strides = [1, 1, 1]} : vector<9x1x16xf32> to vector<1x1x16xf32>
    %29 = vector.shape_cast %28 : vector<1x1x16xf32> to vector<1x16xf32>
    %30 = vector.broadcast %29 : vector<1x16xf32> to vector<8x16xf32>
    %31 = arith.mulf %27, %30 : vector<8x16xf32>
    %32 = arith.addf %25, %31 : vector<8x16xf32>
    %c0_22 = arith.constant 0 : index
    %c1_23 = arith.constant 1 : index
    %c1_24 = arith.constant 1 : index
    %c0_25 = arith.constant 0 : index
    %33 = vector.load %arg1[%c0_22, %c1_23, %c1_24, %c0_25] : memref<1x10x10x16xf32, #tpu.memory_space<vmem>>, vector<1x1x8x16xf32>
    %34 = vector.shape_cast %33 : vector<1x1x8x16xf32> to vector<8x16xf32>
    %35 = vector.extract_strided_slice %0 {offsets = [4, 0, 0], sizes = [1, 1, 16], strides = [1, 1, 1]} : vector<9x1x16xf32> to vector<1x1x16xf32>
    %36 = vector.shape_cast %35 : vector<1x1x16xf32> to vector<1x16xf32>
    %37 = vector.broadcast %36 : vector<1x16xf32> to vector<8x16xf32>
    %38 = arith.mulf %34, %37 : vector<8x16xf32>
    %39 = arith.addf %32, %38 : vector<8x16xf32>
    %c0_26 = arith.constant 0 : index
    %c1_27 = arith.constant 1 : index
    %c2_28 = arith.constant 2 : index
    %c0_29 = arith.constant 0 : index
    %40 = vector.load %arg1[%c0_26, %c1_27, %c2_28, %c0_29] : memref<1x10x10x16xf32, #tpu.memory_space<vmem>>, vector<1x1x8x16xf32>
    %41 = vector.shape_cast %40 : vector<1x1x8x16xf32> to vector<8x16xf32>
    %42 = vector.extract_strided_slice %0 {offsets = [5, 0, 0], sizes = [1, 1, 16], strides = [1, 1, 1]} : vector<9x1x16xf32> to vector<1x1x16xf32>
    %43 = vector.shape_cast %42 : vector<1x1x16xf32> to vector<1x16xf32>
    %44 = vector.broadcast %43 : vector<1x16xf32> to vector<8x16xf32>
    %45 = arith.mulf %41, %44 : vector<8x16xf32>
    %46 = arith.addf %39, %45 : vector<8x16xf32>
    %c0_30 = arith.constant 0 : index
    %c2_31 = arith.constant 2 : index
    %c0_32 = arith.constant 0 : index
    %c0_33 = arith.constant 0 : index
    %47 = vector.load %arg1[%c0_30, %c2_31, %c0_32, %c0_33] : memref<1x10x10x16xf32, #tpu.memory_space<vmem>>, vector<1x1x8x16xf32>
    %48 = vector.shape_cast %47 : vector<1x1x8x16xf32> to vector<8x16xf32>
    %49 = vector.extract_strided_slice %0 {offsets = [6, 0, 0], sizes = [1, 1, 16], strides = [1, 1, 1]} : vector<9x1x16xf32> to vector<1x1x16xf32>
    %50 = vector.shape_cast %49 : vector<1x1x16xf32> to vector<1x16xf32>
    %51 = vector.broadcast %50 : vector<1x16xf32> to vector<8x16xf32>
    %52 = arith.mulf %48, %51 : vector<8x16xf32>
    %53 = arith.addf %46, %52 : vector<8x16xf32>
    %c0_34 = arith.constant 0 : index
    %c2_35 = arith.constant 2 : index
    %c1_36 = arith.constant 1 : index
    %c0_37 = arith.constant 0 : index
    %54 = vector.load %arg1[%c0_34, %c2_35, %c1_36, %c0_37] : memref<1x10x10x16xf32, #tpu.memory_space<vmem>>, vector<1x1x8x16xf32>
    %55 = vector.shape_cast %54 : vector<1x1x8x16xf32> to vector<8x16xf32>
    %56 = vector.extract_strided_slice %0 {offsets = [7, 0, 0], sizes = [1, 1, 16], strides = [1, 1, 1]} : vector<9x1x16xf32> to vector<1x1x16xf32>
    %57 = vector.shape_cast %56 : vector<1x1x16xf32> to vector<1x16xf32>
    %58 = vector.broadcast %57 : vector<1x16xf32> to vector<8x16xf32>
    %59 = arith.mulf %55, %58 : vector<8x16xf32>
    %60 = arith.addf %53, %59 : vector<8x16xf32>
    %c0_38 = arith.constant 0 : index
    %c2_39 = arith.constant 2 : index
    %c2_40 = arith.constant 2 : index
    %c0_41 = arith.constant 0 : index
    %61 = vector.load %arg1[%c0_38, %c2_39, %c2_40, %c0_41] : memref<1x10x10x16xf32, #tpu.memory_space<vmem>>, vector<1x1x8x16xf32>
    %62 = vector.shape_cast %61 : vector<1x1x8x16xf32> to vector<8x16xf32>
    %63 = vector.extract_strided_slice %0 {offsets = [8, 0, 0], sizes = [1, 1, 16], strides = [1, 1, 1]} : vector<9x1x16xf32> to vector<1x1x16xf32>
    %64 = vector.shape_cast %63 : vector<1x1x16xf32> to vector<1x16xf32>
    %65 = vector.broadcast %64 : vector<1x16xf32> to vector<8x16xf32>
    %66 = arith.mulf %62, %65 : vector<8x16xf32>
    %67 = arith.addf %60, %66 : vector<8x16xf32>
    %68 = vector.broadcast %1 : vector<1x16xf32> to vector<8x16xf32>
    %69 = arith.addf %67, %68 : vector<8x16xf32>
    %cst_42 = arith.constant 0.000000e+00 : f32
    %70 = vector.broadcast %cst_42 : f32 to vector<8x16xf32>
    %71 = arith.maximumf %69, %70 : vector<8x16xf32>
    %cst_43 = arith.constant dense<0.000000e+00> : vector<8x32xf32>
    %72 = tpu.matmul %71, %2, %cst_43 {dimension_numbers = #tpu.dot_dimension_numbers<[1], [0], [0], [1], [0, 0, 1, 1], [], []>} : vector<8x16xf32>, vector<16x32xf32>, vector<8x32xf32> -> vector<8x32xf32>
    %73 = vector.broadcast %3 : vector<1x32xf32> to vector<8x32xf32>
    %74 = arith.addf %72, %73 : vector<8x32xf32>
    %cst_44 = arith.constant 0.000000e+00 : f32
    %75 = vector.broadcast %cst_44 : f32 to vector<8x32xf32>
    %76 = arith.maximumf %74, %75 : vector<8x32xf32>
    %c0_45 = arith.constant 0 : index
    %c0_46 = arith.constant 0 : index
    %c0_47 = arith.constant 0 : index
    %c0_48 = arith.constant 0 : index
    %77 = vector.load %arg6[%c0_45, %c0_46, %c0_47, %c0_48] : memref<1x8x8x32xf32, #tpu.memory_space<vmem>>, vector<1x1x8x32xf32>
    %78 = vector.shape_cast %77 : vector<1x1x8x32xf32> to vector<8x32xf32>
    %79 = vector.shape_cast %76 : vector<8x32xf32> to vector<1x1x8x32xf32>
    tpu.vector_store %arg6[%c0_45, %c0_46, %c0_47, %c0_48], %79 {strides = array<i32>} : memref<1x8x8x32xf32, #tpu.memory_space<vmem>>, vector<1x1x8x32xf32>,
    %cst_49 = arith.constant 0.000000e+00 : f32
    %80 = vector.broadcast %cst_49 : f32 to vector<8x16xf32>
    %c0_50 = arith.constant 0 : index
    %c1_51 = arith.constant 1 : index
    %c0_52 = arith.constant 0 : index
    %c0_53 = arith.constant 0 : index
    %81 = vector.load %arg1[%c0_50, %c1_51, %c0_52, %c0_53] : memref<1x10x10x16xf32, #tpu.memory_space<vmem>>, vector<1x1x8x16xf32>
    %82 = vector.shape_cast %81 : vector<1x1x8x16xf32> to vector<8x16xf32>
    %83 = vector.extract_strided_slice %0 {offsets = [0, 0, 0], sizes = [1, 1, 16], strides = [1, 1, 1]} : vector<9x1x16xf32> to vector<1x1x16xf32>
    %84 = vector.shape_cast %83 : vector<1x1x16xf32> to vector<1x16xf32>
    %85 = vector.broadcast %84 : vector<1x16xf32> to vector<8x16xf32>
    %86 = arith.mulf %82, %85 : vector<8x16xf32>
    %87 = arith.addf %80, %86 : vector<8x16xf32>
    %c0_54 = arith.constant 0 : index
    %c1_55 = arith.constant 1 : index
    %c1_56 = arith.constant 1 : index
    %c0_57 = arith.constant 0 : index
    %88 = vector.load %arg1[%c0_54, %c1_55, %c1_56, %c0_57] : memref<1x10x10x16xf32, #tpu.memory_space<vmem>>, vector<1x1x8x16xf32>
    %89 = vector.shape_cast %88 : vector<1x1x8x16xf32> to vector<8x16xf32>
    %90 = vector.extract_strided_slice %0 {offsets = [1, 0, 0], sizes = [1, 1, 16], strides = [1, 1, 1]} : vector<9x1x16xf32> to vector<1x1x16xf32>
    %91 = vector.shape_cast %90 : vector<1x1x16xf32> to vector<1x16xf32>
    %92 = vector.broadcast %91 : vector<1x16xf32> to vector<8x16xf32>
    %93 = arith.mulf %89, %92 : vector<8x16xf32>
    %94 = arith.addf %87, %93 : vector<8x16xf32>
    %c0_58 = arith.constant 0 : index
    %c1_59 = arith.constant 1 : index
    %c2_60 = arith.constant 2 : index
    %c0_61 = arith.constant 0 : index
    %95 = vector.load %arg1[%c0_58, %c1_59, %c2_60, %c0_61] : memref<1x10x10x16xf32, #tpu.memory_space<vmem>>, vector<1x1x8x16xf32>
    %96 = vector.shape_cast %95 : vector<1x1x8x16xf32> to vector<8x16xf32>
    %97 = vector.extract_strided_slice %0 {offsets = [2, 0, 0], sizes = [1, 1, 16], strides = [1, 1, 1]} : vector<9x1x16xf32> to vector<1x1x16xf32>
    %98 = vector.shape_cast %97 : vector<1x1x16xf32> to vector<1x16xf32>
    %99 = vector.broadcast %98 : vector<1x16xf32> to vector<8x16xf32>
    %100 = arith.mulf %96, %99 : vector<8x16xf32>
    %101 = arith.addf %94, %100 : vector<8x16xf32>
    %c0_62 = arith.constant 0 : index
    %c2_63 = arith.constant 2 : index
    %c0_64 = arith.constant 0 : index
    %c0_65 = arith.constant 0 : index
    %102 = vector.load %arg1[%c0_62, %c2_63, %c0_64, %c0_65] : memref<1x10x10x16xf32, #tpu.memory_space<vmem>>, vector<1x1x8x16xf32>
    %103 = vector.shape_cast %102 : vector<1x1x8x16xf32> to vector<8x16xf32>
    %104 = vector.extract_strided_slice %0 {offsets = [3, 0, 0], sizes = [1, 1, 16], strides = [1, 1, 1]} : vector<9x1x16xf32> to vector<1x1x16xf32>
    %105 = vector.shape_cast %104 : vector<1x1x16xf32> to vector<1x16xf32>
    %106 = vector.broadcast %105 : vector<1x16xf32> to vector<8x16xf32>
    %107 = arith.mulf %103, %106 : vector<8x16xf32>
    %108 = arith.addf %101, %107 : vector<8x16xf32>
    %c0_66 = arith.constant 0 : index
    %c2_67 = arith.constant 2 : index
    %c1_68 = arith.constant 1 : index
    %c0_69 = arith.constant 0 : index
    %109 = vector.load %arg1[%c0_66, %c2_67, %c1_68, %c0_69] : memref<1x10x10x16xf32, #tpu.memory_space<vmem>>, vector<1x1x8x16xf32>
    %110 = vector.shape_cast %109 : vector<1x1x8x16xf32> to vector<8x16xf32>
    %111 = vector.extract_strided_slice %0 {offsets = [4, 0, 0], sizes = [1, 1, 16], strides = [1, 1, 1]} : vector<9x1x16xf32> to vector<1x1x16xf32>
    %112 = vector.shape_cast %111 : vector<1x1x16xf32> to vector<1x16xf32>
    %113 = vector.broadcast %112 : vector<1x16xf32> to vector<8x16xf32>
    %114 = arith.mulf %110, %113 : vector<8x16xf32>
    %115 = arith.addf %108, %114 : vector<8x16xf32>
    %c0_70 = arith.constant 0 : index
    %c2_71 = arith.constant 2 : index
    %c2_72 = arith.constant 2 : index
    %c0_73 = arith.constant 0 : index
    %116 = vector.load %arg1[%c0_70, %c2_71, %c2_72, %c0_73] : memref<1x10x10x16xf32, #tpu.memory_space<vmem>>, vector<1x1x8x16xf32>
    %117 = vector.shape_cast %116 : vector<1x1x8x16xf32> to vector<8x16xf32>
    %118 = vector.extract_strided_slice %0 {offsets = [5, 0, 0], sizes = [1, 1, 16], strides = [1, 1, 1]} : vector<9x1x16xf32> to vector<1x1x16xf32>
    %119 = vector.shape_cast %118 : vector<1x1x16xf32> to vector<1x16xf32>
    %120 = vector.broadcast %119 : vector<1x16xf32> to vector<8x16xf32>
    %121 = arith.mulf %117, %120 : vector<8x16xf32>
    %122 = arith.addf %115, %121 : vector<8x16xf32>
    %c0_74 = arith.constant 0 : index
    %c3 = arith.constant 3 : index
    %c0_75 = arith.constant 0 : index
    %c0_76 = arith.constant 0 : index
    %123 = vector.load %arg1[%c0_74, %c3, %c0_75, %c0_76] : memref<1x10x10x16xf32, #tpu.memory_space<vmem>>, vector<1x1x8x16xf32>
    %124 = vector.shape_cast %123 : vector<1x1x8x16xf32> to vector<8x16xf32>
    %125 = vector.extract_strided_slice %0 {offsets = [6, 0, 0], sizes = [1, 1, 16], strides = [1, 1, 1]} : vector<9x1x16xf32> to vector<1x1x16xf32>
    %126 = vector.shape_cast %125 : vector<1x1x16xf32> to vector<1x16xf32>
    %127 = vector.broadcast %126 : vector<1x16xf32> to vector<8x16xf32>
    %128 = arith.mulf %124, %127 : vector<8x16xf32>
    %129 = arith.addf %122, %128 : vector<8x16xf32>
    %c0_77 = arith.constant 0 : index
    %c3_78 = arith.constant 3 : index
    %c1_79 = arith.constant 1 : index
    %c0_80 = arith.constant 0 : index
    %130 = vector.load %arg1[%c0_77, %c3_78, %c1_79, %c0_80] : memref<1x10x10x16xf32, #tpu.memory_space<vmem>>, vector<1x1x8x16xf32>
    %131 = vector.shape_cast %130 : vector<1x1x8x16xf32> to vector<8x16xf32>
    %132 = vector.extract_strided_slice %0 {offsets = [7, 0, 0], sizes = [1, 1, 16], strides = [1, 1, 1]} : vector<9x1x16xf32> to vector<1x1x16xf32>
    %133 = vector.shape_cast %132 : vector<1x1x16xf32> to vector<1x16xf32>
    %134 = vector.broadcast %133 : vector<1x16xf32> to vector<8x16xf32>
    %135 = arith.mulf %131, %134 : vector<8x16xf32>
    %136 = arith.addf %129, %135 : vector<8x16xf32>
    %c0_81 = arith.constant 0 : index
    %c3_82 = arith.constant 3 : index
    %c2_83 = arith.constant 2 : index
    %c0_84 = arith.constant 0 : index
    %137 = vector.load %arg1[%c0_81, %c3_82, %c2_83, %c0_84] : memref<1x10x10x16xf32, #tpu.memory_space<vmem>>, vector<1x1x8x16xf32>
    %138 = vector.shape_cast %137 : vector<1x1x8x16xf32> to vector<8x16xf32>
    %139 = vector.extract_strided_slice %0 {offsets = [8, 0, 0], sizes = [1, 1, 16], strides = [1, 1, 1]} : vector<9x1x16xf32> to vector<1x1x16xf32>
    %140 = vector.shape_cast %139 : vector<1x1x16xf32> to vector<1x16xf32>
    %141 = vector.broadcast %140 : vector<1x16xf32> to vector<8x16xf32>
    %142 = arith.mulf %138, %141 : vector<8x16xf32>
    %143 = arith.addf %136, %142 : vector<8x16xf32>
    %144 = vector.broadcast %1 : vector<1x16xf32> to vector<8x16xf32>
    %145 = arith.addf %143, %144 : vector<8x16xf32>
    %cst_85 = arith.constant 0.000000e+00 : f32
    %146 = vector.broadcast %cst_85 : f32 to vector<8x16xf32>
    %147 = arith.maximumf %145, %146 : vector<8x16xf32>
    %cst_86 = arith.constant dense<0.000000e+00> : vector<8x32xf32>
    %148 = tpu.matmul %147, %2, %cst_86 {dimension_numbers = #tpu.dot_dimension_numbers<[1], [0], [0], [1], [0, 0, 1, 1], [], []>} : vector<8x16xf32>, vector<16x32xf32>, vector<8x32xf32> -> vector<8x32xf32>
    %149 = vector.broadcast %3 : vector<1x32xf32> to vector<8x32xf32>
    %150 = arith.addf %148, %149 : vector<8x32xf32>
    %cst_87 = arith.constant 0.000000e+00 : f32
    %151 = vector.broadcast %cst_87 : f32 to vector<8x32xf32>
    %152 = arith.maximumf %150, %151 : vector<8x32xf32>
    %c0_88 = arith.constant 0 : index
    %c1_89 = arith.constant 1 : index
    %c0_90 = arith.constant 0 : index
    %c0_91 = arith.constant 0 : index
    %153 = vector.load %arg6[%c0_88, %c1_89, %c0_90, %c0_91] : memref<1x8x8x32xf32, #tpu.memory_space<vmem>>, vector<1x1x8x32xf32>
    %154 = vector.shape_cast %153 : vector<1x1x8x32xf32> to vector<8x32xf32>
    %155 = vector.shape_cast %152 : vector<8x32xf32> to vector<1x1x8x32xf32>
    tpu.vector_store %arg6[%c0_88, %c1_89, %c0_90, %c0_91], %155 {strides = array<i32>} : memref<1x8x8x32xf32, #tpu.memory_space<vmem>>, vector<1x1x8x32xf32>,
    %cst_92 = arith.constant 0.000000e+00 : f32
    %156 = vector.broadcast %cst_92 : f32 to vector<8x16xf32>
    %c0_93 = arith.constant 0 : index
    %c2_94 = arith.constant 2 : index
    %c0_95 = arith.constant 0 : index
    %c0_96 = arith.constant 0 : index
    %157 = vector.load %arg1[%c0_93, %c2_94, %c0_95, %c0_96] : memref<1x10x10x16xf32, #tpu.memory_space<vmem>>, vector<1x1x8x16xf32>
    %158 = vector.shape_cast %157 : vector<1x1x8x16xf32> to vector<8x16xf32>
    %159 = vector.extract_strided_slice %0 {offsets = [0, 0, 0], sizes = [1, 1, 16], strides = [1, 1, 1]} : vector<9x1x16xf32> to vector<1x1x16xf32>
    %160 = vector.shape_cast %159 : vector<1x1x16xf32> to vector<1x16xf32>
    %161 = vector.broadcast %160 : vector<1x16xf32> to vector<8x16xf32>
    %162 = arith.mulf %158, %161 : vector<8x16xf32>
    %163 = arith.addf %156, %162 : vector<8x16xf32>
    %c0_97 = arith.constant 0 : index
    %c2_98 = arith.constant 2 : index
    %c1_99 = arith.constant 1 : index
    %c0_100 = arith.constant 0 : index
    %164 = vector.load %arg1[%c0_97, %c2_98, %c1_99, %c0_100] : memref<1x10x10x16xf32, #tpu.memory_space<vmem>>, vector<1x1x8x16xf32>
    %165 = vector.shape_cast %164 : vector<1x1x8x16xf32> to vector<8x16xf32>
    %166 = vector.extract_strided_slice %0 {offsets = [1, 0, 0], sizes = [1, 1, 16], strides = [1, 1, 1]} : vector<9x1x16xf32> to vector<1x1x16xf32>
    %167 = vector.shape_cast %166 : vector<1x1x16xf32> to vector<1x16xf32>
    %168 = vector.broadcast %167 : vector<1x16xf32> to vector<8x16xf32>
    %169 = arith.mulf %165, %168 : vector<8x16xf32>
    %170 = arith.addf %163, %169 : vector<8x16xf32>
    %c0_101 = arith.constant 0 : index
    %c2_102 = arith.constant 2 : index
    %c2_103 = arith.constant 2 : index
    %c0_104 = arith.constant 0 : index
    %171 = vector.load %arg1[%c0_101, %c2_102, %c2_103, %c0_104] : memref<1x10x10x16xf32, #tpu.memory_space<vmem>>, vector<1x1x8x16xf32>
    %172 = vector.shape_cast %171 : vector<1x1x8x16xf32> to vector<8x16xf32>
    %173 = vector.extract_strided_slice %0 {offsets = [2, 0, 0], sizes = [1, 1, 16], strides = [1, 1, 1]} : vector<9x1x16xf32> to vector<1x1x16xf32>
    %174 = vector.shape_cast %173 : vector<1x1x16xf32> to vector<1x16xf32>
    %175 = vector.broadcast %174 : vector<1x16xf32> to vector<8x16xf32>
    %176 = arith.mulf %172, %175 : vector<8x16xf32>
    %177 = arith.addf %170, %176 : vector<8x16xf32>
    %c0_105 = arith.constant 0 : index
    %c3_106 = arith.constant 3 : index
    %c0_107 = arith.constant 0 : index
    %c0_108 = arith.constant 0 : index
    %178 = vector.load %arg1[%c0_105, %c3_106, %c0_107, %c0_108] : memref<1x10x10x16xf32, #tpu.memory_space<vmem>>, vector<1x1x8x16xf32>
    %179 = vector.shape_cast %178 : vector<1x1x8x16xf32> to vector<8x16xf32>
    %180 = vector.extract_strided_slice %0 {offsets = [3, 0, 0], sizes = [1, 1, 16], strides = [1, 1, 1]} : vector<9x1x16xf32> to vector<1x1x16xf32>
    %181 = vector.shape_cast %180 : vector<1x1x16xf32> to vector<1x16xf32>
    %182 = vector.broadcast %181 : vector<1x16xf32> to vector<8x16xf32>
    %183 = arith.mulf %179, %182 : vector<8x16xf32>
    %184 = arith.addf %177, %183 : vector<8x16xf32>
    %c0_109 = arith.constant 0 : index
    %c3_110 = arith.constant 3 : index
    %c1_111 = arith.constant 1 : index
    %c0_112 = arith.constant 0 : index
    %185 = vector.load %arg1[%c0_109, %c3_110, %c1_111, %c0_112] : memref<1x10x10x16xf32, #tpu.memory_space<vmem>>, vector<1x1x8x16xf32>
    %186 = vector.shape_cast %185 : vector<1x1x8x16xf32> to vector<8x16xf32>
    %187 = vector.extract_strided_slice %0 {offsets = [4, 0, 0], sizes = [1, 1, 16], strides = [1, 1, 1]} : vector<9x1x16xf32> to vector<1x1x16xf32>
    %188 = vector.shape_cast %187 : vector<1x1x16xf32> to vector<1x16xf32>
    %189 = vector.broadcast %188 : vector<1x16xf32> to vector<8x16xf32>
    %190 = arith.mulf %186, %189 : vector<8x16xf32>
    %191 = arith.addf %184, %190 : vector<8x16xf32>
    %c0_113 = arith.constant 0 : index
    %c3_114 = arith.constant 3 : index
    %c2_115 = arith.constant 2 : index
    %c0_116 = arith.constant 0 : index
    %192 = vector.load %arg1[%c0_113, %c3_114, %c2_115, %c0_116] : memref<1x10x10x16xf32, #tpu.memory_space<vmem>>, vector<1x1x8x16xf32>
    %193 = vector.shape_cast %192 : vector<1x1x8x16xf32> to vector<8x16xf32>
    %194 = vector.extract_strided_slice %0 {offsets = [5, 0, 0], sizes = [1, 1, 16], strides = [1, 1, 1]} : vector<9x1x16xf32> to vector<1x1x16xf32>
    %195 = vector.shape_cast %194 : vector<1x1x16xf32> to vector<1x16xf32>
    %196 = vector.broadcast %195 : vector<1x16xf32> to vector<8x16xf32>
    %197 = arith.mulf %193, %196 : vector<8x16xf32>
    %198 = arith.addf %191, %197 : vector<8x16xf32>
    %c0_117 = arith.constant 0 : index
    %c4 = arith.constant 4 : index
    %c0_118 = arith.constant 0 : index
    %c0_119 = arith.constant 0 : index
    %199 = vector.load %arg1[%c0_117, %c4, %c0_118, %c0_119] : memref<1x10x10x16xf32, #tpu.memory_space<vmem>>, vector<1x1x8x16xf32>
    %200 = vector.shape_cast %199 : vector<1x1x8x16xf32> to vector<8x16xf32>
    %201 = vector.extract_strided_slice %0 {offsets = [6, 0, 0], sizes = [1, 1, 16], strides = [1, 1, 1]} : vector<9x1x16xf32> to vector<1x1x16xf32>
    %202 = vector.shape_cast %201 : vector<1x1x16xf32> to vector<1x16xf32>
    %203 = vector.broadcast %202 : vector<1x16xf32> to vector<8x16xf32>
    %204 = arith.mulf %200, %203 : vector<8x16xf32>
    %205 = arith.addf %198, %204 : vector<8x16xf32>
    %c0_120 = arith.constant 0 : index
    %c4_121 = arith.constant 4 : index
    %c1_122 = arith.constant 1 : index
    %c0_123 = arith.constant 0 : index
    %206 = vector.load %arg1[%c0_120, %c4_121, %c1_122, %c0_123] : memref<1x10x10x16xf32, #tpu.memory_space<vmem>>, vector<1x1x8x16xf32>
    %207 = vector.shape_cast %206 : vector<1x1x8x16xf32> to vector<8x16xf32>
    %208 = vector.extract_strided_slice %0 {offsets = [7, 0, 0], sizes = [1, 1, 16], strides = [1, 1, 1]} : vector<9x1x16xf32> to vector<1x1x16xf32>
    %209 = vector.shape_cast %208 : vector<1x1x16xf32> to vector<1x16xf32>
    %210 = vector.broadcast %209 : vector<1x16xf32> to vector<8x16xf32>
    %211 = arith.mulf %207, %210 : vector<8x16xf32>
    %212 = arith.addf %205, %211 : vector<8x16xf32>
    %c0_124 = arith.constant 0 : index
    %c4_125 = arith.constant 4 : index
    %c2_126 = arith.constant 2 : index
    %c0_127 = arith.constant 0 : index
    %213 = vector.load %arg1[%c0_124, %c4_125, %c2_126, %c0_127] : memref<1x10x10x16xf32, #tpu.memory_space<vmem>>, vector<1x1x8x16xf32>
    %214 = vector.shape_cast %213 : vector<1x1x8x16xf32> to vector<8x16xf32>
    %215 = vector.extract_strided_slice %0 {offsets = [8, 0, 0], sizes = [1, 1, 16], strides = [1, 1, 1]} : vector<9x1x16xf32> to vector<1x1x16xf32>
    %216 = vector.shape_cast %215 : vector<1x1x16xf32> to vector<1x16xf32>
    %217 = vector.broadcast %216 : vector<1x16xf32> to vector<8x16xf32>
    %218 = arith.mulf %214, %217 : vector<8x16xf32>
    %219 = arith.addf %212, %218 : vector<8x16xf32>
    %220 = vector.broadcast %1 : vector<1x16xf32> to vector<8x16xf32>
    %221 = arith.addf %219, %220 : vector<8x16xf32>
    %cst_128 = arith.constant 0.000000e+00 : f32
    %222 = vector.broadcast %cst_128 : f32 to vector<8x16xf32>
    %223 = arith.maximumf %221, %222 : vector<8x16xf32>
    %cst_129 = arith.constant dense<0.000000e+00> : vector<8x32xf32>
    %224 = tpu.matmul %223, %2, %cst_129 {dimension_numbers = #tpu.dot_dimension_numbers<[1], [0], [0], [1], [0, 0, 1, 1], [], []>} : vector<8x16xf32>, vector<16x32xf32>, vector<8x32xf32> -> vector<8x32xf32>
    %225 = vector.broadcast %3 : vector<1x32xf32> to vector<8x32xf32>
    %226 = arith.addf %224, %225 : vector<8x32xf32>
    %cst_130 = arith.constant 0.000000e+00 : f32
    %227 = vector.broadcast %cst_130 : f32 to vector<8x32xf32>
    %228 = arith.maximumf %226, %227 : vector<8x32xf32>
    %c0_131 = arith.constant 0 : index
    %c2_132 = arith.constant 2 : index
    %c0_133 = arith.constant 0 : index
    %c0_134 = arith.constant 0 : index
    %229 = vector.load %arg6[%c0_131, %c2_132, %c0_133, %c0_134] : memref<1x8x8x32xf32, #tpu.memory_space<vmem>>, vector<1x1x8x32xf32>
    %230 = vector.shape_cast %229 : vector<1x1x8x32xf32> to vector<8x32xf32>
    %231 = vector.shape_cast %228 : vector<8x32xf32> to vector<1x1x8x32xf32>
    tpu.vector_store %arg6[%c0_131, %c2_132, %c0_133, %c0_134], %231 {strides = array<i32>} : memref<1x8x8x32xf32, #tpu.memory_space<vmem>>, vector<1x1x8x32xf32>,
    %cst_135 = arith.constant 0.000000e+00 : f32
    %232 = vector.broadcast %cst_135 : f32 to vector<8x16xf32>
    %c0_136 = arith.constant 0 : index
    %c3_137 = arith.constant 3 : index
    %c0_138 = arith.constant 0 : index
    %c0_139 = arith.constant 0 : index
    %233 = vector.load %arg1[%c0_136, %c3_137, %c0_138, %c0_139] : memref<1x10x10x16xf32, #tpu.memory_space<vmem>>, vector<1x1x8x16xf32>
    %234 = vector.shape_cast %233 : vector<1x1x8x16xf32> to vector<8x16xf32>
    %235 = vector.extract_strided_slice %0 {offsets = [0, 0, 0], sizes = [1, 1, 16], strides = [1, 1, 1]} : vector<9x1x16xf32> to vector<1x1x16xf32>
    %236 = vector.shape_cast %235 : vector<1x1x16xf32> to vector<1x16xf32>
    %237 = vector.broadcast %236 : vector<1x16xf32> to vector<8x16xf32>
    %238 = arith.mulf %234, %237 : vector<8x16xf32>
    %239 = arith.addf %232, %238 : vector<8x16xf32>
    %c0_140 = arith.constant 0 : index
    %c3_141 = arith.constant 3 : index
    %c1_142 = arith.constant 1 : index
    %c0_143 = arith.constant 0 : index
    %240 = vector.load %arg1[%c0_140, %c3_141, %c1_142, %c0_143] : memref<1x10x10x16xf32, #tpu.memory_space<vmem>>, vector<1x1x8x16xf32>
    %241 = vector.shape_cast %240 : vector<1x1x8x16xf32> to vector<8x16xf32>
    %242 = vector.extract_strided_slice %0 {offsets = [1, 0, 0], sizes = [1, 1, 16], strides = [1, 1, 1]} : vector<9x1x16xf32> to vector<1x1x16xf32>
    %243 = vector.shape_cast %242 : vector<1x1x16xf32> to vector<1x16xf32>
    %244 = vector.broadcast %243 : vector<1x16xf32> to vector<8x16xf32>
    %245 = arith.mulf %241, %244 : vector<8x16xf32>
    %246 = arith.addf %239, %245 : vector<8x16xf32>
    %c0_144 = arith.constant 0 : index
    %c3_145 = arith.constant 3 : index
    %c2_146 = arith.constant 2 : index
    %c0_147 = arith.constant 0 : index
    %247 = vector.load %arg1[%c0_144, %c3_145, %c2_146, %c0_147] : memref<1x10x10x16xf32, #tpu.memory_space<vmem>>, vector<1x1x8x16xf32>
    %248 = vector.shape_cast %247 : vector<1x1x8x16xf32> to vector<8x16xf32>
    %249 = vector.extract_strided_slice %0 {offsets = [2, 0, 0], sizes = [1, 1, 16], strides = [1, 1, 1]} : vector<9x1x16xf32> to vector<1x1x16xf32>
    %250 = vector.shape_cast %249 : vector<1x1x16xf32> to vector<1x16xf32>
    %251 = vector.broadcast %250 : vector<1x16xf32> to vector<8x16xf32>
    %252 = arith.mulf %248, %251 : vector<8x16xf32>
    %253 = arith.addf %246, %252 : vector<8x16xf32>
    %c0_148 = arith.constant 0 : index
    %c4_149 = arith.constant 4 : index
    %c0_150 = arith.constant 0 : index
    %c0_151 = arith.constant 0 : index
    %254 = vector.load %arg1[%c0_148, %c4_149, %c0_150, %c0_151] : memref<1x10x10x16xf32, #tpu.memory_space<vmem>>, vector<1x1x8x16xf32>
    %255 = vector.shape_cast %254 : vector<1x1x8x16xf32> to vector<8x16xf32>
    %256 = vector.extract_strided_slice %0 {offsets = [3, 0, 0], sizes = [1, 1, 16], strides = [1, 1, 1]} : vector<9x1x16xf32> to vector<1x1x16xf32>
    %257 = vector.shape_cast %256 : vector<1x1x16xf32> to vector<1x16xf32>
    %258 = vector.broadcast %257 : vector<1x16xf32> to vector<8x16xf32>
    %259 = arith.mulf %255, %258 : vector<8x16xf32>
    %260 = arith.addf %253, %259 : vector<8x16xf32>
    %c0_152 = arith.constant 0 : index
    %c4_153 = arith.constant 4 : index
    %c1_154 = arith.constant 1 : index
    %c0_155 = arith.constant 0 : index
    %261 = vector.load %arg1[%c0_152, %c4_153, %c1_154, %c0_155] : memref<1x10x10x16xf32, #tpu.memory_space<vmem>>, vector<1x1x8x16xf32>
    %262 = vector.shape_cast %261 : vector<1x1x8x16xf32> to vector<8x16xf32>
    %263 = vector.extract_strided_slice %0 {offsets = [4, 0, 0], sizes = [1, 1, 16], strides = [1, 1, 1]} : vector<9x1x16xf32> to vector<1x1x16xf32>
    %264 = vector.shape_cast %263 : vector<1x1x16xf32> to vector<1x16xf32>
    %265 = vector.broadcast %264 : vector<1x16xf32> to vector<8x16xf32>
    %266 = arith.mulf %262, %265 : vector<8x16xf32>
    %267 = arith.addf %260, %266 : vector<8x16xf32>
    %c0_156 = arith.constant 0 : index
    %c4_157 = arith.constant 4 : index
    %c2_158 = arith.constant 2 : index
    %c0_159 = arith.constant 0 : index
    %268 = vector.load %arg1[%c0_156, %c4_157, %c2_158, %c0_159] : memref<1x10x10x16xf32, #tpu.memory_space<vmem>>, vector<1x1x8x16xf32>
    %269 = vector.shape_cast %268 : vector<1x1x8x16xf32> to vector<8x16xf32>
    %270 = vector.extract_strided_slice %0 {offsets = [5, 0, 0], sizes = [1, 1, 16], strides = [1, 1, 1]} : vector<9x1x16xf32> to vector<1x1x16xf32>
    %271 = vector.shape_cast %270 : vector<1x1x16xf32> to vector<1x16xf32>
    %272 = vector.broadcast %271 : vector<1x16xf32> to vector<8x16xf32>
    %273 = arith.mulf %269, %272 : vector<8x16xf32>
    %274 = arith.addf %267, %273 : vector<8x16xf32>
    %c0_160 = arith.constant 0 : index
    %c5 = arith.constant 5 : index
    %c0_161 = arith.constant 0 : index
    %c0_162 = arith.constant 0 : index
    %275 = vector.load %arg1[%c0_160, %c5, %c0_161, %c0_162] : memref<1x10x10x16xf32, #tpu.memory_space<vmem>>, vector<1x1x8x16xf32>
    %276 = vector.shape_cast %275 : vector<1x1x8x16xf32> to vector<8x16xf32>
    %277 = vector.extract_strided_slice %0 {offsets = [6, 0, 0], sizes = [1, 1, 16], strides = [1, 1, 1]} : vector<9x1x16xf32> to vector<1x1x16xf32>
    %278 = vector.shape_cast %277 : vector<1x1x16xf32> to vector<1x16xf32>
    %279 = vector.broadcast %278 : vector<1x16xf32> to vector<8x16xf32>
    %280 = arith.mulf %276, %279 : vector<8x16xf32>
    %281 = arith.addf %274, %280 : vector<8x16xf32>
    %c0_163 = arith.constant 0 : index
    %c5_164 = arith.constant 5 : index
    %c1_165 = arith.constant 1 : index
    %c0_166 = arith.constant 0 : index
    %282 = vector.load %arg1[%c0_163, %c5_164, %c1_165, %c0_166] : memref<1x10x10x16xf32, #tpu.memory_space<vmem>>, vector<1x1x8x16xf32>
    %283 = vector.shape_cast %282 : vector<1x1x8x16xf32> to vector<8x16xf32>
    %284 = vector.extract_strided_slice %0 {offsets = [7, 0, 0], sizes = [1, 1, 16], strides = [1, 1, 1]} : vector<9x1x16xf32> to vector<1x1x16xf32>
    %285 = vector.shape_cast %284 : vector<1x1x16xf32> to vector<1x16xf32>
    %286 = vector.broadcast %285 : vector<1x16xf32> to vector<8x16xf32>
    %287 = arith.mulf %283, %286 : vector<8x16xf32>
    %288 = arith.addf %281, %287 : vector<8x16xf32>
    %c0_167 = arith.constant 0 : index
    %c5_168 = arith.constant 5 : index
    %c2_169 = arith.constant 2 : index
    %c0_170 = arith.constant 0 : index
    %289 = vector.load %arg1[%c0_167, %c5_168, %c2_169, %c0_170] : memref<1x10x10x16xf32, #tpu.memory_space<vmem>>, vector<1x1x8x16xf32>
    %290 = vector.shape_cast %289 : vector<1x1x8x16xf32> to vector<8x16xf32>
    %291 = vector.extract_strided_slice %0 {offsets = [8, 0, 0], sizes = [1, 1, 16], strides = [1, 1, 1]} : vector<9x1x16xf32> to vector<1x1x16xf32>
    %292 = vector.shape_cast %291 : vector<1x1x16xf32> to vector<1x16xf32>
    %293 = vector.broadcast %292 : vector<1x16xf32> to vector<8x16xf32>
    %294 = arith.mulf %290, %293 : vector<8x16xf32>
    %295 = arith.addf %288, %294 : vector<8x16xf32>
    %296 = vector.broadcast %1 : vector<1x16xf32> to vector<8x16xf32>
    %297 = arith.addf %295, %296 : vector<8x16xf32>
    %cst_171 = arith.constant 0.000000e+00 : f32
    %298 = vector.broadcast %cst_171 : f32 to vector<8x16xf32>
    %299 = arith.maximumf %297, %298 : vector<8x16xf32>
    %cst_172 = arith.constant dense<0.000000e+00> : vector<8x32xf32>
    %300 = tpu.matmul %299, %2, %cst_172 {dimension_numbers = #tpu.dot_dimension_numbers<[1], [0], [0], [1], [0, 0, 1, 1], [], []>} : vector<8x16xf32>, vector<16x32xf32>, vector<8x32xf32> -> vector<8x32xf32>
    %301 = vector.broadcast %3 : vector<1x32xf32> to vector<8x32xf32>
    %302 = arith.addf %300, %301 : vector<8x32xf32>
    %cst_173 = arith.constant 0.000000e+00 : f32
    %303 = vector.broadcast %cst_173 : f32 to vector<8x32xf32>
    %304 = arith.maximumf %302, %303 : vector<8x32xf32>
    %c0_174 = arith.constant 0 : index
    %c3_175 = arith.constant 3 : index
    %c0_176 = arith.constant 0 : index
    %c0_177 = arith.constant 0 : index
    %305 = vector.load %arg6[%c0_174, %c3_175, %c0_176, %c0_177] : memref<1x8x8x32xf32, #tpu.memory_space<vmem>>, vector<1x1x8x32xf32>
    %306 = vector.shape_cast %305 : vector<1x1x8x32xf32> to vector<8x32xf32>
    %307 = vector.shape_cast %304 : vector<8x32xf32> to vector<1x1x8x32xf32>
    tpu.vector_store %arg6[%c0_174, %c3_175, %c0_176, %c0_177], %307 {strides = array<i32>} : memref<1x8x8x32xf32, #tpu.memory_space<vmem>>, vector<1x1x8x32xf32>,
    %cst_178 = arith.constant 0.000000e+00 : f32
    %308 = vector.broadcast %cst_178 : f32 to vector<8x16xf32>
    %c0_179 = arith.constant 0 : index
    %c4_180 = arith.constant 4 : index
    %c0_181 = arith.constant 0 : index
    %c0_182 = arith.constant 0 : index
    %309 = vector.load %arg1[%c0_179, %c4_180, %c0_181, %c0_182] : memref<1x10x10x16xf32, #tpu.memory_space<vmem>>, vector<1x1x8x16xf32>
    %310 = vector.shape_cast %309 : vector<1x1x8x16xf32> to vector<8x16xf32>
    %311 = vector.extract_strided_slice %0 {offsets = [0, 0, 0], sizes = [1, 1, 16], strides = [1, 1, 1]} : vector<9x1x16xf32> to vector<1x1x16xf32>
    %312 = vector.shape_cast %311 : vector<1x1x16xf32> to vector<1x16xf32>
    %313 = vector.broadcast %312 : vector<1x16xf32> to vector<8x16xf32>
    %314 = arith.mulf %310, %313 : vector<8x16xf32>
    %315 = arith.addf %308, %314 : vector<8x16xf32>
    %c0_183 = arith.constant 0 : index
    %c4_184 = arith.constant 4 : index
    %c1_185 = arith.constant 1 : index
    %c0_186 = arith.constant 0 : index
    %316 = vector.load %arg1[%c0_183, %c4_184, %c1_185, %c0_186] : memref<1x10x10x16xf32, #tpu.memory_space<vmem>>, vector<1x1x8x16xf32>
    %317 = vector.shape_cast %316 : vector<1x1x8x16xf32> to vector<8x16xf32>
    %318 = vector.extract_strided_slice %0 {offsets = [1, 0, 0], sizes = [1, 1, 16], strides = [1, 1, 1]} : vector<9x1x16xf32> to vector<1x1x16xf32>
    %319 = vector.shape_cast %318 : vector<1x1x16xf32> to vector<1x16xf32>
    %320 = vector.broadcast %319 : vector<1x16xf32> to vector<8x16xf32>
    %321 = arith.mulf %317, %320 : vector<8x16xf32>
    %322 = arith.addf %315, %321 : vector<8x16xf32>
    %c0_187 = arith.constant 0 : index
    %c4_188 = arith.constant 4 : index
    %c2_189 = arith.constant 2 : index
    %c0_190 = arith.constant 0 : index
    %323 = vector.load %arg1[%c0_187, %c4_188, %c2_189, %c0_190] : memref<1x10x10x16xf32, #tpu.memory_space<vmem>>, vector<1x1x8x16xf32>
    %324 = vector.shape_cast %323 : vector<1x1x8x16xf32> to vector<8x16xf32>
    %325 = vector.extract_strided_slice %0 {offsets = [2, 0, 0], sizes = [1, 1, 16], strides = [1, 1, 1]} : vector<9x1x16xf32> to vector<1x1x16xf32>
    %326 = vector.shape_cast %325 : vector<1x1x16xf32> to vector<1x16xf32>
    %327 = vector.broadcast %326 : vector<1x16xf32> to vector<8x16xf32>
    %328 = arith.mulf %324, %327 : vector<8x16xf32>
    %329 = arith.addf %322, %328 : vector<8x16xf32>
    %c0_191 = arith.constant 0 : index
    %c5_192 = arith.constant 5 : index
    %c0_193 = arith.constant 0 : index
    %c0_194 = arith.constant 0 : index
    %330 = vector.load %arg1[%c0_191, %c5_192, %c0_193, %c0_194] : memref<1x10x10x16xf32, #tpu.memory_space<vmem>>, vector<1x1x8x16xf32>
    %331 = vector.shape_cast %330 : vector<1x1x8x16xf32> to vector<8x16xf32>
    %332 = vector.extract_strided_slice %0 {offsets = [3, 0, 0], sizes = [1, 1, 16], strides = [1, 1, 1]} : vector<9x1x16xf32> to vector<1x1x16xf32>
    %333 = vector.shape_cast %332 : vector<1x1x16xf32> to vector<1x16xf32>
    %334 = vector.broadcast %333 : vector<1x16xf32> to vector<8x16xf32>
    %335 = arith.mulf %331, %334 : vector<8x16xf32>
    %336 = arith.addf %329, %335 : vector<8x16xf32>
    %c0_195 = arith.constant 0 : index
    %c5_196 = arith.constant 5 : index
    %c1_197 = arith.constant 1 : index
    %c0_198 = arith.constant 0 : index
    %337 = vector.load %arg1[%c0_195, %c5_196, %c1_197, %c0_198] : memref<1x10x10x16xf32, #tpu.memory_space<vmem>>, vector<1x1x8x16xf32>
    %338 = vector.shape_cast %337 : vector<1x1x8x16xf32> to vector<8x16xf32>
    %339 = vector.extract_strided_slice %0 {offsets = [4, 0, 0], sizes = [1, 1, 16], strides = [1, 1, 1]} : vector<9x1x16xf32> to vector<1x1x16xf32>
    %340 = vector.shape_cast %339 : vector<1x1x16xf32> to vector<1x16xf32>
    %341 = vector.broadcast %340 : vector<1x16xf32> to vector<8x16xf32>
    %342 = arith.mulf %338, %341 : vector<8x16xf32>
    %343 = arith.addf %336, %342 : vector<8x16xf32>
    %c0_199 = arith.constant 0 : index
    %c5_200 = arith.constant 5 : index
    %c2_201 = arith.constant 2 : index
    %c0_202 = arith.constant 0 : index
    %344 = vector.load %arg1[%c0_199, %c5_200, %c2_201, %c0_202] : memref<1x10x10x16xf32, #tpu.memory_space<vmem>>, vector<1x1x8x16xf32>
    %345 = vector.shape_cast %344 : vector<1x1x8x16xf32> to vector<8x16xf32>
    %346 = vector.extract_strided_slice %0 {offsets = [5, 0, 0], sizes = [1, 1, 16], strides = [1, 1, 1]} : vector<9x1x16xf32> to vector<1x1x16xf32>
    %347 = vector.shape_cast %346 : vector<1x1x16xf32> to vector<1x16xf32>
    %348 = vector.broadcast %347 : vector<1x16xf32> to vector<8x16xf32>
    %349 = arith.mulf %345, %348 : vector<8x16xf32>
    %350 = arith.addf %343, %349 : vector<8x16xf32>
    %c0_203 = arith.constant 0 : index
    %c6 = arith.constant 6 : index
    %c0_204 = arith.constant 0 : index
    %c0_205 = arith.constant 0 : index
    %351 = vector.load %arg1[%c0_203, %c6, %c0_204, %c0_205] : memref<1x10x10x16xf32, #tpu.memory_space<vmem>>, vector<1x1x8x16xf32>
    %352 = vector.shape_cast %351 : vector<1x1x8x16xf32> to vector<8x16xf32>
    %353 = vector.extract_strided_slice %0 {offsets = [6, 0, 0], sizes = [1, 1, 16], strides = [1, 1, 1]} : vector<9x1x16xf32> to vector<1x1x16xf32>
    %354 = vector.shape_cast %353 : vector<1x1x16xf32> to vector<1x16xf32>
    %355 = vector.broadcast %354 : vector<1x16xf32> to vector<8x16xf32>
    %356 = arith.mulf %352, %355 : vector<8x16xf32>
    %357 = arith.addf %350, %356 : vector<8x16xf32>
    %c0_206 = arith.constant 0 : index
    %c6_207 = arith.constant 6 : index
    %c1_208 = arith.constant 1 : index
    %c0_209 = arith.constant 0 : index
    %358 = vector.load %arg1[%c0_206, %c6_207, %c1_208, %c0_209] : memref<1x10x10x16xf32, #tpu.memory_space<vmem>>, vector<1x1x8x16xf32>
    %359 = vector.shape_cast %358 : vector<1x1x8x16xf32> to vector<8x16xf32>
    %360 = vector.extract_strided_slice %0 {offsets = [7, 0, 0], sizes = [1, 1, 16], strides = [1, 1, 1]} : vector<9x1x16xf32> to vector<1x1x16xf32>
    %361 = vector.shape_cast %360 : vector<1x1x16xf32> to vector<1x16xf32>
    %362 = vector.broadcast %361 : vector<1x16xf32> to vector<8x16xf32>
    %363 = arith.mulf %359, %362 : vector<8x16xf32>
    %364 = arith.addf %357, %363 : vector<8x16xf32>
    %c0_210 = arith.constant 0 : index
    %c6_211 = arith.constant 6 : index
    %c2_212 = arith.constant 2 : index
    %c0_213 = arith.constant 0 : index
    %365 = vector.load %arg1[%c0_210, %c6_211, %c2_212, %c0_213] : memref<1x10x10x16xf32, #tpu.memory_space<vmem>>, vector<1x1x8x16xf32>
    %366 = vector.shape_cast %365 : vector<1x1x8x16xf32> to vector<8x16xf32>
    %367 = vector.extract_strided_slice %0 {offsets = [8, 0, 0], sizes = [1, 1, 16], strides = [1, 1, 1]} : vector<9x1x16xf32> to vector<1x1x16xf32>
    %368 = vector.shape_cast %367 : vector<1x1x16xf32> to vector<1x16xf32>
    %369 = vector.broadcast %368 : vector<1x16xf32> to vector<8x16xf32>
    %370 = arith.mulf %366, %369 : vector<8x16xf32>
    %371 = arith.addf %364, %370 : vector<8x16xf32>
    %372 = vector.broadcast %1 : vector<1x16xf32> to vector<8x16xf32>
    %373 = arith.addf %371, %372 : vector<8x16xf32>
    %cst_214 = arith.constant 0.000000e+00 : f32
    %374 = vector.broadcast %cst_214 : f32 to vector<8x16xf32>
    %375 = arith.maximumf %373, %374 : vector<8x16xf32>
    %cst_215 = arith.constant dense<0.000000e+00> : vector<8x32xf32>
    %376 = tpu.matmul %375, %2, %cst_215 {dimension_numbers = #tpu.dot_dimension_numbers<[1], [0], [0], [1], [0, 0, 1, 1], [], []>} : vector<8x16xf32>, vector<16x32xf32>, vector<8x32xf32> -> vector<8x32xf32>
    %377 = vector.broadcast %3 : vector<1x32xf32> to vector<8x32xf32>
    %378 = arith.addf %376, %377 : vector<8x32xf32>
    %cst_216 = arith.constant 0.000000e+00 : f32
    %379 = vector.broadcast %cst_216 : f32 to vector<8x32xf32>
    %380 = arith.maximumf %378, %379 : vector<8x32xf32>
    %c0_217 = arith.constant 0 : index
    %c4_218 = arith.constant 4 : index
    %c0_219 = arith.constant 0 : index
    %c0_220 = arith.constant 0 : index
    %381 = vector.load %arg6[%c0_217, %c4_218, %c0_219, %c0_220] : memref<1x8x8x32xf32, #tpu.memory_space<vmem>>, vector<1x1x8x32xf32>
    %382 = vector.shape_cast %381 : vector<1x1x8x32xf32> to vector<8x32xf32>
    %383 = vector.shape_cast %380 : vector<8x32xf32> to vector<1x1x8x32xf32>
    tpu.vector_store %arg6[%c0_217, %c4_218, %c0_219, %c0_220], %383 {strides = array<i32>} : memref<1x8x8x32xf32, #tpu.memory_space<vmem>>, vector<1x1x8x32xf32>,
    %cst_221 = arith.constant 0.000000e+00 : f32
    %384 = vector.broadcast %cst_221 : f32 to vector<8x16xf32>
    %c0_222 = arith.constant 0 : index
    %c5_223 = arith.constant 5 : index
    %c0_224 = arith.constant 0 : index
    %c0_225 = arith.constant 0 : index
    %385 = vector.load %arg1[%c0_222, %c5_223, %c0_224, %c0_225] : memref<1x10x10x16xf32, #tpu.memory_space<vmem>>, vector<1x1x8x16xf32>
    %386 = vector.shape_cast %385 : vector<1x1x8x16xf32> to vector<8x16xf32>
    %387 = vector.extract_strided_slice %0 {offsets = [0, 0, 0], sizes = [1, 1, 16], strides = [1, 1, 1]} : vector<9x1x16xf32> to vector<1x1x16xf32>
    %388 = vector.shape_cast %387 : vector<1x1x16xf32> to vector<1x16xf32>
    %389 = vector.broadcast %388 : vector<1x16xf32> to vector<8x16xf32>
    %390 = arith.mulf %386, %389 : vector<8x16xf32>
    %391 = arith.addf %384, %390 : vector<8x16xf32>
    %c0_226 = arith.constant 0 : index
    %c5_227 = arith.constant 5 : index
    %c1_228 = arith.constant 1 : index
    %c0_229 = arith.constant 0 : index
    %392 = vector.load %arg1[%c0_226, %c5_227, %c1_228, %c0_229] : memref<1x10x10x16xf32, #tpu.memory_space<vmem>>, vector<1x1x8x16xf32>
    %393 = vector.shape_cast %392 : vector<1x1x8x16xf32> to vector<8x16xf32>
    %394 = vector.extract_strided_slice %0 {offsets = [1, 0, 0], sizes = [1, 1, 16], strides = [1, 1, 1]} : vector<9x1x16xf32> to vector<1x1x16xf32>
    %395 = vector.shape_cast %394 : vector<1x1x16xf32> to vector<1x16xf32>
    %396 = vector.broadcast %395 : vector<1x16xf32> to vector<8x16xf32>
    %397 = arith.mulf %393, %396 : vector<8x16xf32>
    %398 = arith.addf %391, %397 : vector<8x16xf32>
    %c0_230 = arith.constant 0 : index
    %c5_231 = arith.constant 5 : index
    %c2_232 = arith.constant 2 : index
    %c0_233 = arith.constant 0 : index
    %399 = vector.load %arg1[%c0_230, %c5_231, %c2_232, %c0_233] : memref<1x10x10x16xf32, #tpu.memory_space<vmem>>, vector<1x1x8x16xf32>
    %400 = vector.shape_cast %399 : vector<1x1x8x16xf32> to vector<8x16xf32>
    %401 = vector.extract_strided_slice %0 {offsets = [2, 0, 0], sizes = [1, 1, 16], strides = [1, 1, 1]} : vector<9x1x16xf32> to vector<1x1x16xf32>
    %402 = vector.shape_cast %401 : vector<1x1x16xf32> to vector<1x16xf32>
    %403 = vector.broadcast %402 : vector<1x16xf32> to vector<8x16xf32>
    %404 = arith.mulf %400, %403 : vector<8x16xf32>
    %405 = arith.addf %398, %404 : vector<8x16xf32>
    %c0_234 = arith.constant 0 : index
    %c6_235 = arith.constant 6 : index
    %c0_236 = arith.constant 0 : index
    %c0_237 = arith.constant 0 : index
    %406 = vector.load %arg1[%c0_234, %c6_235, %c0_236, %c0_237] : memref<1x10x10x16xf32, #tpu.memory_space<vmem>>, vector<1x1x8x16xf32>
    %407 = vector.shape_cast %406 : vector<1x1x8x16xf32> to vector<8x16xf32>
    %408 = vector.extract_strided_slice %0 {offsets = [3, 0, 0], sizes = [1, 1, 16], strides = [1, 1, 1]} : vector<9x1x16xf32> to vector<1x1x16xf32>
    %409 = vector.shape_cast %408 : vector<1x1x16xf32> to vector<1x16xf32>
    %410 = vector.broadcast %409 : vector<1x16xf32> to vector<8x16xf32>
    %411 = arith.mulf %407, %410 : vector<8x16xf32>
    %412 = arith.addf %405, %411 : vector<8x16xf32>
    %c0_238 = arith.constant 0 : index
    %c6_239 = arith.constant 6 : index
    %c1_240 = arith.constant 1 : index
    %c0_241 = arith.constant 0 : index
    %413 = vector.load %arg1[%c0_238, %c6_239, %c1_240, %c0_241] : memref<1x10x10x16xf32, #tpu.memory_space<vmem>>, vector<1x1x8x16xf32>
    %414 = vector.shape_cast %413 : vector<1x1x8x16xf32> to vector<8x16xf32>
    %415 = vector.extract_strided_slice %0 {offsets = [4, 0, 0], sizes = [1, 1, 16], strides = [1, 1, 1]} : vector<9x1x16xf32> to vector<1x1x16xf32>
    %416 = vector.shape_cast %415 : vector<1x1x16xf32> to vector<1x16xf32>
    %417 = vector.broadcast %416 : vector<1x16xf32> to vector<8x16xf32>
    %418 = arith.mulf %414, %417 : vector<8x16xf32>
    %419 = arith.addf %412, %418 : vector<8x16xf32>
    %c0_242 = arith.constant 0 : index
    %c6_243 = arith.constant 6 : index
    %c2_244 = arith.constant 2 : index
    %c0_245 = arith.constant 0 : index
    %420 = vector.load %arg1[%c0_242, %c6_243, %c2_244, %c0_245] : memref<1x10x10x16xf32, #tpu.memory_space<vmem>>, vector<1x1x8x16xf32>
    %421 = vector.shape_cast %420 : vector<1x1x8x16xf32> to vector<8x16xf32>
    %422 = vector.extract_strided_slice %0 {offsets = [5, 0, 0], sizes = [1, 1, 16], strides = [1, 1, 1]} : vector<9x1x16xf32> to vector<1x1x16xf32>
    %423 = vector.shape_cast %422 : vector<1x1x16xf32> to vector<1x16xf32>
    %424 = vector.broadcast %423 : vector<1x16xf32> to vector<8x16xf32>
    %425 = arith.mulf %421, %424 : vector<8x16xf32>
    %426 = arith.addf %419, %425 : vector<8x16xf32>
    %c0_246 = arith.constant 0 : index
    %c7 = arith.constant 7 : index
    %c0_247 = arith.constant 0 : index
    %c0_248 = arith.constant 0 : index
    %427 = vector.load %arg1[%c0_246, %c7, %c0_247, %c0_248] : memref<1x10x10x16xf32, #tpu.memory_space<vmem>>, vector<1x1x8x16xf32>
    %428 = vector.shape_cast %427 : vector<1x1x8x16xf32> to vector<8x16xf32>
    %429 = vector.extract_strided_slice %0 {offsets = [6, 0, 0], sizes = [1, 1, 16], strides = [1, 1, 1]} : vector<9x1x16xf32> to vector<1x1x16xf32>
    %430 = vector.shape_cast %429 : vector<1x1x16xf32> to vector<1x16xf32>
    %431 = vector.broadcast %430 : vector<1x16xf32> to vector<8x16xf32>
    %432 = arith.mulf %428, %431 : vector<8x16xf32>
    %433 = arith.addf %426, %432 : vector<8x16xf32>
    %c0_249 = arith.constant 0 : index
    %c7_250 = arith.constant 7 : index
    %c1_251 = arith.constant 1 : index
    %c0_252 = arith.constant 0 : index
    %434 = vector.load %arg1[%c0_249, %c7_250, %c1_251, %c0_252] : memref<1x10x10x16xf32, #tpu.memory_space<vmem>>, vector<1x1x8x16xf32>
    %435 = vector.shape_cast %434 : vector<1x1x8x16xf32> to vector<8x16xf32>
    %436 = vector.extract_strided_slice %0 {offsets = [7, 0, 0], sizes = [1, 1, 16], strides = [1, 1, 1]} : vector<9x1x16xf32> to vector<1x1x16xf32>
    %437 = vector.shape_cast %436 : vector<1x1x16xf32> to vector<1x16xf32>
    %438 = vector.broadcast %437 : vector<1x16xf32> to vector<8x16xf32>
    %439 = arith.mulf %435, %438 : vector<8x16xf32>
    %440 = arith.addf %433, %439 : vector<8x16xf32>
    %c0_253 = arith.constant 0 : index
    %c7_254 = arith.constant 7 : index
    %c2_255 = arith.constant 2 : index
    %c0_256 = arith.constant 0 : index
    %441 = vector.load %arg1[%c0_253, %c7_254, %c2_255, %c0_256] : memref<1x10x10x16xf32, #tpu.memory_space<vmem>>, vector<1x1x8x16xf32>
    %442 = vector.shape_cast %441 : vector<1x1x8x16xf32> to vector<8x16xf32>
    %443 = vector.extract_strided_slice %0 {offsets = [8, 0, 0], sizes = [1, 1, 16], strides = [1, 1, 1]} : vector<9x1x16xf32> to vector<1x1x16xf32>
    %444 = vector.shape_cast %443 : vector<1x1x16xf32> to vector<1x16xf32>
    %445 = vector.broadcast %444 : vector<1x16xf32> to vector<8x16xf32>
    %446 = arith.mulf %442, %445 : vector<8x16xf32>
    %447 = arith.addf %440, %446 : vector<8x16xf32>
    %448 = vector.broadcast %1 : vector<1x16xf32> to vector<8x16xf32>
    %449 = arith.addf %447, %448 : vector<8x16xf32>
    %cst_257 = arith.constant 0.000000e+00 : f32
    %450 = vector.broadcast %cst_257 : f32 to vector<8x16xf32>
    %451 = arith.maximumf %449, %450 : vector<8x16xf32>
    %cst_258 = arith.constant dense<0.000000e+00> : vector<8x32xf32>
    %452 = tpu.matmul %451, %2, %cst_258 {dimension_numbers = #tpu.dot_dimension_numbers<[1], [0], [0], [1], [0, 0, 1, 1], [], []>} : vector<8x16xf32>, vector<16x32xf32>, vector<8x32xf32> -> vector<8x32xf32>
    %453 = vector.broadcast %3 : vector<1x32xf32> to vector<8x32xf32>
    %454 = arith.addf %452, %453 : vector<8x32xf32>
    %cst_259 = arith.constant 0.000000e+00 : f32
    %455 = vector.broadcast %cst_259 : f32 to vector<8x32xf32>
    %456 = arith.maximumf %454, %455 : vector<8x32xf32>
    %c0_260 = arith.constant 0 : index
    %c5_261 = arith.constant 5 : index
    %c0_262 = arith.constant 0 : index
    %c0_263 = arith.constant 0 : index
    %457 = vector.load %arg6[%c0_260, %c5_261, %c0_262, %c0_263] : memref<1x8x8x32xf32, #tpu.memory_space<vmem>>, vector<1x1x8x32xf32>
    %458 = vector.shape_cast %457 : vector<1x1x8x32xf32> to vector<8x32xf32>
    %459 = vector.shape_cast %456 : vector<8x32xf32> to vector<1x1x8x32xf32>
    tpu.vector_store %arg6[%c0_260, %c5_261, %c0_262, %c0_263], %459 {strides = array<i32>} : memref<1x8x8x32xf32, #tpu.memory_space<vmem>>, vector<1x1x8x32xf32>,
    %cst_264 = arith.constant 0.000000e+00 : f32
    %460 = vector.broadcast %cst_264 : f32 to vector<8x16xf32>
    %c0_265 = arith.constant 0 : index
    %c6_266 = arith.constant 6 : index
    %c0_267 = arith.constant 0 : index
    %c0_268 = arith.constant 0 : index
    %461 = vector.load %arg1[%c0_265, %c6_266, %c0_267, %c0_268] : memref<1x10x10x16xf32, #tpu.memory_space<vmem>>, vector<1x1x8x16xf32>
    %462 = vector.shape_cast %461 : vector<1x1x8x16xf32> to vector<8x16xf32>
    %463 = vector.extract_strided_slice %0 {offsets = [0, 0, 0], sizes = [1, 1, 16], strides = [1, 1, 1]} : vector<9x1x16xf32> to vector<1x1x16xf32>
    %464 = vector.shape_cast %463 : vector<1x1x16xf32> to vector<1x16xf32>
    %465 = vector.broadcast %464 : vector<1x16xf32> to vector<8x16xf32>
    %466 = arith.mulf %462, %465 : vector<8x16xf32>
    %467 = arith.addf %460, %466 : vector<8x16xf32>
    %c0_269 = arith.constant 0 : index
    %c6_270 = arith.constant 6 : index
    %c1_271 = arith.constant 1 : index
    %c0_272 = arith.constant 0 : index
    %468 = vector.load %arg1[%c0_269, %c6_270, %c1_271, %c0_272] : memref<1x10x10x16xf32, #tpu.memory_space<vmem>>, vector<1x1x8x16xf32>
    %469 = vector.shape_cast %468 : vector<1x1x8x16xf32> to vector<8x16xf32>
    %470 = vector.extract_strided_slice %0 {offsets = [1, 0, 0], sizes = [1, 1, 16], strides = [1, 1, 1]} : vector<9x1x16xf32> to vector<1x1x16xf32>
    %471 = vector.shape_cast %470 : vector<1x1x16xf32> to vector<1x16xf32>
    %472 = vector.broadcast %471 : vector<1x16xf32> to vector<8x16xf32>
    %473 = arith.mulf %469, %472 : vector<8x16xf32>
    %474 = arith.addf %467, %473 : vector<8x16xf32>
    %c0_273 = arith.constant 0 : index
    %c6_274 = arith.constant 6 : index
    %c2_275 = arith.constant 2 : index
    %c0_276 = arith.constant 0 : index
    %475 = vector.load %arg1[%c0_273, %c6_274, %c2_275, %c0_276] : memref<1x10x10x16xf32, #tpu.memory_space<vmem>>, vector<1x1x8x16xf32>
    %476 = vector.shape_cast %475 : vector<1x1x8x16xf32> to vector<8x16xf32>
    %477 = vector.extract_strided_slice %0 {offsets = [2, 0, 0], sizes = [1, 1, 16], strides = [1, 1, 1]} : vector<9x1x16xf32> to vector<1x1x16xf32>
    %478 = vector.shape_cast %477 : vector<1x1x16xf32> to vector<1x16xf32>
    %479 = vector.broadcast %478 : vector<1x16xf32> to vector<8x16xf32>
    %480 = arith.mulf %476, %479 : vector<8x16xf32>
    %481 = arith.addf %474, %480 : vector<8x16xf32>
    %c0_277 = arith.constant 0 : index
    %c7_278 = arith.constant 7 : index
    %c0_279 = arith.constant 0 : index
    %c0_280 = arith.constant 0 : index
    %482 = vector.load %arg1[%c0_277, %c7_278, %c0_279, %c0_280] : memref<1x10x10x16xf32, #tpu.memory_space<vmem>>, vector<1x1x8x16xf32>
    %483 = vector.shape_cast %482 : vector<1x1x8x16xf32> to vector<8x16xf32>
    %484 = vector.extract_strided_slice %0 {offsets = [3, 0, 0], sizes = [1, 1, 16], strides = [1, 1, 1]} : vector<9x1x16xf32> to vector<1x1x16xf32>
    %485 = vector.shape_cast %484 : vector<1x1x16xf32> to vector<1x16xf32>
    %486 = vector.broadcast %485 : vector<1x16xf32> to vector<8x16xf32>
    %487 = arith.mulf %483, %486 : vector<8x16xf32>
    %488 = arith.addf %481, %487 : vector<8x16xf32>
    %c0_281 = arith.constant 0 : index
    %c7_282 = arith.constant 7 : index
    %c1_283 = arith.constant 1 : index
    %c0_284 = arith.constant 0 : index
    %489 = vector.load %arg1[%c0_281, %c7_282, %c1_283, %c0_284] : memref<1x10x10x16xf32, #tpu.memory_space<vmem>>, vector<1x1x8x16xf32>
    %490 = vector.shape_cast %489 : vector<1x1x8x16xf32> to vector<8x16xf32>
    %491 = vector.extract_strided_slice %0 {offsets = [4, 0, 0], sizes = [1, 1, 16], strides = [1, 1, 1]} : vector<9x1x16xf32> to vector<1x1x16xf32>
    %492 = vector.shape_cast %491 : vector<1x1x16xf32> to vector<1x16xf32>
    %493 = vector.broadcast %492 : vector<1x16xf32> to vector<8x16xf32>
    %494 = arith.mulf %490, %493 : vector<8x16xf32>
    %495 = arith.addf %488, %494 : vector<8x16xf32>
    %c0_285 = arith.constant 0 : index
    %c7_286 = arith.constant 7 : index
    %c2_287 = arith.constant 2 : index
    %c0_288 = arith.constant 0 : index
    %496 = vector.load %arg1[%c0_285, %c7_286, %c2_287, %c0_288] : memref<1x10x10x16xf32, #tpu.memory_space<vmem>>, vector<1x1x8x16xf32>
    %497 = vector.shape_cast %496 : vector<1x1x8x16xf32> to vector<8x16xf32>
    %498 = vector.extract_strided_slice %0 {offsets = [5, 0, 0], sizes = [1, 1, 16], strides = [1, 1, 1]} : vector<9x1x16xf32> to vector<1x1x16xf32>
    %499 = vector.shape_cast %498 : vector<1x1x16xf32> to vector<1x16xf32>
    %500 = vector.broadcast %499 : vector<1x16xf32> to vector<8x16xf32>
    %501 = arith.mulf %497, %500 : vector<8x16xf32>
    %502 = arith.addf %495, %501 : vector<8x16xf32>
    %c0_289 = arith.constant 0 : index
    %c8 = arith.constant 8 : index
    %c0_290 = arith.constant 0 : index
    %c0_291 = arith.constant 0 : index
    %503 = vector.load %arg1[%c0_289, %c8, %c0_290, %c0_291] : memref<1x10x10x16xf32, #tpu.memory_space<vmem>>, vector<1x1x8x16xf32>
    %504 = vector.shape_cast %503 : vector<1x1x8x16xf32> to vector<8x16xf32>
    %505 = vector.extract_strided_slice %0 {offsets = [6, 0, 0], sizes = [1, 1, 16], strides = [1, 1, 1]} : vector<9x1x16xf32> to vector<1x1x16xf32>
    %506 = vector.shape_cast %505 : vector<1x1x16xf32> to vector<1x16xf32>
    %507 = vector.broadcast %506 : vector<1x16xf32> to vector<8x16xf32>
    %508 = arith.mulf %504, %507 : vector<8x16xf32>
    %509 = arith.addf %502, %508 : vector<8x16xf32>
    %c0_292 = arith.constant 0 : index
    %c8_293 = arith.constant 8 : index
    %c1_294 = arith.constant 1 : index
    %c0_295 = arith.constant 0 : index
    %510 = vector.load %arg1[%c0_292, %c8_293, %c1_294, %c0_295] : memref<1x10x10x16xf32, #tpu.memory_space<vmem>>, vector<1x1x8x16xf32>
    %511 = vector.shape_cast %510 : vector<1x1x8x16xf32> to vector<8x16xf32>
    %512 = vector.extract_strided_slice %0 {offsets = [7, 0, 0], sizes = [1, 1, 16], strides = [1, 1, 1]} : vector<9x1x16xf32> to vector<1x1x16xf32>
    %513 = vector.shape_cast %512 : vector<1x1x16xf32> to vector<1x16xf32>
    %514 = vector.broadcast %513 : vector<1x16xf32> to vector<8x16xf32>
    %515 = arith.mulf %511, %514 : vector<8x16xf32>
    %516 = arith.addf %509, %515 : vector<8x16xf32>
    %c0_296 = arith.constant 0 : index
    %c8_297 = arith.constant 8 : index
    %c2_298 = arith.constant 2 : index
    %c0_299 = arith.constant 0 : index
    %517 = vector.load %arg1[%c0_296, %c8_297, %c2_298, %c0_299] : memref<1x10x10x16xf32, #tpu.memory_space<vmem>>, vector<1x1x8x16xf32>
    %518 = vector.shape_cast %517 : vector<1x1x8x16xf32> to vector<8x16xf32>
    %519 = vector.extract_strided_slice %0 {offsets = [8, 0, 0], sizes = [1, 1, 16], strides = [1, 1, 1]} : vector<9x1x16xf32> to vector<1x1x16xf32>
    %520 = vector.shape_cast %519 : vector<1x1x16xf32> to vector<1x16xf32>
    %521 = vector.broadcast %520 : vector<1x16xf32> to vector<8x16xf32>
    %522 = arith.mulf %518, %521 : vector<8x16xf32>
    %523 = arith.addf %516, %522 : vector<8x16xf32>
    %524 = vector.broadcast %1 : vector<1x16xf32> to vector<8x16xf32>
    %525 = arith.addf %523, %524 : vector<8x16xf32>
    %cst_300 = arith.constant 0.000000e+00 : f32
    %526 = vector.broadcast %cst_300 : f32 to vector<8x16xf32>
    %527 = arith.maximumf %525, %526 : vector<8x16xf32>
    %cst_301 = arith.constant dense<0.000000e+00> : vector<8x32xf32>
    %528 = tpu.matmul %527, %2, %cst_301 {dimension_numbers = #tpu.dot_dimension_numbers<[1], [0], [0], [1], [0, 0, 1, 1], [], []>} : vector<8x16xf32>, vector<16x32xf32>, vector<8x32xf32> -> vector<8x32xf32>
    %529 = vector.broadcast %3 : vector<1x32xf32> to vector<8x32xf32>
    %530 = arith.addf %528, %529 : vector<8x32xf32>
    %cst_302 = arith.constant 0.000000e+00 : f32
    %531 = vector.broadcast %cst_302 : f32 to vector<8x32xf32>
    %532 = arith.maximumf %530, %531 : vector<8x32xf32>
    %c0_303 = arith.constant 0 : index
    %c6_304 = arith.constant 6 : index
    %c0_305 = arith.constant 0 : index
    %c0_306 = arith.constant 0 : index
    %533 = vector.load %arg6[%c0_303, %c6_304, %c0_305, %c0_306] : memref<1x8x8x32xf32, #tpu.memory_space<vmem>>, vector<1x1x8x32xf32>
    %534 = vector.shape_cast %533 : vector<1x1x8x32xf32> to vector<8x32xf32>
    %535 = vector.shape_cast %532 : vector<8x32xf32> to vector<1x1x8x32xf32>
    tpu.vector_store %arg6[%c0_303, %c6_304, %c0_305, %c0_306], %535 {strides = array<i32>} : memref<1x8x8x32xf32, #tpu.memory_space<vmem>>, vector<1x1x8x32xf32>,
    %cst_307 = arith.constant 0.000000e+00 : f32
    %536 = vector.broadcast %cst_307 : f32 to vector<8x16xf32>
    %c0_308 = arith.constant 0 : index
    %c7_309 = arith.constant 7 : index
    %c0_310 = arith.constant 0 : index
    %c0_311 = arith.constant 0 : index
    %537 = vector.load %arg1[%c0_308, %c7_309, %c0_310, %c0_311] : memref<1x10x10x16xf32, #tpu.memory_space<vmem>>, vector<1x1x8x16xf32>
    %538 = vector.shape_cast %537 : vector<1x1x8x16xf32> to vector<8x16xf32>
    %539 = vector.extract_strided_slice %0 {offsets = [0, 0, 0], sizes = [1, 1, 16], strides = [1, 1, 1]} : vector<9x1x16xf32> to vector<1x1x16xf32>
    %540 = vector.shape_cast %539 : vector<1x1x16xf32> to vector<1x16xf32>
    %541 = vector.broadcast %540 : vector<1x16xf32> to vector<8x16xf32>
    %542 = arith.mulf %538, %541 : vector<8x16xf32>
    %543 = arith.addf %536, %542 : vector<8x16xf32>
    %c0_312 = arith.constant 0 : index
    %c7_313 = arith.constant 7 : index
    %c1_314 = arith.constant 1 : index
    %c0_315 = arith.constant 0 : index
    %544 = vector.load %arg1[%c0_312, %c7_313, %c1_314, %c0_315] : memref<1x10x10x16xf32, #tpu.memory_space<vmem>>, vector<1x1x8x16xf32>
    %545 = vector.shape_cast %544 : vector<1x1x8x16xf32> to vector<8x16xf32>
    %546 = vector.extract_strided_slice %0 {offsets = [1, 0, 0], sizes = [1, 1, 16], strides = [1, 1, 1]} : vector<9x1x16xf32> to vector<1x1x16xf32>
    %547 = vector.shape_cast %546 : vector<1x1x16xf32> to vector<1x16xf32>
    %548 = vector.broadcast %547 : vector<1x16xf32> to vector<8x16xf32>
    %549 = arith.mulf %545, %548 : vector<8x16xf32>
    %550 = arith.addf %543, %549 : vector<8x16xf32>
    %c0_316 = arith.constant 0 : index
    %c7_317 = arith.constant 7 : index
    %c2_318 = arith.constant 2 : index
    %c0_319 = arith.constant 0 : index
    %551 = vector.load %arg1[%c0_316, %c7_317, %c2_318, %c0_319] : memref<1x10x10x16xf32, #tpu.memory_space<vmem>>, vector<1x1x8x16xf32>
    %552 = vector.shape_cast %551 : vector<1x1x8x16xf32> to vector<8x16xf32>
    %553 = vector.extract_strided_slice %0 {offsets = [2, 0, 0], sizes = [1, 1, 16], strides = [1, 1, 1]} : vector<9x1x16xf32> to vector<1x1x16xf32>
    %554 = vector.shape_cast %553 : vector<1x1x16xf32> to vector<1x16xf32>
    %555 = vector.broadcast %554 : vector<1x16xf32> to vector<8x16xf32>
    %556 = arith.mulf %552, %555 : vector<8x16xf32>
    %557 = arith.addf %550, %556 : vector<8x16xf32>
    %c0_320 = arith.constant 0 : index
    %c8_321 = arith.constant 8 : index
    %c0_322 = arith.constant 0 : index
    %c0_323 = arith.constant 0 : index
    %558 = vector.load %arg1[%c0_320, %c8_321, %c0_322, %c0_323] : memref<1x10x10x16xf32, #tpu.memory_space<vmem>>, vector<1x1x8x16xf32>
    %559 = vector.shape_cast %558 : vector<1x1x8x16xf32> to vector<8x16xf32>
    %560 = vector.extract_strided_slice %0 {offsets = [3, 0, 0], sizes = [1, 1, 16], strides = [1, 1, 1]} : vector<9x1x16xf32> to vector<1x1x16xf32>
    %561 = vector.shape_cast %560 : vector<1x1x16xf32> to vector<1x16xf32>
    %562 = vector.broadcast %561 : vector<1x16xf32> to vector<8x16xf32>
    %563 = arith.mulf %559, %562 : vector<8x16xf32>
    %564 = arith.addf %557, %563 : vector<8x16xf32>
    %c0_324 = arith.constant 0 : index
    %c8_325 = arith.constant 8 : index
    %c1_326 = arith.constant 1 : index
    %c0_327 = arith.constant 0 : index
    %565 = vector.load %arg1[%c0_324, %c8_325, %c1_326, %c0_327] : memref<1x10x10x16xf32, #tpu.memory_space<vmem>>, vector<1x1x8x16xf32>
    %566 = vector.shape_cast %565 : vector<1x1x8x16xf32> to vector<8x16xf32>
    %567 = vector.extract_strided_slice %0 {offsets = [4, 0, 0], sizes = [1, 1, 16], strides = [1, 1, 1]} : vector<9x1x16xf32> to vector<1x1x16xf32>
    %568 = vector.shape_cast %567 : vector<1x1x16xf32> to vector<1x16xf32>
    %569 = vector.broadcast %568 : vector<1x16xf32> to vector<8x16xf32>
    %570 = arith.mulf %566, %569 : vector<8x16xf32>
    %571 = arith.addf %564, %570 : vector<8x16xf32>
    %c0_328 = arith.constant 0 : index
    %c8_329 = arith.constant 8 : index
    %c2_330 = arith.constant 2 : index
    %c0_331 = arith.constant 0 : index
    %572 = vector.load %arg1[%c0_328, %c8_329, %c2_330, %c0_331] : memref<1x10x10x16xf32, #tpu.memory_space<vmem>>, vector<1x1x8x16xf32>
    %573 = vector.shape_cast %572 : vector<1x1x8x16xf32> to vector<8x16xf32>
    %574 = vector.extract_strided_slice %0 {offsets = [5, 0, 0], sizes = [1, 1, 16], strides = [1, 1, 1]} : vector<9x1x16xf32> to vector<1x1x16xf32>
    %575 = vector.shape_cast %574 : vector<1x1x16xf32> to vector<1x16xf32>
    %576 = vector.broadcast %575 : vector<1x16xf32> to vector<8x16xf32>
    %577 = arith.mulf %573, %576 : vector<8x16xf32>
    %578 = arith.addf %571, %577 : vector<8x16xf32>
    %c0_332 = arith.constant 0 : index
    %c9 = arith.constant 9 : index
    %c0_333 = arith.constant 0 : index
    %c0_334 = arith.constant 0 : index
    %579 = vector.load %arg1[%c0_332, %c9, %c0_333, %c0_334] : memref<1x10x10x16xf32, #tpu.memory_space<vmem>>, vector<1x1x8x16xf32>
    %580 = vector.shape_cast %579 : vector<1x1x8x16xf32> to vector<8x16xf32>
    %581 = vector.extract_strided_slice %0 {offsets = [6, 0, 0], sizes = [1, 1, 16], strides = [1, 1, 1]} : vector<9x1x16xf32> to vector<1x1x16xf32>
    %582 = vector.shape_cast %581 : vector<1x1x16xf32> to vector<1x16xf32>
    %583 = vector.broadcast %582 : vector<1x16xf32> to vector<8x16xf32>
    %584 = arith.mulf %580, %583 : vector<8x16xf32>
    %585 = arith.addf %578, %584 : vector<8x16xf32>
    %c0_335 = arith.constant 0 : index
    %c9_336 = arith.constant 9 : index
    %c1_337 = arith.constant 1 : index
    %c0_338 = arith.constant 0 : index
    %586 = vector.load %arg1[%c0_335, %c9_336, %c1_337, %c0_338] : memref<1x10x10x16xf32, #tpu.memory_space<vmem>>, vector<1x1x8x16xf32>
    %587 = vector.shape_cast %586 : vector<1x1x8x16xf32> to vector<8x16xf32>
    %588 = vector.extract_strided_slice %0 {offsets = [7, 0, 0], sizes = [1, 1, 16], strides = [1, 1, 1]} : vector<9x1x16xf32> to vector<1x1x16xf32>
    %589 = vector.shape_cast %588 : vector<1x1x16xf32> to vector<1x16xf32>
    %590 = vector.broadcast %589 : vector<1x16xf32> to vector<8x16xf32>
    %591 = arith.mulf %587, %590 : vector<8x16xf32>
    %592 = arith.addf %585, %591 : vector<8x16xf32>
    %c0_339 = arith.constant 0 : index
    %c9_340 = arith.constant 9 : index
    %c2_341 = arith.constant 2 : index
    %c0_342 = arith.constant 0 : index
    %593 = vector.load %arg1[%c0_339, %c9_340, %c2_341, %c0_342] : memref<1x10x10x16xf32, #tpu.memory_space<vmem>>, vector<1x1x8x16xf32>
    %594 = vector.shape_cast %593 : vector<1x1x8x16xf32> to vector<8x16xf32>
    %595 = vector.extract_strided_slice %0 {offsets = [8, 0, 0], sizes = [1, 1, 16], strides = [1, 1, 1]} : vector<9x1x16xf32> to vector<1x1x16xf32>
    %596 = vector.shape_cast %595 : vector<1x1x16xf32> to vector<1x16xf32>
    %597 = vector.broadcast %596 : vector<1x16xf32> to vector<8x16xf32>
    %598 = arith.mulf %594, %597 : vector<8x16xf32>
    %599 = arith.addf %592, %598 : vector<8x16xf32>
    %600 = vector.broadcast %1 : vector<1x16xf32> to vector<8x16xf32>
    %601 = arith.addf %599, %600 : vector<8x16xf32>
    %cst_343 = arith.constant 0.000000e+00 : f32
    %602 = vector.broadcast %cst_343 : f32 to vector<8x16xf32>
    %603 = arith.maximumf %601, %602 : vector<8x16xf32>
    %cst_344 = arith.constant dense<0.000000e+00> : vector<8x32xf32>
    %604 = tpu.matmul %603, %2, %cst_344 {dimension_numbers = #tpu.dot_dimension_numbers<[1], [0], [0], [1], [0, 0, 1, 1], [], []>} : vector<8x16xf32>, vector<16x32xf32>, vector<8x32xf32> -> vector<8x32xf32>
    %605 = vector.broadcast %3 : vector<1x32xf32> to vector<8x32xf32>
    %606 = arith.addf %604, %605 : vector<8x32xf32>
    %cst_345 = arith.constant 0.000000e+00 : f32
    %607 = vector.broadcast %cst_345 : f32 to vector<8x32xf32>
    %608 = arith.maximumf %606, %607 : vector<8x32xf32>
    %c0_346 = arith.constant 0 : index
    %c7_347 = arith.constant 7 : index
    %c0_348 = arith.constant 0 : index
    %c0_349 = arith.constant 0 : index
    %609 = vector.load %arg6[%c0_346, %c7_347, %c0_348, %c0_349] : memref<1x8x8x32xf32, #tpu.memory_space<vmem>>, vector<1x1x8x32xf32>
    %610 = vector.shape_cast %609 : vector<1x1x8x32xf32> to vector<8x32xf32>
    %611 = vector.shape_cast %608 : vector<8x32xf32> to vector<1x1x8x32xf32>
    tpu.vector_store %arg6[%c0_346, %c7_347, %c0_348, %c0_349], %611 {strides = array<i32>} : memref<1x8x8x32xf32, #tpu.memory_space<vmem>>, vector<1x1x8x32xf32>,
    return
  }
  func.func @transform_0(%arg0: i32) -> (i32, i32, i32, i32) {
    %c0_i32 = arith.constant 0 : i32
    %c0_i32_0 = arith.constant 0 : i32
    %c0_i32_1 = arith.constant 0 : i32
    %c0_i32_2 = arith.constant 0 : i32
    return %arg0, %c0_i32, %c0_i32_0, %c0_i32_1 : i32, i32, i32, i32
  }
  func.func @transform_1(%arg0: i32) -> (i32, i32, i32) {
    %c0_i32 = arith.constant 0 : i32
    %c0_i32_0 = arith.constant 0 : i32
    %c0_i32_1 = arith.constant 0 : i32
    %c0_i32_2 = arith.constant 0 : i32
    return %c0_i32, %c0_i32_0, %c0_i32_1 : i32, i32, i32
  }
  func.func @transform_2(%arg0: i32) -> (i32, i32) {
    %c0_i32 = arith.constant 0 : i32
    %c0_i32_0 = arith.constant 0 : i32
    %c0_i32_1 = arith.constant 0 : i32
    return %c0_i32, %c0_i32_0 : i32, i32
  }
  func.func @transform_3(%arg0: i32) -> (i32, i32) {
    %c0_i32 = arith.constant 0 : i32
    %c0_i32_0 = arith.constant 0 : i32
    %c0_i32_1 = arith.constant 0 : i32
    return %c0_i32, %c0_i32_0 : i32, i32
  }
  func.func @transform_4(%arg0: i32) -> (i32, i32) {
    %c0_i32 = arith.constant 0 : i32
    %c0_i32_0 = arith.constant 0 : i32
    %c0_i32_1 = arith.constant 0 : i32
    return %c0_i32, %c0_i32_0 : i32, i32
  }
  func.func @transform_5(%arg0: i32) -> (i32, i32, i32, i32) {
    %c0_i32 = arith.constant 0 : i32
    %c0_i32_0 = arith.constant 0 : i32
    %c0_i32_1 = arith.constant 0 : i32
    %c0_i32_2 = arith.constant 0 : i32
    return %arg0, %c0_i32, %c0_i32_0, %c0_i32_1 : i32, i32, i32, i32
  }
}

module attributes {stable_mosaic.version = 11 : i64} {
  func.func @dw_pw_block_kernel(%arg0: i32, %arg1: memref<1x6x6x32xf32, #tpu.memory_space<vmem>>, %arg2: memref<9x1x32xf32, #tpu.memory_space<vmem>>, %arg3: memref<1x32xf32, #tpu.memory_space<vmem>>, %arg4: memref<32x32xf32, #tpu.memory_space<vmem>>, %arg5: memref<1x32xf32, #tpu.memory_space<vmem>>, %arg6: memref<1x4x4x32xf32, #tpu.memory_space<vmem>>) attributes {dimension_semantics = [#tpu.dimension_semantics<parallel>], iteration_bounds = array<i64: 2>, scalar_prefetch = 0 : i64, scratch_operands = 0 : i64, tpu.core_type = #tpu.core_type<tc>, window_params = [{transform_indices = @transform_0, window_bounds = array<i64: 1, 6, 6, 32>}, {pipeline_mode = #tpu.pipeline_mode<synchronous>, transform_indices = @transform_1, window_bounds = array<i64: 9, 1, 32>}, {pipeline_mode = #tpu.pipeline_mode<synchronous>, transform_indices = @transform_2, window_bounds = array<i64: 1, 32>}, {pipeline_mode = #tpu.pipeline_mode<synchronous>, transform_indices = @transform_3, window_bounds = array<i64: 32, 32>}, {pipeline_mode = #tpu.pipeline_mode<synchronous>, transform_indices = @transform_4, window_bounds = array<i64: 1, 32>}, {transform_indices = @transform_5, window_bounds = array<i64: 1, 4, 4, 32>}]} {
    %c0 = arith.constant 0 : index
    %c0_0 = arith.constant 0 : index
    %c0_1 = arith.constant 0 : index
    %0 = vector.load %arg2[%c0, %c0_0, %c0_1] : memref<9x1x32xf32, #tpu.memory_space<vmem>>, vector<9x1x32xf32>
    %c0_2 = arith.constant 0 : index
    %c0_3 = arith.constant 0 : index
    %1 = vector.load %arg3[%c0_2, %c0_3] : memref<1x32xf32, #tpu.memory_space<vmem>>, vector<1x32xf32>
    %c0_4 = arith.constant 0 : index
    %c0_5 = arith.constant 0 : index
    %2 = vector.load %arg4[%c0_4, %c0_5] : memref<32x32xf32, #tpu.memory_space<vmem>>, vector<32x32xf32>
    %c0_6 = arith.constant 0 : index
    %c0_7 = arith.constant 0 : index
    %3 = vector.load %arg5[%c0_6, %c0_7] : memref<1x32xf32, #tpu.memory_space<vmem>>, vector<1x32xf32>
    %cst = arith.constant 0.000000e+00 : f32
    %4 = vector.broadcast %cst : f32 to vector<4x32xf32>
    %c0_8 = arith.constant 0 : index
    %c0_9 = arith.constant 0 : index
    %c0_10 = arith.constant 0 : index
    %c0_11 = arith.constant 0 : index
    %5 = vector.load %arg1[%c0_8, %c0_9, %c0_10, %c0_11] : memref<1x6x6x32xf32, #tpu.memory_space<vmem>>, vector<1x1x4x32xf32>
    %6 = vector.shape_cast %5 : vector<1x1x4x32xf32> to vector<4x32xf32>
    %7 = vector.extract_strided_slice %0 {offsets = [0, 0, 0], sizes = [1, 1, 32], strides = [1, 1, 1]} : vector<9x1x32xf32> to vector<1x1x32xf32>
    %8 = vector.shape_cast %7 : vector<1x1x32xf32> to vector<1x32xf32>
    %9 = vector.broadcast %8 : vector<1x32xf32> to vector<4x32xf32>
    %10 = arith.mulf %6, %9 : vector<4x32xf32>
    %11 = arith.addf %4, %10 : vector<4x32xf32>
    %c0_12 = arith.constant 0 : index
    %c0_13 = arith.constant 0 : index
    %c1 = arith.constant 1 : index
    %c0_14 = arith.constant 0 : index
    %12 = vector.load %arg1[%c0_12, %c0_13, %c1, %c0_14] : memref<1x6x6x32xf32, #tpu.memory_space<vmem>>, vector<1x1x4x32xf32>
    %13 = vector.shape_cast %12 : vector<1x1x4x32xf32> to vector<4x32xf32>
    %14 = vector.extract_strided_slice %0 {offsets = [1, 0, 0], sizes = [1, 1, 32], strides = [1, 1, 1]} : vector<9x1x32xf32> to vector<1x1x32xf32>
    %15 = vector.shape_cast %14 : vector<1x1x32xf32> to vector<1x32xf32>
    %16 = vector.broadcast %15 : vector<1x32xf32> to vector<4x32xf32>
    %17 = arith.mulf %13, %16 : vector<4x32xf32>
    %18 = arith.addf %11, %17 : vector<4x32xf32>
    %c0_15 = arith.constant 0 : index
    %c0_16 = arith.constant 0 : index
    %c2 = arith.constant 2 : index
    %c0_17 = arith.constant 0 : index
    %19 = vector.load %arg1[%c0_15, %c0_16, %c2, %c0_17] : memref<1x6x6x32xf32, #tpu.memory_space<vmem>>, vector<1x1x4x32xf32>
    %20 = vector.shape_cast %19 : vector<1x1x4x32xf32> to vector<4x32xf32>
    %21 = vector.extract_strided_slice %0 {offsets = [2, 0, 0], sizes = [1, 1, 32], strides = [1, 1, 1]} : vector<9x1x32xf32> to vector<1x1x32xf32>
    %22 = vector.shape_cast %21 : vector<1x1x32xf32> to vector<1x32xf32>
    %23 = vector.broadcast %22 : vector<1x32xf32> to vector<4x32xf32>
    %24 = arith.mulf %20, %23 : vector<4x32xf32>
    %25 = arith.addf %18, %24 : vector<4x32xf32>
    %c0_18 = arith.constant 0 : index
    %c1_19 = arith.constant 1 : index
    %c0_20 = arith.constant 0 : index
    %c0_21 = arith.constant 0 : index
    %26 = vector.load %arg1[%c0_18, %c1_19, %c0_20, %c0_21] : memref<1x6x6x32xf32, #tpu.memory_space<vmem>>, vector<1x1x4x32xf32>
    %27 = vector.shape_cast %26 : vector<1x1x4x32xf32> to vector<4x32xf32>
    %28 = vector.extract_strided_slice %0 {offsets = [3, 0, 0], sizes = [1, 1, 32], strides = [1, 1, 1]} : vector<9x1x32xf32> to vector<1x1x32xf32>
    %29 = vector.shape_cast %28 : vector<1x1x32xf32> to vector<1x32xf32>
    %30 = vector.broadcast %29 : vector<1x32xf32> to vector<4x32xf32>
    %31 = arith.mulf %27, %30 : vector<4x32xf32>
    %32 = arith.addf %25, %31 : vector<4x32xf32>
    %c0_22 = arith.constant 0 : index
    %c1_23 = arith.constant 1 : index
    %c1_24 = arith.constant 1 : index
    %c0_25 = arith.constant 0 : index
    %33 = vector.load %arg1[%c0_22, %c1_23, %c1_24, %c0_25] : memref<1x6x6x32xf32, #tpu.memory_space<vmem>>, vector<1x1x4x32xf32>
    %34 = vector.shape_cast %33 : vector<1x1x4x32xf32> to vector<4x32xf32>
    %35 = vector.extract_strided_slice %0 {offsets = [4, 0, 0], sizes = [1, 1, 32], strides = [1, 1, 1]} : vector<9x1x32xf32> to vector<1x1x32xf32>
    %36 = vector.shape_cast %35 : vector<1x1x32xf32> to vector<1x32xf32>
    %37 = vector.broadcast %36 : vector<1x32xf32> to vector<4x32xf32>
    %38 = arith.mulf %34, %37 : vector<4x32xf32>
    %39 = arith.addf %32, %38 : vector<4x32xf32>
    %c0_26 = arith.constant 0 : index
    %c1_27 = arith.constant 1 : index
    %c2_28 = arith.constant 2 : index
    %c0_29 = arith.constant 0 : index
    %40 = vector.load %arg1[%c0_26, %c1_27, %c2_28, %c0_29] : memref<1x6x6x32xf32, #tpu.memory_space<vmem>>, vector<1x1x4x32xf32>
    %41 = vector.shape_cast %40 : vector<1x1x4x32xf32> to vector<4x32xf32>
    %42 = vector.extract_strided_slice %0 {offsets = [5, 0, 0], sizes = [1, 1, 32], strides = [1, 1, 1]} : vector<9x1x32xf32> to vector<1x1x32xf32>
    %43 = vector.shape_cast %42 : vector<1x1x32xf32> to vector<1x32xf32>
    %44 = vector.broadcast %43 : vector<1x32xf32> to vector<4x32xf32>
    %45 = arith.mulf %41, %44 : vector<4x32xf32>
    %46 = arith.addf %39, %45 : vector<4x32xf32>
    %c0_30 = arith.constant 0 : index
    %c2_31 = arith.constant 2 : index
    %c0_32 = arith.constant 0 : index
    %c0_33 = arith.constant 0 : index
    %47 = vector.load %arg1[%c0_30, %c2_31, %c0_32, %c0_33] : memref<1x6x6x32xf32, #tpu.memory_space<vmem>>, vector<1x1x4x32xf32>
    %48 = vector.shape_cast %47 : vector<1x1x4x32xf32> to vector<4x32xf32>
    %49 = vector.extract_strided_slice %0 {offsets = [6, 0, 0], sizes = [1, 1, 32], strides = [1, 1, 1]} : vector<9x1x32xf32> to vector<1x1x32xf32>
    %50 = vector.shape_cast %49 : vector<1x1x32xf32> to vector<1x32xf32>
    %51 = vector.broadcast %50 : vector<1x32xf32> to vector<4x32xf32>
    %52 = arith.mulf %48, %51 : vector<4x32xf32>
    %53 = arith.addf %46, %52 : vector<4x32xf32>
    %c0_34 = arith.constant 0 : index
    %c2_35 = arith.constant 2 : index
    %c1_36 = arith.constant 1 : index
    %c0_37 = arith.constant 0 : index
    %54 = vector.load %arg1[%c0_34, %c2_35, %c1_36, %c0_37] : memref<1x6x6x32xf32, #tpu.memory_space<vmem>>, vector<1x1x4x32xf32>
    %55 = vector.shape_cast %54 : vector<1x1x4x32xf32> to vector<4x32xf32>
    %56 = vector.extract_strided_slice %0 {offsets = [7, 0, 0], sizes = [1, 1, 32], strides = [1, 1, 1]} : vector<9x1x32xf32> to vector<1x1x32xf32>
    %57 = vector.shape_cast %56 : vector<1x1x32xf32> to vector<1x32xf32>
    %58 = vector.broadcast %57 : vector<1x32xf32> to vector<4x32xf32>
    %59 = arith.mulf %55, %58 : vector<4x32xf32>
    %60 = arith.addf %53, %59 : vector<4x32xf32>
    %c0_38 = arith.constant 0 : index
    %c2_39 = arith.constant 2 : index
    %c2_40 = arith.constant 2 : index
    %c0_41 = arith.constant 0 : index
    %61 = vector.load %arg1[%c0_38, %c2_39, %c2_40, %c0_41] : memref<1x6x6x32xf32, #tpu.memory_space<vmem>>, vector<1x1x4x32xf32>
    %62 = vector.shape_cast %61 : vector<1x1x4x32xf32> to vector<4x32xf32>
    %63 = vector.extract_strided_slice %0 {offsets = [8, 0, 0], sizes = [1, 1, 32], strides = [1, 1, 1]} : vector<9x1x32xf32> to vector<1x1x32xf32>
    %64 = vector.shape_cast %63 : vector<1x1x32xf32> to vector<1x32xf32>
    %65 = vector.broadcast %64 : vector<1x32xf32> to vector<4x32xf32>
    %66 = arith.mulf %62, %65 : vector<4x32xf32>
    %67 = arith.addf %60, %66 : vector<4x32xf32>
    %68 = vector.broadcast %1 : vector<1x32xf32> to vector<4x32xf32>
    %69 = arith.addf %67, %68 : vector<4x32xf32>
    %cst_42 = arith.constant 0.000000e+00 : f32
    %70 = vector.broadcast %cst_42 : f32 to vector<4x32xf32>
    %71 = arith.maximumf %69, %70 : vector<4x32xf32>
    %cst_43 = arith.constant dense<0.000000e+00> : vector<4x32xf32>
    %72 = tpu.matmul %71, %2, %cst_43 {dimension_numbers = #tpu.dot_dimension_numbers<[1], [0], [0], [1], [0, 0, 1, 1], [], []>} : vector<4x32xf32>, vector<32x32xf32>, vector<4x32xf32> -> vector<4x32xf32>
    %73 = vector.broadcast %3 : vector<1x32xf32> to vector<4x32xf32>
    %74 = arith.addf %72, %73 : vector<4x32xf32>
    %cst_44 = arith.constant 0.000000e+00 : f32
    %75 = vector.broadcast %cst_44 : f32 to vector<4x32xf32>
    %76 = arith.maximumf %74, %75 : vector<4x32xf32>
    %c0_45 = arith.constant 0 : index
    %c0_46 = arith.constant 0 : index
    %c0_47 = arith.constant 0 : index
    %c0_48 = arith.constant 0 : index
    %77 = vector.load %arg6[%c0_45, %c0_46, %c0_47, %c0_48] : memref<1x4x4x32xf32, #tpu.memory_space<vmem>>, vector<1x1x4x32xf32>
    %78 = vector.shape_cast %77 : vector<1x1x4x32xf32> to vector<4x32xf32>
    %79 = vector.shape_cast %76 : vector<4x32xf32> to vector<1x1x4x32xf32>
    tpu.vector_store %arg6[%c0_45, %c0_46, %c0_47, %c0_48], %79 {strides = array<i32>} : memref<1x4x4x32xf32, #tpu.memory_space<vmem>>, vector<1x1x4x32xf32>,
    %cst_49 = arith.constant 0.000000e+00 : f32
    %80 = vector.broadcast %cst_49 : f32 to vector<4x32xf32>
    %c0_50 = arith.constant 0 : index
    %c1_51 = arith.constant 1 : index
    %c0_52 = arith.constant 0 : index
    %c0_53 = arith.constant 0 : index
    %81 = vector.load %arg1[%c0_50, %c1_51, %c0_52, %c0_53] : memref<1x6x6x32xf32, #tpu.memory_space<vmem>>, vector<1x1x4x32xf32>
    %82 = vector.shape_cast %81 : vector<1x1x4x32xf32> to vector<4x32xf32>
    %83 = vector.extract_strided_slice %0 {offsets = [0, 0, 0], sizes = [1, 1, 32], strides = [1, 1, 1]} : vector<9x1x32xf32> to vector<1x1x32xf32>
    %84 = vector.shape_cast %83 : vector<1x1x32xf32> to vector<1x32xf32>
    %85 = vector.broadcast %84 : vector<1x32xf32> to vector<4x32xf32>
    %86 = arith.mulf %82, %85 : vector<4x32xf32>
    %87 = arith.addf %80, %86 : vector<4x32xf32>
    %c0_54 = arith.constant 0 : index
    %c1_55 = arith.constant 1 : index
    %c1_56 = arith.constant 1 : index
    %c0_57 = arith.constant 0 : index
    %88 = vector.load %arg1[%c0_54, %c1_55, %c1_56, %c0_57] : memref<1x6x6x32xf32, #tpu.memory_space<vmem>>, vector<1x1x4x32xf32>
    %89 = vector.shape_cast %88 : vector<1x1x4x32xf32> to vector<4x32xf32>
    %90 = vector.extract_strided_slice %0 {offsets = [1, 0, 0], sizes = [1, 1, 32], strides = [1, 1, 1]} : vector<9x1x32xf32> to vector<1x1x32xf32>
    %91 = vector.shape_cast %90 : vector<1x1x32xf32> to vector<1x32xf32>
    %92 = vector.broadcast %91 : vector<1x32xf32> to vector<4x32xf32>
    %93 = arith.mulf %89, %92 : vector<4x32xf32>
    %94 = arith.addf %87, %93 : vector<4x32xf32>
    %c0_58 = arith.constant 0 : index
    %c1_59 = arith.constant 1 : index
    %c2_60 = arith.constant 2 : index
    %c0_61 = arith.constant 0 : index
    %95 = vector.load %arg1[%c0_58, %c1_59, %c2_60, %c0_61] : memref<1x6x6x32xf32, #tpu.memory_space<vmem>>, vector<1x1x4x32xf32>
    %96 = vector.shape_cast %95 : vector<1x1x4x32xf32> to vector<4x32xf32>
    %97 = vector.extract_strided_slice %0 {offsets = [2, 0, 0], sizes = [1, 1, 32], strides = [1, 1, 1]} : vector<9x1x32xf32> to vector<1x1x32xf32>
    %98 = vector.shape_cast %97 : vector<1x1x32xf32> to vector<1x32xf32>
    %99 = vector.broadcast %98 : vector<1x32xf32> to vector<4x32xf32>
    %100 = arith.mulf %96, %99 : vector<4x32xf32>
    %101 = arith.addf %94, %100 : vector<4x32xf32>
    %c0_62 = arith.constant 0 : index
    %c2_63 = arith.constant 2 : index
    %c0_64 = arith.constant 0 : index
    %c0_65 = arith.constant 0 : index
    %102 = vector.load %arg1[%c0_62, %c2_63, %c0_64, %c0_65] : memref<1x6x6x32xf32, #tpu.memory_space<vmem>>, vector<1x1x4x32xf32>
    %103 = vector.shape_cast %102 : vector<1x1x4x32xf32> to vector<4x32xf32>
    %104 = vector.extract_strided_slice %0 {offsets = [3, 0, 0], sizes = [1, 1, 32], strides = [1, 1, 1]} : vector<9x1x32xf32> to vector<1x1x32xf32>
    %105 = vector.shape_cast %104 : vector<1x1x32xf32> to vector<1x32xf32>
    %106 = vector.broadcast %105 : vector<1x32xf32> to vector<4x32xf32>
    %107 = arith.mulf %103, %106 : vector<4x32xf32>
    %108 = arith.addf %101, %107 : vector<4x32xf32>
    %c0_66 = arith.constant 0 : index
    %c2_67 = arith.constant 2 : index
    %c1_68 = arith.constant 1 : index
    %c0_69 = arith.constant 0 : index
    %109 = vector.load %arg1[%c0_66, %c2_67, %c1_68, %c0_69] : memref<1x6x6x32xf32, #tpu.memory_space<vmem>>, vector<1x1x4x32xf32>
    %110 = vector.shape_cast %109 : vector<1x1x4x32xf32> to vector<4x32xf32>
    %111 = vector.extract_strided_slice %0 {offsets = [4, 0, 0], sizes = [1, 1, 32], strides = [1, 1, 1]} : vector<9x1x32xf32> to vector<1x1x32xf32>
    %112 = vector.shape_cast %111 : vector<1x1x32xf32> to vector<1x32xf32>
    %113 = vector.broadcast %112 : vector<1x32xf32> to vector<4x32xf32>
    %114 = arith.mulf %110, %113 : vector<4x32xf32>
    %115 = arith.addf %108, %114 : vector<4x32xf32>
    %c0_70 = arith.constant 0 : index
    %c2_71 = arith.constant 2 : index
    %c2_72 = arith.constant 2 : index
    %c0_73 = arith.constant 0 : index
    %116 = vector.load %arg1[%c0_70, %c2_71, %c2_72, %c0_73] : memref<1x6x6x32xf32, #tpu.memory_space<vmem>>, vector<1x1x4x32xf32>
    %117 = vector.shape_cast %116 : vector<1x1x4x32xf32> to vector<4x32xf32>
    %118 = vector.extract_strided_slice %0 {offsets = [5, 0, 0], sizes = [1, 1, 32], strides = [1, 1, 1]} : vector<9x1x32xf32> to vector<1x1x32xf32>
    %119 = vector.shape_cast %118 : vector<1x1x32xf32> to vector<1x32xf32>
    %120 = vector.broadcast %119 : vector<1x32xf32> to vector<4x32xf32>
    %121 = arith.mulf %117, %120 : vector<4x32xf32>
    %122 = arith.addf %115, %121 : vector<4x32xf32>
    %c0_74 = arith.constant 0 : index
    %c3 = arith.constant 3 : index
    %c0_75 = arith.constant 0 : index
    %c0_76 = arith.constant 0 : index
    %123 = vector.load %arg1[%c0_74, %c3, %c0_75, %c0_76] : memref<1x6x6x32xf32, #tpu.memory_space<vmem>>, vector<1x1x4x32xf32>
    %124 = vector.shape_cast %123 : vector<1x1x4x32xf32> to vector<4x32xf32>
    %125 = vector.extract_strided_slice %0 {offsets = [6, 0, 0], sizes = [1, 1, 32], strides = [1, 1, 1]} : vector<9x1x32xf32> to vector<1x1x32xf32>
    %126 = vector.shape_cast %125 : vector<1x1x32xf32> to vector<1x32xf32>
    %127 = vector.broadcast %126 : vector<1x32xf32> to vector<4x32xf32>
    %128 = arith.mulf %124, %127 : vector<4x32xf32>
    %129 = arith.addf %122, %128 : vector<4x32xf32>
    %c0_77 = arith.constant 0 : index
    %c3_78 = arith.constant 3 : index
    %c1_79 = arith.constant 1 : index
    %c0_80 = arith.constant 0 : index
    %130 = vector.load %arg1[%c0_77, %c3_78, %c1_79, %c0_80] : memref<1x6x6x32xf32, #tpu.memory_space<vmem>>, vector<1x1x4x32xf32>
    %131 = vector.shape_cast %130 : vector<1x1x4x32xf32> to vector<4x32xf32>
    %132 = vector.extract_strided_slice %0 {offsets = [7, 0, 0], sizes = [1, 1, 32], strides = [1, 1, 1]} : vector<9x1x32xf32> to vector<1x1x32xf32>
    %133 = vector.shape_cast %132 : vector<1x1x32xf32> to vector<1x32xf32>
    %134 = vector.broadcast %133 : vector<1x32xf32> to vector<4x32xf32>
    %135 = arith.mulf %131, %134 : vector<4x32xf32>
    %136 = arith.addf %129, %135 : vector<4x32xf32>
    %c0_81 = arith.constant 0 : index
    %c3_82 = arith.constant 3 : index
    %c2_83 = arith.constant 2 : index
    %c0_84 = arith.constant 0 : index
    %137 = vector.load %arg1[%c0_81, %c3_82, %c2_83, %c0_84] : memref<1x6x6x32xf32, #tpu.memory_space<vmem>>, vector<1x1x4x32xf32>
    %138 = vector.shape_cast %137 : vector<1x1x4x32xf32> to vector<4x32xf32>
    %139 = vector.extract_strided_slice %0 {offsets = [8, 0, 0], sizes = [1, 1, 32], strides = [1, 1, 1]} : vector<9x1x32xf32> to vector<1x1x32xf32>
    %140 = vector.shape_cast %139 : vector<1x1x32xf32> to vector<1x32xf32>
    %141 = vector.broadcast %140 : vector<1x32xf32> to vector<4x32xf32>
    %142 = arith.mulf %138, %141 : vector<4x32xf32>
    %143 = arith.addf %136, %142 : vector<4x32xf32>
    %144 = vector.broadcast %1 : vector<1x32xf32> to vector<4x32xf32>
    %145 = arith.addf %143, %144 : vector<4x32xf32>
    %cst_85 = arith.constant 0.000000e+00 : f32
    %146 = vector.broadcast %cst_85 : f32 to vector<4x32xf32>
    %147 = arith.maximumf %145, %146 : vector<4x32xf32>
    %cst_86 = arith.constant dense<0.000000e+00> : vector<4x32xf32>
    %148 = tpu.matmul %147, %2, %cst_86 {dimension_numbers = #tpu.dot_dimension_numbers<[1], [0], [0], [1], [0, 0, 1, 1], [], []>} : vector<4x32xf32>, vector<32x32xf32>, vector<4x32xf32> -> vector<4x32xf32>
    %149 = vector.broadcast %3 : vector<1x32xf32> to vector<4x32xf32>
    %150 = arith.addf %148, %149 : vector<4x32xf32>
    %cst_87 = arith.constant 0.000000e+00 : f32
    %151 = vector.broadcast %cst_87 : f32 to vector<4x32xf32>
    %152 = arith.maximumf %150, %151 : vector<4x32xf32>
    %c0_88 = arith.constant 0 : index
    %c1_89 = arith.constant 1 : index
    %c0_90 = arith.constant 0 : index
    %c0_91 = arith.constant 0 : index
    %153 = vector.load %arg6[%c0_88, %c1_89, %c0_90, %c0_91] : memref<1x4x4x32xf32, #tpu.memory_space<vmem>>, vector<1x1x4x32xf32>
    %154 = vector.shape_cast %153 : vector<1x1x4x32xf32> to vector<4x32xf32>
    %155 = vector.shape_cast %152 : vector<4x32xf32> to vector<1x1x4x32xf32>
    tpu.vector_store %arg6[%c0_88, %c1_89, %c0_90, %c0_91], %155 {strides = array<i32>} : memref<1x4x4x32xf32, #tpu.memory_space<vmem>>, vector<1x1x4x32xf32>,
    %cst_92 = arith.constant 0.000000e+00 : f32
    %156 = vector.broadcast %cst_92 : f32 to vector<4x32xf32>
    %c0_93 = arith.constant 0 : index
    %c2_94 = arith.constant 2 : index
    %c0_95 = arith.constant 0 : index
    %c0_96 = arith.constant 0 : index
    %157 = vector.load %arg1[%c0_93, %c2_94, %c0_95, %c0_96] : memref<1x6x6x32xf32, #tpu.memory_space<vmem>>, vector<1x1x4x32xf32>
    %158 = vector.shape_cast %157 : vector<1x1x4x32xf32> to vector<4x32xf32>
    %159 = vector.extract_strided_slice %0 {offsets = [0, 0, 0], sizes = [1, 1, 32], strides = [1, 1, 1]} : vector<9x1x32xf32> to vector<1x1x32xf32>
    %160 = vector.shape_cast %159 : vector<1x1x32xf32> to vector<1x32xf32>
    %161 = vector.broadcast %160 : vector<1x32xf32> to vector<4x32xf32>
    %162 = arith.mulf %158, %161 : vector<4x32xf32>
    %163 = arith.addf %156, %162 : vector<4x32xf32>
    %c0_97 = arith.constant 0 : index
    %c2_98 = arith.constant 2 : index
    %c1_99 = arith.constant 1 : index
    %c0_100 = arith.constant 0 : index
    %164 = vector.load %arg1[%c0_97, %c2_98, %c1_99, %c0_100] : memref<1x6x6x32xf32, #tpu.memory_space<vmem>>, vector<1x1x4x32xf32>
    %165 = vector.shape_cast %164 : vector<1x1x4x32xf32> to vector<4x32xf32>
    %166 = vector.extract_strided_slice %0 {offsets = [1, 0, 0], sizes = [1, 1, 32], strides = [1, 1, 1]} : vector<9x1x32xf32> to vector<1x1x32xf32>
    %167 = vector.shape_cast %166 : vector<1x1x32xf32> to vector<1x32xf32>
    %168 = vector.broadcast %167 : vector<1x32xf32> to vector<4x32xf32>
    %169 = arith.mulf %165, %168 : vector<4x32xf32>
    %170 = arith.addf %163, %169 : vector<4x32xf32>
    %c0_101 = arith.constant 0 : index
    %c2_102 = arith.constant 2 : index
    %c2_103 = arith.constant 2 : index
    %c0_104 = arith.constant 0 : index
    %171 = vector.load %arg1[%c0_101, %c2_102, %c2_103, %c0_104] : memref<1x6x6x32xf32, #tpu.memory_space<vmem>>, vector<1x1x4x32xf32>
    %172 = vector.shape_cast %171 : vector<1x1x4x32xf32> to vector<4x32xf32>
    %173 = vector.extract_strided_slice %0 {offsets = [2, 0, 0], sizes = [1, 1, 32], strides = [1, 1, 1]} : vector<9x1x32xf32> to vector<1x1x32xf32>
    %174 = vector.shape_cast %173 : vector<1x1x32xf32> to vector<1x32xf32>
    %175 = vector.broadcast %174 : vector<1x32xf32> to vector<4x32xf32>
    %176 = arith.mulf %172, %175 : vector<4x32xf32>
    %177 = arith.addf %170, %176 : vector<4x32xf32>
    %c0_105 = arith.constant 0 : index
    %c3_106 = arith.constant 3 : index
    %c0_107 = arith.constant 0 : index
    %c0_108 = arith.constant 0 : index
    %178 = vector.load %arg1[%c0_105, %c3_106, %c0_107, %c0_108] : memref<1x6x6x32xf32, #tpu.memory_space<vmem>>, vector<1x1x4x32xf32>
    %179 = vector.shape_cast %178 : vector<1x1x4x32xf32> to vector<4x32xf32>
    %180 = vector.extract_strided_slice %0 {offsets = [3, 0, 0], sizes = [1, 1, 32], strides = [1, 1, 1]} : vector<9x1x32xf32> to vector<1x1x32xf32>
    %181 = vector.shape_cast %180 : vector<1x1x32xf32> to vector<1x32xf32>
    %182 = vector.broadcast %181 : vector<1x32xf32> to vector<4x32xf32>
    %183 = arith.mulf %179, %182 : vector<4x32xf32>
    %184 = arith.addf %177, %183 : vector<4x32xf32>
    %c0_109 = arith.constant 0 : index
    %c3_110 = arith.constant 3 : index
    %c1_111 = arith.constant 1 : index
    %c0_112 = arith.constant 0 : index
    %185 = vector.load %arg1[%c0_109, %c3_110, %c1_111, %c0_112] : memref<1x6x6x32xf32, #tpu.memory_space<vmem>>, vector<1x1x4x32xf32>
    %186 = vector.shape_cast %185 : vector<1x1x4x32xf32> to vector<4x32xf32>
    %187 = vector.extract_strided_slice %0 {offsets = [4, 0, 0], sizes = [1, 1, 32], strides = [1, 1, 1]} : vector<9x1x32xf32> to vector<1x1x32xf32>
    %188 = vector.shape_cast %187 : vector<1x1x32xf32> to vector<1x32xf32>
    %189 = vector.broadcast %188 : vector<1x32xf32> to vector<4x32xf32>
    %190 = arith.mulf %186, %189 : vector<4x32xf32>
    %191 = arith.addf %184, %190 : vector<4x32xf32>
    %c0_113 = arith.constant 0 : index
    %c3_114 = arith.constant 3 : index
    %c2_115 = arith.constant 2 : index
    %c0_116 = arith.constant 0 : index
    %192 = vector.load %arg1[%c0_113, %c3_114, %c2_115, %c0_116] : memref<1x6x6x32xf32, #tpu.memory_space<vmem>>, vector<1x1x4x32xf32>
    %193 = vector.shape_cast %192 : vector<1x1x4x32xf32> to vector<4x32xf32>
    %194 = vector.extract_strided_slice %0 {offsets = [5, 0, 0], sizes = [1, 1, 32], strides = [1, 1, 1]} : vector<9x1x32xf32> to vector<1x1x32xf32>
    %195 = vector.shape_cast %194 : vector<1x1x32xf32> to vector<1x32xf32>
    %196 = vector.broadcast %195 : vector<1x32xf32> to vector<4x32xf32>
    %197 = arith.mulf %193, %196 : vector<4x32xf32>
    %198 = arith.addf %191, %197 : vector<4x32xf32>
    %c0_117 = arith.constant 0 : index
    %c4 = arith.constant 4 : index
    %c0_118 = arith.constant 0 : index
    %c0_119 = arith.constant 0 : index
    %199 = vector.load %arg1[%c0_117, %c4, %c0_118, %c0_119] : memref<1x6x6x32xf32, #tpu.memory_space<vmem>>, vector<1x1x4x32xf32>
    %200 = vector.shape_cast %199 : vector<1x1x4x32xf32> to vector<4x32xf32>
    %201 = vector.extract_strided_slice %0 {offsets = [6, 0, 0], sizes = [1, 1, 32], strides = [1, 1, 1]} : vector<9x1x32xf32> to vector<1x1x32xf32>
    %202 = vector.shape_cast %201 : vector<1x1x32xf32> to vector<1x32xf32>
    %203 = vector.broadcast %202 : vector<1x32xf32> to vector<4x32xf32>
    %204 = arith.mulf %200, %203 : vector<4x32xf32>
    %205 = arith.addf %198, %204 : vector<4x32xf32>
    %c0_120 = arith.constant 0 : index
    %c4_121 = arith.constant 4 : index
    %c1_122 = arith.constant 1 : index
    %c0_123 = arith.constant 0 : index
    %206 = vector.load %arg1[%c0_120, %c4_121, %c1_122, %c0_123] : memref<1x6x6x32xf32, #tpu.memory_space<vmem>>, vector<1x1x4x32xf32>
    %207 = vector.shape_cast %206 : vector<1x1x4x32xf32> to vector<4x32xf32>
    %208 = vector.extract_strided_slice %0 {offsets = [7, 0, 0], sizes = [1, 1, 32], strides = [1, 1, 1]} : vector<9x1x32xf32> to vector<1x1x32xf32>
    %209 = vector.shape_cast %208 : vector<1x1x32xf32> to vector<1x32xf32>
    %210 = vector.broadcast %209 : vector<1x32xf32> to vector<4x32xf32>
    %211 = arith.mulf %207, %210 : vector<4x32xf32>
    %212 = arith.addf %205, %211 : vector<4x32xf32>
    %c0_124 = arith.constant 0 : index
    %c4_125 = arith.constant 4 : index
    %c2_126 = arith.constant 2 : index
    %c0_127 = arith.constant 0 : index
    %213 = vector.load %arg1[%c0_124, %c4_125, %c2_126, %c0_127] : memref<1x6x6x32xf32, #tpu.memory_space<vmem>>, vector<1x1x4x32xf32>
    %214 = vector.shape_cast %213 : vector<1x1x4x32xf32> to vector<4x32xf32>
    %215 = vector.extract_strided_slice %0 {offsets = [8, 0, 0], sizes = [1, 1, 32], strides = [1, 1, 1]} : vector<9x1x32xf32> to vector<1x1x32xf32>
    %216 = vector.shape_cast %215 : vector<1x1x32xf32> to vector<1x32xf32>
    %217 = vector.broadcast %216 : vector<1x32xf32> to vector<4x32xf32>
    %218 = arith.mulf %214, %217 : vector<4x32xf32>
    %219 = arith.addf %212, %218 : vector<4x32xf32>
    %220 = vector.broadcast %1 : vector<1x32xf32> to vector<4x32xf32>
    %221 = arith.addf %219, %220 : vector<4x32xf32>
    %cst_128 = arith.constant 0.000000e+00 : f32
    %222 = vector.broadcast %cst_128 : f32 to vector<4x32xf32>
    %223 = arith.maximumf %221, %222 : vector<4x32xf32>
    %cst_129 = arith.constant dense<0.000000e+00> : vector<4x32xf32>
    %224 = tpu.matmul %223, %2, %cst_129 {dimension_numbers = #tpu.dot_dimension_numbers<[1], [0], [0], [1], [0, 0, 1, 1], [], []>} : vector<4x32xf32>, vector<32x32xf32>, vector<4x32xf32> -> vector<4x32xf32>
    %225 = vector.broadcast %3 : vector<1x32xf32> to vector<4x32xf32>
    %226 = arith.addf %224, %225 : vector<4x32xf32>
    %cst_130 = arith.constant 0.000000e+00 : f32
    %227 = vector.broadcast %cst_130 : f32 to vector<4x32xf32>
    %228 = arith.maximumf %226, %227 : vector<4x32xf32>
    %c0_131 = arith.constant 0 : index
    %c2_132 = arith.constant 2 : index
    %c0_133 = arith.constant 0 : index
    %c0_134 = arith.constant 0 : index
    %229 = vector.load %arg6[%c0_131, %c2_132, %c0_133, %c0_134] : memref<1x4x4x32xf32, #tpu.memory_space<vmem>>, vector<1x1x4x32xf32>
    %230 = vector.shape_cast %229 : vector<1x1x4x32xf32> to vector<4x32xf32>
    %231 = vector.shape_cast %228 : vector<4x32xf32> to vector<1x1x4x32xf32>
    tpu.vector_store %arg6[%c0_131, %c2_132, %c0_133, %c0_134], %231 {strides = array<i32>} : memref<1x4x4x32xf32, #tpu.memory_space<vmem>>, vector<1x1x4x32xf32>,
    %cst_135 = arith.constant 0.000000e+00 : f32
    %232 = vector.broadcast %cst_135 : f32 to vector<4x32xf32>
    %c0_136 = arith.constant 0 : index
    %c3_137 = arith.constant 3 : index
    %c0_138 = arith.constant 0 : index
    %c0_139 = arith.constant 0 : index
    %233 = vector.load %arg1[%c0_136, %c3_137, %c0_138, %c0_139] : memref<1x6x6x32xf32, #tpu.memory_space<vmem>>, vector<1x1x4x32xf32>
    %234 = vector.shape_cast %233 : vector<1x1x4x32xf32> to vector<4x32xf32>
    %235 = vector.extract_strided_slice %0 {offsets = [0, 0, 0], sizes = [1, 1, 32], strides = [1, 1, 1]} : vector<9x1x32xf32> to vector<1x1x32xf32>
    %236 = vector.shape_cast %235 : vector<1x1x32xf32> to vector<1x32xf32>
    %237 = vector.broadcast %236 : vector<1x32xf32> to vector<4x32xf32>
    %238 = arith.mulf %234, %237 : vector<4x32xf32>
    %239 = arith.addf %232, %238 : vector<4x32xf32>
    %c0_140 = arith.constant 0 : index
    %c3_141 = arith.constant 3 : index
    %c1_142 = arith.constant 1 : index
    %c0_143 = arith.constant 0 : index
    %240 = vector.load %arg1[%c0_140, %c3_141, %c1_142, %c0_143] : memref<1x6x6x32xf32, #tpu.memory_space<vmem>>, vector<1x1x4x32xf32>
    %241 = vector.shape_cast %240 : vector<1x1x4x32xf32> to vector<4x32xf32>
    %242 = vector.extract_strided_slice %0 {offsets = [1, 0, 0], sizes = [1, 1, 32], strides = [1, 1, 1]} : vector<9x1x32xf32> to vector<1x1x32xf32>
    %243 = vector.shape_cast %242 : vector<1x1x32xf32> to vector<1x32xf32>
    %244 = vector.broadcast %243 : vector<1x32xf32> to vector<4x32xf32>
    %245 = arith.mulf %241, %244 : vector<4x32xf32>
    %246 = arith.addf %239, %245 : vector<4x32xf32>
    %c0_144 = arith.constant 0 : index
    %c3_145 = arith.constant 3 : index
    %c2_146 = arith.constant 2 : index
    %c0_147 = arith.constant 0 : index
    %247 = vector.load %arg1[%c0_144, %c3_145, %c2_146, %c0_147] : memref<1x6x6x32xf32, #tpu.memory_space<vmem>>, vector<1x1x4x32xf32>
    %248 = vector.shape_cast %247 : vector<1x1x4x32xf32> to vector<4x32xf32>
    %249 = vector.extract_strided_slice %0 {offsets = [2, 0, 0], sizes = [1, 1, 32], strides = [1, 1, 1]} : vector<9x1x32xf32> to vector<1x1x32xf32>
    %250 = vector.shape_cast %249 : vector<1x1x32xf32> to vector<1x32xf32>
    %251 = vector.broadcast %250 : vector<1x32xf32> to vector<4x32xf32>
    %252 = arith.mulf %248, %251 : vector<4x32xf32>
    %253 = arith.addf %246, %252 : vector<4x32xf32>
    %c0_148 = arith.constant 0 : index
    %c4_149 = arith.constant 4 : index
    %c0_150 = arith.constant 0 : index
    %c0_151 = arith.constant 0 : index
    %254 = vector.load %arg1[%c0_148, %c4_149, %c0_150, %c0_151] : memref<1x6x6x32xf32, #tpu.memory_space<vmem>>, vector<1x1x4x32xf32>
    %255 = vector.shape_cast %254 : vector<1x1x4x32xf32> to vector<4x32xf32>
    %256 = vector.extract_strided_slice %0 {offsets = [3, 0, 0], sizes = [1, 1, 32], strides = [1, 1, 1]} : vector<9x1x32xf32> to vector<1x1x32xf32>
    %257 = vector.shape_cast %256 : vector<1x1x32xf32> to vector<1x32xf32>
    %258 = vector.broadcast %257 : vector<1x32xf32> to vector<4x32xf32>
    %259 = arith.mulf %255, %258 : vector<4x32xf32>
    %260 = arith.addf %253, %259 : vector<4x32xf32>
    %c0_152 = arith.constant 0 : index
    %c4_153 = arith.constant 4 : index
    %c1_154 = arith.constant 1 : index
    %c0_155 = arith.constant 0 : index
    %261 = vector.load %arg1[%c0_152, %c4_153, %c1_154, %c0_155] : memref<1x6x6x32xf32, #tpu.memory_space<vmem>>, vector<1x1x4x32xf32>
    %262 = vector.shape_cast %261 : vector<1x1x4x32xf32> to vector<4x32xf32>
    %263 = vector.extract_strided_slice %0 {offsets = [4, 0, 0], sizes = [1, 1, 32], strides = [1, 1, 1]} : vector<9x1x32xf32> to vector<1x1x32xf32>
    %264 = vector.shape_cast %263 : vector<1x1x32xf32> to vector<1x32xf32>
    %265 = vector.broadcast %264 : vector<1x32xf32> to vector<4x32xf32>
    %266 = arith.mulf %262, %265 : vector<4x32xf32>
    %267 = arith.addf %260, %266 : vector<4x32xf32>
    %c0_156 = arith.constant 0 : index
    %c4_157 = arith.constant 4 : index
    %c2_158 = arith.constant 2 : index
    %c0_159 = arith.constant 0 : index
    %268 = vector.load %arg1[%c0_156, %c4_157, %c2_158, %c0_159] : memref<1x6x6x32xf32, #tpu.memory_space<vmem>>, vector<1x1x4x32xf32>
    %269 = vector.shape_cast %268 : vector<1x1x4x32xf32> to vector<4x32xf32>
    %270 = vector.extract_strided_slice %0 {offsets = [5, 0, 0], sizes = [1, 1, 32], strides = [1, 1, 1]} : vector<9x1x32xf32> to vector<1x1x32xf32>
    %271 = vector.shape_cast %270 : vector<1x1x32xf32> to vector<1x32xf32>
    %272 = vector.broadcast %271 : vector<1x32xf32> to vector<4x32xf32>
    %273 = arith.mulf %269, %272 : vector<4x32xf32>
    %274 = arith.addf %267, %273 : vector<4x32xf32>
    %c0_160 = arith.constant 0 : index
    %c5 = arith.constant 5 : index
    %c0_161 = arith.constant 0 : index
    %c0_162 = arith.constant 0 : index
    %275 = vector.load %arg1[%c0_160, %c5, %c0_161, %c0_162] : memref<1x6x6x32xf32, #tpu.memory_space<vmem>>, vector<1x1x4x32xf32>
    %276 = vector.shape_cast %275 : vector<1x1x4x32xf32> to vector<4x32xf32>
    %277 = vector.extract_strided_slice %0 {offsets = [6, 0, 0], sizes = [1, 1, 32], strides = [1, 1, 1]} : vector<9x1x32xf32> to vector<1x1x32xf32>
    %278 = vector.shape_cast %277 : vector<1x1x32xf32> to vector<1x32xf32>
    %279 = vector.broadcast %278 : vector<1x32xf32> to vector<4x32xf32>
    %280 = arith.mulf %276, %279 : vector<4x32xf32>
    %281 = arith.addf %274, %280 : vector<4x32xf32>
    %c0_163 = arith.constant 0 : index
    %c5_164 = arith.constant 5 : index
    %c1_165 = arith.constant 1 : index
    %c0_166 = arith.constant 0 : index
    %282 = vector.load %arg1[%c0_163, %c5_164, %c1_165, %c0_166] : memref<1x6x6x32xf32, #tpu.memory_space<vmem>>, vector<1x1x4x32xf32>
    %283 = vector.shape_cast %282 : vector<1x1x4x32xf32> to vector<4x32xf32>
    %284 = vector.extract_strided_slice %0 {offsets = [7, 0, 0], sizes = [1, 1, 32], strides = [1, 1, 1]} : vector<9x1x32xf32> to vector<1x1x32xf32>
    %285 = vector.shape_cast %284 : vector<1x1x32xf32> to vector<1x32xf32>
    %286 = vector.broadcast %285 : vector<1x32xf32> to vector<4x32xf32>
    %287 = arith.mulf %283, %286 : vector<4x32xf32>
    %288 = arith.addf %281, %287 : vector<4x32xf32>
    %c0_167 = arith.constant 0 : index
    %c5_168 = arith.constant 5 : index
    %c2_169 = arith.constant 2 : index
    %c0_170 = arith.constant 0 : index
    %289 = vector.load %arg1[%c0_167, %c5_168, %c2_169, %c0_170] : memref<1x6x6x32xf32, #tpu.memory_space<vmem>>, vector<1x1x4x32xf32>
    %290 = vector.shape_cast %289 : vector<1x1x4x32xf32> to vector<4x32xf32>
    %291 = vector.extract_strided_slice %0 {offsets = [8, 0, 0], sizes = [1, 1, 32], strides = [1, 1, 1]} : vector<9x1x32xf32> to vector<1x1x32xf32>
    %292 = vector.shape_cast %291 : vector<1x1x32xf32> to vector<1x32xf32>
    %293 = vector.broadcast %292 : vector<1x32xf32> to vector<4x32xf32>
    %294 = arith.mulf %290, %293 : vector<4x32xf32>
    %295 = arith.addf %288, %294 : vector<4x32xf32>
    %296 = vector.broadcast %1 : vector<1x32xf32> to vector<4x32xf32>
    %297 = arith.addf %295, %296 : vector<4x32xf32>
    %cst_171 = arith.constant 0.000000e+00 : f32
    %298 = vector.broadcast %cst_171 : f32 to vector<4x32xf32>
    %299 = arith.maximumf %297, %298 : vector<4x32xf32>
    %cst_172 = arith.constant dense<0.000000e+00> : vector<4x32xf32>
    %300 = tpu.matmul %299, %2, %cst_172 {dimension_numbers = #tpu.dot_dimension_numbers<[1], [0], [0], [1], [0, 0, 1, 1], [], []>} : vector<4x32xf32>, vector<32x32xf32>, vector<4x32xf32> -> vector<4x32xf32>
    %301 = vector.broadcast %3 : vector<1x32xf32> to vector<4x32xf32>
    %302 = arith.addf %300, %301 : vector<4x32xf32>
    %cst_173 = arith.constant 0.000000e+00 : f32
    %303 = vector.broadcast %cst_173 : f32 to vector<4x32xf32>
    %304 = arith.maximumf %302, %303 : vector<4x32xf32>
    %c0_174 = arith.constant 0 : index
    %c3_175 = arith.constant 3 : index
    %c0_176 = arith.constant 0 : index
    %c0_177 = arith.constant 0 : index
    %305 = vector.load %arg6[%c0_174, %c3_175, %c0_176, %c0_177] : memref<1x4x4x32xf32, #tpu.memory_space<vmem>>, vector<1x1x4x32xf32>
    %306 = vector.shape_cast %305 : vector<1x1x4x32xf32> to vector<4x32xf32>
    %307 = vector.shape_cast %304 : vector<4x32xf32> to vector<1x1x4x32xf32>
    tpu.vector_store %arg6[%c0_174, %c3_175, %c0_176, %c0_177], %307 {strides = array<i32>} : memref<1x4x4x32xf32, #tpu.memory_space<vmem>>, vector<1x1x4x32xf32>,
    return
  }
  func.func @transform_0(%arg0: i32) -> (i32, i32, i32, i32) {
    %c0_i32 = arith.constant 0 : i32
    %c0_i32_0 = arith.constant 0 : i32
    %c0_i32_1 = arith.constant 0 : i32
    %c0_i32_2 = arith.constant 0 : i32
    return %arg0, %c0_i32, %c0_i32_0, %c0_i32_1 : i32, i32, i32, i32
  }
  func.func @transform_1(%arg0: i32) -> (i32, i32, i32) {
    %c0_i32 = arith.constant 0 : i32
    %c0_i32_0 = arith.constant 0 : i32
    %c0_i32_1 = arith.constant 0 : i32
    %c0_i32_2 = arith.constant 0 : i32
    return %c0_i32, %c0_i32_0, %c0_i32_1 : i32, i32, i32
  }
  func.func @transform_2(%arg0: i32) -> (i32, i32) {
    %c0_i32 = arith.constant 0 : i32
    %c0_i32_0 = arith.constant 0 : i32
    %c0_i32_1 = arith.constant 0 : i32
    return %c0_i32, %c0_i32_0 : i32, i32
  }
  func.func @transform_3(%arg0: i32) -> (i32, i32) {
    %c0_i32 = arith.constant 0 : i32
    %c0_i32_0 = arith.constant 0 : i32
    %c0_i32_1 = arith.constant 0 : i32
    return %c0_i32, %c0_i32_0 : i32, i32
  }
  func.func @transform_4(%arg0: i32) -> (i32, i32) {
    %c0_i32 = arith.constant 0 : i32
    %c0_i32_0 = arith.constant 0 : i32
    %c0_i32_1 = arith.constant 0 : i32
    return %c0_i32, %c0_i32_0 : i32, i32
  }
  func.func @transform_5(%arg0: i32) -> (i32, i32, i32, i32) {
    %c0_i32 = arith.constant 0 : i32
    %c0_i32_0 = arith.constant 0 : i32
    %c0_i32_1 = arith.constant 0 : i32
    %c0_i32_2 = arith.constant 0 : i32
    return %arg0, %c0_i32, %c0_i32_0, %c0_i32_1 : i32, i32, i32, i32
  }
}

module attributes {stable_mosaic.version = 11 : i64} {
  func.func @dw_pw_block_kernel(%arg0: i32, %arg1: memref<1x6x6x32xf32, #tpu.memory_space<vmem>>, %arg2: memref<9x1x32xf32, #tpu.memory_space<vmem>>, %arg3: memref<1x32xf32, #tpu.memory_space<vmem>>, %arg4: memref<32x64xf32, #tpu.memory_space<vmem>>, %arg5: memref<1x64xf32, #tpu.memory_space<vmem>>, %arg6: memref<1x4x4x64xf32, #tpu.memory_space<vmem>>) attributes {dimension_semantics = [#tpu.dimension_semantics<parallel>], iteration_bounds = array<i64: 2>, scalar_prefetch = 0 : i64, scratch_operands = 0 : i64, tpu.core_type = #tpu.core_type<tc>, window_params = [{transform_indices = @transform_0, window_bounds = array<i64: 1, 6, 6, 32>}, {pipeline_mode = #tpu.pipeline_mode<synchronous>, transform_indices = @transform_1, window_bounds = array<i64: 9, 1, 32>}, {pipeline_mode = #tpu.pipeline_mode<synchronous>, transform_indices = @transform_2, window_bounds = array<i64: 1, 32>}, {pipeline_mode = #tpu.pipeline_mode<synchronous>, transform_indices = @transform_3, window_bounds = array<i64: 32, 64>}, {pipeline_mode = #tpu.pipeline_mode<synchronous>, transform_indices = @transform_4, window_bounds = array<i64: 1, 64>}, {transform_indices = @transform_5, window_bounds = array<i64: 1, 4, 4, 64>}]} {
    %c0 = arith.constant 0 : index
    %c0_0 = arith.constant 0 : index
    %c0_1 = arith.constant 0 : index
    %0 = vector.load %arg2[%c0, %c0_0, %c0_1] : memref<9x1x32xf32, #tpu.memory_space<vmem>>, vector<9x1x32xf32>
    %c0_2 = arith.constant 0 : index
    %c0_3 = arith.constant 0 : index
    %1 = vector.load %arg3[%c0_2, %c0_3] : memref<1x32xf32, #tpu.memory_space<vmem>>, vector<1x32xf32>
    %c0_4 = arith.constant 0 : index
    %c0_5 = arith.constant 0 : index
    %2 = vector.load %arg4[%c0_4, %c0_5] : memref<32x64xf32, #tpu.memory_space<vmem>>, vector<32x64xf32>
    %c0_6 = arith.constant 0 : index
    %c0_7 = arith.constant 0 : index
    %3 = vector.load %arg5[%c0_6, %c0_7] : memref<1x64xf32, #tpu.memory_space<vmem>>, vector<1x64xf32>
    %cst = arith.constant 0.000000e+00 : f32
    %4 = vector.broadcast %cst : f32 to vector<4x32xf32>
    %c0_8 = arith.constant 0 : index
    %c0_9 = arith.constant 0 : index
    %c0_10 = arith.constant 0 : index
    %c0_11 = arith.constant 0 : index
    %5 = vector.load %arg1[%c0_8, %c0_9, %c0_10, %c0_11] : memref<1x6x6x32xf32, #tpu.memory_space<vmem>>, vector<1x1x4x32xf32>
    %6 = vector.shape_cast %5 : vector<1x1x4x32xf32> to vector<4x32xf32>
    %7 = vector.extract_strided_slice %0 {offsets = [0, 0, 0], sizes = [1, 1, 32], strides = [1, 1, 1]} : vector<9x1x32xf32> to vector<1x1x32xf32>
    %8 = vector.shape_cast %7 : vector<1x1x32xf32> to vector<1x32xf32>
    %9 = vector.broadcast %8 : vector<1x32xf32> to vector<4x32xf32>
    %10 = arith.mulf %6, %9 : vector<4x32xf32>
    %11 = arith.addf %4, %10 : vector<4x32xf32>
    %c0_12 = arith.constant 0 : index
    %c0_13 = arith.constant 0 : index
    %c1 = arith.constant 1 : index
    %c0_14 = arith.constant 0 : index
    %12 = vector.load %arg1[%c0_12, %c0_13, %c1, %c0_14] : memref<1x6x6x32xf32, #tpu.memory_space<vmem>>, vector<1x1x4x32xf32>
    %13 = vector.shape_cast %12 : vector<1x1x4x32xf32> to vector<4x32xf32>
    %14 = vector.extract_strided_slice %0 {offsets = [1, 0, 0], sizes = [1, 1, 32], strides = [1, 1, 1]} : vector<9x1x32xf32> to vector<1x1x32xf32>
    %15 = vector.shape_cast %14 : vector<1x1x32xf32> to vector<1x32xf32>
    %16 = vector.broadcast %15 : vector<1x32xf32> to vector<4x32xf32>
    %17 = arith.mulf %13, %16 : vector<4x32xf32>
    %18 = arith.addf %11, %17 : vector<4x32xf32>
    %c0_15 = arith.constant 0 : index
    %c0_16 = arith.constant 0 : index
    %c2 = arith.constant 2 : index
    %c0_17 = arith.constant 0 : index
    %19 = vector.load %arg1[%c0_15, %c0_16, %c2, %c0_17] : memref<1x6x6x32xf32, #tpu.memory_space<vmem>>, vector<1x1x4x32xf32>
    %20 = vector.shape_cast %19 : vector<1x1x4x32xf32> to vector<4x32xf32>
    %21 = vector.extract_strided_slice %0 {offsets = [2, 0, 0], sizes = [1, 1, 32], strides = [1, 1, 1]} : vector<9x1x32xf32> to vector<1x1x32xf32>
    %22 = vector.shape_cast %21 : vector<1x1x32xf32> to vector<1x32xf32>
    %23 = vector.broadcast %22 : vector<1x32xf32> to vector<4x32xf32>
    %24 = arith.mulf %20, %23 : vector<4x32xf32>
    %25 = arith.addf %18, %24 : vector<4x32xf32>
    %c0_18 = arith.constant 0 : index
    %c1_19 = arith.constant 1 : index
    %c0_20 = arith.constant 0 : index
    %c0_21 = arith.constant 0 : index
    %26 = vector.load %arg1[%c0_18, %c1_19, %c0_20, %c0_21] : memref<1x6x6x32xf32, #tpu.memory_space<vmem>>, vector<1x1x4x32xf32>
    %27 = vector.shape_cast %26 : vector<1x1x4x32xf32> to vector<4x32xf32>
    %28 = vector.extract_strided_slice %0 {offsets = [3, 0, 0], sizes = [1, 1, 32], strides = [1, 1, 1]} : vector<9x1x32xf32> to vector<1x1x32xf32>
    %29 = vector.shape_cast %28 : vector<1x1x32xf32> to vector<1x32xf32>
    %30 = vector.broadcast %29 : vector<1x32xf32> to vector<4x32xf32>
    %31 = arith.mulf %27, %30 : vector<4x32xf32>
    %32 = arith.addf %25, %31 : vector<4x32xf32>
    %c0_22 = arith.constant 0 : index
    %c1_23 = arith.constant 1 : index
    %c1_24 = arith.constant 1 : index
    %c0_25 = arith.constant 0 : index
    %33 = vector.load %arg1[%c0_22, %c1_23, %c1_24, %c0_25] : memref<1x6x6x32xf32, #tpu.memory_space<vmem>>, vector<1x1x4x32xf32>
    %34 = vector.shape_cast %33 : vector<1x1x4x32xf32> to vector<4x32xf32>
    %35 = vector.extract_strided_slice %0 {offsets = [4, 0, 0], sizes = [1, 1, 32], strides = [1, 1, 1]} : vector<9x1x32xf32> to vector<1x1x32xf32>
    %36 = vector.shape_cast %35 : vector<1x1x32xf32> to vector<1x32xf32>
    %37 = vector.broadcast %36 : vector<1x32xf32> to vector<4x32xf32>
    %38 = arith.mulf %34, %37 : vector<4x32xf32>
    %39 = arith.addf %32, %38 : vector<4x32xf32>
    %c0_26 = arith.constant 0 : index
    %c1_27 = arith.constant 1 : index
    %c2_28 = arith.constant 2 : index
    %c0_29 = arith.constant 0 : index
    %40 = vector.load %arg1[%c0_26, %c1_27, %c2_28, %c0_29] : memref<1x6x6x32xf32, #tpu.memory_space<vmem>>, vector<1x1x4x32xf32>
    %41 = vector.shape_cast %40 : vector<1x1x4x32xf32> to vector<4x32xf32>
    %42 = vector.extract_strided_slice %0 {offsets = [5, 0, 0], sizes = [1, 1, 32], strides = [1, 1, 1]} : vector<9x1x32xf32> to vector<1x1x32xf32>
    %43 = vector.shape_cast %42 : vector<1x1x32xf32> to vector<1x32xf32>
    %44 = vector.broadcast %43 : vector<1x32xf32> to vector<4x32xf32>
    %45 = arith.mulf %41, %44 : vector<4x32xf32>
    %46 = arith.addf %39, %45 : vector<4x32xf32>
    %c0_30 = arith.constant 0 : index
    %c2_31 = arith.constant 2 : index
    %c0_32 = arith.constant 0 : index
    %c0_33 = arith.constant 0 : index
    %47 = vector.load %arg1[%c0_30, %c2_31, %c0_32, %c0_33] : memref<1x6x6x32xf32, #tpu.memory_space<vmem>>, vector<1x1x4x32xf32>
    %48 = vector.shape_cast %47 : vector<1x1x4x32xf32> to vector<4x32xf32>
    %49 = vector.extract_strided_slice %0 {offsets = [6, 0, 0], sizes = [1, 1, 32], strides = [1, 1, 1]} : vector<9x1x32xf32> to vector<1x1x32xf32>
    %50 = vector.shape_cast %49 : vector<1x1x32xf32> to vector<1x32xf32>
    %51 = vector.broadcast %50 : vector<1x32xf32> to vector<4x32xf32>
    %52 = arith.mulf %48, %51 : vector<4x32xf32>
    %53 = arith.addf %46, %52 : vector<4x32xf32>
    %c0_34 = arith.constant 0 : index
    %c2_35 = arith.constant 2 : index
    %c1_36 = arith.constant 1 : index
    %c0_37 = arith.constant 0 : index
    %54 = vector.load %arg1[%c0_34, %c2_35, %c1_36, %c0_37] : memref<1x6x6x32xf32, #tpu.memory_space<vmem>>, vector<1x1x4x32xf32>
    %55 = vector.shape_cast %54 : vector<1x1x4x32xf32> to vector<4x32xf32>
    %56 = vector.extract_strided_slice %0 {offsets = [7, 0, 0], sizes = [1, 1, 32], strides = [1, 1, 1]} : vector<9x1x32xf32> to vector<1x1x32xf32>
    %57 = vector.shape_cast %56 : vector<1x1x32xf32> to vector<1x32xf32>
    %58 = vector.broadcast %57 : vector<1x32xf32> to vector<4x32xf32>
    %59 = arith.mulf %55, %58 : vector<4x32xf32>
    %60 = arith.addf %53, %59 : vector<4x32xf32>
    %c0_38 = arith.constant 0 : index
    %c2_39 = arith.constant 2 : index
    %c2_40 = arith.constant 2 : index
    %c0_41 = arith.constant 0 : index
    %61 = vector.load %arg1[%c0_38, %c2_39, %c2_40, %c0_41] : memref<1x6x6x32xf32, #tpu.memory_space<vmem>>, vector<1x1x4x32xf32>
    %62 = vector.shape_cast %61 : vector<1x1x4x32xf32> to vector<4x32xf32>
    %63 = vector.extract_strided_slice %0 {offsets = [8, 0, 0], sizes = [1, 1, 32], strides = [1, 1, 1]} : vector<9x1x32xf32> to vector<1x1x32xf32>
    %64 = vector.shape_cast %63 : vector<1x1x32xf32> to vector<1x32xf32>
    %65 = vector.broadcast %64 : vector<1x32xf32> to vector<4x32xf32>
    %66 = arith.mulf %62, %65 : vector<4x32xf32>
    %67 = arith.addf %60, %66 : vector<4x32xf32>
    %68 = vector.broadcast %1 : vector<1x32xf32> to vector<4x32xf32>
    %69 = arith.addf %67, %68 : vector<4x32xf32>
    %cst_42 = arith.constant 0.000000e+00 : f32
    %70 = vector.broadcast %cst_42 : f32 to vector<4x32xf32>
    %71 = arith.maximumf %69, %70 : vector<4x32xf32>
    %cst_43 = arith.constant dense<0.000000e+00> : vector<4x64xf32>
    %72 = tpu.matmul %71, %2, %cst_43 {dimension_numbers = #tpu.dot_dimension_numbers<[1], [0], [0], [1], [0, 0, 1, 1], [], []>} : vector<4x32xf32>, vector<32x64xf32>, vector<4x64xf32> -> vector<4x64xf32>
    %73 = vector.broadcast %3 : vector<1x64xf32> to vector<4x64xf32>
    %74 = arith.addf %72, %73 : vector<4x64xf32>
    %cst_44 = arith.constant 0.000000e+00 : f32
    %75 = vector.broadcast %cst_44 : f32 to vector<4x64xf32>
    %76 = arith.maximumf %74, %75 : vector<4x64xf32>
    %c0_45 = arith.constant 0 : index
    %c0_46 = arith.constant 0 : index
    %c0_47 = arith.constant 0 : index
    %c0_48 = arith.constant 0 : index
    %77 = vector.load %arg6[%c0_45, %c0_46, %c0_47, %c0_48] : memref<1x4x4x64xf32, #tpu.memory_space<vmem>>, vector<1x1x4x64xf32>
    %78 = vector.shape_cast %77 : vector<1x1x4x64xf32> to vector<4x64xf32>
    %79 = vector.shape_cast %76 : vector<4x64xf32> to vector<1x1x4x64xf32>
    tpu.vector_store %arg6[%c0_45, %c0_46, %c0_47, %c0_48], %79 {strides = array<i32>} : memref<1x4x4x64xf32, #tpu.memory_space<vmem>>, vector<1x1x4x64xf32>,
    %cst_49 = arith.constant 0.000000e+00 : f32
    %80 = vector.broadcast %cst_49 : f32 to vector<4x32xf32>
    %c0_50 = arith.constant 0 : index
    %c1_51 = arith.constant 1 : index
    %c0_52 = arith.constant 0 : index
    %c0_53 = arith.constant 0 : index
    %81 = vector.load %arg1[%c0_50, %c1_51, %c0_52, %c0_53] : memref<1x6x6x32xf32, #tpu.memory_space<vmem>>, vector<1x1x4x32xf32>
    %82 = vector.shape_cast %81 : vector<1x1x4x32xf32> to vector<4x32xf32>
    %83 = vector.extract_strided_slice %0 {offsets = [0, 0, 0], sizes = [1, 1, 32], strides = [1, 1, 1]} : vector<9x1x32xf32> to vector<1x1x32xf32>
    %84 = vector.shape_cast %83 : vector<1x1x32xf32> to vector<1x32xf32>
    %85 = vector.broadcast %84 : vector<1x32xf32> to vector<4x32xf32>
    %86 = arith.mulf %82, %85 : vector<4x32xf32>
    %87 = arith.addf %80, %86 : vector<4x32xf32>
    %c0_54 = arith.constant 0 : index
    %c1_55 = arith.constant 1 : index
    %c1_56 = arith.constant 1 : index
    %c0_57 = arith.constant 0 : index
    %88 = vector.load %arg1[%c0_54, %c1_55, %c1_56, %c0_57] : memref<1x6x6x32xf32, #tpu.memory_space<vmem>>, vector<1x1x4x32xf32>
    %89 = vector.shape_cast %88 : vector<1x1x4x32xf32> to vector<4x32xf32>
    %90 = vector.extract_strided_slice %0 {offsets = [1, 0, 0], sizes = [1, 1, 32], strides = [1, 1, 1]} : vector<9x1x32xf32> to vector<1x1x32xf32>
    %91 = vector.shape_cast %90 : vector<1x1x32xf32> to vector<1x32xf32>
    %92 = vector.broadcast %91 : vector<1x32xf32> to vector<4x32xf32>
    %93 = arith.mulf %89, %92 : vector<4x32xf32>
    %94 = arith.addf %87, %93 : vector<4x32xf32>
    %c0_58 = arith.constant 0 : index
    %c1_59 = arith.constant 1 : index
    %c2_60 = arith.constant 2 : index
    %c0_61 = arith.constant 0 : index
    %95 = vector.load %arg1[%c0_58, %c1_59, %c2_60, %c0_61] : memref<1x6x6x32xf32, #tpu.memory_space<vmem>>, vector<1x1x4x32xf32>
    %96 = vector.shape_cast %95 : vector<1x1x4x32xf32> to vector<4x32xf32>
    %97 = vector.extract_strided_slice %0 {offsets = [2, 0, 0], sizes = [1, 1, 32], strides = [1, 1, 1]} : vector<9x1x32xf32> to vector<1x1x32xf32>
    %98 = vector.shape_cast %97 : vector<1x1x32xf32> to vector<1x32xf32>
    %99 = vector.broadcast %98 : vector<1x32xf32> to vector<4x32xf32>
    %100 = arith.mulf %96, %99 : vector<4x32xf32>
    %101 = arith.addf %94, %100 : vector<4x32xf32>
    %c0_62 = arith.constant 0 : index
    %c2_63 = arith.constant 2 : index
    %c0_64 = arith.constant 0 : index
    %c0_65 = arith.constant 0 : index
    %102 = vector.load %arg1[%c0_62, %c2_63, %c0_64, %c0_65] : memref<1x6x6x32xf32, #tpu.memory_space<vmem>>, vector<1x1x4x32xf32>
    %103 = vector.shape_cast %102 : vector<1x1x4x32xf32> to vector<4x32xf32>
    %104 = vector.extract_strided_slice %0 {offsets = [3, 0, 0], sizes = [1, 1, 32], strides = [1, 1, 1]} : vector<9x1x32xf32> to vector<1x1x32xf32>
    %105 = vector.shape_cast %104 : vector<1x1x32xf32> to vector<1x32xf32>
    %106 = vector.broadcast %105 : vector<1x32xf32> to vector<4x32xf32>
    %107 = arith.mulf %103, %106 : vector<4x32xf32>
    %108 = arith.addf %101, %107 : vector<4x32xf32>
    %c0_66 = arith.constant 0 : index
    %c2_67 = arith.constant 2 : index
    %c1_68 = arith.constant 1 : index
    %c0_69 = arith.constant 0 : index
    %109 = vector.load %arg1[%c0_66, %c2_67, %c1_68, %c0_69] : memref<1x6x6x32xf32, #tpu.memory_space<vmem>>, vector<1x1x4x32xf32>
    %110 = vector.shape_cast %109 : vector<1x1x4x32xf32> to vector<4x32xf32>
    %111 = vector.extract_strided_slice %0 {offsets = [4, 0, 0], sizes = [1, 1, 32], strides = [1, 1, 1]} : vector<9x1x32xf32> to vector<1x1x32xf32>
    %112 = vector.shape_cast %111 : vector<1x1x32xf32> to vector<1x32xf32>
    %113 = vector.broadcast %112 : vector<1x32xf32> to vector<4x32xf32>
    %114 = arith.mulf %110, %113 : vector<4x32xf32>
    %115 = arith.addf %108, %114 : vector<4x32xf32>
    %c0_70 = arith.constant 0 : index
    %c2_71 = arith.constant 2 : index
    %c2_72 = arith.constant 2 : index
    %c0_73 = arith.constant 0 : index
    %116 = vector.load %arg1[%c0_70, %c2_71, %c2_72, %c0_73] : memref<1x6x6x32xf32, #tpu.memory_space<vmem>>, vector<1x1x4x32xf32>
    %117 = vector.shape_cast %116 : vector<1x1x4x32xf32> to vector<4x32xf32>
    %118 = vector.extract_strided_slice %0 {offsets = [5, 0, 0], sizes = [1, 1, 32], strides = [1, 1, 1]} : vector<9x1x32xf32> to vector<1x1x32xf32>
    %119 = vector.shape_cast %118 : vector<1x1x32xf32> to vector<1x32xf32>
    %120 = vector.broadcast %119 : vector<1x32xf32> to vector<4x32xf32>
    %121 = arith.mulf %117, %120 : vector<4x32xf32>
    %122 = arith.addf %115, %121 : vector<4x32xf32>
    %c0_74 = arith.constant 0 : index
    %c3 = arith.constant 3 : index
    %c0_75 = arith.constant 0 : index
    %c0_76 = arith.constant 0 : index
    %123 = vector.load %arg1[%c0_74, %c3, %c0_75, %c0_76] : memref<1x6x6x32xf32, #tpu.memory_space<vmem>>, vector<1x1x4x32xf32>
    %124 = vector.shape_cast %123 : vector<1x1x4x32xf32> to vector<4x32xf32>
    %125 = vector.extract_strided_slice %0 {offsets = [6, 0, 0], sizes = [1, 1, 32], strides = [1, 1, 1]} : vector<9x1x32xf32> to vector<1x1x32xf32>
    %126 = vector.shape_cast %125 : vector<1x1x32xf32> to vector<1x32xf32>
    %127 = vector.broadcast %126 : vector<1x32xf32> to vector<4x32xf32>
    %128 = arith.mulf %124, %127 : vector<4x32xf32>
    %129 = arith.addf %122, %128 : vector<4x32xf32>
    %c0_77 = arith.constant 0 : index
    %c3_78 = arith.constant 3 : index
    %c1_79 = arith.constant 1 : index
    %c0_80 = arith.constant 0 : index
    %130 = vector.load %arg1[%c0_77, %c3_78, %c1_79, %c0_80] : memref<1x6x6x32xf32, #tpu.memory_space<vmem>>, vector<1x1x4x32xf32>
    %131 = vector.shape_cast %130 : vector<1x1x4x32xf32> to vector<4x32xf32>
    %132 = vector.extract_strided_slice %0 {offsets = [7, 0, 0], sizes = [1, 1, 32], strides = [1, 1, 1]} : vector<9x1x32xf32> to vector<1x1x32xf32>
    %133 = vector.shape_cast %132 : vector<1x1x32xf32> to vector<1x32xf32>
    %134 = vector.broadcast %133 : vector<1x32xf32> to vector<4x32xf32>
    %135 = arith.mulf %131, %134 : vector<4x32xf32>
    %136 = arith.addf %129, %135 : vector<4x32xf32>
    %c0_81 = arith.constant 0 : index
    %c3_82 = arith.constant 3 : index
    %c2_83 = arith.constant 2 : index
    %c0_84 = arith.constant 0 : index
    %137 = vector.load %arg1[%c0_81, %c3_82, %c2_83, %c0_84] : memref<1x6x6x32xf32, #tpu.memory_space<vmem>>, vector<1x1x4x32xf32>
    %138 = vector.shape_cast %137 : vector<1x1x4x32xf32> to vector<4x32xf32>
    %139 = vector.extract_strided_slice %0 {offsets = [8, 0, 0], sizes = [1, 1, 32], strides = [1, 1, 1]} : vector<9x1x32xf32> to vector<1x1x32xf32>
    %140 = vector.shape_cast %139 : vector<1x1x32xf32> to vector<1x32xf32>
    %141 = vector.broadcast %140 : vector<1x32xf32> to vector<4x32xf32>
    %142 = arith.mulf %138, %141 : vector<4x32xf32>
    %143 = arith.addf %136, %142 : vector<4x32xf32>
    %144 = vector.broadcast %1 : vector<1x32xf32> to vector<4x32xf32>
    %145 = arith.addf %143, %144 : vector<4x32xf32>
    %cst_85 = arith.constant 0.000000e+00 : f32
    %146 = vector.broadcast %cst_85 : f32 to vector<4x32xf32>
    %147 = arith.maximumf %145, %146 : vector<4x32xf32>
    %cst_86 = arith.constant dense<0.000000e+00> : vector<4x64xf32>
    %148 = tpu.matmul %147, %2, %cst_86 {dimension_numbers = #tpu.dot_dimension_numbers<[1], [0], [0], [1], [0, 0, 1, 1], [], []>} : vector<4x32xf32>, vector<32x64xf32>, vector<4x64xf32> -> vector<4x64xf32>
    %149 = vector.broadcast %3 : vector<1x64xf32> to vector<4x64xf32>
    %150 = arith.addf %148, %149 : vector<4x64xf32>
    %cst_87 = arith.constant 0.000000e+00 : f32
    %151 = vector.broadcast %cst_87 : f32 to vector<4x64xf32>
    %152 = arith.maximumf %150, %151 : vector<4x64xf32>
    %c0_88 = arith.constant 0 : index
    %c1_89 = arith.constant 1 : index
    %c0_90 = arith.constant 0 : index
    %c0_91 = arith.constant 0 : index
    %153 = vector.load %arg6[%c0_88, %c1_89, %c0_90, %c0_91] : memref<1x4x4x64xf32, #tpu.memory_space<vmem>>, vector<1x1x4x64xf32>
    %154 = vector.shape_cast %153 : vector<1x1x4x64xf32> to vector<4x64xf32>
    %155 = vector.shape_cast %152 : vector<4x64xf32> to vector<1x1x4x64xf32>
    tpu.vector_store %arg6[%c0_88, %c1_89, %c0_90, %c0_91], %155 {strides = array<i32>} : memref<1x4x4x64xf32, #tpu.memory_space<vmem>>, vector<1x1x4x64xf32>,
    %cst_92 = arith.constant 0.000000e+00 : f32
    %156 = vector.broadcast %cst_92 : f32 to vector<4x32xf32>
    %c0_93 = arith.constant 0 : index
    %c2_94 = arith.constant 2 : index
    %c0_95 = arith.constant 0 : index
    %c0_96 = arith.constant 0 : index
    %157 = vector.load %arg1[%c0_93, %c2_94, %c0_95, %c0_96] : memref<1x6x6x32xf32, #tpu.memory_space<vmem>>, vector<1x1x4x32xf32>
    %158 = vector.shape_cast %157 : vector<1x1x4x32xf32> to vector<4x32xf32>
    %159 = vector.extract_strided_slice %0 {offsets = [0, 0, 0], sizes = [1, 1, 32], strides = [1, 1, 1]} : vector<9x1x32xf32> to vector<1x1x32xf32>
    %160 = vector.shape_cast %159 : vector<1x1x32xf32> to vector<1x32xf32>
    %161 = vector.broadcast %160 : vector<1x32xf32> to vector<4x32xf32>
    %162 = arith.mulf %158, %161 : vector<4x32xf32>
    %163 = arith.addf %156, %162 : vector<4x32xf32>
    %c0_97 = arith.constant 0 : index
    %c2_98 = arith.constant 2 : index
    %c1_99 = arith.constant 1 : index
    %c0_100 = arith.constant 0 : index
    %164 = vector.load %arg1[%c0_97, %c2_98, %c1_99, %c0_100] : memref<1x6x6x32xf32, #tpu.memory_space<vmem>>, vector<1x1x4x32xf32>
    %165 = vector.shape_cast %164 : vector<1x1x4x32xf32> to vector<4x32xf32>
    %166 = vector.extract_strided_slice %0 {offsets = [1, 0, 0], sizes = [1, 1, 32], strides = [1, 1, 1]} : vector<9x1x32xf32> to vector<1x1x32xf32>
    %167 = vector.shape_cast %166 : vector<1x1x32xf32> to vector<1x32xf32>
    %168 = vector.broadcast %167 : vector<1x32xf32> to vector<4x32xf32>
    %169 = arith.mulf %165, %168 : vector<4x32xf32>
    %170 = arith.addf %163, %169 : vector<4x32xf32>
    %c0_101 = arith.constant 0 : index
    %c2_102 = arith.constant 2 : index
    %c2_103 = arith.constant 2 : index
    %c0_104 = arith.constant 0 : index
    %171 = vector.load %arg1[%c0_101, %c2_102, %c2_103, %c0_104] : memref<1x6x6x32xf32, #tpu.memory_space<vmem>>, vector<1x1x4x32xf32>
    %172 = vector.shape_cast %171 : vector<1x1x4x32xf32> to vector<4x32xf32>
    %173 = vector.extract_strided_slice %0 {offsets = [2, 0, 0], sizes = [1, 1, 32], strides = [1, 1, 1]} : vector<9x1x32xf32> to vector<1x1x32xf32>
    %174 = vector.shape_cast %173 : vector<1x1x32xf32> to vector<1x32xf32>
    %175 = vector.broadcast %174 : vector<1x32xf32> to vector<4x32xf32>
    %176 = arith.mulf %172, %175 : vector<4x32xf32>
    %177 = arith.addf %170, %176 : vector<4x32xf32>
    %c0_105 = arith.constant 0 : index
    %c3_106 = arith.constant 3 : index
    %c0_107 = arith.constant 0 : index
    %c0_108 = arith.constant 0 : index
    %178 = vector.load %arg1[%c0_105, %c3_106, %c0_107, %c0_108] : memref<1x6x6x32xf32, #tpu.memory_space<vmem>>, vector<1x1x4x32xf32>
    %179 = vector.shape_cast %178 : vector<1x1x4x32xf32> to vector<4x32xf32>
    %180 = vector.extract_strided_slice %0 {offsets = [3, 0, 0], sizes = [1, 1, 32], strides = [1, 1, 1]} : vector<9x1x32xf32> to vector<1x1x32xf32>
    %181 = vector.shape_cast %180 : vector<1x1x32xf32> to vector<1x32xf32>
    %182 = vector.broadcast %181 : vector<1x32xf32> to vector<4x32xf32>
    %183 = arith.mulf %179, %182 : vector<4x32xf32>
    %184 = arith.addf %177, %183 : vector<4x32xf32>
    %c0_109 = arith.constant 0 : index
    %c3_110 = arith.constant 3 : index
    %c1_111 = arith.constant 1 : index
    %c0_112 = arith.constant 0 : index
    %185 = vector.load %arg1[%c0_109, %c3_110, %c1_111, %c0_112] : memref<1x6x6x32xf32, #tpu.memory_space<vmem>>, vector<1x1x4x32xf32>
    %186 = vector.shape_cast %185 : vector<1x1x4x32xf32> to vector<4x32xf32>
    %187 = vector.extract_strided_slice %0 {offsets = [4, 0, 0], sizes = [1, 1, 32], strides = [1, 1, 1]} : vector<9x1x32xf32> to vector<1x1x32xf32>
    %188 = vector.shape_cast %187 : vector<1x1x32xf32> to vector<1x32xf32>
    %189 = vector.broadcast %188 : vector<1x32xf32> to vector<4x32xf32>
    %190 = arith.mulf %186, %189 : vector<4x32xf32>
    %191 = arith.addf %184, %190 : vector<4x32xf32>
    %c0_113 = arith.constant 0 : index
    %c3_114 = arith.constant 3 : index
    %c2_115 = arith.constant 2 : index
    %c0_116 = arith.constant 0 : index
    %192 = vector.load %arg1[%c0_113, %c3_114, %c2_115, %c0_116] : memref<1x6x6x32xf32, #tpu.memory_space<vmem>>, vector<1x1x4x32xf32>
    %193 = vector.shape_cast %192 : vector<1x1x4x32xf32> to vector<4x32xf32>
    %194 = vector.extract_strided_slice %0 {offsets = [5, 0, 0], sizes = [1, 1, 32], strides = [1, 1, 1]} : vector<9x1x32xf32> to vector<1x1x32xf32>
    %195 = vector.shape_cast %194 : vector<1x1x32xf32> to vector<1x32xf32>
    %196 = vector.broadcast %195 : vector<1x32xf32> to vector<4x32xf32>
    %197 = arith.mulf %193, %196 : vector<4x32xf32>
    %198 = arith.addf %191, %197 : vector<4x32xf32>
    %c0_117 = arith.constant 0 : index
    %c4 = arith.constant 4 : index
    %c0_118 = arith.constant 0 : index
    %c0_119 = arith.constant 0 : index
    %199 = vector.load %arg1[%c0_117, %c4, %c0_118, %c0_119] : memref<1x6x6x32xf32, #tpu.memory_space<vmem>>, vector<1x1x4x32xf32>
    %200 = vector.shape_cast %199 : vector<1x1x4x32xf32> to vector<4x32xf32>
    %201 = vector.extract_strided_slice %0 {offsets = [6, 0, 0], sizes = [1, 1, 32], strides = [1, 1, 1]} : vector<9x1x32xf32> to vector<1x1x32xf32>
    %202 = vector.shape_cast %201 : vector<1x1x32xf32> to vector<1x32xf32>
    %203 = vector.broadcast %202 : vector<1x32xf32> to vector<4x32xf32>
    %204 = arith.mulf %200, %203 : vector<4x32xf32>
    %205 = arith.addf %198, %204 : vector<4x32xf32>
    %c0_120 = arith.constant 0 : index
    %c4_121 = arith.constant 4 : index
    %c1_122 = arith.constant 1 : index
    %c0_123 = arith.constant 0 : index
    %206 = vector.load %arg1[%c0_120, %c4_121, %c1_122, %c0_123] : memref<1x6x6x32xf32, #tpu.memory_space<vmem>>, vector<1x1x4x32xf32>
    %207 = vector.shape_cast %206 : vector<1x1x4x32xf32> to vector<4x32xf32>
    %208 = vector.extract_strided_slice %0 {offsets = [7, 0, 0], sizes = [1, 1, 32], strides = [1, 1, 1]} : vector<9x1x32xf32> to vector<1x1x32xf32>
    %209 = vector.shape_cast %208 : vector<1x1x32xf32> to vector<1x32xf32>
    %210 = vector.broadcast %209 : vector<1x32xf32> to vector<4x32xf32>
    %211 = arith.mulf %207, %210 : vector<4x32xf32>
    %212 = arith.addf %205, %211 : vector<4x32xf32>
    %c0_124 = arith.constant 0 : index
    %c4_125 = arith.constant 4 : index
    %c2_126 = arith.constant 2 : index
    %c0_127 = arith.constant 0 : index
    %213 = vector.load %arg1[%c0_124, %c4_125, %c2_126, %c0_127] : memref<1x6x6x32xf32, #tpu.memory_space<vmem>>, vector<1x1x4x32xf32>
    %214 = vector.shape_cast %213 : vector<1x1x4x32xf32> to vector<4x32xf32>
    %215 = vector.extract_strided_slice %0 {offsets = [8, 0, 0], sizes = [1, 1, 32], strides = [1, 1, 1]} : vector<9x1x32xf32> to vector<1x1x32xf32>
    %216 = vector.shape_cast %215 : vector<1x1x32xf32> to vector<1x32xf32>
    %217 = vector.broadcast %216 : vector<1x32xf32> to vector<4x32xf32>
    %218 = arith.mulf %214, %217 : vector<4x32xf32>
    %219 = arith.addf %212, %218 : vector<4x32xf32>
    %220 = vector.broadcast %1 : vector<1x32xf32> to vector<4x32xf32>
    %221 = arith.addf %219, %220 : vector<4x32xf32>
    %cst_128 = arith.constant 0.000000e+00 : f32
    %222 = vector.broadcast %cst_128 : f32 to vector<4x32xf32>
    %223 = arith.maximumf %221, %222 : vector<4x32xf32>
    %cst_129 = arith.constant dense<0.000000e+00> : vector<4x64xf32>
    %224 = tpu.matmul %223, %2, %cst_129 {dimension_numbers = #tpu.dot_dimension_numbers<[1], [0], [0], [1], [0, 0, 1, 1], [], []>} : vector<4x32xf32>, vector<32x64xf32>, vector<4x64xf32> -> vector<4x64xf32>
    %225 = vector.broadcast %3 : vector<1x64xf32> to vector<4x64xf32>
    %226 = arith.addf %224, %225 : vector<4x64xf32>
    %cst_130 = arith.constant 0.000000e+00 : f32
    %227 = vector.broadcast %cst_130 : f32 to vector<4x64xf32>
    %228 = arith.maximumf %226, %227 : vector<4x64xf32>
    %c0_131 = arith.constant 0 : index
    %c2_132 = arith.constant 2 : index
    %c0_133 = arith.constant 0 : index
    %c0_134 = arith.constant 0 : index
    %229 = vector.load %arg6[%c0_131, %c2_132, %c0_133, %c0_134] : memref<1x4x4x64xf32, #tpu.memory_space<vmem>>, vector<1x1x4x64xf32>
    %230 = vector.shape_cast %229 : vector<1x1x4x64xf32> to vector<4x64xf32>
    %231 = vector.shape_cast %228 : vector<4x64xf32> to vector<1x1x4x64xf32>
    tpu.vector_store %arg6[%c0_131, %c2_132, %c0_133, %c0_134], %231 {strides = array<i32>} : memref<1x4x4x64xf32, #tpu.memory_space<vmem>>, vector<1x1x4x64xf32>,
    %cst_135 = arith.constant 0.000000e+00 : f32
    %232 = vector.broadcast %cst_135 : f32 to vector<4x32xf32>
    %c0_136 = arith.constant 0 : index
    %c3_137 = arith.constant 3 : index
    %c0_138 = arith.constant 0 : index
    %c0_139 = arith.constant 0 : index
    %233 = vector.load %arg1[%c0_136, %c3_137, %c0_138, %c0_139] : memref<1x6x6x32xf32, #tpu.memory_space<vmem>>, vector<1x1x4x32xf32>
    %234 = vector.shape_cast %233 : vector<1x1x4x32xf32> to vector<4x32xf32>
    %235 = vector.extract_strided_slice %0 {offsets = [0, 0, 0], sizes = [1, 1, 32], strides = [1, 1, 1]} : vector<9x1x32xf32> to vector<1x1x32xf32>
    %236 = vector.shape_cast %235 : vector<1x1x32xf32> to vector<1x32xf32>
    %237 = vector.broadcast %236 : vector<1x32xf32> to vector<4x32xf32>
    %238 = arith.mulf %234, %237 : vector<4x32xf32>
    %239 = arith.addf %232, %238 : vector<4x32xf32>
    %c0_140 = arith.constant 0 : index
    %c3_141 = arith.constant 3 : index
    %c1_142 = arith.constant 1 : index
    %c0_143 = arith.constant 0 : index
    %240 = vector.load %arg1[%c0_140, %c3_141, %c1_142, %c0_143] : memref<1x6x6x32xf32, #tpu.memory_space<vmem>>, vector<1x1x4x32xf32>
    %241 = vector.shape_cast %240 : vector<1x1x4x32xf32> to vector<4x32xf32>
    %242 = vector.extract_strided_slice %0 {offsets = [1, 0, 0], sizes = [1, 1, 32], strides = [1, 1, 1]} : vector<9x1x32xf32> to vector<1x1x32xf32>
    %243 = vector.shape_cast %242 : vector<1x1x32xf32> to vector<1x32xf32>
    %244 = vector.broadcast %243 : vector<1x32xf32> to vector<4x32xf32>
    %245 = arith.mulf %241, %244 : vector<4x32xf32>
    %246 = arith.addf %239, %245 : vector<4x32xf32>
    %c0_144 = arith.constant 0 : index
    %c3_145 = arith.constant 3 : index
    %c2_146 = arith.constant 2 : index
    %c0_147 = arith.constant 0 : index
    %247 = vector.load %arg1[%c0_144, %c3_145, %c2_146, %c0_147] : memref<1x6x6x32xf32, #tpu.memory_space<vmem>>, vector<1x1x4x32xf32>
    %248 = vector.shape_cast %247 : vector<1x1x4x32xf32> to vector<4x32xf32>
    %249 = vector.extract_strided_slice %0 {offsets = [2, 0, 0], sizes = [1, 1, 32], strides = [1, 1, 1]} : vector<9x1x32xf32> to vector<1x1x32xf32>
    %250 = vector.shape_cast %249 : vector<1x1x32xf32> to vector<1x32xf32>
    %251 = vector.broadcast %250 : vector<1x32xf32> to vector<4x32xf32>
    %252 = arith.mulf %248, %251 : vector<4x32xf32>
    %253 = arith.addf %246, %252 : vector<4x32xf32>
    %c0_148 = arith.constant 0 : index
    %c4_149 = arith.constant 4 : index
    %c0_150 = arith.constant 0 : index
    %c0_151 = arith.constant 0 : index
    %254 = vector.load %arg1[%c0_148, %c4_149, %c0_150, %c0_151] : memref<1x6x6x32xf32, #tpu.memory_space<vmem>>, vector<1x1x4x32xf32>
    %255 = vector.shape_cast %254 : vector<1x1x4x32xf32> to vector<4x32xf32>
    %256 = vector.extract_strided_slice %0 {offsets = [3, 0, 0], sizes = [1, 1, 32], strides = [1, 1, 1]} : vector<9x1x32xf32> to vector<1x1x32xf32>
    %257 = vector.shape_cast %256 : vector<1x1x32xf32> to vector<1x32xf32>
    %258 = vector.broadcast %257 : vector<1x32xf32> to vector<4x32xf32>
    %259 = arith.mulf %255, %258 : vector<4x32xf32>
    %260 = arith.addf %253, %259 : vector<4x32xf32>
    %c0_152 = arith.constant 0 : index
    %c4_153 = arith.constant 4 : index
    %c1_154 = arith.constant 1 : index
    %c0_155 = arith.constant 0 : index
    %261 = vector.load %arg1[%c0_152, %c4_153, %c1_154, %c0_155] : memref<1x6x6x32xf32, #tpu.memory_space<vmem>>, vector<1x1x4x32xf32>
    %262 = vector.shape_cast %261 : vector<1x1x4x32xf32> to vector<4x32xf32>
    %263 = vector.extract_strided_slice %0 {offsets = [4, 0, 0], sizes = [1, 1, 32], strides = [1, 1, 1]} : vector<9x1x32xf32> to vector<1x1x32xf32>
    %264 = vector.shape_cast %263 : vector<1x1x32xf32> to vector<1x32xf32>
    %265 = vector.broadcast %264 : vector<1x32xf32> to vector<4x32xf32>
    %266 = arith.mulf %262, %265 : vector<4x32xf32>
    %267 = arith.addf %260, %266 : vector<4x32xf32>
    %c0_156 = arith.constant 0 : index
    %c4_157 = arith.constant 4 : index
    %c2_158 = arith.constant 2 : index
    %c0_159 = arith.constant 0 : index
    %268 = vector.load %arg1[%c0_156, %c4_157, %c2_158, %c0_159] : memref<1x6x6x32xf32, #tpu.memory_space<vmem>>, vector<1x1x4x32xf32>
    %269 = vector.shape_cast %268 : vector<1x1x4x32xf32> to vector<4x32xf32>
    %270 = vector.extract_strided_slice %0 {offsets = [5, 0, 0], sizes = [1, 1, 32], strides = [1, 1, 1]} : vector<9x1x32xf32> to vector<1x1x32xf32>
    %271 = vector.shape_cast %270 : vector<1x1x32xf32> to vector<1x32xf32>
    %272 = vector.broadcast %271 : vector<1x32xf32> to vector<4x32xf32>
    %273 = arith.mulf %269, %272 : vector<4x32xf32>
    %274 = arith.addf %267, %273 : vector<4x32xf32>
    %c0_160 = arith.constant 0 : index
    %c5 = arith.constant 5 : index
    %c0_161 = arith.constant 0 : index
    %c0_162 = arith.constant 0 : index
    %275 = vector.load %arg1[%c0_160, %c5, %c0_161, %c0_162] : memref<1x6x6x32xf32, #tpu.memory_space<vmem>>, vector<1x1x4x32xf32>
    %276 = vector.shape_cast %275 : vector<1x1x4x32xf32> to vector<4x32xf32>
    %277 = vector.extract_strided_slice %0 {offsets = [6, 0, 0], sizes = [1, 1, 32], strides = [1, 1, 1]} : vector<9x1x32xf32> to vector<1x1x32xf32>
    %278 = vector.shape_cast %277 : vector<1x1x32xf32> to vector<1x32xf32>
    %279 = vector.broadcast %278 : vector<1x32xf32> to vector<4x32xf32>
    %280 = arith.mulf %276, %279 : vector<4x32xf32>
    %281 = arith.addf %274, %280 : vector<4x32xf32>
    %c0_163 = arith.constant 0 : index
    %c5_164 = arith.constant 5 : index
    %c1_165 = arith.constant 1 : index
    %c0_166 = arith.constant 0 : index
    %282 = vector.load %arg1[%c0_163, %c5_164, %c1_165, %c0_166] : memref<1x6x6x32xf32, #tpu.memory_space<vmem>>, vector<1x1x4x32xf32>
    %283 = vector.shape_cast %282 : vector<1x1x4x32xf32> to vector<4x32xf32>
    %284 = vector.extract_strided_slice %0 {offsets = [7, 0, 0], sizes = [1, 1, 32], strides = [1, 1, 1]} : vector<9x1x32xf32> to vector<1x1x32xf32>
    %285 = vector.shape_cast %284 : vector<1x1x32xf32> to vector<1x32xf32>
    %286 = vector.broadcast %285 : vector<1x32xf32> to vector<4x32xf32>
    %287 = arith.mulf %283, %286 : vector<4x32xf32>
    %288 = arith.addf %281, %287 : vector<4x32xf32>
    %c0_167 = arith.constant 0 : index
    %c5_168 = arith.constant 5 : index
    %c2_169 = arith.constant 2 : index
    %c0_170 = arith.constant 0 : index
    %289 = vector.load %arg1[%c0_167, %c5_168, %c2_169, %c0_170] : memref<1x6x6x32xf32, #tpu.memory_space<vmem>>, vector<1x1x4x32xf32>
    %290 = vector.shape_cast %289 : vector<1x1x4x32xf32> to vector<4x32xf32>
    %291 = vector.extract_strided_slice %0 {offsets = [8, 0, 0], sizes = [1, 1, 32], strides = [1, 1, 1]} : vector<9x1x32xf32> to vector<1x1x32xf32>
    %292 = vector.shape_cast %291 : vector<1x1x32xf32> to vector<1x32xf32>
    %293 = vector.broadcast %292 : vector<1x32xf32> to vector<4x32xf32>
    %294 = arith.mulf %290, %293 : vector<4x32xf32>
    %295 = arith.addf %288, %294 : vector<4x32xf32>
    %296 = vector.broadcast %1 : vector<1x32xf32> to vector<4x32xf32>
    %297 = arith.addf %295, %296 : vector<4x32xf32>
    %cst_171 = arith.constant 0.000000e+00 : f32
    %298 = vector.broadcast %cst_171 : f32 to vector<4x32xf32>
    %299 = arith.maximumf %297, %298 : vector<4x32xf32>
    %cst_172 = arith.constant dense<0.000000e+00> : vector<4x64xf32>
    %300 = tpu.matmul %299, %2, %cst_172 {dimension_numbers = #tpu.dot_dimension_numbers<[1], [0], [0], [1], [0, 0, 1, 1], [], []>} : vector<4x32xf32>, vector<32x64xf32>, vector<4x64xf32> -> vector<4x64xf32>
    %301 = vector.broadcast %3 : vector<1x64xf32> to vector<4x64xf32>
    %302 = arith.addf %300, %301 : vector<4x64xf32>
    %cst_173 = arith.constant 0.000000e+00 : f32
    %303 = vector.broadcast %cst_173 : f32 to vector<4x64xf32>
    %304 = arith.maximumf %302, %303 : vector<4x64xf32>
    %c0_174 = arith.constant 0 : index
    %c3_175 = arith.constant 3 : index
    %c0_176 = arith.constant 0 : index
    %c0_177 = arith.constant 0 : index
    %305 = vector.load %arg6[%c0_174, %c3_175, %c0_176, %c0_177] : memref<1x4x4x64xf32, #tpu.memory_space<vmem>>, vector<1x1x4x64xf32>
    %306 = vector.shape_cast %305 : vector<1x1x4x64xf32> to vector<4x64xf32>
    %307 = vector.shape_cast %304 : vector<4x64xf32> to vector<1x1x4x64xf32>
    tpu.vector_store %arg6[%c0_174, %c3_175, %c0_176, %c0_177], %307 {strides = array<i32>} : memref<1x4x4x64xf32, #tpu.memory_space<vmem>>, vector<1x1x4x64xf32>,
    return
  }
  func.func @transform_0(%arg0: i32) -> (i32, i32, i32, i32) {
    %c0_i32 = arith.constant 0 : i32
    %c0_i32_0 = arith.constant 0 : i32
    %c0_i32_1 = arith.constant 0 : i32
    %c0_i32_2 = arith.constant 0 : i32
    return %arg0, %c0_i32, %c0_i32_0, %c0_i32_1 : i32, i32, i32, i32
  }
  func.func @transform_1(%arg0: i32) -> (i32, i32, i32) {
    %c0_i32 = arith.constant 0 : i32
    %c0_i32_0 = arith.constant 0 : i32
    %c0_i32_1 = arith.constant 0 : i32
    %c0_i32_2 = arith.constant 0 : i32
    return %c0_i32, %c0_i32_0, %c0_i32_1 : i32, i32, i32
  }
  func.func @transform_2(%arg0: i32) -> (i32, i32) {
    %c0_i32 = arith.constant 0 : i32
    %c0_i32_0 = arith.constant 0 : i32
    %c0_i32_1 = arith.constant 0 : i32
    return %c0_i32, %c0_i32_0 : i32, i32
  }
  func.func @transform_3(%arg0: i32) -> (i32, i32) {
    %c0_i32 = arith.constant 0 : i32
    %c0_i32_0 = arith.constant 0 : i32
    %c0_i32_1 = arith.constant 0 : i32
    return %c0_i32, %c0_i32_0 : i32, i32
  }
  func.func @transform_4(%arg0: i32) -> (i32, i32) {
    %c0_i32 = arith.constant 0 : i32
    %c0_i32_0 = arith.constant 0 : i32
    %c0_i32_1 = arith.constant 0 : i32
    return %c0_i32, %c0_i32_0 : i32, i32
  }
  func.func @transform_5(%arg0: i32) -> (i32, i32, i32, i32) {
    %c0_i32 = arith.constant 0 : i32
    %c0_i32_0 = arith.constant 0 : i32
    %c0_i32_1 = arith.constant 0 : i32
    %c0_i32_2 = arith.constant 0 : i32
    return %arg0, %c0_i32, %c0_i32_0, %c0_i32_1 : i32, i32, i32, i32
  }
}

module attributes {stable_mosaic.version = 11 : i64} {
  func.func @dw_pw_block_kernel(%arg0: i32, %arg1: memref<1x4x4x64xf32, #tpu.memory_space<vmem>>, %arg2: memref<9x1x64xf32, #tpu.memory_space<vmem>>, %arg3: memref<1x64xf32, #tpu.memory_space<vmem>>, %arg4: memref<64x64xf32, #tpu.memory_space<vmem>>, %arg5: memref<1x64xf32, #tpu.memory_space<vmem>>, %arg6: memref<1x2x2x64xf32, #tpu.memory_space<vmem>>) attributes {dimension_semantics = [#tpu.dimension_semantics<parallel>], iteration_bounds = array<i64: 2>, scalar_prefetch = 0 : i64, scratch_operands = 0 : i64, tpu.core_type = #tpu.core_type<tc>, window_params = [{transform_indices = @transform_0, window_bounds = array<i64: 1, 4, 4, 64>}, {pipeline_mode = #tpu.pipeline_mode<synchronous>, transform_indices = @transform_1, window_bounds = array<i64: 9, 1, 64>}, {pipeline_mode = #tpu.pipeline_mode<synchronous>, transform_indices = @transform_2, window_bounds = array<i64: 1, 64>}, {pipeline_mode = #tpu.pipeline_mode<synchronous>, transform_indices = @transform_3, window_bounds = array<i64: 64, 64>}, {pipeline_mode = #tpu.pipeline_mode<synchronous>, transform_indices = @transform_4, window_bounds = array<i64: 1, 64>}, {transform_indices = @transform_5, window_bounds = array<i64: 1, 2, 2, 64>}]} {
    %c0 = arith.constant 0 : index
    %c0_0 = arith.constant 0 : index
    %c0_1 = arith.constant 0 : index
    %0 = vector.load %arg2[%c0, %c0_0, %c0_1] : memref<9x1x64xf32, #tpu.memory_space<vmem>>, vector<9x1x64xf32>
    %c0_2 = arith.constant 0 : index
    %c0_3 = arith.constant 0 : index
    %1 = vector.load %arg3[%c0_2, %c0_3] : memref<1x64xf32, #tpu.memory_space<vmem>>, vector<1x64xf32>
    %c0_4 = arith.constant 0 : index
    %c0_5 = arith.constant 0 : index
    %2 = vector.load %arg4[%c0_4, %c0_5] : memref<64x64xf32, #tpu.memory_space<vmem>>, vector<64x64xf32>
    %c0_6 = arith.constant 0 : index
    %c0_7 = arith.constant 0 : index
    %3 = vector.load %arg5[%c0_6, %c0_7] : memref<1x64xf32, #tpu.memory_space<vmem>>, vector<1x64xf32>
    %cst = arith.constant 0.000000e+00 : f32
    %4 = vector.broadcast %cst : f32 to vector<2x64xf32>
    %c0_8 = arith.constant 0 : index
    %c0_9 = arith.constant 0 : index
    %c0_10 = arith.constant 0 : index
    %c0_11 = arith.constant 0 : index
    %5 = vector.load %arg1[%c0_8, %c0_9, %c0_10, %c0_11] : memref<1x4x4x64xf32, #tpu.memory_space<vmem>>, vector<1x1x2x64xf32>
    %6 = vector.shape_cast %5 : vector<1x1x2x64xf32> to vector<2x64xf32>
    %7 = vector.extract_strided_slice %0 {offsets = [0, 0, 0], sizes = [1, 1, 64], strides = [1, 1, 1]} : vector<9x1x64xf32> to vector<1x1x64xf32>
    %8 = vector.shape_cast %7 : vector<1x1x64xf32> to vector<1x64xf32>
    %9 = vector.broadcast %8 : vector<1x64xf32> to vector<2x64xf32>
    %10 = arith.mulf %6, %9 : vector<2x64xf32>
    %11 = arith.addf %4, %10 : vector<2x64xf32>
    %c0_12 = arith.constant 0 : index
    %c0_13 = arith.constant 0 : index
    %c1 = arith.constant 1 : index
    %c0_14 = arith.constant 0 : index
    %12 = vector.load %arg1[%c0_12, %c0_13, %c1, %c0_14] : memref<1x4x4x64xf32, #tpu.memory_space<vmem>>, vector<1x1x2x64xf32>
    %13 = vector.shape_cast %12 : vector<1x1x2x64xf32> to vector<2x64xf32>
    %14 = vector.extract_strided_slice %0 {offsets = [1, 0, 0], sizes = [1, 1, 64], strides = [1, 1, 1]} : vector<9x1x64xf32> to vector<1x1x64xf32>
    %15 = vector.shape_cast %14 : vector<1x1x64xf32> to vector<1x64xf32>
    %16 = vector.broadcast %15 : vector<1x64xf32> to vector<2x64xf32>
    %17 = arith.mulf %13, %16 : vector<2x64xf32>
    %18 = arith.addf %11, %17 : vector<2x64xf32>
    %c0_15 = arith.constant 0 : index
    %c0_16 = arith.constant 0 : index
    %c2 = arith.constant 2 : index
    %c0_17 = arith.constant 0 : index
    %19 = vector.load %arg1[%c0_15, %c0_16, %c2, %c0_17] : memref<1x4x4x64xf32, #tpu.memory_space<vmem>>, vector<1x1x2x64xf32>
    %20 = vector.shape_cast %19 : vector<1x1x2x64xf32> to vector<2x64xf32>
    %21 = vector.extract_strided_slice %0 {offsets = [2, 0, 0], sizes = [1, 1, 64], strides = [1, 1, 1]} : vector<9x1x64xf32> to vector<1x1x64xf32>
    %22 = vector.shape_cast %21 : vector<1x1x64xf32> to vector<1x64xf32>
    %23 = vector.broadcast %22 : vector<1x64xf32> to vector<2x64xf32>
    %24 = arith.mulf %20, %23 : vector<2x64xf32>
    %25 = arith.addf %18, %24 : vector<2x64xf32>
    %c0_18 = arith.constant 0 : index
    %c1_19 = arith.constant 1 : index
    %c0_20 = arith.constant 0 : index
    %c0_21 = arith.constant 0 : index
    %26 = vector.load %arg1[%c0_18, %c1_19, %c0_20, %c0_21] : memref<1x4x4x64xf32, #tpu.memory_space<vmem>>, vector<1x1x2x64xf32>
    %27 = vector.shape_cast %26 : vector<1x1x2x64xf32> to vector<2x64xf32>
    %28 = vector.extract_strided_slice %0 {offsets = [3, 0, 0], sizes = [1, 1, 64], strides = [1, 1, 1]} : vector<9x1x64xf32> to vector<1x1x64xf32>
    %29 = vector.shape_cast %28 : vector<1x1x64xf32> to vector<1x64xf32>
    %30 = vector.broadcast %29 : vector<1x64xf32> to vector<2x64xf32>
    %31 = arith.mulf %27, %30 : vector<2x64xf32>
    %32 = arith.addf %25, %31 : vector<2x64xf32>
    %c0_22 = arith.constant 0 : index
    %c1_23 = arith.constant 1 : index
    %c1_24 = arith.constant 1 : index
    %c0_25 = arith.constant 0 : index
    %33 = vector.load %arg1[%c0_22, %c1_23, %c1_24, %c0_25] : memref<1x4x4x64xf32, #tpu.memory_space<vmem>>, vector<1x1x2x64xf32>
    %34 = vector.shape_cast %33 : vector<1x1x2x64xf32> to vector<2x64xf32>
    %35 = vector.extract_strided_slice %0 {offsets = [4, 0, 0], sizes = [1, 1, 64], strides = [1, 1, 1]} : vector<9x1x64xf32> to vector<1x1x64xf32>
    %36 = vector.shape_cast %35 : vector<1x1x64xf32> to vector<1x64xf32>
    %37 = vector.broadcast %36 : vector<1x64xf32> to vector<2x64xf32>
    %38 = arith.mulf %34, %37 : vector<2x64xf32>
    %39 = arith.addf %32, %38 : vector<2x64xf32>
    %c0_26 = arith.constant 0 : index
    %c1_27 = arith.constant 1 : index
    %c2_28 = arith.constant 2 : index
    %c0_29 = arith.constant 0 : index
    %40 = vector.load %arg1[%c0_26, %c1_27, %c2_28, %c0_29] : memref<1x4x4x64xf32, #tpu.memory_space<vmem>>, vector<1x1x2x64xf32>
    %41 = vector.shape_cast %40 : vector<1x1x2x64xf32> to vector<2x64xf32>
    %42 = vector.extract_strided_slice %0 {offsets = [5, 0, 0], sizes = [1, 1, 64], strides = [1, 1, 1]} : vector<9x1x64xf32> to vector<1x1x64xf32>
    %43 = vector.shape_cast %42 : vector<1x1x64xf32> to vector<1x64xf32>
    %44 = vector.broadcast %43 : vector<1x64xf32> to vector<2x64xf32>
    %45 = arith.mulf %41, %44 : vector<2x64xf32>
    %46 = arith.addf %39, %45 : vector<2x64xf32>
    %c0_30 = arith.constant 0 : index
    %c2_31 = arith.constant 2 : index
    %c0_32 = arith.constant 0 : index
    %c0_33 = arith.constant 0 : index
    %47 = vector.load %arg1[%c0_30, %c2_31, %c0_32, %c0_33] : memref<1x4x4x64xf32, #tpu.memory_space<vmem>>, vector<1x1x2x64xf32>
    %48 = vector.shape_cast %47 : vector<1x1x2x64xf32> to vector<2x64xf32>
    %49 = vector.extract_strided_slice %0 {offsets = [6, 0, 0], sizes = [1, 1, 64], strides = [1, 1, 1]} : vector<9x1x64xf32> to vector<1x1x64xf32>
    %50 = vector.shape_cast %49 : vector<1x1x64xf32> to vector<1x64xf32>
    %51 = vector.broadcast %50 : vector<1x64xf32> to vector<2x64xf32>
    %52 = arith.mulf %48, %51 : vector<2x64xf32>
    %53 = arith.addf %46, %52 : vector<2x64xf32>
    %c0_34 = arith.constant 0 : index
    %c2_35 = arith.constant 2 : index
    %c1_36 = arith.constant 1 : index
    %c0_37 = arith.constant 0 : index
    %54 = vector.load %arg1[%c0_34, %c2_35, %c1_36, %c0_37] : memref<1x4x4x64xf32, #tpu.memory_space<vmem>>, vector<1x1x2x64xf32>
    %55 = vector.shape_cast %54 : vector<1x1x2x64xf32> to vector<2x64xf32>
    %56 = vector.extract_strided_slice %0 {offsets = [7, 0, 0], sizes = [1, 1, 64], strides = [1, 1, 1]} : vector<9x1x64xf32> to vector<1x1x64xf32>
    %57 = vector.shape_cast %56 : vector<1x1x64xf32> to vector<1x64xf32>
    %58 = vector.broadcast %57 : vector<1x64xf32> to vector<2x64xf32>
    %59 = arith.mulf %55, %58 : vector<2x64xf32>
    %60 = arith.addf %53, %59 : vector<2x64xf32>
    %c0_38 = arith.constant 0 : index
    %c2_39 = arith.constant 2 : index
    %c2_40 = arith.constant 2 : index
    %c0_41 = arith.constant 0 : index
    %61 = vector.load %arg1[%c0_38, %c2_39, %c2_40, %c0_41] : memref<1x4x4x64xf32, #tpu.memory_space<vmem>>, vector<1x1x2x64xf32>
    %62 = vector.shape_cast %61 : vector<1x1x2x64xf32> to vector<2x64xf32>
    %63 = vector.extract_strided_slice %0 {offsets = [8, 0, 0], sizes = [1, 1, 64], strides = [1, 1, 1]} : vector<9x1x64xf32> to vector<1x1x64xf32>
    %64 = vector.shape_cast %63 : vector<1x1x64xf32> to vector<1x64xf32>
    %65 = vector.broadcast %64 : vector<1x64xf32> to vector<2x64xf32>
    %66 = arith.mulf %62, %65 : vector<2x64xf32>
    %67 = arith.addf %60, %66 : vector<2x64xf32>
    %68 = vector.broadcast %1 : vector<1x64xf32> to vector<2x64xf32>
    %69 = arith.addf %67, %68 : vector<2x64xf32>
    %cst_42 = arith.constant 0.000000e+00 : f32
    %70 = vector.broadcast %cst_42 : f32 to vector<2x64xf32>
    %71 = arith.maximumf %69, %70 : vector<2x64xf32>
    %cst_43 = arith.constant dense<0.000000e+00> : vector<2x64xf32>
    %72 = tpu.matmul %71, %2, %cst_43 {dimension_numbers = #tpu.dot_dimension_numbers<[1], [0], [0], [1], [0, 0, 1, 1], [], []>} : vector<2x64xf32>, vector<64x64xf32>, vector<2x64xf32> -> vector<2x64xf32>
    %73 = vector.broadcast %3 : vector<1x64xf32> to vector<2x64xf32>
    %74 = arith.addf %72, %73 : vector<2x64xf32>
    %cst_44 = arith.constant 0.000000e+00 : f32
    %75 = vector.broadcast %cst_44 : f32 to vector<2x64xf32>
    %76 = arith.maximumf %74, %75 : vector<2x64xf32>
    %c0_45 = arith.constant 0 : index
    %c0_46 = arith.constant 0 : index
    %c0_47 = arith.constant 0 : index
    %c0_48 = arith.constant 0 : index
    %77 = vector.load %arg6[%c0_45, %c0_46, %c0_47, %c0_48] : memref<1x2x2x64xf32, #tpu.memory_space<vmem>>, vector<1x1x2x64xf32>
    %78 = vector.shape_cast %77 : vector<1x1x2x64xf32> to vector<2x64xf32>
    %79 = vector.shape_cast %76 : vector<2x64xf32> to vector<1x1x2x64xf32>
    tpu.vector_store %arg6[%c0_45, %c0_46, %c0_47, %c0_48], %79 {strides = array<i32>} : memref<1x2x2x64xf32, #tpu.memory_space<vmem>>, vector<1x1x2x64xf32>,
    %cst_49 = arith.constant 0.000000e+00 : f32
    %80 = vector.broadcast %cst_49 : f32 to vector<2x64xf32>
    %c0_50 = arith.constant 0 : index
    %c1_51 = arith.constant 1 : index
    %c0_52 = arith.constant 0 : index
    %c0_53 = arith.constant 0 : index
    %81 = vector.load %arg1[%c0_50, %c1_51, %c0_52, %c0_53] : memref<1x4x4x64xf32, #tpu.memory_space<vmem>>, vector<1x1x2x64xf32>
    %82 = vector.shape_cast %81 : vector<1x1x2x64xf32> to vector<2x64xf32>
    %83 = vector.extract_strided_slice %0 {offsets = [0, 0, 0], sizes = [1, 1, 64], strides = [1, 1, 1]} : vector<9x1x64xf32> to vector<1x1x64xf32>
    %84 = vector.shape_cast %83 : vector<1x1x64xf32> to vector<1x64xf32>
    %85 = vector.broadcast %84 : vector<1x64xf32> to vector<2x64xf32>
    %86 = arith.mulf %82, %85 : vector<2x64xf32>
    %87 = arith.addf %80, %86 : vector<2x64xf32>
    %c0_54 = arith.constant 0 : index
    %c1_55 = arith.constant 1 : index
    %c1_56 = arith.constant 1 : index
    %c0_57 = arith.constant 0 : index
    %88 = vector.load %arg1[%c0_54, %c1_55, %c1_56, %c0_57] : memref<1x4x4x64xf32, #tpu.memory_space<vmem>>, vector<1x1x2x64xf32>
    %89 = vector.shape_cast %88 : vector<1x1x2x64xf32> to vector<2x64xf32>
    %90 = vector.extract_strided_slice %0 {offsets = [1, 0, 0], sizes = [1, 1, 64], strides = [1, 1, 1]} : vector<9x1x64xf32> to vector<1x1x64xf32>
    %91 = vector.shape_cast %90 : vector<1x1x64xf32> to vector<1x64xf32>
    %92 = vector.broadcast %91 : vector<1x64xf32> to vector<2x64xf32>
    %93 = arith.mulf %89, %92 : vector<2x64xf32>
    %94 = arith.addf %87, %93 : vector<2x64xf32>
    %c0_58 = arith.constant 0 : index
    %c1_59 = arith.constant 1 : index
    %c2_60 = arith.constant 2 : index
    %c0_61 = arith.constant 0 : index
    %95 = vector.load %arg1[%c0_58, %c1_59, %c2_60, %c0_61] : memref<1x4x4x64xf32, #tpu.memory_space<vmem>>, vector<1x1x2x64xf32>
    %96 = vector.shape_cast %95 : vector<1x1x2x64xf32> to vector<2x64xf32>
    %97 = vector.extract_strided_slice %0 {offsets = [2, 0, 0], sizes = [1, 1, 64], strides = [1, 1, 1]} : vector<9x1x64xf32> to vector<1x1x64xf32>
    %98 = vector.shape_cast %97 : vector<1x1x64xf32> to vector<1x64xf32>
    %99 = vector.broadcast %98 : vector<1x64xf32> to vector<2x64xf32>
    %100 = arith.mulf %96, %99 : vector<2x64xf32>
    %101 = arith.addf %94, %100 : vector<2x64xf32>
    %c0_62 = arith.constant 0 : index
    %c2_63 = arith.constant 2 : index
    %c0_64 = arith.constant 0 : index
    %c0_65 = arith.constant 0 : index
    %102 = vector.load %arg1[%c0_62, %c2_63, %c0_64, %c0_65] : memref<1x4x4x64xf32, #tpu.memory_space<vmem>>, vector<1x1x2x64xf32>
    %103 = vector.shape_cast %102 : vector<1x1x2x64xf32> to vector<2x64xf32>
    %104 = vector.extract_strided_slice %0 {offsets = [3, 0, 0], sizes = [1, 1, 64], strides = [1, 1, 1]} : vector<9x1x64xf32> to vector<1x1x64xf32>
    %105 = vector.shape_cast %104 : vector<1x1x64xf32> to vector<1x64xf32>
    %106 = vector.broadcast %105 : vector<1x64xf32> to vector<2x64xf32>
    %107 = arith.mulf %103, %106 : vector<2x64xf32>
    %108 = arith.addf %101, %107 : vector<2x64xf32>
    %c0_66 = arith.constant 0 : index
    %c2_67 = arith.constant 2 : index
    %c1_68 = arith.constant 1 : index
    %c0_69 = arith.constant 0 : index
    %109 = vector.load %arg1[%c0_66, %c2_67, %c1_68, %c0_69] : memref<1x4x4x64xf32, #tpu.memory_space<vmem>>, vector<1x1x2x64xf32>
    %110 = vector.shape_cast %109 : vector<1x1x2x64xf32> to vector<2x64xf32>
    %111 = vector.extract_strided_slice %0 {offsets = [4, 0, 0], sizes = [1, 1, 64], strides = [1, 1, 1]} : vector<9x1x64xf32> to vector<1x1x64xf32>
    %112 = vector.shape_cast %111 : vector<1x1x64xf32> to vector<1x64xf32>
    %113 = vector.broadcast %112 : vector<1x64xf32> to vector<2x64xf32>
    %114 = arith.mulf %110, %113 : vector<2x64xf32>
    %115 = arith.addf %108, %114 : vector<2x64xf32>
    %c0_70 = arith.constant 0 : index
    %c2_71 = arith.constant 2 : index
    %c2_72 = arith.constant 2 : index
    %c0_73 = arith.constant 0 : index
    %116 = vector.load %arg1[%c0_70, %c2_71, %c2_72, %c0_73] : memref<1x4x4x64xf32, #tpu.memory_space<vmem>>, vector<1x1x2x64xf32>
    %117 = vector.shape_cast %116 : vector<1x1x2x64xf32> to vector<2x64xf32>
    %118 = vector.extract_strided_slice %0 {offsets = [5, 0, 0], sizes = [1, 1, 64], strides = [1, 1, 1]} : vector<9x1x64xf32> to vector<1x1x64xf32>
    %119 = vector.shape_cast %118 : vector<1x1x64xf32> to vector<1x64xf32>
    %120 = vector.broadcast %119 : vector<1x64xf32> to vector<2x64xf32>
    %121 = arith.mulf %117, %120 : vector<2x64xf32>
    %122 = arith.addf %115, %121 : vector<2x64xf32>
    %c0_74 = arith.constant 0 : index
    %c3 = arith.constant 3 : index
    %c0_75 = arith.constant 0 : index
    %c0_76 = arith.constant 0 : index
    %123 = vector.load %arg1[%c0_74, %c3, %c0_75, %c0_76] : memref<1x4x4x64xf32, #tpu.memory_space<vmem>>, vector<1x1x2x64xf32>
    %124 = vector.shape_cast %123 : vector<1x1x2x64xf32> to vector<2x64xf32>
    %125 = vector.extract_strided_slice %0 {offsets = [6, 0, 0], sizes = [1, 1, 64], strides = [1, 1, 1]} : vector<9x1x64xf32> to vector<1x1x64xf32>
    %126 = vector.shape_cast %125 : vector<1x1x64xf32> to vector<1x64xf32>
    %127 = vector.broadcast %126 : vector<1x64xf32> to vector<2x64xf32>
    %128 = arith.mulf %124, %127 : vector<2x64xf32>
    %129 = arith.addf %122, %128 : vector<2x64xf32>
    %c0_77 = arith.constant 0 : index
    %c3_78 = arith.constant 3 : index
    %c1_79 = arith.constant 1 : index
    %c0_80 = arith.constant 0 : index
    %130 = vector.load %arg1[%c0_77, %c3_78, %c1_79, %c0_80] : memref<1x4x4x64xf32, #tpu.memory_space<vmem>>, vector<1x1x2x64xf32>
    %131 = vector.shape_cast %130 : vector<1x1x2x64xf32> to vector<2x64xf32>
    %132 = vector.extract_strided_slice %0 {offsets = [7, 0, 0], sizes = [1, 1, 64], strides = [1, 1, 1]} : vector<9x1x64xf32> to vector<1x1x64xf32>
    %133 = vector.shape_cast %132 : vector<1x1x64xf32> to vector<1x64xf32>
    %134 = vector.broadcast %133 : vector<1x64xf32> to vector<2x64xf32>
    %135 = arith.mulf %131, %134 : vector<2x64xf32>
    %136 = arith.addf %129, %135 : vector<2x64xf32>
    %c0_81 = arith.constant 0 : index
    %c3_82 = arith.constant 3 : index
    %c2_83 = arith.constant 2 : index
    %c0_84 = arith.constant 0 : index
    %137 = vector.load %arg1[%c0_81, %c3_82, %c2_83, %c0_84] : memref<1x4x4x64xf32, #tpu.memory_space<vmem>>, vector<1x1x2x64xf32>
    %138 = vector.shape_cast %137 : vector<1x1x2x64xf32> to vector<2x64xf32>
    %139 = vector.extract_strided_slice %0 {offsets = [8, 0, 0], sizes = [1, 1, 64], strides = [1, 1, 1]} : vector<9x1x64xf32> to vector<1x1x64xf32>
    %140 = vector.shape_cast %139 : vector<1x1x64xf32> to vector<1x64xf32>
    %141 = vector.broadcast %140 : vector<1x64xf32> to vector<2x64xf32>
    %142 = arith.mulf %138, %141 : vector<2x64xf32>
    %143 = arith.addf %136, %142 : vector<2x64xf32>
    %144 = vector.broadcast %1 : vector<1x64xf32> to vector<2x64xf32>
    %145 = arith.addf %143, %144 : vector<2x64xf32>
    %cst_85 = arith.constant 0.000000e+00 : f32
    %146 = vector.broadcast %cst_85 : f32 to vector<2x64xf32>
    %147 = arith.maximumf %145, %146 : vector<2x64xf32>
    %cst_86 = arith.constant dense<0.000000e+00> : vector<2x64xf32>
    %148 = tpu.matmul %147, %2, %cst_86 {dimension_numbers = #tpu.dot_dimension_numbers<[1], [0], [0], [1], [0, 0, 1, 1], [], []>} : vector<2x64xf32>, vector<64x64xf32>, vector<2x64xf32> -> vector<2x64xf32>
    %149 = vector.broadcast %3 : vector<1x64xf32> to vector<2x64xf32>
    %150 = arith.addf %148, %149 : vector<2x64xf32>
    %cst_87 = arith.constant 0.000000e+00 : f32
    %151 = vector.broadcast %cst_87 : f32 to vector<2x64xf32>
    %152 = arith.maximumf %150, %151 : vector<2x64xf32>
    %c0_88 = arith.constant 0 : index
    %c1_89 = arith.constant 1 : index
    %c0_90 = arith.constant 0 : index
    %c0_91 = arith.constant 0 : index
    %153 = vector.load %arg6[%c0_88, %c1_89, %c0_90, %c0_91] : memref<1x2x2x64xf32, #tpu.memory_space<vmem>>, vector<1x1x2x64xf32>
    %154 = vector.shape_cast %153 : vector<1x1x2x64xf32> to vector<2x64xf32>
    %155 = vector.shape_cast %152 : vector<2x64xf32> to vector<1x1x2x64xf32>
    tpu.vector_store %arg6[%c0_88, %c1_89, %c0_90, %c0_91], %155 {strides = array<i32>} : memref<1x2x2x64xf32, #tpu.memory_space<vmem>>, vector<1x1x2x64xf32>,
    return
  }
  func.func @transform_0(%arg0: i32) -> (i32, i32, i32, i32) {
    %c0_i32 = arith.constant 0 : i32
    %c0_i32_0 = arith.constant 0 : i32
    %c0_i32_1 = arith.constant 0 : i32
    %c0_i32_2 = arith.constant 0 : i32
    return %arg0, %c0_i32, %c0_i32_0, %c0_i32_1 : i32, i32, i32, i32
  }
  func.func @transform_1(%arg0: i32) -> (i32, i32, i32) {
    %c0_i32 = arith.constant 0 : i32
    %c0_i32_0 = arith.constant 0 : i32
    %c0_i32_1 = arith.constant 0 : i32
    %c0_i32_2 = arith.constant 0 : i32
    return %c0_i32, %c0_i32_0, %c0_i32_1 : i32, i32, i32
  }
  func.func @transform_2(%arg0: i32) -> (i32, i32) {
    %c0_i32 = arith.constant 0 : i32
    %c0_i32_0 = arith.constant 0 : i32
    %c0_i32_1 = arith.constant 0 : i32
    return %c0_i32, %c0_i32_0 : i32, i32
  }
  func.func @transform_3(%arg0: i32) -> (i32, i32) {
    %c0_i32 = arith.constant 0 : i32
    %c0_i32_0 = arith.constant 0 : i32
    %c0_i32_1 = arith.constant 0 : i32
    return %c0_i32, %c0_i32_0 : i32, i32
  }
  func.func @transform_4(%arg0: i32) -> (i32, i32) {
    %c0_i32 = arith.constant 0 : i32
    %c0_i32_0 = arith.constant 0 : i32
    %c0_i32_1 = arith.constant 0 : i32
    return %c0_i32, %c0_i32_0 : i32, i32
  }
  func.func @transform_5(%arg0: i32) -> (i32, i32, i32, i32) {
    %c0_i32 = arith.constant 0 : i32
    %c0_i32_0 = arith.constant 0 : i32
    %c0_i32_1 = arith.constant 0 : i32
    %c0_i32_2 = arith.constant 0 : i32
    return %arg0, %c0_i32, %c0_i32_0, %c0_i32_1 : i32, i32, i32, i32
  }
}

module attributes {stable_mosaic.version = 11 : i64} {
  func.func @dw_pw_block_kernel(%arg0: i32, %arg1: memref<1x4x4x64xf32, #tpu.memory_space<vmem>>, %arg2: memref<9x1x64xf32, #tpu.memory_space<vmem>>, %arg3: memref<1x64xf32, #tpu.memory_space<vmem>>, %arg4: memref<64x128xf32, #tpu.memory_space<vmem>>, %arg5: memref<1x128xf32, #tpu.memory_space<vmem>>, %arg6: memref<1x2x2x128xf32, #tpu.memory_space<vmem>>) attributes {dimension_semantics = [#tpu.dimension_semantics<parallel>], iteration_bounds = array<i64: 2>, scalar_prefetch = 0 : i64, scratch_operands = 0 : i64, tpu.core_type = #tpu.core_type<tc>, window_params = [{transform_indices = @transform_0, window_bounds = array<i64: 1, 4, 4, 64>}, {pipeline_mode = #tpu.pipeline_mode<synchronous>, transform_indices = @transform_1, window_bounds = array<i64: 9, 1, 64>}, {pipeline_mode = #tpu.pipeline_mode<synchronous>, transform_indices = @transform_2, window_bounds = array<i64: 1, 64>}, {pipeline_mode = #tpu.pipeline_mode<synchronous>, transform_indices = @transform_3, window_bounds = array<i64: 64, 128>}, {pipeline_mode = #tpu.pipeline_mode<synchronous>, transform_indices = @transform_4, window_bounds = array<i64: 1, 128>}, {transform_indices = @transform_5, window_bounds = array<i64: 1, 2, 2, 128>}]} {
    %c0 = arith.constant 0 : index
    %c0_0 = arith.constant 0 : index
    %c0_1 = arith.constant 0 : index
    %0 = vector.load %arg2[%c0, %c0_0, %c0_1] : memref<9x1x64xf32, #tpu.memory_space<vmem>>, vector<9x1x64xf32>
    %c0_2 = arith.constant 0 : index
    %c0_3 = arith.constant 0 : index
    %1 = vector.load %arg3[%c0_2, %c0_3] : memref<1x64xf32, #tpu.memory_space<vmem>>, vector<1x64xf32>
    %c0_4 = arith.constant 0 : index
    %c0_5 = arith.constant 0 : index
    %2 = vector.load %arg4[%c0_4, %c0_5] : memref<64x128xf32, #tpu.memory_space<vmem>>, vector<64x128xf32>
    %c0_6 = arith.constant 0 : index
    %c0_7 = arith.constant 0 : index
    %3 = vector.load %arg5[%c0_6, %c0_7] : memref<1x128xf32, #tpu.memory_space<vmem>>, vector<1x128xf32>
    %cst = arith.constant 0.000000e+00 : f32
    %4 = vector.broadcast %cst : f32 to vector<2x64xf32>
    %c0_8 = arith.constant 0 : index
    %c0_9 = arith.constant 0 : index
    %c0_10 = arith.constant 0 : index
    %c0_11 = arith.constant 0 : index
    %5 = vector.load %arg1[%c0_8, %c0_9, %c0_10, %c0_11] : memref<1x4x4x64xf32, #tpu.memory_space<vmem>>, vector<1x1x2x64xf32>
    %6 = vector.shape_cast %5 : vector<1x1x2x64xf32> to vector<2x64xf32>
    %7 = vector.extract_strided_slice %0 {offsets = [0, 0, 0], sizes = [1, 1, 64], strides = [1, 1, 1]} : vector<9x1x64xf32> to vector<1x1x64xf32>
    %8 = vector.shape_cast %7 : vector<1x1x64xf32> to vector<1x64xf32>
    %9 = vector.broadcast %8 : vector<1x64xf32> to vector<2x64xf32>
    %10 = arith.mulf %6, %9 : vector<2x64xf32>
    %11 = arith.addf %4, %10 : vector<2x64xf32>
    %c0_12 = arith.constant 0 : index
    %c0_13 = arith.constant 0 : index
    %c1 = arith.constant 1 : index
    %c0_14 = arith.constant 0 : index
    %12 = vector.load %arg1[%c0_12, %c0_13, %c1, %c0_14] : memref<1x4x4x64xf32, #tpu.memory_space<vmem>>, vector<1x1x2x64xf32>
    %13 = vector.shape_cast %12 : vector<1x1x2x64xf32> to vector<2x64xf32>
    %14 = vector.extract_strided_slice %0 {offsets = [1, 0, 0], sizes = [1, 1, 64], strides = [1, 1, 1]} : vector<9x1x64xf32> to vector<1x1x64xf32>
    %15 = vector.shape_cast %14 : vector<1x1x64xf32> to vector<1x64xf32>
    %16 = vector.broadcast %15 : vector<1x64xf32> to vector<2x64xf32>
    %17 = arith.mulf %13, %16 : vector<2x64xf32>
    %18 = arith.addf %11, %17 : vector<2x64xf32>
    %c0_15 = arith.constant 0 : index
    %c0_16 = arith.constant 0 : index
    %c2 = arith.constant 2 : index
    %c0_17 = arith.constant 0 : index
    %19 = vector.load %arg1[%c0_15, %c0_16, %c2, %c0_17] : memref<1x4x4x64xf32, #tpu.memory_space<vmem>>, vector<1x1x2x64xf32>
    %20 = vector.shape_cast %19 : vector<1x1x2x64xf32> to vector<2x64xf32>
    %21 = vector.extract_strided_slice %0 {offsets = [2, 0, 0], sizes = [1, 1, 64], strides = [1, 1, 1]} : vector<9x1x64xf32> to vector<1x1x64xf32>
    %22 = vector.shape_cast %21 : vector<1x1x64xf32> to vector<1x64xf32>
    %23 = vector.broadcast %22 : vector<1x64xf32> to vector<2x64xf32>
    %24 = arith.mulf %20, %23 : vector<2x64xf32>
    %25 = arith.addf %18, %24 : vector<2x64xf32>
    %c0_18 = arith.constant 0 : index
    %c1_19 = arith.constant 1 : index
    %c0_20 = arith.constant 0 : index
    %c0_21 = arith.constant 0 : index
    %26 = vector.load %arg1[%c0_18, %c1_19, %c0_20, %c0_21] : memref<1x4x4x64xf32, #tpu.memory_space<vmem>>, vector<1x1x2x64xf32>
    %27 = vector.shape_cast %26 : vector<1x1x2x64xf32> to vector<2x64xf32>
    %28 = vector.extract_strided_slice %0 {offsets = [3, 0, 0], sizes = [1, 1, 64], strides = [1, 1, 1]} : vector<9x1x64xf32> to vector<1x1x64xf32>
    %29 = vector.shape_cast %28 : vector<1x1x64xf32> to vector<1x64xf32>
    %30 = vector.broadcast %29 : vector<1x64xf32> to vector<2x64xf32>
    %31 = arith.mulf %27, %30 : vector<2x64xf32>
    %32 = arith.addf %25, %31 : vector<2x64xf32>
    %c0_22 = arith.constant 0 : index
    %c1_23 = arith.constant 1 : index
    %c1_24 = arith.constant 1 : index
    %c0_25 = arith.constant 0 : index
    %33 = vector.load %arg1[%c0_22, %c1_23, %c1_24, %c0_25] : memref<1x4x4x64xf32, #tpu.memory_space<vmem>>, vector<1x1x2x64xf32>
    %34 = vector.shape_cast %33 : vector<1x1x2x64xf32> to vector<2x64xf32>
    %35 = vector.extract_strided_slice %0 {offsets = [4, 0, 0], sizes = [1, 1, 64], strides = [1, 1, 1]} : vector<9x1x64xf32> to vector<1x1x64xf32>
    %36 = vector.shape_cast %35 : vector<1x1x64xf32> to vector<1x64xf32>
    %37 = vector.broadcast %36 : vector<1x64xf32> to vector<2x64xf32>
    %38 = arith.mulf %34, %37 : vector<2x64xf32>
    %39 = arith.addf %32, %38 : vector<2x64xf32>
    %c0_26 = arith.constant 0 : index
    %c1_27 = arith.constant 1 : index
    %c2_28 = arith.constant 2 : index
    %c0_29 = arith.constant 0 : index
    %40 = vector.load %arg1[%c0_26, %c1_27, %c2_28, %c0_29] : memref<1x4x4x64xf32, #tpu.memory_space<vmem>>, vector<1x1x2x64xf32>
    %41 = vector.shape_cast %40 : vector<1x1x2x64xf32> to vector<2x64xf32>
    %42 = vector.extract_strided_slice %0 {offsets = [5, 0, 0], sizes = [1, 1, 64], strides = [1, 1, 1]} : vector<9x1x64xf32> to vector<1x1x64xf32>
    %43 = vector.shape_cast %42 : vector<1x1x64xf32> to vector<1x64xf32>
    %44 = vector.broadcast %43 : vector<1x64xf32> to vector<2x64xf32>
    %45 = arith.mulf %41, %44 : vector<2x64xf32>
    %46 = arith.addf %39, %45 : vector<2x64xf32>
    %c0_30 = arith.constant 0 : index
    %c2_31 = arith.constant 2 : index
    %c0_32 = arith.constant 0 : index
    %c0_33 = arith.constant 0 : index
    %47 = vector.load %arg1[%c0_30, %c2_31, %c0_32, %c0_33] : memref<1x4x4x64xf32, #tpu.memory_space<vmem>>, vector<1x1x2x64xf32>
    %48 = vector.shape_cast %47 : vector<1x1x2x64xf32> to vector<2x64xf32>
    %49 = vector.extract_strided_slice %0 {offsets = [6, 0, 0], sizes = [1, 1, 64], strides = [1, 1, 1]} : vector<9x1x64xf32> to vector<1x1x64xf32>
    %50 = vector.shape_cast %49 : vector<1x1x64xf32> to vector<1x64xf32>
    %51 = vector.broadcast %50 : vector<1x64xf32> to vector<2x64xf32>
    %52 = arith.mulf %48, %51 : vector<2x64xf32>
    %53 = arith.addf %46, %52 : vector<2x64xf32>
    %c0_34 = arith.constant 0 : index
    %c2_35 = arith.constant 2 : index
    %c1_36 = arith.constant 1 : index
    %c0_37 = arith.constant 0 : index
    %54 = vector.load %arg1[%c0_34, %c2_35, %c1_36, %c0_37] : memref<1x4x4x64xf32, #tpu.memory_space<vmem>>, vector<1x1x2x64xf32>
    %55 = vector.shape_cast %54 : vector<1x1x2x64xf32> to vector<2x64xf32>
    %56 = vector.extract_strided_slice %0 {offsets = [7, 0, 0], sizes = [1, 1, 64], strides = [1, 1, 1]} : vector<9x1x64xf32> to vector<1x1x64xf32>
    %57 = vector.shape_cast %56 : vector<1x1x64xf32> to vector<1x64xf32>
    %58 = vector.broadcast %57 : vector<1x64xf32> to vector<2x64xf32>
    %59 = arith.mulf %55, %58 : vector<2x64xf32>
    %60 = arith.addf %53, %59 : vector<2x64xf32>
    %c0_38 = arith.constant 0 : index
    %c2_39 = arith.constant 2 : index
    %c2_40 = arith.constant 2 : index
    %c0_41 = arith.constant 0 : index
    %61 = vector.load %arg1[%c0_38, %c2_39, %c2_40, %c0_41] : memref<1x4x4x64xf32, #tpu.memory_space<vmem>>, vector<1x1x2x64xf32>
    %62 = vector.shape_cast %61 : vector<1x1x2x64xf32> to vector<2x64xf32>
    %63 = vector.extract_strided_slice %0 {offsets = [8, 0, 0], sizes = [1, 1, 64], strides = [1, 1, 1]} : vector<9x1x64xf32> to vector<1x1x64xf32>
    %64 = vector.shape_cast %63 : vector<1x1x64xf32> to vector<1x64xf32>
    %65 = vector.broadcast %64 : vector<1x64xf32> to vector<2x64xf32>
    %66 = arith.mulf %62, %65 : vector<2x64xf32>
    %67 = arith.addf %60, %66 : vector<2x64xf32>
    %68 = vector.broadcast %1 : vector<1x64xf32> to vector<2x64xf32>
    %69 = arith.addf %67, %68 : vector<2x64xf32>
    %cst_42 = arith.constant 0.000000e+00 : f32
    %70 = vector.broadcast %cst_42 : f32 to vector<2x64xf32>
    %71 = arith.maximumf %69, %70 : vector<2x64xf32>
    %cst_43 = arith.constant dense<0.000000e+00> : vector<2x128xf32>
    %72 = tpu.matmul %71, %2, %cst_43 {dimension_numbers = #tpu.dot_dimension_numbers<[1], [0], [0], [1], [0, 0, 1, 1], [], []>} : vector<2x64xf32>, vector<64x128xf32>, vector<2x128xf32> -> vector<2x128xf32>
    %73 = vector.broadcast %3 : vector<1x128xf32> to vector<2x128xf32>
    %74 = arith.addf %72, %73 : vector<2x128xf32>
    %cst_44 = arith.constant 0.000000e+00 : f32
    %75 = vector.broadcast %cst_44 : f32 to vector<2x128xf32>
    %76 = arith.maximumf %74, %75 : vector<2x128xf32>
    %c0_45 = arith.constant 0 : index
    %c0_46 = arith.constant 0 : index
    %c0_47 = arith.constant 0 : index
    %c0_48 = arith.constant 0 : index
    %77 = vector.load %arg6[%c0_45, %c0_46, %c0_47, %c0_48] : memref<1x2x2x128xf32, #tpu.memory_space<vmem>>, vector<1x1x2x128xf32>
    %78 = vector.shape_cast %77 : vector<1x1x2x128xf32> to vector<2x128xf32>
    %79 = vector.shape_cast %76 : vector<2x128xf32> to vector<1x1x2x128xf32>
    tpu.vector_store %arg6[%c0_45, %c0_46, %c0_47, %c0_48], %79 {strides = array<i32>} : memref<1x2x2x128xf32, #tpu.memory_space<vmem>>, vector<1x1x2x128xf32>,
    %cst_49 = arith.constant 0.000000e+00 : f32
    %80 = vector.broadcast %cst_49 : f32 to vector<2x64xf32>
    %c0_50 = arith.constant 0 : index
    %c1_51 = arith.constant 1 : index
    %c0_52 = arith.constant 0 : index
    %c0_53 = arith.constant 0 : index
    %81 = vector.load %arg1[%c0_50, %c1_51, %c0_52, %c0_53] : memref<1x4x4x64xf32, #tpu.memory_space<vmem>>, vector<1x1x2x64xf32>
    %82 = vector.shape_cast %81 : vector<1x1x2x64xf32> to vector<2x64xf32>
    %83 = vector.extract_strided_slice %0 {offsets = [0, 0, 0], sizes = [1, 1, 64], strides = [1, 1, 1]} : vector<9x1x64xf32> to vector<1x1x64xf32>
    %84 = vector.shape_cast %83 : vector<1x1x64xf32> to vector<1x64xf32>
    %85 = vector.broadcast %84 : vector<1x64xf32> to vector<2x64xf32>
    %86 = arith.mulf %82, %85 : vector<2x64xf32>
    %87 = arith.addf %80, %86 : vector<2x64xf32>
    %c0_54 = arith.constant 0 : index
    %c1_55 = arith.constant 1 : index
    %c1_56 = arith.constant 1 : index
    %c0_57 = arith.constant 0 : index
    %88 = vector.load %arg1[%c0_54, %c1_55, %c1_56, %c0_57] : memref<1x4x4x64xf32, #tpu.memory_space<vmem>>, vector<1x1x2x64xf32>
    %89 = vector.shape_cast %88 : vector<1x1x2x64xf32> to vector<2x64xf32>
    %90 = vector.extract_strided_slice %0 {offsets = [1, 0, 0], sizes = [1, 1, 64], strides = [1, 1, 1]} : vector<9x1x64xf32> to vector<1x1x64xf32>
    %91 = vector.shape_cast %90 : vector<1x1x64xf32> to vector<1x64xf32>
    %92 = vector.broadcast %91 : vector<1x64xf32> to vector<2x64xf32>
    %93 = arith.mulf %89, %92 : vector<2x64xf32>
    %94 = arith.addf %87, %93 : vector<2x64xf32>
    %c0_58 = arith.constant 0 : index
    %c1_59 = arith.constant 1 : index
    %c2_60 = arith.constant 2 : index
    %c0_61 = arith.constant 0 : index
    %95 = vector.load %arg1[%c0_58, %c1_59, %c2_60, %c0_61] : memref<1x4x4x64xf32, #tpu.memory_space<vmem>>, vector<1x1x2x64xf32>
    %96 = vector.shape_cast %95 : vector<1x1x2x64xf32> to vector<2x64xf32>
    %97 = vector.extract_strided_slice %0 {offsets = [2, 0, 0], sizes = [1, 1, 64], strides = [1, 1, 1]} : vector<9x1x64xf32> to vector<1x1x64xf32>
    %98 = vector.shape_cast %97 : vector<1x1x64xf32> to vector<1x64xf32>
    %99 = vector.broadcast %98 : vector<1x64xf32> to vector<2x64xf32>
    %100 = arith.mulf %96, %99 : vector<2x64xf32>
    %101 = arith.addf %94, %100 : vector<2x64xf32>
    %c0_62 = arith.constant 0 : index
    %c2_63 = arith.constant 2 : index
    %c0_64 = arith.constant 0 : index
    %c0_65 = arith.constant 0 : index
    %102 = vector.load %arg1[%c0_62, %c2_63, %c0_64, %c0_65] : memref<1x4x4x64xf32, #tpu.memory_space<vmem>>, vector<1x1x2x64xf32>
    %103 = vector.shape_cast %102 : vector<1x1x2x64xf32> to vector<2x64xf32>
    %104 = vector.extract_strided_slice %0 {offsets = [3, 0, 0], sizes = [1, 1, 64], strides = [1, 1, 1]} : vector<9x1x64xf32> to vector<1x1x64xf32>
    %105 = vector.shape_cast %104 : vector<1x1x64xf32> to vector<1x64xf32>
    %106 = vector.broadcast %105 : vector<1x64xf32> to vector<2x64xf32>
    %107 = arith.mulf %103, %106 : vector<2x64xf32>
    %108 = arith.addf %101, %107 : vector<2x64xf32>
    %c0_66 = arith.constant 0 : index
    %c2_67 = arith.constant 2 : index
    %c1_68 = arith.constant 1 : index
    %c0_69 = arith.constant 0 : index
    %109 = vector.load %arg1[%c0_66, %c2_67, %c1_68, %c0_69] : memref<1x4x4x64xf32, #tpu.memory_space<vmem>>, vector<1x1x2x64xf32>
    %110 = vector.shape_cast %109 : vector<1x1x2x64xf32> to vector<2x64xf32>
    %111 = vector.extract_strided_slice %0 {offsets = [4, 0, 0], sizes = [1, 1, 64], strides = [1, 1, 1]} : vector<9x1x64xf32> to vector<1x1x64xf32>
    %112 = vector.shape_cast %111 : vector<1x1x64xf32> to vector<1x64xf32>
    %113 = vector.broadcast %112 : vector<1x64xf32> to vector<2x64xf32>
    %114 = arith.mulf %110, %113 : vector<2x64xf32>
    %115 = arith.addf %108, %114 : vector<2x64xf32>
    %c0_70 = arith.constant 0 : index
    %c2_71 = arith.constant 2 : index
    %c2_72 = arith.constant 2 : index
    %c0_73 = arith.constant 0 : index
    %116 = vector.load %arg1[%c0_70, %c2_71, %c2_72, %c0_73] : memref<1x4x4x64xf32, #tpu.memory_space<vmem>>, vector<1x1x2x64xf32>
    %117 = vector.shape_cast %116 : vector<1x1x2x64xf32> to vector<2x64xf32>
    %118 = vector.extract_strided_slice %0 {offsets = [5, 0, 0], sizes = [1, 1, 64], strides = [1, 1, 1]} : vector<9x1x64xf32> to vector<1x1x64xf32>
    %119 = vector.shape_cast %118 : vector<1x1x64xf32> to vector<1x64xf32>
    %120 = vector.broadcast %119 : vector<1x64xf32> to vector<2x64xf32>
    %121 = arith.mulf %117, %120 : vector<2x64xf32>
    %122 = arith.addf %115, %121 : vector<2x64xf32>
    %c0_74 = arith.constant 0 : index
    %c3 = arith.constant 3 : index
    %c0_75 = arith.constant 0 : index
    %c0_76 = arith.constant 0 : index
    %123 = vector.load %arg1[%c0_74, %c3, %c0_75, %c0_76] : memref<1x4x4x64xf32, #tpu.memory_space<vmem>>, vector<1x1x2x64xf32>
    %124 = vector.shape_cast %123 : vector<1x1x2x64xf32> to vector<2x64xf32>
    %125 = vector.extract_strided_slice %0 {offsets = [6, 0, 0], sizes = [1, 1, 64], strides = [1, 1, 1]} : vector<9x1x64xf32> to vector<1x1x64xf32>
    %126 = vector.shape_cast %125 : vector<1x1x64xf32> to vector<1x64xf32>
    %127 = vector.broadcast %126 : vector<1x64xf32> to vector<2x64xf32>
    %128 = arith.mulf %124, %127 : vector<2x64xf32>
    %129 = arith.addf %122, %128 : vector<2x64xf32>
    %c0_77 = arith.constant 0 : index
    %c3_78 = arith.constant 3 : index
    %c1_79 = arith.constant 1 : index
    %c0_80 = arith.constant 0 : index
    %130 = vector.load %arg1[%c0_77, %c3_78, %c1_79, %c0_80] : memref<1x4x4x64xf32, #tpu.memory_space<vmem>>, vector<1x1x2x64xf32>
    %131 = vector.shape_cast %130 : vector<1x1x2x64xf32> to vector<2x64xf32>
    %132 = vector.extract_strided_slice %0 {offsets = [7, 0, 0], sizes = [1, 1, 64], strides = [1, 1, 1]} : vector<9x1x64xf32> to vector<1x1x64xf32>
    %133 = vector.shape_cast %132 : vector<1x1x64xf32> to vector<1x64xf32>
    %134 = vector.broadcast %133 : vector<1x64xf32> to vector<2x64xf32>
    %135 = arith.mulf %131, %134 : vector<2x64xf32>
    %136 = arith.addf %129, %135 : vector<2x64xf32>
    %c0_81 = arith.constant 0 : index
    %c3_82 = arith.constant 3 : index
    %c2_83 = arith.constant 2 : index
    %c0_84 = arith.constant 0 : index
    %137 = vector.load %arg1[%c0_81, %c3_82, %c2_83, %c0_84] : memref<1x4x4x64xf32, #tpu.memory_space<vmem>>, vector<1x1x2x64xf32>
    %138 = vector.shape_cast %137 : vector<1x1x2x64xf32> to vector<2x64xf32>
    %139 = vector.extract_strided_slice %0 {offsets = [8, 0, 0], sizes = [1, 1, 64], strides = [1, 1, 1]} : vector<9x1x64xf32> to vector<1x1x64xf32>
    %140 = vector.shape_cast %139 : vector<1x1x64xf32> to vector<1x64xf32>
    %141 = vector.broadcast %140 : vector<1x64xf32> to vector<2x64xf32>
    %142 = arith.mulf %138, %141 : vector<2x64xf32>
    %143 = arith.addf %136, %142 : vector<2x64xf32>
    %144 = vector.broadcast %1 : vector<1x64xf32> to vector<2x64xf32>
    %145 = arith.addf %143, %144 : vector<2x64xf32>
    %cst_85 = arith.constant 0.000000e+00 : f32
    %146 = vector.broadcast %cst_85 : f32 to vector<2x64xf32>
    %147 = arith.maximumf %145, %146 : vector<2x64xf32>
    %cst_86 = arith.constant dense<0.000000e+00> : vector<2x128xf32>
    %148 = tpu.matmul %147, %2, %cst_86 {dimension_numbers = #tpu.dot_dimension_numbers<[1], [0], [0], [1], [0, 0, 1, 1], [], []>} : vector<2x64xf32>, vector<64x128xf32>, vector<2x128xf32> -> vector<2x128xf32>
    %149 = vector.broadcast %3 : vector<1x128xf32> to vector<2x128xf32>
    %150 = arith.addf %148, %149 : vector<2x128xf32>
    %cst_87 = arith.constant 0.000000e+00 : f32
    %151 = vector.broadcast %cst_87 : f32 to vector<2x128xf32>
    %152 = arith.maximumf %150, %151 : vector<2x128xf32>
    %c0_88 = arith.constant 0 : index
    %c1_89 = arith.constant 1 : index
    %c0_90 = arith.constant 0 : index
    %c0_91 = arith.constant 0 : index
    %153 = vector.load %arg6[%c0_88, %c1_89, %c0_90, %c0_91] : memref<1x2x2x128xf32, #tpu.memory_space<vmem>>, vector<1x1x2x128xf32>
    %154 = vector.shape_cast %153 : vector<1x1x2x128xf32> to vector<2x128xf32>
    %155 = vector.shape_cast %152 : vector<2x128xf32> to vector<1x1x2x128xf32>
    tpu.vector_store %arg6[%c0_88, %c1_89, %c0_90, %c0_91], %155 {strides = array<i32>} : memref<1x2x2x128xf32, #tpu.memory_space<vmem>>, vector<1x1x2x128xf32>,
    return
  }
  func.func @transform_0(%arg0: i32) -> (i32, i32, i32, i32) {
    %c0_i32 = arith.constant 0 : i32
    %c0_i32_0 = arith.constant 0 : i32
    %c0_i32_1 = arith.constant 0 : i32
    %c0_i32_2 = arith.constant 0 : i32
    return %arg0, %c0_i32, %c0_i32_0, %c0_i32_1 : i32, i32, i32, i32
  }
  func.func @transform_1(%arg0: i32) -> (i32, i32, i32) {
    %c0_i32 = arith.constant 0 : i32
    %c0_i32_0 = arith.constant 0 : i32
    %c0_i32_1 = arith.constant 0 : i32
    %c0_i32_2 = arith.constant 0 : i32
    return %c0_i32, %c0_i32_0, %c0_i32_1 : i32, i32, i32
  }
  func.func @transform_2(%arg0: i32) -> (i32, i32) {
    %c0_i32 = arith.constant 0 : i32
    %c0_i32_0 = arith.constant 0 : i32
    %c0_i32_1 = arith.constant 0 : i32
    return %c0_i32, %c0_i32_0 : i32, i32
  }
  func.func @transform_3(%arg0: i32) -> (i32, i32) {
    %c0_i32 = arith.constant 0 : i32
    %c0_i32_0 = arith.constant 0 : i32
    %c0_i32_1 = arith.constant 0 : i32
    return %c0_i32, %c0_i32_0 : i32, i32
  }
  func.func @transform_4(%arg0: i32) -> (i32, i32) {
    %c0_i32 = arith.constant 0 : i32
    %c0_i32_0 = arith.constant 0 : i32
    %c0_i32_1 = arith.constant 0 : i32
    return %c0_i32, %c0_i32_0 : i32, i32
  }
  func.func @transform_5(%arg0: i32) -> (i32, i32, i32, i32) {
    %c0_i32 = arith.constant 0 : i32
    %c0_i32_0 = arith.constant 0 : i32
    %c0_i32_1 = arith.constant 0 : i32
    %c0_i32_2 = arith.constant 0 : i32
    return %arg0, %c0_i32, %c0_i32_0, %c0_i32_1 : i32, i32, i32, i32
  }
}

module attributes {stable_mosaic.version = 11 : i64} {
  func.func @dw_pw_block_kernel(%arg0: i32, %arg1: memref<1x3x3x128xf32, #tpu.memory_space<vmem>>, %arg2: memref<9x1x128xf32, #tpu.memory_space<vmem>>, %arg3: memref<1x128xf32, #tpu.memory_space<vmem>>, %arg4: memref<128x256xf32, #tpu.memory_space<vmem>>, %arg5: memref<1x256xf32, #tpu.memory_space<vmem>>, %arg6: memref<1x1x1x256xf32, #tpu.memory_space<vmem>>) attributes {dimension_semantics = [#tpu.dimension_semantics<parallel>], iteration_bounds = array<i64: 2>, scalar_prefetch = 0 : i64, scratch_operands = 0 : i64, tpu.core_type = #tpu.core_type<tc>, window_params = [{transform_indices = @transform_0, window_bounds = array<i64: 1, 3, 3, 128>}, {pipeline_mode = #tpu.pipeline_mode<synchronous>, transform_indices = @transform_1, window_bounds = array<i64: 9, 1, 128>}, {pipeline_mode = #tpu.pipeline_mode<synchronous>, transform_indices = @transform_2, window_bounds = array<i64: 1, 128>}, {pipeline_mode = #tpu.pipeline_mode<synchronous>, transform_indices = @transform_3, window_bounds = array<i64: 128, 256>}, {pipeline_mode = #tpu.pipeline_mode<synchronous>, transform_indices = @transform_4, window_bounds = array<i64: 1, 256>}, {transform_indices = @transform_5, window_bounds = array<i64: 1, 1, 1, 256>}]} {
    %c0 = arith.constant 0 : index
    %c0_0 = arith.constant 0 : index
    %c0_1 = arith.constant 0 : index
    %0 = vector.load %arg2[%c0, %c0_0, %c0_1] : memref<9x1x128xf32, #tpu.memory_space<vmem>>, vector<9x1x128xf32>
    %c0_2 = arith.constant 0 : index
    %c0_3 = arith.constant 0 : index
    %1 = vector.load %arg3[%c0_2, %c0_3] : memref<1x128xf32, #tpu.memory_space<vmem>>, vector<1x128xf32>
    %c0_4 = arith.constant 0 : index
    %c0_5 = arith.constant 0 : index
    %2 = vector.load %arg4[%c0_4, %c0_5] : memref<128x256xf32, #tpu.memory_space<vmem>>, vector<128x256xf32>
    %c0_6 = arith.constant 0 : index
    %c0_7 = arith.constant 0 : index
    %3 = vector.load %arg5[%c0_6, %c0_7] : memref<1x256xf32, #tpu.memory_space<vmem>>, vector<1x256xf32>
    %cst = arith.constant 0.000000e+00 : f32
    %4 = vector.broadcast %cst : f32 to vector<1x128xf32>
    %c0_8 = arith.constant 0 : index
    %c0_9 = arith.constant 0 : index
    %c0_10 = arith.constant 0 : index
    %c0_11 = arith.constant 0 : index
    %5 = vector.load %arg1[%c0_8, %c0_9, %c0_10, %c0_11] : memref<1x3x3x128xf32, #tpu.memory_space<vmem>>, vector<1x1x1x128xf32>
    %6 = vector.shape_cast %5 : vector<1x1x1x128xf32> to vector<1x128xf32>
    %7 = vector.extract_strided_slice %0 {offsets = [0, 0, 0], sizes = [1, 1, 128], strides = [1, 1, 1]} : vector<9x1x128xf32> to vector<1x1x128xf32>
    %8 = vector.shape_cast %7 : vector<1x1x128xf32> to vector<1x128xf32>
    %9 = arith.mulf %6, %8 : vector<1x128xf32>
    %10 = arith.addf %4, %9 : vector<1x128xf32>
    %c0_12 = arith.constant 0 : index
    %c0_13 = arith.constant 0 : index
    %c1 = arith.constant 1 : index
    %c0_14 = arith.constant 0 : index
    %11 = vector.load %arg1[%c0_12, %c0_13, %c1, %c0_14] : memref<1x3x3x128xf32, #tpu.memory_space<vmem>>, vector<1x1x1x128xf32>
    %12 = vector.shape_cast %11 : vector<1x1x1x128xf32> to vector<1x128xf32>
    %13 = vector.extract_strided_slice %0 {offsets = [1, 0, 0], sizes = [1, 1, 128], strides = [1, 1, 1]} : vector<9x1x128xf32> to vector<1x1x128xf32>
    %14 = vector.shape_cast %13 : vector<1x1x128xf32> to vector<1x128xf32>
    %15 = arith.mulf %12, %14 : vector<1x128xf32>
    %16 = arith.addf %10, %15 : vector<1x128xf32>
    %c0_15 = arith.constant 0 : index
    %c0_16 = arith.constant 0 : index
    %c2 = arith.constant 2 : index
    %c0_17 = arith.constant 0 : index
    %17 = vector.load %arg1[%c0_15, %c0_16, %c2, %c0_17] : memref<1x3x3x128xf32, #tpu.memory_space<vmem>>, vector<1x1x1x128xf32>
    %18 = vector.shape_cast %17 : vector<1x1x1x128xf32> to vector<1x128xf32>
    %19 = vector.extract_strided_slice %0 {offsets = [2, 0, 0], sizes = [1, 1, 128], strides = [1, 1, 1]} : vector<9x1x128xf32> to vector<1x1x128xf32>
    %20 = vector.shape_cast %19 : vector<1x1x128xf32> to vector<1x128xf32>
    %21 = arith.mulf %18, %20 : vector<1x128xf32>
    %22 = arith.addf %16, %21 : vector<1x128xf32>
    %c0_18 = arith.constant 0 : index
    %c1_19 = arith.constant 1 : index
    %c0_20 = arith.constant 0 : index
    %c0_21 = arith.constant 0 : index
    %23 = vector.load %arg1[%c0_18, %c1_19, %c0_20, %c0_21] : memref<1x3x3x128xf32, #tpu.memory_space<vmem>>, vector<1x1x1x128xf32>
    %24 = vector.shape_cast %23 : vector<1x1x1x128xf32> to vector<1x128xf32>
    %25 = vector.extract_strided_slice %0 {offsets = [3, 0, 0], sizes = [1, 1, 128], strides = [1, 1, 1]} : vector<9x1x128xf32> to vector<1x1x128xf32>
    %26 = vector.shape_cast %25 : vector<1x1x128xf32> to vector<1x128xf32>
    %27 = arith.mulf %24, %26 : vector<1x128xf32>
    %28 = arith.addf %22, %27 : vector<1x128xf32>
    %c0_22 = arith.constant 0 : index
    %c1_23 = arith.constant 1 : index
    %c1_24 = arith.constant 1 : index
    %c0_25 = arith.constant 0 : index
    %29 = vector.load %arg1[%c0_22, %c1_23, %c1_24, %c0_25] : memref<1x3x3x128xf32, #tpu.memory_space<vmem>>, vector<1x1x1x128xf32>
    %30 = vector.shape_cast %29 : vector<1x1x1x128xf32> to vector<1x128xf32>
    %31 = vector.extract_strided_slice %0 {offsets = [4, 0, 0], sizes = [1, 1, 128], strides = [1, 1, 1]} : vector<9x1x128xf32> to vector<1x1x128xf32>
    %32 = vector.shape_cast %31 : vector<1x1x128xf32> to vector<1x128xf32>
    %33 = arith.mulf %30, %32 : vector<1x128xf32>
    %34 = arith.addf %28, %33 : vector<1x128xf32>
    %c0_26 = arith.constant 0 : index
    %c1_27 = arith.constant 1 : index
    %c2_28 = arith.constant 2 : index
    %c0_29 = arith.constant 0 : index
    %35 = vector.load %arg1[%c0_26, %c1_27, %c2_28, %c0_29] : memref<1x3x3x128xf32, #tpu.memory_space<vmem>>, vector<1x1x1x128xf32>
    %36 = vector.shape_cast %35 : vector<1x1x1x128xf32> to vector<1x128xf32>
    %37 = vector.extract_strided_slice %0 {offsets = [5, 0, 0], sizes = [1, 1, 128], strides = [1, 1, 1]} : vector<9x1x128xf32> to vector<1x1x128xf32>
    %38 = vector.shape_cast %37 : vector<1x1x128xf32> to vector<1x128xf32>
    %39 = arith.mulf %36, %38 : vector<1x128xf32>
    %40 = arith.addf %34, %39 : vector<1x128xf32>
    %c0_30 = arith.constant 0 : index
    %c2_31 = arith.constant 2 : index
    %c0_32 = arith.constant 0 : index
    %c0_33 = arith.constant 0 : index
    %41 = vector.load %arg1[%c0_30, %c2_31, %c0_32, %c0_33] : memref<1x3x3x128xf32, #tpu.memory_space<vmem>>, vector<1x1x1x128xf32>
    %42 = vector.shape_cast %41 : vector<1x1x1x128xf32> to vector<1x128xf32>
    %43 = vector.extract_strided_slice %0 {offsets = [6, 0, 0], sizes = [1, 1, 128], strides = [1, 1, 1]} : vector<9x1x128xf32> to vector<1x1x128xf32>
    %44 = vector.shape_cast %43 : vector<1x1x128xf32> to vector<1x128xf32>
    %45 = arith.mulf %42, %44 : vector<1x128xf32>
    %46 = arith.addf %40, %45 : vector<1x128xf32>
    %c0_34 = arith.constant 0 : index
    %c2_35 = arith.constant 2 : index
    %c1_36 = arith.constant 1 : index
    %c0_37 = arith.constant 0 : index
    %47 = vector.load %arg1[%c0_34, %c2_35, %c1_36, %c0_37] : memref<1x3x3x128xf32, #tpu.memory_space<vmem>>, vector<1x1x1x128xf32>
    %48 = vector.shape_cast %47 : vector<1x1x1x128xf32> to vector<1x128xf32>
    %49 = vector.extract_strided_slice %0 {offsets = [7, 0, 0], sizes = [1, 1, 128], strides = [1, 1, 1]} : vector<9x1x128xf32> to vector<1x1x128xf32>
    %50 = vector.shape_cast %49 : vector<1x1x128xf32> to vector<1x128xf32>
    %51 = arith.mulf %48, %50 : vector<1x128xf32>
    %52 = arith.addf %46, %51 : vector<1x128xf32>
    %c0_38 = arith.constant 0 : index
    %c2_39 = arith.constant 2 : index
    %c2_40 = arith.constant 2 : index
    %c0_41 = arith.constant 0 : index
    %53 = vector.load %arg1[%c0_38, %c2_39, %c2_40, %c0_41] : memref<1x3x3x128xf32, #tpu.memory_space<vmem>>, vector<1x1x1x128xf32>
    %54 = vector.shape_cast %53 : vector<1x1x1x128xf32> to vector<1x128xf32>
    %55 = vector.extract_strided_slice %0 {offsets = [8, 0, 0], sizes = [1, 1, 128], strides = [1, 1, 1]} : vector<9x1x128xf32> to vector<1x1x128xf32>
    %56 = vector.shape_cast %55 : vector<1x1x128xf32> to vector<1x128xf32>
    %57 = arith.mulf %54, %56 : vector<1x128xf32>
    %58 = arith.addf %52, %57 : vector<1x128xf32>
    %59 = arith.addf %58, %1 : vector<1x128xf32>
    %cst_42 = arith.constant 0.000000e+00 : f32
    %60 = vector.broadcast %cst_42 : f32 to vector<1x128xf32>
    %61 = arith.maximumf %59, %60 : vector<1x128xf32>
    %cst_43 = arith.constant dense<0.000000e+00> : vector<1x256xf32>
    %62 = tpu.matmul %61, %2, %cst_43 {dimension_numbers = #tpu.dot_dimension_numbers<[1], [0], [0], [1], [0, 0, 1, 1], [], []>} : vector<1x128xf32>, vector<128x256xf32>, vector<1x256xf32> -> vector<1x256xf32>
    %63 = arith.addf %62, %3 : vector<1x256xf32>
    %cst_44 = arith.constant 0.000000e+00 : f32
    %64 = vector.broadcast %cst_44 : f32 to vector<1x256xf32>
    %65 = arith.maximumf %63, %64 : vector<1x256xf32>
    %c0_45 = arith.constant 0 : index
    %c0_46 = arith.constant 0 : index
    %c0_47 = arith.constant 0 : index
    %c0_48 = arith.constant 0 : index
    %66 = vector.load %arg6[%c0_45, %c0_46, %c0_47, %c0_48] : memref<1x1x1x256xf32, #tpu.memory_space<vmem>>, vector<1x1x1x256xf32>
    %67 = vector.shape_cast %66 : vector<1x1x1x256xf32> to vector<1x256xf32>
    %68 = vector.shape_cast %65 : vector<1x256xf32> to vector<1x1x1x256xf32>
    tpu.vector_store %arg6[%c0_45, %c0_46, %c0_47, %c0_48], %68 {strides = array<i32>} : memref<1x1x1x256xf32, #tpu.memory_space<vmem>>, vector<1x1x1x256xf32>,
    return
  }
  func.func @transform_0(%arg0: i32) -> (i32, i32, i32, i32) {
    %c0_i32 = arith.constant 0 : i32
    %c0_i32_0 = arith.constant 0 : i32
    %c0_i32_1 = arith.constant 0 : i32
    %c0_i32_2 = arith.constant 0 : i32
    return %arg0, %c0_i32, %c0_i32_0, %c0_i32_1 : i32, i32, i32, i32
  }
  func.func @transform_1(%arg0: i32) -> (i32, i32, i32) {
    %c0_i32 = arith.constant 0 : i32
    %c0_i32_0 = arith.constant 0 : i32
    %c0_i32_1 = arith.constant 0 : i32
    %c0_i32_2 = arith.constant 0 : i32
    return %c0_i32, %c0_i32_0, %c0_i32_1 : i32, i32, i32
  }
  func.func @transform_2(%arg0: i32) -> (i32, i32) {
    %c0_i32 = arith.constant 0 : i32
    %c0_i32_0 = arith.constant 0 : i32
    %c0_i32_1 = arith.constant 0 : i32
    return %c0_i32, %c0_i32_0 : i32, i32
  }
  func.func @transform_3(%arg0: i32) -> (i32, i32) {
    %c0_i32 = arith.constant 0 : i32
    %c0_i32_0 = arith.constant 0 : i32
    %c0_i32_1 = arith.constant 0 : i32
    return %c0_i32, %c0_i32_0 : i32, i32
  }
  func.func @transform_4(%arg0: i32) -> (i32, i32) {
    %c0_i32 = arith.constant 0 : i32
    %c0_i32_0 = arith.constant 0 : i32
    %c0_i32_1 = arith.constant 0 : i32
    return %c0_i32, %c0_i32_0 : i32, i32
  }
  func.func @transform_5(%arg0: i32) -> (i32, i32, i32, i32) {
    %c0_i32 = arith.constant 0 : i32
    %c0_i32_0 = arith.constant 0 : i32
    %c0_i32_1 = arith.constant 0 : i32
    %c0_i32_2 = arith.constant 0 : i32
    return %arg0, %c0_i32, %c0_i32_0, %c0_i32_1 : i32, i32, i32, i32
  }
}

module attributes {stable_mosaic.version = 11 : i64} {
  func.func @dw_pw_block_kernel(%arg0: i32, %arg1: memref<1x3x3x128xf32, #tpu.memory_space<vmem>>, %arg2: memref<9x1x128xf32, #tpu.memory_space<vmem>>, %arg3: memref<1x128xf32, #tpu.memory_space<vmem>>, %arg4: memref<128x128xf32, #tpu.memory_space<vmem>>, %arg5: memref<1x128xf32, #tpu.memory_space<vmem>>, %arg6: memref<1x1x1x128xf32, #tpu.memory_space<vmem>>) attributes {dimension_semantics = [#tpu.dimension_semantics<parallel>], iteration_bounds = array<i64: 2>, scalar_prefetch = 0 : i64, scratch_operands = 0 : i64, tpu.core_type = #tpu.core_type<tc>, window_params = [{transform_indices = @transform_0, window_bounds = array<i64: 1, 3, 3, 128>}, {pipeline_mode = #tpu.pipeline_mode<synchronous>, transform_indices = @transform_1, window_bounds = array<i64: 9, 1, 128>}, {pipeline_mode = #tpu.pipeline_mode<synchronous>, transform_indices = @transform_2, window_bounds = array<i64: 1, 128>}, {pipeline_mode = #tpu.pipeline_mode<synchronous>, transform_indices = @transform_3, window_bounds = array<i64: 128, 128>}, {pipeline_mode = #tpu.pipeline_mode<synchronous>, transform_indices = @transform_4, window_bounds = array<i64: 1, 128>}, {transform_indices = @transform_5, window_bounds = array<i64: 1, 1, 1, 128>}]} {
    %c0 = arith.constant 0 : index
    %c0_0 = arith.constant 0 : index
    %c0_1 = arith.constant 0 : index
    %0 = vector.load %arg2[%c0, %c0_0, %c0_1] : memref<9x1x128xf32, #tpu.memory_space<vmem>>, vector<9x1x128xf32>
    %c0_2 = arith.constant 0 : index
    %c0_3 = arith.constant 0 : index
    %1 = vector.load %arg3[%c0_2, %c0_3] : memref<1x128xf32, #tpu.memory_space<vmem>>, vector<1x128xf32>
    %c0_4 = arith.constant 0 : index
    %c0_5 = arith.constant 0 : index
    %2 = vector.load %arg4[%c0_4, %c0_5] : memref<128x128xf32, #tpu.memory_space<vmem>>, vector<128x128xf32>
    %c0_6 = arith.constant 0 : index
    %c0_7 = arith.constant 0 : index
    %3 = vector.load %arg5[%c0_6, %c0_7] : memref<1x128xf32, #tpu.memory_space<vmem>>, vector<1x128xf32>
    %cst = arith.constant 0.000000e+00 : f32
    %4 = vector.broadcast %cst : f32 to vector<1x128xf32>
    %c0_8 = arith.constant 0 : index
    %c0_9 = arith.constant 0 : index
    %c0_10 = arith.constant 0 : index
    %c0_11 = arith.constant 0 : index
    %5 = vector.load %arg1[%c0_8, %c0_9, %c0_10, %c0_11] : memref<1x3x3x128xf32, #tpu.memory_space<vmem>>, vector<1x1x1x128xf32>
    %6 = vector.shape_cast %5 : vector<1x1x1x128xf32> to vector<1x128xf32>
    %7 = vector.extract_strided_slice %0 {offsets = [0, 0, 0], sizes = [1, 1, 128], strides = [1, 1, 1]} : vector<9x1x128xf32> to vector<1x1x128xf32>
    %8 = vector.shape_cast %7 : vector<1x1x128xf32> to vector<1x128xf32>
    %9 = arith.mulf %6, %8 : vector<1x128xf32>
    %10 = arith.addf %4, %9 : vector<1x128xf32>
    %c0_12 = arith.constant 0 : index
    %c0_13 = arith.constant 0 : index
    %c1 = arith.constant 1 : index
    %c0_14 = arith.constant 0 : index
    %11 = vector.load %arg1[%c0_12, %c0_13, %c1, %c0_14] : memref<1x3x3x128xf32, #tpu.memory_space<vmem>>, vector<1x1x1x128xf32>
    %12 = vector.shape_cast %11 : vector<1x1x1x128xf32> to vector<1x128xf32>
    %13 = vector.extract_strided_slice %0 {offsets = [1, 0, 0], sizes = [1, 1, 128], strides = [1, 1, 1]} : vector<9x1x128xf32> to vector<1x1x128xf32>
    %14 = vector.shape_cast %13 : vector<1x1x128xf32> to vector<1x128xf32>
    %15 = arith.mulf %12, %14 : vector<1x128xf32>
    %16 = arith.addf %10, %15 : vector<1x128xf32>
    %c0_15 = arith.constant 0 : index
    %c0_16 = arith.constant 0 : index
    %c2 = arith.constant 2 : index
    %c0_17 = arith.constant 0 : index
    %17 = vector.load %arg1[%c0_15, %c0_16, %c2, %c0_17] : memref<1x3x3x128xf32, #tpu.memory_space<vmem>>, vector<1x1x1x128xf32>
    %18 = vector.shape_cast %17 : vector<1x1x1x128xf32> to vector<1x128xf32>
    %19 = vector.extract_strided_slice %0 {offsets = [2, 0, 0], sizes = [1, 1, 128], strides = [1, 1, 1]} : vector<9x1x128xf32> to vector<1x1x128xf32>
    %20 = vector.shape_cast %19 : vector<1x1x128xf32> to vector<1x128xf32>
    %21 = arith.mulf %18, %20 : vector<1x128xf32>
    %22 = arith.addf %16, %21 : vector<1x128xf32>
    %c0_18 = arith.constant 0 : index
    %c1_19 = arith.constant 1 : index
    %c0_20 = arith.constant 0 : index
    %c0_21 = arith.constant 0 : index
    %23 = vector.load %arg1[%c0_18, %c1_19, %c0_20, %c0_21] : memref<1x3x3x128xf32, #tpu.memory_space<vmem>>, vector<1x1x1x128xf32>
    %24 = vector.shape_cast %23 : vector<1x1x1x128xf32> to vector<1x128xf32>
    %25 = vector.extract_strided_slice %0 {offsets = [3, 0, 0], sizes = [1, 1, 128], strides = [1, 1, 1]} : vector<9x1x128xf32> to vector<1x1x128xf32>
    %26 = vector.shape_cast %25 : vector<1x1x128xf32> to vector<1x128xf32>
    %27 = arith.mulf %24, %26 : vector<1x128xf32>
    %28 = arith.addf %22, %27 : vector<1x128xf32>
    %c0_22 = arith.constant 0 : index
    %c1_23 = arith.constant 1 : index
    %c1_24 = arith.constant 1 : index
    %c0_25 = arith.constant 0 : index
    %29 = vector.load %arg1[%c0_22, %c1_23, %c1_24, %c0_25] : memref<1x3x3x128xf32, #tpu.memory_space<vmem>>, vector<1x1x1x128xf32>
    %30 = vector.shape_cast %29 : vector<1x1x1x128xf32> to vector<1x128xf32>
    %31 = vector.extract_strided_slice %0 {offsets = [4, 0, 0], sizes = [1, 1, 128], strides = [1, 1, 1]} : vector<9x1x128xf32> to vector<1x1x128xf32>
    %32 = vector.shape_cast %31 : vector<1x1x128xf32> to vector<1x128xf32>
    %33 = arith.mulf %30, %32 : vector<1x128xf32>
    %34 = arith.addf %28, %33 : vector<1x128xf32>
    %c0_26 = arith.constant 0 : index
    %c1_27 = arith.constant 1 : index
    %c2_28 = arith.constant 2 : index
    %c0_29 = arith.constant 0 : index
    %35 = vector.load %arg1[%c0_26, %c1_27, %c2_28, %c0_29] : memref<1x3x3x128xf32, #tpu.memory_space<vmem>>, vector<1x1x1x128xf32>
    %36 = vector.shape_cast %35 : vector<1x1x1x128xf32> to vector<1x128xf32>
    %37 = vector.extract_strided_slice %0 {offsets = [5, 0, 0], sizes = [1, 1, 128], strides = [1, 1, 1]} : vector<9x1x128xf32> to vector<1x1x128xf32>
    %38 = vector.shape_cast %37 : vector<1x1x128xf32> to vector<1x128xf32>
    %39 = arith.mulf %36, %38 : vector<1x128xf32>
    %40 = arith.addf %34, %39 : vector<1x128xf32>
    %c0_30 = arith.constant 0 : index
    %c2_31 = arith.constant 2 : index
    %c0_32 = arith.constant 0 : index
    %c0_33 = arith.constant 0 : index
    %41 = vector.load %arg1[%c0_30, %c2_31, %c0_32, %c0_33] : memref<1x3x3x128xf32, #tpu.memory_space<vmem>>, vector<1x1x1x128xf32>
    %42 = vector.shape_cast %41 : vector<1x1x1x128xf32> to vector<1x128xf32>
    %43 = vector.extract_strided_slice %0 {offsets = [6, 0, 0], sizes = [1, 1, 128], strides = [1, 1, 1]} : vector<9x1x128xf32> to vector<1x1x128xf32>
    %44 = vector.shape_cast %43 : vector<1x1x128xf32> to vector<1x128xf32>
    %45 = arith.mulf %42, %44 : vector<1x128xf32>
    %46 = arith.addf %40, %45 : vector<1x128xf32>
    %c0_34 = arith.constant 0 : index
    %c2_35 = arith.constant 2 : index
    %c1_36 = arith.constant 1 : index
    %c0_37 = arith.constant 0 : index
    %47 = vector.load %arg1[%c0_34, %c2_35, %c1_36, %c0_37] : memref<1x3x3x128xf32, #tpu.memory_space<vmem>>, vector<1x1x1x128xf32>
    %48 = vector.shape_cast %47 : vector<1x1x1x128xf32> to vector<1x128xf32>
    %49 = vector.extract_strided_slice %0 {offsets = [7, 0, 0], sizes = [1, 1, 128], strides = [1, 1, 1]} : vector<9x1x128xf32> to vector<1x1x128xf32>
    %50 = vector.shape_cast %49 : vector<1x1x128xf32> to vector<1x128xf32>
    %51 = arith.mulf %48, %50 : vector<1x128xf32>
    %52 = arith.addf %46, %51 : vector<1x128xf32>
    %c0_38 = arith.constant 0 : index
    %c2_39 = arith.constant 2 : index
    %c2_40 = arith.constant 2 : index
    %c0_41 = arith.constant 0 : index
    %53 = vector.load %arg1[%c0_38, %c2_39, %c2_40, %c0_41] : memref<1x3x3x128xf32, #tpu.memory_space<vmem>>, vector<1x1x1x128xf32>
    %54 = vector.shape_cast %53 : vector<1x1x1x128xf32> to vector<1x128xf32>
    %55 = vector.extract_strided_slice %0 {offsets = [8, 0, 0], sizes = [1, 1, 128], strides = [1, 1, 1]} : vector<9x1x128xf32> to vector<1x1x128xf32>
    %56 = vector.shape_cast %55 : vector<1x1x128xf32> to vector<1x128xf32>
    %57 = arith.mulf %54, %56 : vector<1x128xf32>
    %58 = arith.addf %52, %57 : vector<1x128xf32>
    %59 = arith.addf %58, %1 : vector<1x128xf32>
    %cst_42 = arith.constant 0.000000e+00 : f32
    %60 = vector.broadcast %cst_42 : f32 to vector<1x128xf32>
    %61 = arith.maximumf %59, %60 : vector<1x128xf32>
    %cst_43 = arith.constant dense<0.000000e+00> : vector<1x128xf32>
    %62 = tpu.matmul %61, %2, %cst_43 {dimension_numbers = #tpu.dot_dimension_numbers<[1], [0], [0], [1], [0, 0, 1, 1], [], []>} : vector<1x128xf32>, vector<128x128xf32>, vector<1x128xf32> -> vector<1x128xf32>
    %63 = arith.addf %62, %3 : vector<1x128xf32>
    %cst_44 = arith.constant 0.000000e+00 : f32
    %64 = vector.broadcast %cst_44 : f32 to vector<1x128xf32>
    %65 = arith.maximumf %63, %64 : vector<1x128xf32>
    %c0_45 = arith.constant 0 : index
    %c0_46 = arith.constant 0 : index
    %c0_47 = arith.constant 0 : index
    %c0_48 = arith.constant 0 : index
    %66 = vector.load %arg6[%c0_45, %c0_46, %c0_47, %c0_48] : memref<1x1x1x128xf32, #tpu.memory_space<vmem>>, vector<1x1x1x128xf32>
    %67 = vector.shape_cast %66 : vector<1x1x1x128xf32> to vector<1x128xf32>
    %68 = vector.shape_cast %65 : vector<1x128xf32> to vector<1x1x1x128xf32>
    tpu.vector_store %arg6[%c0_45, %c0_46, %c0_47, %c0_48], %68 {strides = array<i32>} : memref<1x1x1x128xf32, #tpu.memory_space<vmem>>, vector<1x1x1x128xf32>,
    return
  }
  func.func @transform_0(%arg0: i32) -> (i32, i32, i32, i32) {
    %c0_i32 = arith.constant 0 : i32
    %c0_i32_0 = arith.constant 0 : i32
    %c0_i32_1 = arith.constant 0 : i32
    %c0_i32_2 = arith.constant 0 : i32
    return %arg0, %c0_i32, %c0_i32_0, %c0_i32_1 : i32, i32, i32, i32
  }
  func.func @transform_1(%arg0: i32) -> (i32, i32, i32) {
    %c0_i32 = arith.constant 0 : i32
    %c0_i32_0 = arith.constant 0 : i32
    %c0_i32_1 = arith.constant 0 : i32
    %c0_i32_2 = arith.constant 0 : i32
    return %c0_i32, %c0_i32_0, %c0_i32_1 : i32, i32, i32
  }
  func.func @transform_2(%arg0: i32) -> (i32, i32) {
    %c0_i32 = arith.constant 0 : i32
    %c0_i32_0 = arith.constant 0 : i32
    %c0_i32_1 = arith.constant 0 : i32
    return %c0_i32, %c0_i32_0 : i32, i32
  }
  func.func @transform_3(%arg0: i32) -> (i32, i32) {
    %c0_i32 = arith.constant 0 : i32
    %c0_i32_0 = arith.constant 0 : i32
    %c0_i32_1 = arith.constant 0 : i32
    return %c0_i32, %c0_i32_0 : i32, i32
  }
  func.func @transform_4(%arg0: i32) -> (i32, i32) {
    %c0_i32 = arith.constant 0 : i32
    %c0_i32_0 = arith.constant 0 : i32
    %c0_i32_1 = arith.constant 0 : i32
    return %c0_i32, %c0_i32_0 : i32, i32
  }
  func.func @transform_5(%arg0: i32) -> (i32, i32, i32, i32) {
    %c0_i32 = arith.constant 0 : i32
    %c0_i32_0 = arith.constant 0 : i32
    %c0_i32_1 = arith.constant 0 : i32
    %c0_i32_2 = arith.constant 0 : i32
    return %arg0, %c0_i32, %c0_i32_0, %c0_i32_1 : i32, i32, i32, i32
  }
}

module attributes {stable_mosaic.version = 11 : i64} {
  func.func @dw_pw_head_kernel(%arg0: i32, %arg1: memref<1x3x3x256xf32, #tpu.memory_space<vmem>>, %arg2: memref<9x1x256xf32, #tpu.memory_space<vmem>>, %arg3: memref<1x256xf32, #tpu.memory_space<vmem>>, %arg4: memref<256x256xf32, #tpu.memory_space<vmem>>, %arg5: memref<1x256xf32, #tpu.memory_space<vmem>>, %arg6: memref<256x2xf32, #tpu.memory_space<vmem>>, %arg7: memref<1x2xf32, #tpu.memory_space<vmem>>, %arg8: memref<1x1x2xf32, #tpu.memory_space<vmem>>) attributes {dimension_semantics = [#tpu.dimension_semantics<parallel>], iteration_bounds = array<i64: 2>, scalar_prefetch = 0 : i64, scratch_operands = 0 : i64, tpu.core_type = #tpu.core_type<tc>, window_params = [{transform_indices = @transform_0, window_bounds = array<i64: 1, 3, 3, 256>}, {pipeline_mode = #tpu.pipeline_mode<synchronous>, transform_indices = @transform_1, window_bounds = array<i64: 9, 1, 256>}, {pipeline_mode = #tpu.pipeline_mode<synchronous>, transform_indices = @transform_2, window_bounds = array<i64: 1, 256>}, {pipeline_mode = #tpu.pipeline_mode<synchronous>, transform_indices = @transform_3, window_bounds = array<i64: 256, 256>}, {pipeline_mode = #tpu.pipeline_mode<synchronous>, transform_indices = @transform_4, window_bounds = array<i64: 1, 256>}, {pipeline_mode = #tpu.pipeline_mode<synchronous>, transform_indices = @transform_5, window_bounds = array<i64: 256, 2>}, {pipeline_mode = #tpu.pipeline_mode<synchronous>, transform_indices = @transform_6, window_bounds = array<i64: 1, 2>}, {transform_indices = @transform_7, window_bounds = array<i64: 1, 1, 2>}]} {
    %c0 = arith.constant 0 : index
    %c0_0 = arith.constant 0 : index
    %c0_1 = arith.constant 0 : index
    %0 = vector.load %arg2[%c0, %c0_0, %c0_1] : memref<9x1x256xf32, #tpu.memory_space<vmem>>, vector<9x1x256xf32>
    %c0_2 = arith.constant 0 : index
    %c0_3 = arith.constant 0 : index
    %1 = vector.load %arg3[%c0_2, %c0_3] : memref<1x256xf32, #tpu.memory_space<vmem>>, vector<1x256xf32>
    %c0_4 = arith.constant 0 : index
    %c0_5 = arith.constant 0 : index
    %2 = vector.load %arg4[%c0_4, %c0_5] : memref<256x256xf32, #tpu.memory_space<vmem>>, vector<256x256xf32>
    %c0_6 = arith.constant 0 : index
    %c0_7 = arith.constant 0 : index
    %3 = vector.load %arg5[%c0_6, %c0_7] : memref<1x256xf32, #tpu.memory_space<vmem>>, vector<1x256xf32>
    %cst = arith.constant 0.000000e+00 : f32
    %4 = vector.broadcast %cst : f32 to vector<1x256xf32>
    %cst_8 = arith.constant 0.000000e+00 : f32
    %5 = vector.broadcast %cst_8 : f32 to vector<1x256xf32>
    %c0_9 = arith.constant 0 : index
    %c0_10 = arith.constant 0 : index
    %c0_11 = arith.constant 0 : index
    %c0_12 = arith.constant 0 : index
    %6 = vector.load %arg1[%c0_9, %c0_10, %c0_11, %c0_12] : memref<1x3x3x256xf32, #tpu.memory_space<vmem>>, vector<1x1x1x256xf32>
    %7 = vector.shape_cast %6 : vector<1x1x1x256xf32> to vector<1x256xf32>
    %8 = vector.extract_strided_slice %0 {offsets = [0, 0, 0], sizes = [1, 1, 256], strides = [1, 1, 1]} : vector<9x1x256xf32> to vector<1x1x256xf32>
    %9 = vector.shape_cast %8 : vector<1x1x256xf32> to vector<1x256xf32>
    %10 = arith.mulf %7, %9 : vector<1x256xf32>
    %11 = arith.addf %5, %10 : vector<1x256xf32>
    %c0_13 = arith.constant 0 : index
    %c0_14 = arith.constant 0 : index
    %c1 = arith.constant 1 : index
    %c0_15 = arith.constant 0 : index
    %12 = vector.load %arg1[%c0_13, %c0_14, %c1, %c0_15] : memref<1x3x3x256xf32, #tpu.memory_space<vmem>>, vector<1x1x1x256xf32>
    %13 = vector.shape_cast %12 : vector<1x1x1x256xf32> to vector<1x256xf32>
    %14 = vector.extract_strided_slice %0 {offsets = [1, 0, 0], sizes = [1, 1, 256], strides = [1, 1, 1]} : vector<9x1x256xf32> to vector<1x1x256xf32>
    %15 = vector.shape_cast %14 : vector<1x1x256xf32> to vector<1x256xf32>
    %16 = arith.mulf %13, %15 : vector<1x256xf32>
    %17 = arith.addf %11, %16 : vector<1x256xf32>
    %c0_16 = arith.constant 0 : index
    %c0_17 = arith.constant 0 : index
    %c2 = arith.constant 2 : index
    %c0_18 = arith.constant 0 : index
    %18 = vector.load %arg1[%c0_16, %c0_17, %c2, %c0_18] : memref<1x3x3x256xf32, #tpu.memory_space<vmem>>, vector<1x1x1x256xf32>
    %19 = vector.shape_cast %18 : vector<1x1x1x256xf32> to vector<1x256xf32>
    %20 = vector.extract_strided_slice %0 {offsets = [2, 0, 0], sizes = [1, 1, 256], strides = [1, 1, 1]} : vector<9x1x256xf32> to vector<1x1x256xf32>
    %21 = vector.shape_cast %20 : vector<1x1x256xf32> to vector<1x256xf32>
    %22 = arith.mulf %19, %21 : vector<1x256xf32>
    %23 = arith.addf %17, %22 : vector<1x256xf32>
    %c0_19 = arith.constant 0 : index
    %c1_20 = arith.constant 1 : index
    %c0_21 = arith.constant 0 : index
    %c0_22 = arith.constant 0 : index
    %24 = vector.load %arg1[%c0_19, %c1_20, %c0_21, %c0_22] : memref<1x3x3x256xf32, #tpu.memory_space<vmem>>, vector<1x1x1x256xf32>
    %25 = vector.shape_cast %24 : vector<1x1x1x256xf32> to vector<1x256xf32>
    %26 = vector.extract_strided_slice %0 {offsets = [3, 0, 0], sizes = [1, 1, 256], strides = [1, 1, 1]} : vector<9x1x256xf32> to vector<1x1x256xf32>
    %27 = vector.shape_cast %26 : vector<1x1x256xf32> to vector<1x256xf32>
    %28 = arith.mulf %25, %27 : vector<1x256xf32>
    %29 = arith.addf %23, %28 : vector<1x256xf32>
    %c0_23 = arith.constant 0 : index
    %c1_24 = arith.constant 1 : index
    %c1_25 = arith.constant 1 : index
    %c0_26 = arith.constant 0 : index
    %30 = vector.load %arg1[%c0_23, %c1_24, %c1_25, %c0_26] : memref<1x3x3x256xf32, #tpu.memory_space<vmem>>, vector<1x1x1x256xf32>
    %31 = vector.shape_cast %30 : vector<1x1x1x256xf32> to vector<1x256xf32>
    %32 = vector.extract_strided_slice %0 {offsets = [4, 0, 0], sizes = [1, 1, 256], strides = [1, 1, 1]} : vector<9x1x256xf32> to vector<1x1x256xf32>
    %33 = vector.shape_cast %32 : vector<1x1x256xf32> to vector<1x256xf32>
    %34 = arith.mulf %31, %33 : vector<1x256xf32>
    %35 = arith.addf %29, %34 : vector<1x256xf32>
    %c0_27 = arith.constant 0 : index
    %c1_28 = arith.constant 1 : index
    %c2_29 = arith.constant 2 : index
    %c0_30 = arith.constant 0 : index
    %36 = vector.load %arg1[%c0_27, %c1_28, %c2_29, %c0_30] : memref<1x3x3x256xf32, #tpu.memory_space<vmem>>, vector<1x1x1x256xf32>
    %37 = vector.shape_cast %36 : vector<1x1x1x256xf32> to vector<1x256xf32>
    %38 = vector.extract_strided_slice %0 {offsets = [5, 0, 0], sizes = [1, 1, 256], strides = [1, 1, 1]} : vector<9x1x256xf32> to vector<1x1x256xf32>
    %39 = vector.shape_cast %38 : vector<1x1x256xf32> to vector<1x256xf32>
    %40 = arith.mulf %37, %39 : vector<1x256xf32>
    %41 = arith.addf %35, %40 : vector<1x256xf32>
    %c0_31 = arith.constant 0 : index
    %c2_32 = arith.constant 2 : index
    %c0_33 = arith.constant 0 : index
    %c0_34 = arith.constant 0 : index
    %42 = vector.load %arg1[%c0_31, %c2_32, %c0_33, %c0_34] : memref<1x3x3x256xf32, #tpu.memory_space<vmem>>, vector<1x1x1x256xf32>
    %43 = vector.shape_cast %42 : vector<1x1x1x256xf32> to vector<1x256xf32>
    %44 = vector.extract_strided_slice %0 {offsets = [6, 0, 0], sizes = [1, 1, 256], strides = [1, 1, 1]} : vector<9x1x256xf32> to vector<1x1x256xf32>
    %45 = vector.shape_cast %44 : vector<1x1x256xf32> to vector<1x256xf32>
    %46 = arith.mulf %43, %45 : vector<1x256xf32>
    %47 = arith.addf %41, %46 : vector<1x256xf32>
    %c0_35 = arith.constant 0 : index
    %c2_36 = arith.constant 2 : index
    %c1_37 = arith.constant 1 : index
    %c0_38 = arith.constant 0 : index
    %48 = vector.load %arg1[%c0_35, %c2_36, %c1_37, %c0_38] : memref<1x3x3x256xf32, #tpu.memory_space<vmem>>, vector<1x1x1x256xf32>
    %49 = vector.shape_cast %48 : vector<1x1x1x256xf32> to vector<1x256xf32>
    %50 = vector.extract_strided_slice %0 {offsets = [7, 0, 0], sizes = [1, 1, 256], strides = [1, 1, 1]} : vector<9x1x256xf32> to vector<1x1x256xf32>
    %51 = vector.shape_cast %50 : vector<1x1x256xf32> to vector<1x256xf32>
    %52 = arith.mulf %49, %51 : vector<1x256xf32>
    %53 = arith.addf %47, %52 : vector<1x256xf32>
    %c0_39 = arith.constant 0 : index
    %c2_40 = arith.constant 2 : index
    %c2_41 = arith.constant 2 : index
    %c0_42 = arith.constant 0 : index
    %54 = vector.load %arg1[%c0_39, %c2_40, %c2_41, %c0_42] : memref<1x3x3x256xf32, #tpu.memory_space<vmem>>, vector<1x1x1x256xf32>
    %55 = vector.shape_cast %54 : vector<1x1x1x256xf32> to vector<1x256xf32>
    %56 = vector.extract_strided_slice %0 {offsets = [8, 0, 0], sizes = [1, 1, 256], strides = [1, 1, 1]} : vector<9x1x256xf32> to vector<1x1x256xf32>
    %57 = vector.shape_cast %56 : vector<1x1x256xf32> to vector<1x256xf32>
    %58 = arith.mulf %55, %57 : vector<1x256xf32>
    %59 = arith.addf %53, %58 : vector<1x256xf32>
    %60 = arith.addf %59, %1 : vector<1x256xf32>
    %cst_43 = arith.constant 0.000000e+00 : f32
    %61 = vector.broadcast %cst_43 : f32 to vector<1x256xf32>
    %62 = arith.maximumf %60, %61 : vector<1x256xf32>
    %cst_44 = arith.constant dense<0.000000e+00> : vector<1x256xf32>
    %63 = tpu.matmul %62, %2, %cst_44 {dimension_numbers = #tpu.dot_dimension_numbers<[1], [0], [0], [1], [0, 0, 1, 1], [], []>} : vector<1x256xf32>, vector<256x256xf32>, vector<1x256xf32> -> vector<1x256xf32>
    %64 = arith.addf %63, %3 : vector<1x256xf32>
    %cst_45 = arith.constant 0.000000e+00 : f32
    %65 = vector.broadcast %cst_45 : f32 to vector<1x256xf32>
    %66 = arith.maximumf %64, %65 : vector<1x256xf32>
    %cst_46 = arith.constant dense<0.000000e+00> : vector<256xf32>
    %67 = vector.multi_reduction <add>, %66, %cst_46 [0] : vector<1x256xf32> to vector<256xf32>
    %68 = vector.shape_cast %67 : vector<256xf32> to vector<1x256xf32>
    %69 = arith.addf %4, %68 : vector<1x256xf32>
    %cst_47 = arith.constant 1.000000e+00 : f32
    %70 = vector.broadcast %cst_47 : f32 to vector<1x256xf32>
    %71 = arith.mulf %69, %70 : vector<1x256xf32>
    %c0_48 = arith.constant 0 : index
    %c0_49 = arith.constant 0 : index
    %72 = vector.load %arg6[%c0_48, %c0_49] : memref<256x2xf32, #tpu.memory_space<vmem>>, vector<256x2xf32>
    %cst_50 = arith.constant dense<0.000000e+00> : vector<1x2xf32>
    %73 = tpu.matmul %71, %72, %cst_50 {dimension_numbers = #tpu.dot_dimension_numbers<[1], [0], [0], [1], [0, 0, 1, 1], [], []>} : vector<1x256xf32>, vector<256x2xf32>, vector<1x2xf32> -> vector<1x2xf32>
    %c0_51 = arith.constant 0 : index
    %c0_52 = arith.constant 0 : index
    %74 = vector.load %arg7[%c0_51, %c0_52] : memref<1x2xf32, #tpu.memory_space<vmem>>, vector<1x2xf32>
    %75 = arith.addf %73, %74 : vector<1x2xf32>
    %cst_53 = arith.constant dense<0xFF800000> : vector<1xf32>
    %76 = vector.multi_reduction <maximumf>, %75, %cst_53 [1] : vector<1x2xf32> to vector<1xf32>
    %77 = vector.shape_cast %76 : vector<1xf32> to vector<1x1xf32>
    %78 = vector.broadcast %77 : vector<1x1xf32> to vector<1x2xf32>
    %79 = arith.subf %75, %78 : vector<1x2xf32>
    %80 = math.exp %79 : vector<1x2xf32>
    %cst_54 = arith.constant dense<0.000000e+00> : vector<1xf32>
    %81 = vector.multi_reduction <add>, %80, %cst_54 [1] : vector<1x2xf32> to vector<1xf32>
    %82 = vector.shape_cast %81 : vector<1xf32> to vector<1x1xf32>
    %83 = vector.broadcast %82 : vector<1x1xf32> to vector<1x2xf32>
    %84 = arith.divf %80, %83 : vector<1x2xf32>
    %c0_55 = arith.constant 0 : index
    %c0_56 = arith.constant 0 : index
    %c0_57 = arith.constant 0 : index
    %85 = vector.load %arg8[%c0_55, %c0_56, %c0_57] : memref<1x1x2xf32, #tpu.memory_space<vmem>>, vector<1x1x2xf32>
    %86 = vector.shape_cast %85 : vector<1x1x2xf32> to vector<1x2xf32>
    %87 = vector.shape_cast %84 : vector<1x2xf32> to vector<1x1x2xf32>
    tpu.vector_store %arg8[%c0_55, %c0_56, %c0_57], %87 {strides = array<i32>} : memref<1x1x2xf32, #tpu.memory_space<vmem>>, vector<1x1x2xf32>,
    return
  }
  func.func @transform_0(%arg0: i32) -> (i32, i32, i32, i32) {
    %c0_i32 = arith.constant 0 : i32
    %c0_i32_0 = arith.constant 0 : i32
    %c0_i32_1 = arith.constant 0 : i32
    %c0_i32_2 = arith.constant 0 : i32
    return %arg0, %c0_i32, %c0_i32_0, %c0_i32_1 : i32, i32, i32, i32
  }
  func.func @transform_1(%arg0: i32) -> (i32, i32, i32) {
    %c0_i32 = arith.constant 0 : i32
    %c0_i32_0 = arith.constant 0 : i32
    %c0_i32_1 = arith.constant 0 : i32
    %c0_i32_2 = arith.constant 0 : i32
    return %c0_i32, %c0_i32_0, %c0_i32_1 : i32, i32, i32
  }
  func.func @transform_2(%arg0: i32) -> (i32, i32) {
    %c0_i32 = arith.constant 0 : i32
    %c0_i32_0 = arith.constant 0 : i32
    %c0_i32_1 = arith.constant 0 : i32
    return %c0_i32, %c0_i32_0 : i32, i32
  }
  func.func @transform_3(%arg0: i32) -> (i32, i32) {
    %c0_i32 = arith.constant 0 : i32
    %c0_i32_0 = arith.constant 0 : i32
    %c0_i32_1 = arith.constant 0 : i32
    return %c0_i32, %c0_i32_0 : i32, i32
  }
  func.func @transform_4(%arg0: i32) -> (i32, i32) {
    %c0_i32 = arith.constant 0 : i32
    %c0_i32_0 = arith.constant 0 : i32
    %c0_i32_1 = arith.constant 0 : i32
    return %c0_i32, %c0_i32_0 : i32, i32
  }
  func.func @transform_5(%arg0: i32) -> (i32, i32) {
    %c0_i32 = arith.constant 0 : i32
    %c0_i32_0 = arith.constant 0 : i32
    %c0_i32_1 = arith.constant 0 : i32
    return %c0_i32, %c0_i32_0 : i32, i32
  }
  func.func @transform_6(%arg0: i32) -> (i32, i32) {
    %c0_i32 = arith.constant 0 : i32
    %c0_i32_0 = arith.constant 0 : i32
    %c0_i32_1 = arith.constant 0 : i32
    return %c0_i32, %c0_i32_0 : i32, i32
  }
  func.func @transform_7(%arg0: i32) -> (i32, i32, i32) {
    %c0_i32 = arith.constant 0 : i32
    %c0_i32_0 = arith.constant 0 : i32
    %c0_i32_1 = arith.constant 0 : i32
    return %arg0, %c0_i32, %c0_i32_0 : i32, i32, i32
  }
}

</mosaic_0001>

<bundles_post_ra>
// kernel: mobilenet_v1_forward.14
= control target key start
LH: loop header
LB: loop body
LE: loop exit
PB: predicated region body
PF: predicated region fallthrough
CT: control target
= control target key end

     0   :  { %vm90_vm0 = vcmask 1042432   ;;  %vm41_vm1 = vcmask 220160   ;;  %vm361_vm2 = vmmov 1   ;;  %vm255_vm4 = vcmask 64512   ;;  %s525_s1 = inlined_call_operand.vmem [shape: f32[27,8], index: 1, kind: input, shape index: {}]   ;;  %s526_s0 = inlined_call_operand.vmem [shape: f32[128,27], index: 0, kind: input, shape index: {}]   ;;  %s527_s2 = inlined_call_operand.vmem [shape: f32[1,8], index: 2, kind: input, shape index: {}]   ;;  %s528_s3 = inlined_call_operand.vmem [shape: f32[128,8], index: 3, kind: output, shape index: {}]  }
   0x1   :  { %v30_v0 = vld [vmem:[%s525_s1] sm:$0xff]  ;;  %v31_v1 = vld [vmem:[%s525_s1 + $0x8] sm:$0xff]  ;;  %v32_v2 = vld [vmem:[%s525_s1 + $0x10] sm:$0xff] }
   0x2   :  { %v346_v3 = vpack.c.bf16 %v31_v1, %v30_v0  ;;  %v33_v4 = vld [vmem:[%s525_s1 + $0x18] sm:$0x7]  ;;  %v14_v5 = vld [vmem:[%s526_s0] sm:$0xff]  ;;  %vm351_vm3 = vmpackc.low %vm90_vm0, %vm361_vm2 }
   0x3   :  { %v350_v6 = vpack.c.bf16 %v33_v4, %v32_v2  ;;  %322 = vmatprep.mubr.msk.f32.mxu0 %vm41_vm1, %v14_v5  ;;  %v22_v7 = vld [vmem:[%s526_s0 + $0x40] sm:$0xff]  ;;  %v15_v8 = vld [vmem:[%s526_s0 + $0x8] sm:$0xff]  ;;  %v16_v10 = vld [vmem:[%s526_s0 + $0x10] sm:$0xff] }
   0x4   :  { %347 = vmatprep.subr.bf16.mxu0 %v346_v3  ;;  %356 = vmatprep.subr.bf16.mxu1 %v346_v3  ;;  %v23_v9 = vld [vmem:[%s526_s0 + $0x48] sm:$0xff]  ;;  %v24_v11 = vld [vmem:[%s526_s0 + $0x50] sm:$0xff]  ;;  %v17_v12 = vld [vmem:[%s526_s0 + $0x18] sm:$0xff] }
   0x5   :  { %349 = vmatpush3.bf16.msra.mxu0 %v346_v3  ;;  %358 = vmatpush3.bf16.msra.mxu1 %v346_v3  ;;  %v25_v13 = vld [vmem:[%s526_s0 + $0x58] sm:$0xff]  ;;  %v18_v14 = vld [vmem:[%s526_s0 + $0x20] sm:$0xff]  ;;  %v19_v16 = vld [vmem:[%s526_s0 + $0x28] sm:$0xff] }
   0x6   :  { %352 = vmatprep.subr.msk.bf16.mxu0 %vm351_vm3, %v350_v6  ;;  %357 = vmatprep.subr.msk.bf16.mxu1 %vm351_vm3, %v350_v6  ;;  %v26_v15 = vld [vmem:[%s526_s0 + $0x60] sm:$0xff]  ;;  %v27_v17 = vld [vmem:[%s526_s0 + $0x68] sm:$0xff]  ;;  %v20_v18 = vld [vmem:[%s526_s0 + $0x30] sm:$0xff] }
   0x7   :  { %334 = vmatprep.mubr.msk.f32.mxu1 %vm41_vm1, %v22_v7  ;;  %v28_v19 = vld [vmem:[%s526_s0 + $0x70] sm:$0xff]  ;;  %v21_v20 = vld [vmem:[%s526_s0 + $0x38] sm:$0xff]  ;;  %v276_v22 = vld [vmem:[%s527_s2] ss:$0 sm:$0xff] }
   0x8   :  { %v29_v21 = vld [vmem:[%s526_s0 + $0x78] sm:$0xff] }
   0x9   :  { %355 = vmatpush3.bf16.msk.msra.mxu0 %vm351_vm3, %v350_v6  ;;  %359 = vmatpush3.bf16.msk.msra.mxu1 %vm351_vm3, %v350_v6 }
   0xc   :  { %323 = vmatmul.mubr.msk.f32.vlgmr.msra.gmra.mrb[0].mxu0 %vm41_vm1, %v15_v8  ;;  %335 = vmatmul.mubr.msk.f32.vlgmr.msra.gmra.mrb[0].mxu1 %vm41_vm1, %v23_v9 }
   0xd   :  { %325 = vmatprep.mubr.msk.f32.mxu0 %vm41_vm1, %v16_v10  ;;  %337 = vmatprep.mubr.msk.f32.mxu1 %vm41_vm1, %v24_v11 }
  0x10   :  { %326 = vmatmul.mubr.msk.f32.gmra.mrb[2].mxu0 %vm41_vm1, %v17_v12  ;;  %338 = vmatmul.mubr.msk.f32.gmra.mrb[2].mxu1 %vm41_vm1, %v25_v13 }
  0x11   :  { %328 = vmatprep.mubr.msk.f32.mxu0 %vm41_vm1, %v18_v14  ;;  %340 = vmatprep.mubr.msk.f32.mxu1 %vm41_vm1, %v26_v15 }
  0x14   :  { %329 = vmatmul.mubr.msk.f32.gmra.mrb[4].mxu0 %vm41_vm1, %v19_v16  ;;  %341 = vmatmul.mubr.msk.f32.gmra.mrb[4].mxu1 %vm41_vm1, %v27_v17 }
  0x15   :  { %331 = vmatprep.mubr.msk.f32.mxu0 %vm41_vm1, %v20_v18  ;;  %343 = vmatprep.mubr.msk.f32.mxu1 %vm41_vm1, %v28_v19 }
  0x18   :  { %332 = vmatmul.mubr.msk.f32.gmra.mrb[6].mxu0 %vm41_vm1, %v21_v20  ;;  %344 = vmatmul.mubr.msk.f32.gmra.mrb[6].mxu1 %vm41_vm1, %v29_v21 }
  0xdf   :  { %v324_v23 = vpop.f32.mrb[0].mxu0  ;;  %v336_v24 = vpop.f32.mrb[0].mxu1 }
  0xe0   :  { %v166_v25 = vadd.f32 %v324_v23, %v276_v22  ;;  %v206_v26 = vadd.f32 %v336_v24, %v276_v22  ;;  %v160_v27 = vpop.f32.mrb[1].mxu0  ;;  %v200_v28 = vpop.f32.mrb[1].mxu1 }
  0xe1   :  { %v161_v29 = vadd.f32 %v276_v22, %v160_v27  ;;  %v201_v30 = vadd.f32 %v276_v22, %v200_v28 }
  0xe2   :  { %v240_v31 = vmax.f32 %v166_v25, 0.0  ;;  %v248_v32 = vmax.f32 %v206_v26, 0.0 }
  0xe3   :  { %v239_v33 = vmax.f32 %v161_v29, 0.0  ;;  %v247_v34 = vmax.f32 %v201_v30, 0.0  ;;  %v327_v35 = vpop.f32.mrb[2].mxu0  ;;  %v339_v36 = vpop.f32.mrb[2].mxu1 }
  0xe4   :  { %257 = vst.msk [vmem:[%s528_s3 + $0x8] sm:$0xff] %vm255_vm4, %v240_v31  ;;  %265 = vst.msk [vmem:[%s528_s3 + $0x48] sm:$0xff] %vm255_vm4, %v248_v32  ;;  %v176_v37 = vadd.f32 %v327_v35, %v276_v22  ;;  %v216_v38 = vadd.f32 %v339_v36, %v276_v22  ;;  %v170_v39 = vpop.f32.mrb[3].mxu0  ;;  %v210_v40 = vpop.f32.mrb[3].mxu1 }
  0xe5   :  { %256 = vst.msk [vmem:[%s528_s3] sm:$0xff] %vm255_vm4, %v239_v33  ;;  %264 = vst.msk [vmem:[%s528_s3 + $0x40] sm:$0xff] %vm255_vm4, %v247_v34  ;;  %v171_v41 = vadd.f32 %v276_v22, %v170_v39  ;;  %v211_v42 = vadd.f32 %v276_v22, %v210_v40 }
  0xe6   :  { %v242_v43 = vmax.f32 %v176_v37, 0.0  ;;  %v250_v44 = vmax.f32 %v216_v38, 0.0 }
  0xe7   :  { %v241_v45 = vmax.f32 %v171_v41, 0.0  ;;  %v249_v46 = vmax.f32 %v211_v42, 0.0  ;;  %v330_v47 = vpop.f32.mrb[4].mxu0  ;;  %v342_v48 = vpop.f32.mrb[4].mxu1 }
  0xe8   :  { %259 = vst.msk [vmem:[%s528_s3 + $0x18] sm:$0xff] %vm255_vm4, %v242_v43  ;;  %267 = vst.msk [vmem:[%s528_s3 + $0x58] sm:$0xff] %vm255_vm4, %v250_v44  ;;  %v186_v49 = vadd.f32 %v330_v47, %v276_v22  ;;  %v226_v50 = vadd.f32 %v342_v48, %v276_v22  ;;  %v180_v51 = vpop.f32.mrb[5].mxu0  ;;  %v220_v52 = vpop.f32.mrb[5].mxu1 }
  0xe9   :  { %258 = vst.msk [vmem:[%s528_s3 + $0x10] sm:$0xff] %vm255_vm4, %v241_v45  ;;  %266 = vst.msk [vmem:[%s528_s3 + $0x50] sm:$0xff] %vm255_vm4, %v249_v46  ;;  %v181_v53 = vadd.f32 %v276_v22, %v180_v51  ;;  %v221_v54 = vadd.f32 %v276_v22, %v220_v52 }
  0xea   :  { %v244_v55 = vmax.f32 %v186_v49, 0.0  ;;  %v252_v56 = vmax.f32 %v226_v50, 0.0 }
  0xeb   :  { %v243_v57 = vmax.f32 %v181_v53, 0.0  ;;  %v251_v58 = vmax.f32 %v221_v54, 0.0  ;;  %v333_v59 = vpop.f32.mrb[6].mxu0  ;;  %v345_v60 = vpop.f32.mrb[6].mxu1 }
  0xec   :  { %261 = vst.msk [vmem:[%s528_s3 + $0x28] sm:$0xff] %vm255_vm4, %v244_v55  ;;  %269 = vst.msk [vmem:[%s528_s3 + $0x68] sm:$0xff] %vm255_vm4, %v252_v56  ;;  %v196_v61 = vadd.f32 %v333_v59, %v276_v22  ;;  %v236_v62 = vadd.f32 %v345_v60, %v276_v22  ;;  %v190_v63 = vpop.f32.mrb[7].mxu0  ;;  %v230_v0 = vpop.f32.mrb[7].mxu1 }
  0xed   :  { %260 = vst.msk [vmem:[%s528_s3 + $0x20] sm:$0xff] %vm255_vm4, %v243_v57  ;;  %268 = vst.msk [vmem:[%s528_s3 + $0x60] sm:$0xff] %vm255_vm4, %v251_v58  ;;  %v191_v1 = vadd.f32 %v276_v22, %v190_v63  ;;  %v231_v2 = vadd.f32 %v276_v22, %v230_v0 }
  0xee   :  { %v246_v3 = vmax.f32 %v196_v61, 0.0  ;;  %v254_v4 = vmax.f32 %v236_v62, 0.0 }
  0xef   :  { %v245_v5 = vmax.f32 %v191_v1, 0.0  ;;  %v253_v6 = vmax.f32 %v231_v2, 0.0 }
  0xf0   :  { %263 = vst.msk [vmem:[%s528_s3 + $0x38] sm:$0xff] %vm255_vm4, %v246_v3  ;;  %271 = vst.msk [vmem:[%s528_s3 + $0x78] sm:$0xff] %vm255_vm4, %v254_v4 }
  0xf1   :  { %262 = vst.msk [vmem:[%s528_s3 + $0x30] sm:$0xff] %vm255_vm4, %v245_v5  ;;  %270 = vst.msk [vmem:[%s528_s3 + $0x70] sm:$0xff] %vm255_vm4, %v253_v6 }

// kernel: mobilenet_v1_forward.15
= control target key start
LH: loop header
LB: loop body
LE: loop exit
PB: predicated region body
PF: predicated region fallthrough
CT: control target
= control target key end

     0   :  { %s1421_s18 = smov 0   ;;  %s1670_s0 = inlined_call_operand.vmem [shape: f32[2,10,10,8], index: 0, kind: input, shape index: {}]   ;;  %s1671_s1 = inlined_call_operand.vmem [shape: f32[9,1,8], index: 1, kind: input, shape index: {}]   ;;  %s1672_s2 = inlined_call_operand.vmem [shape: f32[1,8], index: 2, kind: input, shape index: {}]   ;;  %s1673_s3 = inlined_call_operand.vmem [shape: f32[8,16], index: 3, kind: input, shape index: {}]   ;;  %s1674_s4 = inlined_call_operand.vmem [shape: f32[1,16], index: 4, kind: input, shape index: {}]   ;;  %s1675_s5 = inlined_call_operand.vmem [shape: f32[2,8,8,16], index: 5, kind: output, shape index: {}]  }
   0x1 LB: > { %s1208_s19 = sadd.s32 4294967295, %s1387_s18   ;;  %p1212_p0 = scmp.ge.s32.totalorder %s1387_s18, 1  ;;  %s1387_s18 = sphi %s1421_s18, %s15_s18  }
   0x2   : > { %p187_p1 = scmp.lt.s32.totalorder %s1387_s18, 3 }
   0x4   : > { %p188_p2 = pnand %p1212_p0, %p187_p1 }
   0x5   : > { %v1432_v0 = vld [vmem:[%s1673_s3] sm:$0xff] (!%p188_p2)  ;;  %p215_p3 = scmp.lt.s32.totalorder (!%p188_p2), %s1208_s19, 1  ;;  %v1389_v1 = vmov (!%p188_p2), 0.0   ;;  %vm1390_vm0 = vmmov (!%p188_p2), 0   ;;  %v1495_v10 = vld [vmem:[%s1671_s1 + $0x8] ss:$0 sm:$0xff] (!%p188_p2) }
   0x6   : > { %191 = sbr.rel (%p188_p2) target bundleno = 288 (0x120), region = 40  ;;  %1330 = vmatprep.subr.mxu0 (!%p188_p2), %v1389_v1  ;;  %1335 = vmatprep.subr.mxu1 (!%p188_p2), %v1389_v1  ;;  %v1447_v2 = vld [vmem:[%s1671_s1] ss:$0 sm:$0xff] (!%p188_p2)  ;;  %v1455_v3 = vld [vmem:[%s1671_s1 + $0x1] ss:$0 sm:$0xff] (!%p188_p2)  ;;  %vm334_vm1 = vcmask (!%p188_p2), 64512  }
   0x7   : > { %1331 = vmatpush3.msra.mxu0 (!%p188_p2), %v1432_v0  ;;  %1336 = vmatpush3.msra.mxu1 (!%p188_p2), %v1432_v0  ;;  %v1460_v4 = vld [vmem:[%s1671_s1 + $0x2] ss:$0 sm:$0xff] (!%p188_p2)  ;;  %v1465_v5 = vld [vmem:[%s1671_s1 + $0x3] ss:$0 sm:$0xff] (!%p188_p2)  ;;  %v1470_v6 = vld [vmem:[%s1671_s1 + $0x4] ss:$0 sm:$0xff] (!%p188_p2) }
   0x8   : > { %1332 = vmatprep.mubr.msk.f32.mxu0 (!%p188_p2), %vm1390_vm0, %v1389_v1  ;;  %1337 = vmatprep.mubr.msk.f32.mxu1 (!%p188_p2), %vm1390_vm0, %v1389_v1  ;;  %v1475_v7 = vld [vmem:[%s1671_s1 + $0x5] ss:$0 sm:$0xff] (!%p188_p2)  ;;  %v1485_v8 = vld [vmem:[%s1671_s1 + $0x6] ss:$0 sm:$0xff] (!%p188_p2)  ;;  %v1490_v9 = vld [vmem:[%s1671_s1 + $0x7] ss:$0 sm:$0xff] (!%p188_p2) }
   0x9   : > { %1340 = vmatprep.subr.mxu0 (!%p188_p2), %v1389_v1  ;;  %1345 = vmatprep.subr.mxu1 (!%p188_p2), %v1389_v1  ;;  %vm409_vm2 = vcmask (!%p188_p2), 130048  }
   0xd   : > { %s1677_s19 = smov (!%p215_p3, %s1208_s19), 1 }
   0xe   : > { %s1370_s24 = smul.u32 160, %s1677_s19  ;;  %s1313_s25 = sshll.u32 %s1677_s19, 6 }
   0xf   : > { %s1649_s28 = scalar_lea.vmem %s1675_s5, %s1313_s25 }
  0x10   : > { %s1480_s12 = scalar_lea.vmem %s1670_s0, %s1370_s24 }
  0x11   : > { %v237_v11 = vld [vmem:[%s1480_s12] sm:$0xff]  ;;  %v1219_v17 = vld [vmem:[%s1480_s12 + $0x10] sm:$0xff] }
  0x12   : > { %v246_v12 = vld [vmem:[%s1480_s12 + $0x1] sm:$0xff]  ;;  %v244_v14 = vmul.f32 %v1447_v2, %v237_v11  ;;  %v1221_v18 = vld [vmem:[%s1480_s12 + $0x11] sm:$0xff]  ;;  %v272_v20 = vmul.f32 %v1465_v5, %v1219_v17  ;;  %v412_v22 = vmul.f32 %v1219_v17, %v1447_v2 }
  0x13   : > { %v255_v13 = vld [vmem:[%s1480_s12 + $0x2] sm:$0xff]  ;;  %v253_v15 = vmul.f32 %v1455_v3, %v246_v12  ;;  %v1223_v19 = vld [vmem:[%s1480_s12 + $0x12] sm:$0xff]  ;;  %v281_v24 = vmul.f32 %v1470_v6, %v1221_v18  ;;  %v415_v31 = vmul.f32 %v1221_v18, %v1455_v3 }
  0x14   : > { %v262_v16 = vmul.f32 %v1460_v4, %v255_v13  ;;  %v1225_v21 = vld [vmem:[%s1480_s12 + $0x20] sm:$0xff]  ;;  %v290_v25 = vmul.f32 %v1475_v7, %v1223_v19  ;;  %v418_v32 = vmul.f32 %v1223_v19, %v1460_v4  ;;  %v1240_v37 = vld [vmem:[%s1480_s12 + $0x30] sm:$0xff] }
  0x15   : > { %v254_v23 = vadd.f32 %v253_v15, %v244_v14  ;;  %v300_v26 = vmul.f32 %v1485_v8, %v1225_v21  ;;  %v1227_v27 = vld [vmem:[%s1480_s12 + $0x21] sm:$0xff]  ;;  %v421_v34 = vmul.f32 %v1225_v21, %v1465_v5  ;;  %v416_v38 = vadd.f32 %v415_v31, %v412_v22  ;;  %v1241_v40 = vld [vmem:[%s1480_s12 + $0x31] sm:$0xff] }
  0x16   : > { %v1229_v28 = vld [vmem:[%s1480_s12 + $0x22] sm:$0xff]  ;;  %v309_v29 = vmul.f32 %v1490_v9, %v1227_v27  ;;  %v424_v35 = vmul.f32 %v1227_v27, %v1470_v6  ;;  %v431_v39 = vmul.f32 %v1240_v37, %v1485_v8  ;;  %v1242_v41 = vld [vmem:[%s1480_s12 + $0x32] sm:$0xff]  ;;  %v518_v42 = vmul.f32 %v1225_v21, %v1447_v2 }
  0x17   : > { %v318_v30 = vmul.f32 %v1495_v10, %v1229_v28  ;;  %v263_v33 = vadd.f32 %v262_v16, %v254_v23  ;;  %v427_v36 = vmul.f32 %v1229_v28, %v1475_v7  ;;  %v521_v43 = vmul.f32 %v1227_v27, %v1455_v3  ;;  %v1251_v52 = vld [vmem:[%s1480_s12 + $0x40] sm:$0xff]  ;;  %v1262_v18 = vld [vmem:[%s1480_s12 + $0x50] sm:$0xff] }
  0x18   : > { %v434_v45 = vmul.f32 %v1241_v40, %v1490_v9  ;;  %v437_v46 = vmul.f32 %v1242_v41, %v1495_v10  ;;  %v524_v47 = vmul.f32 %v1229_v28, %v1460_v4  ;;  %v419_v48 = vadd.f32 %v418_v32, %v416_v38  ;;  %v1252_v59 = vld [vmem:[%s1480_s12 + $0x41] sm:$0xff]  ;;  %v1263_v27 = vld [vmem:[%s1480_s12 + $0x51] sm:$0xff] }
  0x19   : > { %v273_v44 = vadd.f32 %v272_v20, %v263_v33  ;;  %v522_v49 = vadd.f32 %v521_v43, %v518_v42  ;;  %v527_v50 = vmul.f32 %v1240_v37, %v1465_v5  ;;  %v530_v51 = vmul.f32 %v1241_v40, %v1470_v6  ;;  %v1253_v60 = vld [vmem:[%s1480_s12 + $0x42] sm:$0xff]  ;;  %v1264_v38 = vld [vmem:[%s1480_s12 + $0x52] sm:$0xff] }
  0x1a   : > { %v533_v54 = vmul.f32 %v1242_v41, %v1475_v7  ;;  %v537_v55 = vmul.f32 %v1251_v52, %v1485_v8  ;;  %v624_v56 = vmul.f32 %v1240_v37, %v1447_v2  ;;  %v422_v57 = vadd.f32 %v421_v34, %v419_v48  ;;  %v1556_v34 = vld [vmem:[%s1672_s2] ss:$0 sm:$0xff] }
  0x1b   : > { %v282_v53 = vadd.f32 %v281_v24, %v273_v44  ;;  %v525_v58 = vadd.f32 %v524_v47, %v522_v49  ;;  %v627_v61 = vmul.f32 %v1241_v40, %v1455_v3  ;;  %v630_v62 = vmul.f32 %v1242_v41, %v1460_v4 }
  0x1c   : > { %v540_v11 = vmul.f32 %v1252_v59, %v1490_v9  ;;  %v543_v12 = vmul.f32 %v1253_v60, %v1495_v10  ;;  %v633_v13 = vmul.f32 %v1251_v52, %v1465_v5  ;;  %v425_v14 = vadd.f32 %v424_v35, %v422_v57 }
  0x1d   : > { %v291_v63 = vadd.f32 %v290_v25, %v282_v53  ;;  %v528_v15 = vadd.f32 %v527_v50, %v525_v58  ;;  %v628_v16 = vadd.f32 %v627_v61, %v624_v56  ;;  %v636_v17 = vmul.f32 %v1252_v59, %v1470_v6  ;;  %v1273_v50 = vld [vmem:[%s1480_s12 + $0x60] sm:$0xff] }
  0x1e   : > { %v639_v20 = vmul.f32 %v1253_v60, %v1475_v7  ;;  %v643_v21 = vmul.f32 %v1262_v18, %v1485_v8  ;;  %v730_v22 = vmul.f32 %v1251_v52, %v1447_v2  ;;  %v428_v23 = vadd.f32 %v427_v36, %v425_v14  ;;  %v1275_v14 = vld [vmem:[%s1480_s12 + $0x62] sm:$0xff] }
  0x1f   : > { %v301_v19 = vadd.f32 %v300_v26, %v291_v63  ;;  %v531_v24 = vadd.f32 %v530_v51, %v528_v15  ;;  %v631_v25 = vadd.f32 %v630_v62, %v628_v16  ;;  %v733_v28 = vmul.f32 %v1252_v59, %v1455_v3 }
  0x20   : > { %v646_v32 = vmul.f32 %v1263_v27, %v1490_v9  ;;  %v736_v33 = vmul.f32 %v1253_v60, %v1460_v4  ;;  %v739_v26 = vmul.f32 %v1262_v18, %v1465_v5  ;;  %v432_v35 = vadd.f32 %v431_v39, %v428_v23 }
  0x21   : > { %v310_v31 = vadd.f32 %v309_v29, %v301_v19  ;;  %v534_v36 = vadd.f32 %v533_v54, %v531_v24  ;;  %v634_v37 = vadd.f32 %v633_v13, %v631_v25  ;;  %v734_v40 = vadd.f32 %v733_v28, %v730_v22  ;;  %v1274_v13 = vld [vmem:[%s1480_s12 + $0x61] sm:$0xff] }
  0x22   : > { %v649_v29 = vmul.f32 %v1264_v38, %v1495_v10  ;;  %v742_v42 = vmul.f32 %v1263_v27, %v1470_v6  ;;  %v745_v43 = vmul.f32 %v1264_v38, %v1475_v7  ;;  %v435_v44 = vadd.f32 %v434_v45, %v432_v35 }
  0x23   : > { %v319_v41 = vadd.f32 %v318_v30, %v310_v31  ;;  %v538_v47 = vadd.f32 %v537_v55, %v534_v36  ;;  %v637_v48 = vadd.f32 %v636_v17, %v634_v37  ;;  %v737_v49 = vadd.f32 %v736_v33, %v734_v40  ;;  %v1285_v37 = vld [vmem:[%s1480_s12 + $0x71] sm:$0xff] }
  0x24   : > { %v749_v39 = vmul.f32 %v1273_v50, %v1485_v8  ;;  %v836_v52 = vmul.f32 %v1262_v18, %v1447_v2  ;;  %v839_v30 = vmul.f32 %v1263_v27, %v1455_v3  ;;  %v438_v53 = vadd.f32 %v437_v46, %v435_v44 }
  0x25   : > { %v326_v51 = vadd.f32 %v1556_v34, %v319_v41  ;;  %v541_v54 = vadd.f32 %v540_v11, %v538_v47  ;;  %v640_v56 = vadd.f32 %v639_v20, %v637_v48  ;;  %v740_v57 = vadd.f32 %v739_v26, %v737_v49  ;;  %v1284_v20 = vld [vmem:[%s1480_s12 + $0x70] sm:$0xff] }
  0x26   : > { %v840_v45 = vadd.f32 %v839_v30, %v836_v52  ;;  %v842_v55 = vmul.f32 %v1264_v38, %v1460_v4  ;;  %v845_v59 = vmul.f32 %v1273_v50, %v1465_v5  ;;  %v439_v60 = vadd.f32 %v1556_v34, %v438_v53 }
  0x27   : > { %v327_v58 = vmax.f32 %v326_v51, 0.0  ;;  %v544_v61 = vadd.f32 %v543_v12, %v541_v54  ;;  %v644_v62 = vadd.f32 %v643_v21, %v640_v56  ;;  %v743_v63 = vadd.f32 %v742_v42, %v740_v57  ;;  %v1295_v51 = vld [vmem:[%s1480_s12 + $0x80] sm:$0xff] }
  0x28   : > { %v752_v46 = vmul.f32 %v1274_v13, %v1490_v9  ;;  %v755_v11 = vmul.f32 %v1275_v14, %v1495_v10  ;;  %v843_v15 = vadd.f32 %v842_v55, %v840_v45  ;;  %v848_v16 = vmul.f32 %v1274_v13, %v1470_v6 }
  0x29   : > { %1333 = vmatmul.mubr.msk.f32.vlgmr.msra.gmra.mrb[0].mxu0 %vm334_vm1, %v327_v58  ;;  %v440_v17 = vmax.f32 %v439_v60, 0.0  ;;  %v545_v12 = vadd.f32 %v1556_v34, %v544_v61  ;;  %v647_v18 = vadd.f32 %v646_v32, %v644_v62  ;;  %v746_v19 = vadd.f32 %v745_v43, %v743_v63  ;;  %v1296_v58 = vld [vmem:[%s1480_s12 + $0x81] sm:$0xff] }
  0x2a   : > { %1341 = vmatpush3.msra.mxu0 %v1432_v0  ;;  %1342 = vmatprep.mubr.msk.f32.mxu0 %vm1390_vm0, %v1389_v1  ;;  %v846_v21 = vadd.f32 %v845_v59, %v843_v15  ;;  %v851_v22 = vmul.f32 %v1275_v14, %v1475_v7  ;;  %v855_v23 = vmul.f32 %v1284_v20, %v1485_v8 }
  0x2b   : > { %1350 = vmatprep.subr.mxu0 %v1389_v1  ;;  %v942_v24 = vmul.f32 %v1273_v50, %v1447_v2  ;;  %1338 = vmatmul.mubr.msk.f32.vlgmr.msra.gmra.mrb[0].mxu1 %vm334_vm1, %v440_v17  ;;  %v546_v25 = vmax.f32 %v545_v12, 0.0  ;;  %v650_v27 = vadd.f32 %v649_v29, %v647_v18  ;;  %v750_v28 = vadd.f32 %v749_v39, %v746_v19  ;;  %v1286_v29 = vld [vmem:[%s1480_s12 + $0x72] sm:$0xff] }
  0x2c   : > { %v945_v31 = vmul.f32 %v1274_v13, %v1455_v3  ;;  %1346 = vmatpush3.msra.mxu1 %v1432_v0  ;;  %1347 = vmatprep.mubr.msk.f32.mxu1 %vm1390_vm0, %v1389_v1  ;;  %v849_v32 = vadd.f32 %v848_v16, %v846_v21  ;;  %v948_v33 = vmul.f32 %v1275_v14, %v1460_v4  ;;  %v1307_v17 = vld [vmem:[%s1480_s12 + $0x91] sm:$0xff] }
  0x2d   : > { %v951_v26 = vmul.f32 %v1284_v20, %v1465_v5  ;;  %1355 = vmatprep.subr.mxu1 %v1389_v1  ;;  %1343 = vmatmul.mubr.msk.f32.vlgmr.msra.gmra.mrb[2].mxu0 %vm334_vm1, %v546_v25  ;;  %v651_v35 = vadd.f32 %v1556_v34, %v650_v27  ;;  %v753_v36 = vadd.f32 %v752_v46, %v750_v28  ;;  %v1308_v19 = vld [vmem:[%s1480_s12 + $0x92] sm:$0xff] }
  0x2e   : > { %v946_v38 = vadd.f32 %v945_v31, %v942_v24  ;;  %1351 = vmatpush3.msra.mxu0 %v1432_v0  ;;  %1352 = vmatprep.mubr.msk.f32.mxu0 %vm1390_vm0, %v1389_v1  ;;  %v852_v40 = vadd.f32 %v851_v22, %v849_v32  ;;  %v858_v41 = vmul.f32 %v1285_v37, %v1490_v9 }
  0x2f   : > { %v652_v42 = vmax.f32 %v651_v35, 0.0  ;;  %1360 = vmatprep.subr.mxu0 %v1389_v1  ;;  %v756_v43 = vadd.f32 %v755_v11, %v753_v36  ;;  %v954_v47 = vmul.f32 %v1285_v37, %v1470_v6  ;;  %v861_v49 = vmul.f32 %v1286_v29, %v1495_v10 }
  0x30   : > { %v949_v44 = vadd.f32 %v948_v33, %v946_v38  ;;  %v856_v48 = vadd.f32 %v855_v23, %v852_v40  ;;  %v957_v50 = vmul.f32 %v1286_v29, %v1475_v7  ;;  %v1048_v39 = vmul.f32 %v1284_v20, %v1447_v2 }
  0x31   : > { %1348 = vmatmul.mubr.msk.f32.vlgmr.msra.gmra.mrb[2].mxu1 %vm334_vm1, %v652_v42  ;;  %v757_v52 = vadd.f32 %v1556_v34, %v756_v43  ;;  %v1051_v53 = vmul.f32 %v1285_v37, %v1455_v3  ;;  %v1054_v54 = vmul.f32 %v1286_v29, %v1460_v4  ;;  %v961_v57 = vmul.f32 %v1295_v51, %v1485_v8  ;;  %v1297_v4 = vld [vmem:[%s1480_s12 + $0x82] sm:$0xff] }
  0x32   : > { %v952_v30 = vadd.f32 %v951_v26, %v949_v44  ;;  %1356 = vmatpush3.msra.mxu1 %v1432_v0  ;;  %1357 = vmatprep.mubr.msk.f32.mxu1 %vm1390_vm0, %v1389_v1  ;;  %v859_v56 = vadd.f32 %v858_v41, %v856_v48  ;;  %v1057_v59 = vmul.f32 %v1295_v51, %v1465_v5  ;;  %v1306_v5 = vld [vmem:[%s1480_s12 + $0x90] sm:$0xff] }
  0x33   : > { %1365 = vmatprep.subr.mxu1 %v1389_v1  ;;  %v758_v2 = vmax.f32 %v757_v52, 0.0  ;;  %v1052_v55 = vadd.f32 %v1051_v53, %v1048_v39  ;;  %v964_v61 = vmul.f32 %v1296_v58, %v1490_v9  ;;  %v1060_v63 = vmul.f32 %v1296_v58, %v1470_v6 }
  0x34   : > { %v955_v45 = vadd.f32 %v954_v47, %v952_v30  ;;  %v862_v3 = vadd.f32 %v861_v49, %v859_v56  ;;  %v967_v46 = vmul.f32 %v1297_v4, %v1495_v10  ;;  %v1063_v15 = vmul.f32 %v1297_v4, %v1475_v7 }
  0x35   : > { %1353 = vmatmul.mubr.msk.f32.vlgmr.msra.gmra.mrb[4].mxu0 %vm334_vm1, %v758_v2  ;;  %v1055_v62 = vadd.f32 %v1054_v54, %v1052_v55  ;;  %v1067_v6 = vmul.f32 %v1306_v5, %v1485_v8  ;;  %v1070_v22 = vmul.f32 %v1307_v17, %v1490_v9  ;;  %v1073_v24 = vmul.f32 %v1308_v19, %v1495_v10 }
  0x36   : > { %v958_v60 = vadd.f32 %v957_v50, %v955_v45  ;;  %v863_v13 = vadd.f32 %v1556_v34, %v862_v3  ;;  %1361 = vmatpush3.msra.mxu0 %v1432_v0  ;;  %1362 = vmatprep.mubr.msk.f32.mxu0 %vm1390_vm0, %v1389_v1 }
  0x37   : > { %v1058_v11 = vadd.f32 %v1057_v59, %v1055_v62 }
  0x38   : > { %v962_v14 = vadd.f32 %v961_v57, %v958_v60  ;;  %v864_v16 = vmax.f32 %v863_v13, 0.0 }
  0x39   : > { %v1061_v18 = vadd.f32 %v1060_v63, %v1058_v11 }
  0x3a   : > { %v965_v12 = vadd.f32 %v964_v61, %v962_v14  ;;  %1358 = vmatmul.mubr.msk.f32.vlgmr.msra.gmra.mrb[4].mxu1 %vm334_vm1, %v864_v16 }
  0x3b   : > { %1366 = vmatpush3.msra.mxu1 %v1432_v0  ;;  %1367 = vmatprep.mubr.msk.f32.mxu1 %vm1390_vm0, %v1389_v1  ;;  %v1064_v21 = vadd.f32 %v1063_v15, %v1061_v18  ;;  %v1232_v1 = vld [vmem:[%s1674_s4] ss:$0 sm:$0xff] }
  0x3c   : > { %v968_v20 = vadd.f32 %v967_v46, %v965_v12 }
  0x3d   : > { %v1068_v23 = vadd.f32 %v1067_v6, %v1064_v21 }
  0x3e   : > { %v969_v7 = vadd.f32 %v1556_v34, %v968_v20 }
  0x3f   : > { %v1071_v8 = vadd.f32 %v1070_v22, %v1068_v23 }
  0x40   : > { %v970_v25 = vmax.f32 %v969_v7, 0.0 }
  0x41   : > { %v1074_v27 = vadd.f32 %v1073_v24, %v1071_v8 }
  0x42   : > { %1363 = vmatmul.mubr.msk.f32.vlgmr.msra.gmra.mrb[6].mxu0 %vm334_vm1, %v970_v25 }
  0x43   : > { %v1075_v0 = vadd.f32 %v1556_v34, %v1074_v27 }
  0x45   : > { %v1076_v28 = vmax.f32 %v1075_v0, 0.0 }
  0x47   : > { %1368 = vmatmul.mubr.msk.f32.vlgmr.msra.gmra.mrb[6].mxu1 %vm334_vm1, %v1076_v28 }
  0xfc   : > { %v404_v9 = vpop.f32.mrb[0].mxu0 }
  0xfd   : > { %v405_v31 = vadd.f32 %v1232_v1, %v404_v9  ;;  %v1334_v32 = vpop.f32.mrb[1].mxu0 }
  0xfe   : > { %v510_v34 = vpop.f32.mrb[0].mxu1 }
  0xff   : > { %v408_v10 = vmax.f32 %v405_v31, 0.0  ;;  %v511_v33 = vadd.f32 %v1232_v1, %v510_v34  ;;  %v1339_v26 = vpop.f32.mrb[1].mxu1 }
 0x100   : > { %v616_v35 = vpop.f32.mrb[2].mxu0 }
 0x101   : > { %410 = vst.msk [vmem:[%s1649_s28] sm:$0xff] %vm409_vm2, %v408_v10  ;;  %v514_v36 = vmax.f32 %v511_v33, 0.0  ;;  %v617_v37 = vadd.f32 %v1232_v1, %v616_v35  ;;  %v1344_v38 = vpop.f32.mrb[3].mxu0 }
 0x103   : > { %1244 = vst.msk [vmem:[%s1649_s28 + $0x8] sm:$0xff] %vm409_vm2, %v514_v36  ;;  %v620_v40 = vmax.f32 %v617_v37, 0.0 }
 0x104   : > { %v722_v41 = vpop.f32.mrb[2].mxu1 }
 0x105   : > { %1255 = vst.msk [vmem:[%s1649_s28 + $0x10] sm:$0xff] %vm409_vm2, %v620_v40  ;;  %v723_v29 = vadd.f32 %v1232_v1, %v722_v41  ;;  %v1349_v42 = vpop.f32.mrb[3].mxu1 }
 0x107   : > { %v726_v43 = vmax.f32 %v723_v29, 0.0 }
 0x108   : > { %v828_v44 = vpop.f32.mrb[4].mxu0 }
 0x109   : > { %1266 = vst.msk [vmem:[%s1649_s28 + $0x18] sm:$0xff] %vm409_vm2, %v726_v43  ;;  %v829_v47 = vadd.f32 %v1232_v1, %v828_v44  ;;  %v1354_v48 = vpop.f32.mrb[5].mxu0 }
 0x10b   : > { %v832_v49 = vmax.f32 %v829_v47, 0.0 }
 0x10d   : > { %1277 = vst.msk [vmem:[%s1649_s28 + $0x20] sm:$0xff] %vm409_vm2, %v832_v49  ;;  %v934_v50 = vpop.f32.mrb[4].mxu1 }
 0x10e   : > { %v935_v51 = vadd.f32 %v1232_v1, %v934_v50  ;;  %v1359_v39 = vpop.f32.mrb[5].mxu1 }
 0x110   : > { %v938_v52 = vmax.f32 %v935_v51, 0.0 }
 0x112   : > { %1288 = vst.msk [vmem:[%s1649_s28 + $0x28] sm:$0xff] %vm409_vm2, %v938_v52 }
 0x115   : > { %v1040_v30 = vpop.f32.mrb[6].mxu0 }
 0x116   : > { %v1041_v53 = vadd.f32 %v1232_v1, %v1040_v30  ;;  %v1364_v54 = vpop.f32.mrb[7].mxu0 }
 0x118   : > { %v1044_v56 = vmax.f32 %v1041_v53, 0.0 }
 0x11a   : > { %1299 = vst.msk [vmem:[%s1649_s28 + $0x30] sm:$0xff] %vm409_vm2, %v1044_v56  ;;  %v1146_v57 = vpop.f32.mrb[6].mxu1 }
 0x11b   : > { %v1147_v58 = vadd.f32 %v1232_v1, %v1146_v57  ;;  %v1369_v2 = vpop.f32.mrb[7].mxu1 }
 0x11d   : > { %v1150_v45 = vmax.f32 %v1147_v58, 0.0 }
 0x11f   : > { %1310 = vst.msk [vmem:[%s1649_s28 + $0x38] sm:$0xff] %vm409_vm2, %v1150_v45 }
 0x120 PF: > { %s15_s18 = sadd.s32 1, %s1387_s18  }
 0x121   : > { %p12_p4 = scmp.ge.s32.totalorder %s15_s18, 4  }
 0x123   :  { %14 = sbr.rel (!%p12_p4) target bundleno = 1 (0x1), region = 86 }

// kernel: mobilenet_v1_forward.16
= control target key start
LH: loop header
LB: loop body
LE: loop exit
PB: predicated region body
PF: predicated region fallthrough
CT: control target
= control target key end

     0   :  { %s1472_s18 = smov 0   ;;  %s1724_s0 = inlined_call_operand.vmem [shape: f32[2,10,10,16], index: 0, kind: input, shape index: {}]   ;;  %s1725_s1 = inlined_call_operand.vmem [shape: f32[9,1,16], index: 1, kind: input, shape index: {}]   ;;  %s1726_s2 = inlined_call_operand.vmem [shape: f32[1,16], index: 2, kind: input, shape index: {}]   ;;  %s1727_s3 = inlined_call_operand.vmem [shape: f32[16,32], index: 3, kind: input, shape index: {}]   ;;  %s1728_s4 = inlined_call_operand.vmem [shape: f32[1,32], index: 4, kind: input, shape index: {}]   ;;  %s1729_s5 = inlined_call_operand.vmem [shape: f32[2,8,8,32], index: 5, kind: output, shape index: {}]  }
   0x1 LB: > { %s1209_s19 = sadd.s32 4294967295, %s1437_s18   ;;  %p1213_p0 = scmp.ge.s32.totalorder %s1437_s18, 1  ;;  %s1437_s18 = sphi %s1472_s18, %s15_s18  }
   0x2   : > { %p187_p1 = scmp.lt.s32.totalorder %s1437_s18, 3 }
   0x4   : > { %p188_p2 = pnand %p1213_p0, %p187_p1 }
   0x5   : > { %v235_v0 = vld [vmem:[%s1727_s3] sm:$0xff] (!%p188_p2)  ;;  %v236_v1 = vld [vmem:[%s1727_s3 + $0x8] sm:$0xff] (!%p188_p2)  ;;  %p215_p3 = scmp.lt.s32.totalorder (!%p188_p2), %s1209_s19, 1  ;;  %v1439_v2 = vmov (!%p188_p2), 0.0|0.0   ;;  %vm1440_vm0 = vmmov (!%p188_p2), 0   ;;  %v1441_v4 = vmov (!%p188_p2), 0.0  }
   0x6   : > { %191 = sbr.rel (%p188_p2) target bundleno = 288 (0x120), region = 40  ;;  %1395 = vmatprep.subr.bf16.mxu0 (!%p188_p2), %v1439_v2  ;;  %1398 = vmatprep.subr.bf16.mxu1 (!%p188_p2), %v1439_v2  ;;  %v1488_v3 = vpack.c.bf16 (!%p188_p2), %v236_v1, %v235_v0  ;;  %v1501_v5 = vld [vmem:[%s1725_s1] ss:$0 sm:$0xff] (!%p188_p2)  ;;  %v1509_v6 = vld [vmem:[%s1725_s1 + $0x1] ss:$0 sm:$0xff] (!%p188_p2)  ;;  %vm335_vm1 = vcmask (!%p188_p2), 130048  }
   0x7   : > { %1343 = vmatprep.mubr.msk.f32.mxu0 (!%p188_p2), %vm1440_vm0, %v1441_v4  ;;  %1350 = vmatprep.mubr.msk.f32.mxu1 (!%p188_p2), %vm1440_vm0, %v1441_v4  ;;  %v1514_v7 = vld [vmem:[%s1725_s1 + $0x2] ss:$0 sm:$0xff] (!%p188_p2)  ;;  %v1519_v8 = vld [vmem:[%s1725_s1 + $0x3] ss:$0 sm:$0xff] (!%p188_p2)  ;;  %v1524_v9 = vld [vmem:[%s1725_s1 + $0x4] ss:$0 sm:$0xff] (!%p188_p2) }
   0x8   : > { %1397 = vmatpush3.bf16.msra.mxu0 (!%p188_p2), %v1488_v3  ;;  %1400 = vmatpush3.bf16.msra.mxu1 (!%p188_p2), %v1488_v3  ;;  %v1529_v10 = vld [vmem:[%s1725_s1 + $0x5] ss:$0 sm:$0xff] (!%p188_p2)  ;;  %v1539_v11 = vld [vmem:[%s1725_s1 + $0x6] ss:$0 sm:$0xff] (!%p188_p2)  ;;  %v1544_v12 = vld [vmem:[%s1725_s1 + $0x7] ss:$0 sm:$0xff] (!%p188_p2) }
   0x9   : > { %1401 = vmatprep.subr.bf16.mxu0 (!%p188_p2), %v1439_v2  ;;  %1404 = vmatprep.subr.bf16.mxu1 (!%p188_p2), %v1439_v2  ;;  %v1549_v13 = vld [vmem:[%s1725_s1 + $0x8] ss:$0 sm:$0xff] (!%p188_p2)  ;;  %vm410_vm2 = vcmask (!%p188_p2), 261120  }
   0xd   : > { %s1731_s19 = smov (!%p215_p3, %s1209_s19), 1 }
   0xe   : > { %s1419_s26 = smul.u32 160, %s1731_s19  ;;  %s1314_s27 = sshll.u32 %s1731_s19, 6 }
   0xf   : > { %s1703_s30 = scalar_lea.vmem %s1729_s5, %s1314_s27 }
  0x10   : > { %s1534_s14 = scalar_lea.vmem %s1724_s0, %s1419_s26 }
  0x11   : > { %v238_v14 = vld [vmem:[%s1534_s14] sm:$0xff]  ;;  %v1220_v20 = vld [vmem:[%s1534_s14 + $0x10] sm:$0xff] }
  0x12   : > { %v247_v15 = vld [vmem:[%s1534_s14 + $0x1] sm:$0xff]  ;;  %v245_v17 = vmul.f32 %v1501_v5, %v238_v14  ;;  %v1222_v21 = vld [vmem:[%s1534_s14 + $0x11] sm:$0xff]  ;;  %v273_v23 = vmul.f32 %v1519_v8, %v1220_v20  ;;  %v413_v25 = vmul.f32 %v1220_v20, %v1501_v5 }
  0x13   : > { %v256_v16 = vld [vmem:[%s1534_s14 + $0x2] sm:$0xff]  ;;  %v254_v18 = vmul.f32 %v1509_v6, %v247_v15  ;;  %v1224_v22 = vld [vmem:[%s1534_s14 + $0x12] sm:$0xff]  ;;  %v282_v27 = vmul.f32 %v1524_v9, %v1222_v21  ;;  %v416_v34 = vmul.f32 %v1222_v21, %v1509_v6 }
  0x14   : > { %v263_v19 = vmul.f32 %v1514_v7, %v256_v16  ;;  %v1226_v24 = vld [vmem:[%s1534_s14 + $0x20] sm:$0xff]  ;;  %v291_v28 = vmul.f32 %v1529_v10, %v1224_v22  ;;  %v419_v35 = vmul.f32 %v1224_v22, %v1514_v7  ;;  %v1241_v40 = vld [vmem:[%s1534_s14 + $0x30] sm:$0xff] }
  0x15   : > { %v255_v26 = vadd.f32 %v254_v18, %v245_v17  ;;  %v301_v29 = vmul.f32 %v1539_v11, %v1226_v24  ;;  %v1228_v30 = vld [vmem:[%s1534_s14 + $0x21] sm:$0xff]  ;;  %v422_v37 = vmul.f32 %v1226_v24, %v1519_v8  ;;  %v417_v41 = vadd.f32 %v416_v34, %v413_v25  ;;  %v1242_v43 = vld [vmem:[%s1534_s14 + $0x31] sm:$0xff] }
  0x16   : > { %v1230_v31 = vld [vmem:[%s1534_s14 + $0x22] sm:$0xff]  ;;  %v310_v32 = vmul.f32 %v1544_v12, %v1228_v30  ;;  %v425_v38 = vmul.f32 %v1228_v30, %v1524_v9  ;;  %v432_v42 = vmul.f32 %v1241_v40, %v1539_v11  ;;  %v1243_v44 = vld [vmem:[%s1534_s14 + $0x32] sm:$0xff]  ;;  %v519_v45 = vmul.f32 %v1226_v24, %v1501_v5 }
  0x17   : > { %v319_v33 = vmul.f32 %v1549_v13, %v1230_v31  ;;  %v264_v36 = vadd.f32 %v263_v19, %v255_v26  ;;  %v428_v39 = vmul.f32 %v1230_v31, %v1529_v10  ;;  %v522_v46 = vmul.f32 %v1228_v30, %v1509_v6  ;;  %v1252_v55 = vld [vmem:[%s1534_s14 + $0x40] sm:$0xff]  ;;  %v1263_v22 = vld [vmem:[%s1534_s14 + $0x50] sm:$0xff] }
  0x18   : > { %v435_v48 = vmul.f32 %v1242_v43, %v1544_v12  ;;  %v438_v49 = vmul.f32 %v1243_v44, %v1549_v13  ;;  %v525_v50 = vmul.f32 %v1230_v31, %v1514_v7  ;;  %v420_v51 = vadd.f32 %v419_v35, %v417_v41  ;;  %v1253_v62 = vld [vmem:[%s1534_s14 + $0x41] sm:$0xff]  ;;  %v1264_v31 = vld [vmem:[%s1534_s14 + $0x51] sm:$0xff] }
  0x19   : > { %v274_v47 = vadd.f32 %v273_v23, %v264_v36  ;;  %v523_v52 = vadd.f32 %v522_v46, %v519_v45  ;;  %v528_v53 = vmul.f32 %v1241_v40, %v1519_v8  ;;  %v531_v54 = vmul.f32 %v1242_v43, %v1524_v9  ;;  %v1254_v63 = vld [vmem:[%s1534_s14 + $0x42] sm:$0xff] }
  0x1a   : > { %v534_v57 = vmul.f32 %v1243_v44, %v1529_v10  ;;  %v538_v58 = vmul.f32 %v1252_v55, %v1539_v11  ;;  %v625_v59 = vmul.f32 %v1241_v40, %v1501_v5  ;;  %v423_v60 = vadd.f32 %v422_v37, %v420_v51 }
  0x1b   : > { %v283_v56 = vadd.f32 %v282_v27, %v274_v47  ;;  %v526_v61 = vadd.f32 %v525_v50, %v523_v52  ;;  %v628_v0 = vmul.f32 %v1242_v43, %v1509_v6  ;;  %v631_v1 = vmul.f32 %v1243_v44, %v1514_v7  ;;  %v1265_v43 = vld [vmem:[%s1534_s14 + $0x52] sm:$0xff] }
  0x1c   : > { %v541_v15 = vmul.f32 %v1253_v62, %v1544_v12  ;;  %v544_v16 = vmul.f32 %v1254_v63, %v1549_v13  ;;  %v634_v17 = vmul.f32 %v1252_v55, %v1519_v8  ;;  %v426_v18 = vadd.f32 %v425_v38, %v423_v60  ;;  %v1610_v38 = vld [vmem:[%s1726_s2] ss:$0 sm:$0xff] }
  0x1d   : > { %v292_v14 = vadd.f32 %v291_v28, %v283_v56  ;;  %v529_v19 = vadd.f32 %v528_v53, %v526_v61  ;;  %v629_v20 = vadd.f32 %v628_v0, %v625_v59  ;;  %v637_v21 = vmul.f32 %v1253_v62, %v1524_v9 }
  0x1e   : > { %v640_v24 = vmul.f32 %v1254_v63, %v1529_v10  ;;  %v644_v25 = vmul.f32 %v1263_v22, %v1539_v11  ;;  %v731_v26 = vmul.f32 %v1252_v55, %v1501_v5  ;;  %v429_v27 = vadd.f32 %v428_v39, %v426_v18  ;;  %v1275_v18 = vld [vmem:[%s1534_s14 + $0x61] sm:$0xff] }
  0x1f   : > { %v302_v23 = vadd.f32 %v301_v29, %v292_v14  ;;  %v532_v28 = vadd.f32 %v531_v54, %v529_v19  ;;  %v632_v30 = vadd.f32 %v631_v1, %v629_v20  ;;  %v734_v34 = vmul.f32 %v1253_v62, %v1509_v6  ;;  %v1274_v54 = vld [vmem:[%s1534_s14 + $0x60] sm:$0xff] }
  0x20   : > { %v647_v36 = vmul.f32 %v1264_v31, %v1544_v12  ;;  %v737_v37 = vmul.f32 %v1254_v63, %v1514_v7  ;;  %v740_v29 = vmul.f32 %v1263_v22, %v1519_v8  ;;  %v433_v40 = vadd.f32 %v432_v42, %v429_v27  ;;  %v1276_v19 = vld [vmem:[%s1534_s14 + $0x62] sm:$0xff] }
  0x21   : > { %v311_v35 = vadd.f32 %v310_v32, %v302_v23  ;;  %v535_v39 = vadd.f32 %v534_v57, %v532_v28  ;;  %v635_v41 = vadd.f32 %v634_v17, %v632_v30  ;;  %v735_v44 = vadd.f32 %v734_v34, %v731_v26 }
  0x22   : > { %v650_v32 = vmul.f32 %v1265_v43, %v1549_v13  ;;  %v743_v46 = vmul.f32 %v1264_v31, %v1524_v9  ;;  %v746_v47 = vmul.f32 %v1265_v43, %v1529_v10  ;;  %v436_v50 = vadd.f32 %v435_v48, %v433_v40 }
  0x23   : > { %v320_v45 = vadd.f32 %v319_v33, %v311_v35  ;;  %v539_v51 = vadd.f32 %v538_v58, %v535_v39  ;;  %v638_v52 = vadd.f32 %v637_v21, %v635_v41  ;;  %v738_v53 = vadd.f32 %v737_v37, %v735_v44 }
  0x24   : > { %v750_v42 = vmul.f32 %v1274_v54, %v1539_v11  ;;  %v837_v56 = vmul.f32 %v1263_v22, %v1501_v5  ;;  %v840_v33 = vmul.f32 %v1264_v31, %v1509_v6  ;;  %v439_v57 = vadd.f32 %v438_v49, %v436_v50 }
  0x25   : > { %v327_v55 = vadd.f32 %v1610_v38, %v320_v45  ;;  %v542_v59 = vadd.f32 %v541_v15, %v539_v51  ;;  %v641_v60 = vadd.f32 %v640_v24, %v638_v52  ;;  %v741_v61 = vadd.f32 %v740_v29, %v738_v53 }
  0x26   : > { %v841_v48 = vadd.f32 %v840_v33, %v837_v56  ;;  %v843_v58 = vmul.f32 %v1265_v43, %v1514_v7  ;;  %v846_v63 = vmul.f32 %v1274_v54, %v1519_v8  ;;  %v440_v0 = vadd.f32 %v1610_v38, %v439_v57  ;;  %v1286_v43 = vld [vmem:[%s1534_s14 + $0x71] sm:$0xff] }
  0x27   : > { %v328_v62 = vmax.f32 %v327_v55, 0.0  ;;  %v545_v1 = vadd.f32 %v544_v16, %v542_v59  ;;  %v645_v14 = vadd.f32 %v644_v25, %v641_v60  ;;  %v744_v17 = vadd.f32 %v743_v46, %v741_v61  ;;  %v1285_v25 = vld [vmem:[%s1534_s14 + $0x70] sm:$0xff] }
  0x28   : > { %v753_v49 = vmul.f32 %v1275_v18, %v1544_v12  ;;  %v756_v15 = vmul.f32 %v1276_v19, %v1549_v13  ;;  %v844_v20 = vadd.f32 %v843_v58, %v841_v48  ;;  %v849_v21 = vmul.f32 %v1275_v18, %v1524_v9  ;;  %v1287_v46 = vld [vmem:[%s1534_s14 + $0x72] sm:$0xff]  ;;  %v1297_v48 = vld [vmem:[%s1534_s14 + $0x81] sm:$0xff] }
  0x29   : > { %1344 = vmatmul.mubr.msk.f32.vlgmr.msra.gmra.mrb[0].mxu0 %vm335_vm1, %v328_v62  ;;  %v441_v22 = vmax.f32 %v440_v0, 0.0  ;;  %v546_v16 = vadd.f32 %v1610_v38, %v545_v1  ;;  %v648_v23 = vadd.f32 %v647_v36, %v645_v14  ;;  %v747_v24 = vadd.f32 %v746_v47, %v744_v17 }
  0x2a   : > { %1403 = vmatpush3.bf16.msra.mxu0 %v1488_v3  ;;  %1357 = vmatprep.mubr.msk.f32.mxu0 %vm1440_vm0, %v1441_v4  ;;  %v847_v26 = vadd.f32 %v846_v63, %v844_v20  ;;  %v852_v27 = vmul.f32 %v1276_v19, %v1529_v10  ;;  %v856_v28 = vmul.f32 %v1285_v25, %v1539_v11 }
  0x2b   : > { %1407 = vmatprep.subr.bf16.mxu0 %v1439_v2  ;;  %v943_v30 = vmul.f32 %v1274_v54, %v1501_v5  ;;  %1351 = vmatmul.mubr.msk.f32.vlgmr.msra.gmra.mrb[0].mxu1 %vm335_vm1, %v441_v22  ;;  %v547_v31 = vmax.f32 %v546_v16, 0.0  ;;  %v651_v34 = vadd.f32 %v650_v32, %v648_v23  ;;  %v751_v35 = vadd.f32 %v750_v42, %v747_v24  ;;  %v1296_v42 = vld [vmem:[%s1534_s14 + $0x80] sm:$0xff]  ;;  %v1308_v22 = vld [vmem:[%s1534_s14 + $0x91] sm:$0xff] }
  0x2c   : > { %v946_v37 = vmul.f32 %v1275_v18, %v1509_v6  ;;  %1406 = vmatpush3.bf16.msra.mxu1 %v1488_v3  ;;  %1364 = vmatprep.mubr.msk.f32.mxu1 %vm1440_vm0, %v1441_v4  ;;  %v850_v36 = vadd.f32 %v849_v21, %v847_v26  ;;  %v949_v29 = vmul.f32 %v1276_v19, %v1514_v7  ;;  %v1309_v24 = vld [vmem:[%s1534_s14 + $0x92] sm:$0xff] }
  0x2d   : > { %v952_v40 = vmul.f32 %v1285_v25, %v1519_v8  ;;  %1410 = vmatprep.subr.bf16.mxu1 %v1439_v2  ;;  %1358 = vmatmul.mubr.msk.f32.vlgmr.msra.gmra.mrb[2].mxu0 %vm335_vm1, %v547_v31  ;;  %v652_v39 = vadd.f32 %v1610_v38, %v651_v34  ;;  %v754_v41 = vadd.f32 %v753_v49, %v751_v35 }
  0x2e   : > { %v947_v44 = vadd.f32 %v946_v37, %v943_v30  ;;  %1409 = vmatpush3.bf16.msra.mxu0 %v1488_v3  ;;  %1371 = vmatprep.mubr.msk.f32.mxu0 %vm1440_vm0, %v1441_v4  ;;  %v853_v45 = vadd.f32 %v852_v27, %v850_v36  ;;  %v859_v32 = vmul.f32 %v1286_v43, %v1544_v12 }
  0x2f   : > { %v653_v47 = vmax.f32 %v652_v39, 0.0  ;;  %1413 = vmatprep.subr.bf16.mxu0 %v1439_v2  ;;  %v757_v50 = vadd.f32 %v756_v15, %v754_v41  ;;  %v955_v52 = vmul.f32 %v1286_v43, %v1524_v9  ;;  %v862_v54 = vmul.f32 %v1287_v46, %v1549_v13 }
  0x30   : > { %v950_v51 = vadd.f32 %v949_v29, %v947_v44  ;;  %v857_v53 = vadd.f32 %v856_v28, %v853_v45  ;;  %v958_v55 = vmul.f32 %v1287_v46, %v1529_v10  ;;  %v1049_v56 = vmul.f32 %v1285_v25, %v1501_v5 }
  0x31   : > { %1365 = vmatmul.mubr.msk.f32.vlgmr.msra.gmra.mrb[2].mxu1 %vm335_vm1, %v653_v47  ;;  %v758_v33 = vadd.f32 %v1610_v38, %v757_v50  ;;  %v1052_v59 = vmul.f32 %v1286_v43, %v1509_v6  ;;  %v1055_v60 = vmul.f32 %v1287_v46, %v1514_v7  ;;  %v962_v62 = vmul.f32 %v1296_v42, %v1539_v11  ;;  %v1298_v7 = vld [vmem:[%s1534_s14 + $0x82] sm:$0xff] }
  0x32   : > { %v953_v57 = vadd.f32 %v952_v40, %v950_v51  ;;  %1412 = vmatpush3.bf16.msra.mxu1 %v1488_v3  ;;  %1378 = vmatprep.mubr.msk.f32.mxu1 %vm1440_vm0, %v1441_v4  ;;  %v860_v61 = vadd.f32 %v859_v32, %v857_v53  ;;  %v1058_v0 = vmul.f32 %v1296_v42, %v1519_v8 }
  0x33   : > { %1416 = vmatprep.subr.bf16.mxu1 %v1439_v2  ;;  %v759_v5 = vmax.f32 %v758_v33, 0.0  ;;  %v1053_v63 = vadd.f32 %v1052_v59, %v1049_v56  ;;  %v965_v14 = vmul.f32 %v1297_v48, %v1544_v12  ;;  %v1061_v18 = vmul.f32 %v1297_v48, %v1524_v9  ;;  %v1307_v2 = vld [vmem:[%s1534_s14 + $0x90] sm:$0xff] }
  0x34   : > { %v956_v58 = vadd.f32 %v955_v52, %v953_v57  ;;  %v863_v6 = vadd.f32 %v862_v54, %v860_v61  ;;  %v968_v49 = vmul.f32 %v1298_v7, %v1549_v13  ;;  %v1064_v20 = vmul.f32 %v1298_v7, %v1529_v10 }
  0x35   : > { %1372 = vmatmul.mubr.msk.f32.vlgmr.msra.gmra.mrb[4].mxu0 %vm335_vm1, %v759_v5  ;;  %v1056_v17 = vadd.f32 %v1055_v60, %v1053_v63  ;;  %v1068_v9 = vmul.f32 %v1307_v2, %v1539_v11  ;;  %v1071_v27 = vmul.f32 %v1308_v22, %v1544_v12  ;;  %v1074_v30 = vmul.f32 %v1309_v24, %v1549_v13 }
  0x36   : > { %v959_v1 = vadd.f32 %v958_v55, %v956_v58  ;;  %v864_v19 = vadd.f32 %v1610_v38, %v863_v6  ;;  %1415 = vmatpush3.bf16.msra.mxu0 %v1488_v3  ;;  %1385 = vmatprep.mubr.msk.f32.mxu0 %vm1440_vm0, %v1441_v4 }
  0x37   : > { %v1059_v15 = vadd.f32 %v1058_v0, %v1056_v17 }
  0x38   : > { %v963_v8 = vadd.f32 %v962_v62, %v959_v1  ;;  %v865_v21 = vmax.f32 %v864_v19, 0.0 }
  0x39   : > { %v1062_v23 = vadd.f32 %v1061_v18, %v1059_v15 }
  0x3a   : > { %v966_v16 = vadd.f32 %v965_v14, %v963_v8  ;;  %1379 = vmatmul.mubr.msk.f32.vlgmr.msra.gmra.mrb[4].mxu1 %vm335_vm1, %v865_v21 }
  0x3b   : > { %1418 = vmatpush3.bf16.msra.mxu1 %v1488_v3  ;;  %1392 = vmatprep.mubr.msk.f32.mxu1 %vm1440_vm0, %v1441_v4  ;;  %v1065_v26 = vadd.f32 %v1064_v20, %v1062_v23  ;;  %v1233_v4 = vld [vmem:[%s1728_s4] ss:$0 sm:$0xff] }
  0x3c   : > { %v969_v25 = vadd.f32 %v968_v49, %v966_v16 }
  0x3d   : > { %v1069_v28 = vadd.f32 %v1068_v9, %v1065_v26 }
  0x3e   : > { %v970_v10 = vadd.f32 %v1610_v38, %v969_v25 }
  0x3f   : > { %v1072_v11 = vadd.f32 %v1071_v27, %v1069_v28 }
  0x40   : > { %v971_v31 = vmax.f32 %v970_v10, 0.0 }
  0x41   : > { %v1075_v34 = vadd.f32 %v1074_v30, %v1072_v11 }
  0x42   : > { %1386 = vmatmul.mubr.msk.f32.vlgmr.msra.gmra.mrb[6].mxu0 %vm335_vm1, %v971_v31 }
  0x43   : > { %v1076_v3 = vadd.f32 %v1610_v38, %v1075_v34 }
  0x45   : > { %v1077_v35 = vmax.f32 %v1076_v3, 0.0 }
  0x47   : > { %1393 = vmatmul.mubr.msk.f32.vlgmr.msra.gmra.mrb[6].mxu1 %vm335_vm1, %v1077_v35 }
  0xfc   : > { %v405_v12 = vpop.f32.mrb[0].mxu0 }
  0xfd   : > { %v406_v37 = vadd.f32 %v1233_v4, %v405_v12  ;;  %v1345_v36 = vpop.f32.mrb[1].mxu0 }
  0xfe   : > { %v511_v38 = vpop.f32.mrb[0].mxu1 }
  0xff   : > { %v409_v13 = vmax.f32 %v406_v37, 0.0  ;;  %v512_v29 = vadd.f32 %v1233_v4, %v511_v38  ;;  %v1352_v40 = vpop.f32.mrb[1].mxu1 }
 0x100   : > { %v617_v39 = vpop.f32.mrb[2].mxu0 }
 0x101   : > { %411 = vst.msk [vmem:[%s1703_s30] sm:$0xff] %vm410_vm2, %v409_v13  ;;  %v515_v41 = vmax.f32 %v512_v29, 0.0  ;;  %v618_v43 = vadd.f32 %v1233_v4, %v617_v39  ;;  %v1359_v44 = vpop.f32.mrb[3].mxu0 }
 0x103   : > { %1245 = vst.msk [vmem:[%s1703_s30 + $0x8] sm:$0xff] %vm410_vm2, %v515_v41  ;;  %v621_v45 = vmax.f32 %v618_v43, 0.0 }
 0x104   : > { %v723_v32 = vpop.f32.mrb[2].mxu1 }
 0x105   : > { %1256 = vst.msk [vmem:[%s1703_s30 + $0x10] sm:$0xff] %vm410_vm2, %v621_v45  ;;  %v724_v46 = vadd.f32 %v1233_v4, %v723_v32  ;;  %v1366_v47 = vpop.f32.mrb[3].mxu1 }
 0x107   : > { %v727_v50 = vmax.f32 %v724_v46, 0.0 }
 0x108   : > { %v829_v51 = vpop.f32.mrb[4].mxu0 }
 0x109   : > { %1267 = vst.msk [vmem:[%s1703_s30 + $0x18] sm:$0xff] %vm410_vm2, %v727_v50  ;;  %v830_v52 = vadd.f32 %v1233_v4, %v829_v51  ;;  %v1373_v53 = vpop.f32.mrb[5].mxu0 }
 0x10b   : > { %v833_v54 = vmax.f32 %v830_v52, 0.0 }
 0x10d   : > { %1278 = vst.msk [vmem:[%s1703_s30 + $0x20] sm:$0xff] %vm410_vm2, %v833_v54  ;;  %v935_v55 = vpop.f32.mrb[4].mxu1 }
 0x10e   : > { %v936_v42 = vadd.f32 %v1233_v4, %v935_v55  ;;  %v1380_v56 = vpop.f32.mrb[5].mxu1 }
 0x110   : > { %v939_v33 = vmax.f32 %v936_v42, 0.0 }
 0x112   : > { %1289 = vst.msk [vmem:[%s1703_s30 + $0x28] sm:$0xff] %vm410_vm2, %v939_v33 }
 0x115   : > { %v1041_v57 = vpop.f32.mrb[6].mxu0 }
 0x116   : > { %v1042_v59 = vadd.f32 %v1233_v4, %v1041_v57  ;;  %v1387_v60 = vpop.f32.mrb[7].mxu0 }
 0x118   : > { %v1045_v61 = vmax.f32 %v1042_v59, 0.0 }
 0x11a   : > { %1300 = vst.msk [vmem:[%s1703_s30 + $0x30] sm:$0xff] %vm410_vm2, %v1045_v61  ;;  %v1147_v62 = vpop.f32.mrb[6].mxu1 }
 0x11b   : > { %v1148_v48 = vadd.f32 %v1233_v4, %v1147_v62  ;;  %v1394_v5 = vpop.f32.mrb[7].mxu1 }
 0x11d   : > { %v1151_v58 = vmax.f32 %v1148_v48, 0.0 }
 0x11f   : > { %1311 = vst.msk [vmem:[%s1703_s30 + $0x38] sm:$0xff] %vm410_vm2, %v1151_v58 }
 0x120 PF: > { %s15_s18 = sadd.s32 1, %s1437_s18  }
 0x121   : > { %p12_p4 = scmp.ge.s32.totalorder %s15_s18, 4  }
 0x123   :  { %14 = sbr.rel (!%p12_p4) target bundleno = 1 (0x1), region = 86 }

// kernel: mobilenet_v1_forward.17
= control target key start
LH: loop header
LB: loop body
LE: loop exit
PB: predicated region body
PF: predicated region fallthrough
CT: control target
= control target key end

     0   :  { %s990_s18 = smov 0   ;;  %s1184_s0 = inlined_call_operand.vmem [shape: f32[2,6,6,32], index: 0, kind: input, shape index: {}]   ;;  %s1185_s1 = inlined_call_operand.vmem [shape: f32[9,1,32], index: 1, kind: input, shape index: {}]   ;;  %s1186_s2 = inlined_call_operand.vmem [shape: f32[1,32], index: 2, kind: input, shape index: {}]   ;;  %s1187_s3 = inlined_call_operand.vmem [shape: f32[32,32], index: 3, kind: input, shape index: {}]   ;;  %s1188_s4 = inlined_call_operand.vmem [shape: f32[1,32], index: 4, kind: input, shape index: {}]   ;;  %s1189_s5 = inlined_call_operand.vmem [shape: f32[2,4,4,32], index: 5, kind: output, shape index: {}]  }
   0x1 LB: > { %s787_s19 = sadd.s32 4294967295, %s955_s18   ;;  %p791_p0 = scmp.ge.s32.totalorder %s955_s18, 1  ;;  %s955_s18 = sphi %s990_s18, %s15_s18  }
   0x2   : > { %p187_p1 = scmp.lt.s32.totalorder %s955_s18, 3 }
   0x4   : > { %p188_p2 = pnand %p791_p0, %p187_p1 }
   0x5   : > { %v235_v0 = vld [vmem:[%s1187_s3] sm:$0xff] (!%p188_p2)  ;;  %v236_v1 = vld [vmem:[%s1187_s3 + $0x8] sm:$0xff] (!%p188_p2)  ;;  %v237_v2 = vld [vmem:[%s1187_s3 + $0x10] sm:$0xff] (!%p188_p2)  ;;  %v957_v3 = vmov (!%p188_p2), 0.0|0.0   ;;  %p215_p3 = scmp.lt.s32.totalorder (!%p188_p2), %s787_s19, 1  ;;  %vm958_vm0 = vmmov (!%p188_p2), 0  }
   0x6   : > { %191 = sbr.rel (%p188_p2) target bundleno = 269 (0x10d), region = 40  ;;  %913 = vmatprep.subr.bf16.mxu0 (!%p188_p2), %v957_v3  ;;  %919 = vmatprep.subr.bf16.mxu1 (!%p188_p2), %v957_v3  ;;  %v1009_v4 = vpack.c.bf16 (!%p188_p2), %v236_v1, %v235_v0  ;;  %v238_v5 = vld [vmem:[%s1187_s3 + $0x18] sm:$0xff] (!%p188_p2)  ;;  %v959_v6 = vmov (!%p188_p2), 0.0   ;;  %v1030_v8 = vld [vmem:[%s1185_s1] ss:$0 sm:$0xff] (!%p188_p2)  ;;  %vm337_vm1 = vcmask (!%p188_p2), 261120  }
   0x7   : > { %877 = vmatprep.mubr.msk.f32.mxu0 (!%p188_p2), %vm958_vm0, %v959_v6  ;;  %888 = vmatprep.mubr.msk.f32.mxu1 (!%p188_p2), %vm958_vm0, %v959_v6  ;;  %v1020_v7 = vpack.c.bf16 (!%p188_p2), %v238_v5, %v237_v2  ;;  %v1035_v9 = vld [vmem:[%s1185_s1 + $0x1] ss:$0 sm:$0xff] (!%p188_p2)  ;;  %v1040_v10 = vld [vmem:[%s1185_s1 + $0x2] ss:$0 sm:$0xff] (!%p188_p2)  ;;  %v1052_v11 = vld [vmem:[%s1185_s1 + $0x3] ss:$0 sm:$0xff] (!%p188_p2) }
   0x8   : > { %915 = vmatpush3.bf16.msra.mxu0 (!%p188_p2), %v1009_v4  ;;  %921 = vmatpush3.bf16.msra.mxu1 (!%p188_p2), %v1009_v4  ;;  %v1062_v15 = vld [vmem:[%s1185_s1 + $0x4] ss:$0 sm:$0xff] (!%p188_p2)  ;;  %v1071_v20 = vld [vmem:[%s1185_s1 + $0x5] ss:$0 sm:$0xff] (!%p188_p2)  ;;  %v1082_v28 = vld [vmem:[%s1185_s1 + $0x6] ss:$0 sm:$0xff] (!%p188_p2) }
   0x9   : > { %916 = vmatprep.subr.bf16.mxu0 (!%p188_p2), %v957_v3  ;;  %922 = vmatprep.subr.bf16.mxu1 (!%p188_p2), %v957_v3  ;;  %v1087_v29 = vld [vmem:[%s1185_s1 + $0x7] ss:$0 sm:$0xff] (!%p188_p2)  ;;  %v1110_v51 = vld [vmem:[%s1185_s1 + $0x8] ss:$0 sm:$0xff] (!%p188_p2)  ;;  %vm412_vm2 = vcmask (!%p188_p2), 257024  }
   0xc   : > { %918 = vmatpush3.bf16.msra.mxu0 (!%p188_p2), %v1020_v7  ;;  %924 = vmatpush3.bf16.msra.mxu1 (!%p188_p2), %v1020_v7 }
   0xd   : > { %s1191_s19 = smov (!%p215_p3, %s787_s19), 1  ;;  %925 = vmatprep.subr.bf16.mxu0 %v957_v3  ;;  %931 = vmatprep.subr.bf16.mxu1 %v957_v3 }
   0xe   : > { %s937_s28 = smul.u32 48, %s1191_s19  ;;  %s848_s6 = sshll.u32 %s1191_s19, 4 }
   0xf   : > { %s224_s9 = scalar_lea.vmem %s1189_s5, %s848_s6 }
  0x10   : > { %s1047_s12 = scalar_lea.vmem %s1184_s0, %s937_s28 }
  0x11   : > { %v240_v12 = vld [vmem:[%s1047_s12] sm:$0xf]  ;;  %v798_v19 = vld [vmem:[%s1047_s12 + $0x8] sm:$0xf]  ;;  %v816_v33 = vld [vmem:[%s1047_s12 + $0x10] sm:$0xf] }
  0x12   : > { %v249_v13 = vld [vmem:[%s1047_s12 + $0x1] sm:$0xf]  ;;  %v247_v16 = vmul.f32 %v1030_v8, %v240_v12  ;;  %v800_v21 = vld [vmem:[%s1047_s12 + $0x9] sm:$0xf]  ;;  %v275_v24 = vmul.f32 %v1052_v11, %v798_v19  ;;  %v804_v36 = vld [vmem:[%s1047_s12 + $0x10] sm:$0xf]  ;;  %v424_v41 = vmul.f32 %v816_v33, %v1052_v11 }
  0x13   : > { %v258_v14 = vld [vmem:[%s1047_s12 + $0x2] sm:$0xf]  ;;  %v256_v17 = vmul.f32 %v1035_v9, %v249_v13  ;;  %v802_v22 = vld [vmem:[%s1047_s12 + $0xa] sm:$0xf]  ;;  %v284_v35 = vmul.f32 %v1062_v15, %v800_v21  ;;  %v806_v37 = vld [vmem:[%s1047_s12 + $0x11] sm:$0xf]  ;;  %v303_v52 = vmul.f32 %v1082_v28, %v804_v36 }
  0x14   : > { %v265_v18 = vmul.f32 %v1040_v10, %v258_v14  ;;  %v813_v25 = vld [vmem:[%s1047_s12 + $0x8] sm:$0xf]  ;;  %v817_v38 = vld [vmem:[%s1047_s12 + $0x11] sm:$0xf]  ;;  %v293_v39 = vmul.f32 %v1071_v20, %v802_v22  ;;  %v827_v50 = vld [vmem:[%s1047_s12 + $0x18] sm:$0xf]  ;;  %v312_v58 = vmul.f32 %v1087_v29, %v806_v37 }
  0x15   : > { %v257_v23 = vadd.f32 %v256_v17, %v247_v16  ;;  %v814_v26 = vld [vmem:[%s1047_s12 + $0x9] sm:$0xf]  ;;  %v415_v30 = vmul.f32 %v813_v25, %v1030_v8  ;;  %v824_v42 = vld [vmem:[%s1047_s12 + $0x10] sm:$0xf]  ;;  %v427_v54 = vmul.f32 %v817_v38, %v1062_v15  ;;  %v819_v55 = vld [vmem:[%s1047_s12 + $0x18] sm:$0xf]  ;;  %v530_v60 = vmul.f32 %v827_v50, %v1052_v11 }
  0x16   : > { %v815_v27 = vld [vmem:[%s1047_s12 + $0xa] sm:$0xf]  ;;  %v418_v31 = vmul.f32 %v814_v26, %v1035_v9  ;;  %v825_v43 = vld [vmem:[%s1047_s12 + $0x11] sm:$0xf]  ;;  %v521_v47 = vmul.f32 %v824_v42, %v1030_v8  ;;  %v828_v56 = vld [vmem:[%s1047_s12 + $0x19] sm:$0xf] }
  0x17   : > { %v421_v32 = vmul.f32 %v815_v27, %v1040_v10  ;;  %v266_v34 = vadd.f32 %v265_v18, %v257_v23  ;;  %v826_v44 = vld [vmem:[%s1047_s12 + $0x12] sm:$0xf]  ;;  %v524_v48 = vmul.f32 %v825_v43, %v1035_v9  ;;  %v835_v61 = vld [vmem:[%s1047_s12 + $0x18] sm:$0xf]  ;;  %v838_v14 = vld [vmem:[%s1047_s12 + $0x20] sm:$0xf]  ;;  %v533_v19 = vmul.f32 %v828_v56, %v1062_v15 }
  0x18   : > { %v419_v40 = vadd.f32 %v418_v31, %v415_v30  ;;  %v818_v46 = vld [vmem:[%s1047_s12 + $0x12] sm:$0xf]  ;;  %v527_v49 = vmul.f32 %v826_v44, %v1040_v10  ;;  %v836_v62 = vld [vmem:[%s1047_s12 + $0x19] sm:$0xf]  ;;  %v627_v12 = vmul.f32 %v835_v61, %v1030_v8  ;;  %v839_v22 = vld [vmem:[%s1047_s12 + $0x21] sm:$0xf]  ;;  %v636_v8 = vmul.f32 %v838_v14, %v1052_v11 }
  0x19   : > { %v276_v45 = vadd.f32 %v275_v24, %v266_v34  ;;  %v525_v59 = vadd.f32 %v524_v48, %v521_v47  ;;  %v837_v63 = vld [vmem:[%s1047_s12 + $0x1a] sm:$0xf]  ;;  %v808_v0 = vld [vmem:[%s1047_s12 + $0x12] sm:$0xf]  ;;  %v430_v2 = vmul.f32 %v818_v46, %v1071_v20  ;;  %v630_v13 = vmul.f32 %v836_v62, %v1035_v9  ;;  %v830_v25 = vld [vmem:[%s1047_s12 + $0x20] sm:$0xf] }
  0x1a   : > { %v422_v53 = vadd.f32 %v421_v32, %v419_v40  ;;  %v829_v5 = vld [vmem:[%s1047_s12 + $0x1a] sm:$0xf]  ;;  %v633_v21 = vmul.f32 %v837_v63, %v1040_v10  ;;  %v434_v24 = vmul.f32 %v819_v55, %v1082_v28  ;;  %v321_v27 = vmul.f32 %v1110_v51, %v808_v0  ;;  %v840_v33 = vld [vmem:[%s1047_s12 + $0x22] sm:$0xf]  ;;  %v841_v40 = vld [vmem:[%s1047_s12 + $0x28] sm:$0xf] }
  0x1b   : > { %v285_v57 = vadd.f32 %v284_v35, %v276_v45  ;;  %v820_v17 = vld [vmem:[%s1047_s12 + $0x19] sm:$0xf]  ;;  %v528_v18 = vadd.f32 %v527_v49, %v525_v59  ;;  %v631_v26 = vadd.f32 %v630_v13, %v627_v12  ;;  %v536_v32 = vmul.f32 %v829_v5, %v1071_v20  ;;  %v831_v35 = vld [vmem:[%s1047_s12 + $0x21] sm:$0xf]  ;;  %v842_v49 = vld [vmem:[%s1047_s12 + $0x29] sm:$0xf] }
  0x1c   : > { %v425_v1 = vadd.f32 %v424_v41, %v422_v53  ;;  %v821_v30 = vld [vmem:[%s1047_s12 + $0x1a] sm:$0xf]  ;;  %v437_v10 = vmul.f32 %v820_v17, %v1087_v29  ;;  %v639_v37 = vmul.f32 %v839_v22, %v1062_v15  ;;  %v540_v11 = vmul.f32 %v830_v25, %v1082_v28  ;;  %v810_v41 = vld [vmem:[%s1186_s2] ss:$0 sm:$0xff]  ;;  %v832_v44 = vld [vmem:[%s1047_s12 + $0x22] sm:$0xf] }
  0x1d   : > { %v294_v16 = vadd.f32 %v293_v39, %v285_v57  ;;  %v531_v31 = vadd.f32 %v530_v60, %v528_v18  ;;  %v634_v36 = vadd.f32 %v633_v21, %v631_v26  ;;  %v440_v43 = vmul.f32 %v821_v30, %v1110_v51  ;;  %v843_v57 = vld [vmem:[%s1047_s12 + $0x2a] sm:$0xf] }
  0x1e   : > { %v428_v23 = vadd.f32 %v427_v54, %v425_v1  ;;  %v642_v46 = vmul.f32 %v840_v33, %v1071_v20  ;;  %v543_v15 = vmul.f32 %v831_v35, %v1087_v29  ;;  %v646_v53 = vmul.f32 %v841_v40, %v1082_v28 }
  0x1f   : > { %v304_v9 = vadd.f32 %v303_v52, %v294_v16  ;;  %v534_v39 = vadd.f32 %v533_v19, %v531_v31  ;;  %v637_v45 = vadd.f32 %v636_v8, %v634_v36  ;;  %v546_v56 = vmul.f32 %v832_v44, %v1110_v51 }
  0x20   : > { %v431_v34 = vadd.f32 %v430_v2, %v428_v23  ;;  %v649_v60 = vmul.f32 %v842_v49, %v1087_v29  ;;  %v652_v0 = vmul.f32 %v843_v57, %v1110_v51 }
  0x21   : > { %v313_v38 = vadd.f32 %v312_v58, %v304_v9  ;;  %v537_v48 = vadd.f32 %v536_v32, %v534_v39  ;;  %v640_v52 = vadd.f32 %v639_v37, %v637_v45 }
  0x22   : > { %v435_v42 = vadd.f32 %v434_v24, %v431_v34 }
  0x23   : > { %v322_v47 = vadd.f32 %v321_v27, %v313_v38  ;;  %v541_v55 = vadd.f32 %v540_v11, %v537_v48  ;;  %v643_v59 = vadd.f32 %v642_v46, %v640_v52 }
  0x24   : > { %v438_v50 = vadd.f32 %v437_v10, %v435_v42 }
  0x25   : > { %v329_v54 = vadd.f32 %v810_v41, %v322_v47  ;;  %v544_v61 = vadd.f32 %v543_v15, %v541_v55  ;;  %v647_v63 = vadd.f32 %v646_v53, %v643_v59 }
  0x26   : > { %v441_v58 = vadd.f32 %v440_v43, %v438_v50 }
  0x27   : > { %v330_v20 = vmax.f32 %v329_v54, 0.0  ;;  %v547_v1 = vadd.f32 %v546_v56, %v544_v61  ;;  %v650_v2 = vadd.f32 %v649_v60, %v647_v63 }
  0x28   : > { %v442_v62 = vadd.f32 %v810_v41, %v441_v58 }
  0x29   : > { %878 = vmatmul.mubr.msk.f32.vlgmr.msra.gmra.mrb[0].mxu0 %vm337_vm1, %v330_v20  ;;  %v548_v29 = vadd.f32 %v810_v41, %v547_v1  ;;  %v653_v5 = vadd.f32 %v652_v0, %v650_v2 }
  0x2a   : > { %v443_v28 = vmax.f32 %v442_v62, 0.0  ;;  %927 = vmatpush3.bf16.msra.mxu0 %v1009_v4  ;;  %899 = vmatprep.mubr.msk.f32.mxu0 %vm958_vm0, %v959_v6 }
  0x2b   : > { %928 = vmatprep.subr.bf16.mxu0 %v957_v3  ;;  %v549_v51 = vmax.f32 %v548_v29, 0.0  ;;  %v654_v12 = vadd.f32 %v810_v41, %v653_v5 }
  0x2c   : > { %889 = vmatmul.mubr.msk.f32.vlgmr.msra.gmra.mrb[0].mxu1 %vm337_vm1, %v443_v28 }
  0x2d   : > { %933 = vmatpush3.bf16.msra.mxu1 %v1009_v4  ;;  %910 = vmatprep.mubr.msk.f32.mxu1 %vm958_vm0, %v959_v6  ;;  %v655_v13 = vmax.f32 %v654_v12, 0.0  ;;  %v811_v4 = vld [vmem:[%s1188_s4] ss:$0 sm:$0xff] }
  0x2e   : > { %934 = vmatprep.subr.bf16.mxu1 %v957_v3  ;;  %930 = vmatpush3.bf16.msra.mxu0 %v1020_v7 }
  0x31   : > { %936 = vmatpush3.bf16.msra.mxu1 %v1020_v7  ;;  %900 = vmatmul.mubr.msk.f32.vlgmr.msra.gmra.mrb[2].mxu0 %vm337_vm1, %v549_v51 }
  0x34   : > { %911 = vmatmul.mubr.msk.f32.vlgmr.msra.gmra.mrb[2].mxu1 %vm337_vm1, %v655_v13 }
  0xfc   : > { %v407_v14 = vpop.f32.mrb[0].mxu0 }
  0xfd   : > { %v408_v6 = vadd.f32 %v811_v4, %v407_v14  ;;  %v879_v16 = vpop.f32.mrb[1].mxu0 }
  0xff   : > { %v411_v3 = vmax.f32 %v408_v6, 0.0  ;;  %v513_v17 = vpop.f32.mrb[0].mxu1 }
 0x100   : > { %v514_v7 = vadd.f32 %v811_v4, %v513_v17  ;;  %v890_v18 = vpop.f32.mrb[1].mxu1 }
 0x101   : > { %413 = vst.msk [vmem:[%s224_s9] sm:$0xf] %vm412_vm2, %v411_v3 }
 0x102   : > { %v517_v19 = vmax.f32 %v514_v7, 0.0 }
 0x104   : > { %823 = vst.msk [vmem:[%s224_s9 + $0x4] sm:$0xf] %vm412_vm2, %v517_v19  ;;  %v619_v21 = vpop.f32.mrb[2].mxu0 }
 0x105   : > { %v620_v22 = vadd.f32 %v811_v4, %v619_v21  ;;  %v901_v23 = vpop.f32.mrb[3].mxu0 }
 0x107   : > { %v623_v24 = vmax.f32 %v620_v22, 0.0  ;;  %v725_v25 = vpop.f32.mrb[2].mxu1 }
 0x108   : > { %v726_v26 = vadd.f32 %v811_v4, %v725_v25  ;;  %v912_v8 = vpop.f32.mrb[3].mxu1 }
 0x109   : > { %834 = vst.msk [vmem:[%s224_s9 + $0x8] sm:$0xf] %vm412_vm2, %v623_v24 }
 0x10a   : > { %v729_v9 = vmax.f32 %v726_v26, 0.0 }
 0x10c   : > { %845 = vst.msk [vmem:[%s224_s9 + $0xc] sm:$0xf] %vm412_vm2, %v729_v9 }
 0x10d PF: > { %s15_s18 = sadd.s32 1, %s955_s18  }
 0x10e   : > { %p12_p4 = scmp.ge.s32.totalorder %s15_s18, 4  }
 0x110   :  { %14 = sbr.rel (!%p12_p4) target bundleno = 1 (0x1), region = 78 }

// kernel: mobilenet_v1_forward.18
= control target key start
LH: loop header
LB: loop body
LE: loop exit
PB: predicated region body
PF: predicated region fallthrough
CT: control target
= control target key end

     0   :  { %s990_s18 = smov 0   ;;  %s1184_s0 = inlined_call_operand.vmem [shape: f32[2,6,6,32], index: 0, kind: input, shape index: {}]   ;;  %s1185_s1 = inlined_call_operand.vmem [shape: f32[9,1,32], index: 1, kind: input, shape index: {}]   ;;  %s1186_s2 = inlined_call_operand.vmem [shape: f32[1,32], index: 2, kind: input, shape index: {}]   ;;  %s1187_s3 = inlined_call_operand.vmem [shape: f32[32,64], index: 3, kind: input, shape index: {}]   ;;  %s1188_s4 = inlined_call_operand.vmem [shape: f32[1,64], index: 4, kind: input, shape index: {}]   ;;  %s1189_s5 = inlined_call_operand.vmem [shape: f32[2,4,4,64], index: 5, kind: output, shape index: {}]  }
   0x1 LB: > { %s787_s19 = sadd.s32 4294967295, %s955_s18   ;;  %p791_p0 = scmp.ge.s32.totalorder %s955_s18, 1  ;;  %s955_s18 = sphi %s990_s18, %s15_s18  }
   0x2   : > { %p187_p1 = scmp.lt.s32.totalorder %s955_s18, 3 }
   0x4   : > { %p188_p2 = pnand %p791_p0, %p187_p1 }
   0x5   : > { %v235_v0 = vld [vmem:[%s1187_s3] sm:$0xff] (!%p188_p2)  ;;  %v236_v1 = vld [vmem:[%s1187_s3 + $0x8] sm:$0xff] (!%p188_p2)  ;;  %v237_v2 = vld [vmem:[%s1187_s3 + $0x10] sm:$0xff] (!%p188_p2)  ;;  %v957_v3 = vmov (!%p188_p2), 0.0|0.0   ;;  %p215_p3 = scmp.lt.s32.totalorder (!%p188_p2), %s787_s19, 1  ;;  %vm958_vm0 = vmmov (!%p188_p2), 0  }
   0x6   : > { %191 = sbr.rel (%p188_p2) target bundleno = 269 (0x10d), region = 40  ;;  %913 = vmatprep.subr.bf16.mxu0 (!%p188_p2), %v957_v3  ;;  %919 = vmatprep.subr.bf16.mxu1 (!%p188_p2), %v957_v3  ;;  %v1009_v4 = vpack.c.bf16 (!%p188_p2), %v236_v1, %v235_v0  ;;  %v238_v5 = vld [vmem:[%s1187_s3 + $0x18] sm:$0xff] (!%p188_p2)  ;;  %v959_v6 = vmov (!%p188_p2), 0.0   ;;  %v1030_v8 = vld [vmem:[%s1185_s1] ss:$0 sm:$0xff] (!%p188_p2)  ;;  %vm337_vm1 = vcmask (!%p188_p2), 261120  }
   0x7   : > { %877 = vmatprep.mubr.msk.f32.mxu0 (!%p188_p2), %vm958_vm0, %v959_v6  ;;  %888 = vmatprep.mubr.msk.f32.mxu1 (!%p188_p2), %vm958_vm0, %v959_v6  ;;  %v1020_v7 = vpack.c.bf16 (!%p188_p2), %v238_v5, %v237_v2  ;;  %v1035_v9 = vld [vmem:[%s1185_s1 + $0x1] ss:$0 sm:$0xff] (!%p188_p2)  ;;  %v1040_v10 = vld [vmem:[%s1185_s1 + $0x2] ss:$0 sm:$0xff] (!%p188_p2)  ;;  %v1052_v11 = vld [vmem:[%s1185_s1 + $0x3] ss:$0 sm:$0xff] (!%p188_p2) }
   0x8   : > { %915 = vmatpush3.bf16.msra.mxu0 (!%p188_p2), %v1009_v4  ;;  %921 = vmatpush3.bf16.msra.mxu1 (!%p188_p2), %v1009_v4  ;;  %v1062_v15 = vld [vmem:[%s1185_s1 + $0x4] ss:$0 sm:$0xff] (!%p188_p2)  ;;  %v1071_v20 = vld [vmem:[%s1185_s1 + $0x5] ss:$0 sm:$0xff] (!%p188_p2)  ;;  %v1082_v28 = vld [vmem:[%s1185_s1 + $0x6] ss:$0 sm:$0xff] (!%p188_p2) }
   0x9   : > { %916 = vmatprep.subr.bf16.mxu0 (!%p188_p2), %v957_v3  ;;  %922 = vmatprep.subr.bf16.mxu1 (!%p188_p2), %v957_v3  ;;  %v1087_v29 = vld [vmem:[%s1185_s1 + $0x7] ss:$0 sm:$0xff] (!%p188_p2)  ;;  %v1110_v51 = vld [vmem:[%s1185_s1 + $0x8] ss:$0 sm:$0xff] (!%p188_p2)  ;;  %vm412_vm2 = vcmask (!%p188_p2), 519168  }
   0xc   : > { %918 = vmatpush3.bf16.msra.mxu0 (!%p188_p2), %v1020_v7  ;;  %924 = vmatpush3.bf16.msra.mxu1 (!%p188_p2), %v1020_v7 }
   0xd   : > { %s1191_s19 = smov (!%p215_p3, %s787_s19), 1  ;;  %925 = vmatprep.subr.bf16.mxu0 %v957_v3  ;;  %931 = vmatprep.subr.bf16.mxu1 %v957_v3 }
   0xe   : > { %s937_s28 = smul.u32 48, %s1191_s19  ;;  %s848_s6 = sshll.u32 %s1191_s19, 4 }
   0xf   : > { %s224_s9 = scalar_lea.vmem %s1189_s5, %s848_s6 }
  0x10   : > { %s1047_s12 = scalar_lea.vmem %s1184_s0, %s937_s28 }
  0x11   : > { %v240_v12 = vld [vmem:[%s1047_s12] sm:$0xf]  ;;  %v798_v19 = vld [vmem:[%s1047_s12 + $0x8] sm:$0xf]  ;;  %v816_v33 = vld [vmem:[%s1047_s12 + $0x10] sm:$0xf] }
  0x12   : > { %v249_v13 = vld [vmem:[%s1047_s12 + $0x1] sm:$0xf]  ;;  %v247_v16 = vmul.f32 %v1030_v8, %v240_v12  ;;  %v800_v21 = vld [vmem:[%s1047_s12 + $0x9] sm:$0xf]  ;;  %v275_v24 = vmul.f32 %v1052_v11, %v798_v19  ;;  %v804_v36 = vld [vmem:[%s1047_s12 + $0x10] sm:$0xf]  ;;  %v424_v41 = vmul.f32 %v816_v33, %v1052_v11 }
  0x13   : > { %v258_v14 = vld [vmem:[%s1047_s12 + $0x2] sm:$0xf]  ;;  %v256_v17 = vmul.f32 %v1035_v9, %v249_v13  ;;  %v802_v22 = vld [vmem:[%s1047_s12 + $0xa] sm:$0xf]  ;;  %v284_v35 = vmul.f32 %v1062_v15, %v800_v21  ;;  %v806_v37 = vld [vmem:[%s1047_s12 + $0x11] sm:$0xf]  ;;  %v303_v52 = vmul.f32 %v1082_v28, %v804_v36 }
  0x14   : > { %v265_v18 = vmul.f32 %v1040_v10, %v258_v14  ;;  %v813_v25 = vld [vmem:[%s1047_s12 + $0x8] sm:$0xf]  ;;  %v817_v38 = vld [vmem:[%s1047_s12 + $0x11] sm:$0xf]  ;;  %v293_v39 = vmul.f32 %v1071_v20, %v802_v22  ;;  %v827_v50 = vld [vmem:[%s1047_s12 + $0x18] sm:$0xf]  ;;  %v312_v58 = vmul.f32 %v1087_v29, %v806_v37 }
  0x15   : > { %v257_v23 = vadd.f32 %v256_v17, %v247_v16  ;;  %v814_v26 = vld [vmem:[%s1047_s12 + $0x9] sm:$0xf]  ;;  %v415_v30 = vmul.f32 %v813_v25, %v1030_v8  ;;  %v824_v42 = vld [vmem:[%s1047_s12 + $0x10] sm:$0xf]  ;;  %v427_v54 = vmul.f32 %v817_v38, %v1062_v15  ;;  %v819_v55 = vld [vmem:[%s1047_s12 + $0x18] sm:$0xf]  ;;  %v530_v60 = vmul.f32 %v827_v50, %v1052_v11 }
  0x16   : > { %v815_v27 = vld [vmem:[%s1047_s12 + $0xa] sm:$0xf]  ;;  %v418_v31 = vmul.f32 %v814_v26, %v1035_v9  ;;  %v825_v43 = vld [vmem:[%s1047_s12 + $0x11] sm:$0xf]  ;;  %v521_v47 = vmul.f32 %v824_v42, %v1030_v8  ;;  %v828_v56 = vld [vmem:[%s1047_s12 + $0x19] sm:$0xf] }
  0x17   : > { %v421_v32 = vmul.f32 %v815_v27, %v1040_v10  ;;  %v266_v34 = vadd.f32 %v265_v18, %v257_v23  ;;  %v826_v44 = vld [vmem:[%s1047_s12 + $0x12] sm:$0xf]  ;;  %v524_v48 = vmul.f32 %v825_v43, %v1035_v9  ;;  %v835_v61 = vld [vmem:[%s1047_s12 + $0x18] sm:$0xf]  ;;  %v838_v14 = vld [vmem:[%s1047_s12 + $0x20] sm:$0xf]  ;;  %v533_v19 = vmul.f32 %v828_v56, %v1062_v15 }
  0x18   : > { %v419_v40 = vadd.f32 %v418_v31, %v415_v30  ;;  %v818_v46 = vld [vmem:[%s1047_s12 + $0x12] sm:$0xf]  ;;  %v527_v49 = vmul.f32 %v826_v44, %v1040_v10  ;;  %v836_v62 = vld [vmem:[%s1047_s12 + $0x19] sm:$0xf]  ;;  %v627_v12 = vmul.f32 %v835_v61, %v1030_v8  ;;  %v839_v22 = vld [vmem:[%s1047_s12 + $0x21] sm:$0xf]  ;;  %v636_v8 = vmul.f32 %v838_v14, %v1052_v11 }
  0x19   : > { %v276_v45 = vadd.f32 %v275_v24, %v266_v34  ;;  %v525_v59 = vadd.f32 %v524_v48, %v521_v47  ;;  %v837_v63 = vld [vmem:[%s1047_s12 + $0x1a] sm:$0xf]  ;;  %v808_v0 = vld [vmem:[%s1047_s12 + $0x12] sm:$0xf]  ;;  %v430_v2 = vmul.f32 %v818_v46, %v1071_v20  ;;  %v630_v13 = vmul.f32 %v836_v62, %v1035_v9  ;;  %v830_v25 = vld [vmem:[%s1047_s12 + $0x20] sm:$0xf] }
  0x1a   : > { %v422_v53 = vadd.f32 %v421_v32, %v419_v40  ;;  %v829_v5 = vld [vmem:[%s1047_s12 + $0x1a] sm:$0xf]  ;;  %v633_v21 = vmul.f32 %v837_v63, %v1040_v10  ;;  %v434_v24 = vmul.f32 %v819_v55, %v1082_v28  ;;  %v321_v27 = vmul.f32 %v1110_v51, %v808_v0  ;;  %v840_v33 = vld [vmem:[%s1047_s12 + $0x22] sm:$0xf]  ;;  %v841_v40 = vld [vmem:[%s1047_s12 + $0x28] sm:$0xf] }
  0x1b   : > { %v285_v57 = vadd.f32 %v284_v35, %v276_v45  ;;  %v820_v17 = vld [vmem:[%s1047_s12 + $0x19] sm:$0xf]  ;;  %v528_v18 = vadd.f32 %v527_v49, %v525_v59  ;;  %v631_v26 = vadd.f32 %v630_v13, %v627_v12  ;;  %v536_v32 = vmul.f32 %v829_v5, %v1071_v20  ;;  %v831_v35 = vld [vmem:[%s1047_s12 + $0x21] sm:$0xf]  ;;  %v842_v49 = vld [vmem:[%s1047_s12 + $0x29] sm:$0xf] }
  0x1c   : > { %v425_v1 = vadd.f32 %v424_v41, %v422_v53  ;;  %v821_v30 = vld [vmem:[%s1047_s12 + $0x1a] sm:$0xf]  ;;  %v437_v10 = vmul.f32 %v820_v17, %v1087_v29  ;;  %v639_v37 = vmul.f32 %v839_v22, %v1062_v15  ;;  %v540_v11 = vmul.f32 %v830_v25, %v1082_v28  ;;  %v810_v41 = vld [vmem:[%s1186_s2] ss:$0 sm:$0xff]  ;;  %v832_v44 = vld [vmem:[%s1047_s12 + $0x22] sm:$0xf] }
  0x1d   : > { %v294_v16 = vadd.f32 %v293_v39, %v285_v57  ;;  %v531_v31 = vadd.f32 %v530_v60, %v528_v18  ;;  %v634_v36 = vadd.f32 %v633_v21, %v631_v26  ;;  %v440_v43 = vmul.f32 %v821_v30, %v1110_v51  ;;  %v843_v57 = vld [vmem:[%s1047_s12 + $0x2a] sm:$0xf] }
  0x1e   : > { %v428_v23 = vadd.f32 %v427_v54, %v425_v1  ;;  %v642_v46 = vmul.f32 %v840_v33, %v1071_v20  ;;  %v543_v15 = vmul.f32 %v831_v35, %v1087_v29  ;;  %v646_v53 = vmul.f32 %v841_v40, %v1082_v28 }
  0x1f   : > { %v304_v9 = vadd.f32 %v303_v52, %v294_v16  ;;  %v534_v39 = vadd.f32 %v533_v19, %v531_v31  ;;  %v637_v45 = vadd.f32 %v636_v8, %v634_v36  ;;  %v546_v56 = vmul.f32 %v832_v44, %v1110_v51 }
  0x20   : > { %v431_v34 = vadd.f32 %v430_v2, %v428_v23  ;;  %v649_v60 = vmul.f32 %v842_v49, %v1087_v29  ;;  %v652_v0 = vmul.f32 %v843_v57, %v1110_v51 }
  0x21   : > { %v313_v38 = vadd.f32 %v312_v58, %v304_v9  ;;  %v537_v48 = vadd.f32 %v536_v32, %v534_v39  ;;  %v640_v52 = vadd.f32 %v639_v37, %v637_v45 }
  0x22   : > { %v435_v42 = vadd.f32 %v434_v24, %v431_v34 }
  0x23   : > { %v322_v47 = vadd.f32 %v321_v27, %v313_v38  ;;  %v541_v55 = vadd.f32 %v540_v11, %v537_v48  ;;  %v643_v59 = vadd.f32 %v642_v46, %v640_v52 }
  0x24   : > { %v438_v50 = vadd.f32 %v437_v10, %v435_v42 }
  0x25   : > { %v329_v54 = vadd.f32 %v810_v41, %v322_v47  ;;  %v544_v61 = vadd.f32 %v543_v15, %v541_v55  ;;  %v647_v63 = vadd.f32 %v646_v53, %v643_v59 }
  0x26   : > { %v441_v58 = vadd.f32 %v440_v43, %v438_v50 }
  0x27   : > { %v330_v20 = vmax.f32 %v329_v54, 0.0  ;;  %v547_v1 = vadd.f32 %v546_v56, %v544_v61  ;;  %v650_v2 = vadd.f32 %v649_v60, %v647_v63 }
  0x28   : > { %v442_v62 = vadd.f32 %v810_v41, %v441_v58 }
  0x29   : > { %878 = vmatmul.mubr.msk.f32.vlgmr.msra.gmra.mrb[0].mxu0 %vm337_vm1, %v330_v20  ;;  %v548_v29 = vadd.f32 %v810_v41, %v547_v1  ;;  %v653_v5 = vadd.f32 %v652_v0, %v650_v2 }
  0x2a   : > { %v443_v28 = vmax.f32 %v442_v62, 0.0  ;;  %927 = vmatpush3.bf16.msra.mxu0 %v1009_v4  ;;  %899 = vmatprep.mubr.msk.f32.mxu0 %vm958_vm0, %v959_v6 }
  0x2b   : > { %928 = vmatprep.subr.bf16.mxu0 %v957_v3  ;;  %v549_v51 = vmax.f32 %v548_v29, 0.0  ;;  %v654_v12 = vadd.f32 %v810_v41, %v653_v5 }
  0x2c   : > { %889 = vmatmul.mubr.msk.f32.vlgmr.msra.gmra.mrb[0].mxu1 %vm337_vm1, %v443_v28 }
  0x2d   : > { %933 = vmatpush3.bf16.msra.mxu1 %v1009_v4  ;;  %910 = vmatprep.mubr.msk.f32.mxu1 %vm958_vm0, %v959_v6  ;;  %v655_v13 = vmax.f32 %v654_v12, 0.0  ;;  %v811_v4 = vld [vmem:[%s1188_s4] ss:$0 sm:$0xff] }
  0x2e   : > { %934 = vmatprep.subr.bf16.mxu1 %v957_v3  ;;  %930 = vmatpush3.bf16.msra.mxu0 %v1020_v7 }
  0x31   : > { %936 = vmatpush3.bf16.msra.mxu1 %v1020_v7  ;;  %900 = vmatmul.mubr.msk.f32.vlgmr.msra.gmra.mrb[2].mxu0 %vm337_vm1, %v549_v51 }
  0x34   : > { %911 = vmatmul.mubr.msk.f32.vlgmr.msra.gmra.mrb[2].mxu1 %vm337_vm1, %v655_v13 }
  0xfc   : > { %v407_v14 = vpop.f32.mrb[0].mxu0 }
  0xfd   : > { %v408_v6 = vadd.f32 %v811_v4, %v407_v14  ;;  %v879_v16 = vpop.f32.mrb[1].mxu0 }
  0xff   : > { %v411_v3 = vmax.f32 %v408_v6, 0.0  ;;  %v513_v17 = vpop.f32.mrb[0].mxu1 }
 0x100   : > { %v514_v7 = vadd.f32 %v811_v4, %v513_v17  ;;  %v890_v18 = vpop.f32.mrb[1].mxu1 }
 0x101   : > { %413 = vst.msk [vmem:[%s224_s9] sm:$0xf] %vm412_vm2, %v411_v3 }
 0x102   : > { %v517_v19 = vmax.f32 %v514_v7, 0.0 }
 0x104   : > { %823 = vst.msk [vmem:[%s224_s9 + $0x4] sm:$0xf] %vm412_vm2, %v517_v19  ;;  %v619_v21 = vpop.f32.mrb[2].mxu0 }
 0x105   : > { %v620_v22 = vadd.f32 %v811_v4, %v619_v21  ;;  %v901_v23 = vpop.f32.mrb[3].mxu0 }
 0x107   : > { %v623_v24 = vmax.f32 %v620_v22, 0.0  ;;  %v725_v25 = vpop.f32.mrb[2].mxu1 }
 0x108   : > { %v726_v26 = vadd.f32 %v811_v4, %v725_v25  ;;  %v912_v8 = vpop.f32.mrb[3].mxu1 }
 0x109   : > { %834 = vst.msk [vmem:[%s224_s9 + $0x8] sm:$0xf] %vm412_vm2, %v623_v24 }
 0x10a   : > { %v729_v9 = vmax.f32 %v726_v26, 0.0 }
 0x10c   : > { %845 = vst.msk [vmem:[%s224_s9 + $0xc] sm:$0xf] %vm412_vm2, %v729_v9 }
 0x10d PF: > { %s15_s18 = sadd.s32 1, %s955_s18  }
 0x10e   : > { %p12_p4 = scmp.ge.s32.totalorder %s15_s18, 4  }
 0x110   :  { %14 = sbr.rel (!%p12_p4) target bundleno = 1 (0x1), region = 78 }

// kernel: mobilenet_v1_forward.19
= control target key start
LH: loop header
LB: loop body
LE: loop exit
PB: predicated region body
PF: predicated region fallthrough
CT: control target
= control target key end

     0   :  { %s753_s18 = smov 0   ;;  %s851_s0 = inlined_call_operand.vmem [shape: f32[2,4,4,64], index: 0, kind: input, shape index: {}]   ;;  %s852_s1 = inlined_call_operand.vmem [shape: f32[9,1,64], index: 1, kind: input, shape index: {}]   ;;  %s853_s2 = inlined_call_operand.vmem [shape: f32[1,64], index: 2, kind: input, shape index: {}]   ;;  %s854_s3 = inlined_call_operand.vmem [shape: f32[64,64], index: 3, kind: input, shape index: {}]   ;;  %s855_s4 = inlined_call_operand.vmem [shape: f32[1,64], index: 4, kind: input, shape index: {}]   ;;  %s856_s5 = inlined_call_operand.vmem [shape: f32[2,2,2,64], index: 5, kind: output, shape index: {}]  }
   0x1 LB: > { %s579_s19 = sadd.s32 4294967295, %s718_s18   ;;  %p583_p0 = scmp.ge.s32.totalorder %s718_s18, 1  ;;  %s718_s18 = sphi %s753_s18, %s15_s18  }
   0x2   : > { %p187_p1 = scmp.lt.s32.totalorder %s718_s18, 3 }
   0x4   : > { %p188_p2 = pnand %p583_p0, %p187_p1 }
   0x5   : > { %v235_v0 = vld [vmem:[%s854_s3] sm:$0xff] (!%p188_p2)  ;;  %v236_v1 = vld [vmem:[%s854_s3 + $0x8] sm:$0xff] (!%p188_p2)  ;;  %v237_v2 = vld [vmem:[%s854_s3 + $0x10] sm:$0xff] (!%p188_p2)  ;;  %v720_v3 = vmov (!%p188_p2), 0.0|0.0   ;;  %p215_p3 = scmp.lt.s32.totalorder (!%p188_p2), %s579_s19, 1  ;;  %vm721_vm0 = vmmov (!%p188_p2), 0  }
   0x6   : > { %191 = sbr.rel (%p188_p2) target bundleno = 259 (0x103), region = 40  ;;  %677 = vmatprep.subr.bf16.mxu0 (!%p188_p2), %v720_v3  ;;  %689 = vmatprep.subr.bf16.mxu1 (!%p188_p2), %v720_v3  ;;  %v678_v4 = vpack.c.bf16 (!%p188_p2), %v236_v1, %v235_v0  ;;  %v238_v5 = vld [vmem:[%s854_s3 + $0x18] sm:$0xff] (!%p188_p2)  ;;  %v722_v6 = vmov (!%p188_p2), 0.0   ;;  %v239_v8 = vld [vmem:[%s854_s3 + $0x20] sm:$0xff] (!%p188_p2)  ;;  %v240_v9 = vld [vmem:[%s854_s3 + $0x28] sm:$0xff] (!%p188_p2)  ;;  %vm341_vm1 = vcmask (!%p188_p2), 523264  }
   0x7   : > { %655 = vmatprep.mubr.msk.f32.mxu0 (!%p188_p2), %vm721_vm0, %v722_v6  ;;  %674 = vmatprep.mubr.msk.f32.mxu1 (!%p188_p2), %vm721_vm0, %v722_v6  ;;  %v681_v7 = vpack.c.bf16 (!%p188_p2), %v238_v5, %v237_v2  ;;  %v588_v10 = vld [vmem:[%s852_s1] ss:$0 sm:$0xff] (!%p188_p2)  ;;  %v589_v11 = vld [vmem:[%s852_s1 + $0x1] ss:$0 sm:$0xff] (!%p188_p2)  ;;  %v590_v12 = vld [vmem:[%s852_s1 + $0x2] ss:$0 sm:$0xff] (!%p188_p2)  ;;  %v684_v16 = vpack.c.bf16 (!%p188_p2), %v240_v9, %v239_v8 }
   0x8   : > { %679 = vmatpush3.bf16.msra.mxu0 (!%p188_p2), %v678_v4  ;;  %691 = vmatpush3.bf16.msra.mxu1 (!%p188_p2), %v678_v4  ;;  %v241_v13 = vld [vmem:[%s854_s3 + $0x30] sm:$0xff] (!%p188_p2)  ;;  %v242_v14 = vld [vmem:[%s854_s3 + $0x38] sm:$0xff] (!%p188_p2)  ;;  %v592_v15 = vld [vmem:[%s852_s1 + $0x3] ss:$0 sm:$0xff] (!%p188_p2)  ;;  %vm416_vm2 = vcmask (!%p188_p2), 517120  }
   0x9   : > { %680 = vmatprep.subr.bf16.mxu0 (!%p188_p2), %v720_v3  ;;  %692 = vmatprep.subr.bf16.mxu1 (!%p188_p2), %v720_v3  ;;  %v594_v24 = vld [vmem:[%s852_s1 + $0x4] ss:$0 sm:$0xff] (!%p188_p2)  ;;  %v687_v26 = vpack.c.bf16 (!%p188_p2), %v242_v14, %v241_v13  ;;  %v596_v32 = vld [vmem:[%s852_s1 + $0x5] ss:$0 sm:$0xff] (!%p188_p2)  ;;  %v598_v41 = vld [vmem:[%s852_s1 + $0x6] ss:$0 sm:$0xff] (!%p188_p2) }
   0xa   : > { %v600_v48 = vld [vmem:[%s852_s1 + $0x7] ss:$0 sm:$0xff] (!%p188_p2)  ;;  %v602_v55 = vld [vmem:[%s852_s1 + $0x8] ss:$0 sm:$0xff] (!%p188_p2)  ;;  %v603_v6 = vld [vmem:[%s853_s2] ss:$0 sm:$0xff] (!%p188_p2) }
   0xc   : > { %682 = vmatpush3.bf16.msra.mxu0 (!%p188_p2), %v681_v7  ;;  %694 = vmatpush3.bf16.msra.mxu1 (!%p188_p2), %v681_v7 }
   0xd   : > { %s858_s19 = smov (!%p215_p3, %s579_s19), 1  ;;  %683 = vmatprep.subr.bf16.mxu0 %v720_v3  ;;  %695 = vmatprep.subr.bf16.mxu1 %v720_v3 }
   0xe   : > { %s619_s9 = sshll.u32 %s858_s19, 4  ;;  %s620_s14 = sshll.u32 %s858_s19, 2 }
   0xf   : > { %s800_s22 = scalar_lea.vmem %s851_s0, %s619_s9  ;;  %s224_s17 = scalar_lea.vmem %s856_s5, %s620_s14 }
  0x10   : > { %v244_v17 = vld [vmem:[%s800_s22] sm:$0x3]  ;;  %v262_v19 = vld [vmem:[%s800_s22 + $0x2] sm:$0x3]  ;;  %v591_v23 = vld [vmem:[%s800_s22 + $0x4] sm:$0x3]  ;;  %685 = vmatpush3.bf16.msra.mxu0 %v684_v16  ;;  %697 = vmatpush3.bf16.msra.mxu1 %v684_v16 }
  0x11   : > { %v253_v18 = vld [vmem:[%s800_s22 + $0x1] sm:$0x3]  ;;  %v251_v20 = vmul.f32 %v588_v10, %v244_v17  ;;  %v269_v22 = vmul.f32 %v590_v12, %v262_v19  ;;  %v593_v25 = vld [vmem:[%s800_s22 + $0x5] sm:$0x3]  ;;  %v279_v28 = vmul.f32 %v592_v15, %v591_v23  ;;  %v609_v37 = vld [vmem:[%s800_s22 + $0x8] sm:$0x3]  ;;  %686 = vmatprep.subr.bf16.mxu0 %v720_v3  ;;  %698 = vmatprep.subr.bf16.mxu1 %v720_v3 }
  0x12   : > { %v260_v21 = vmul.f32 %v589_v11, %v253_v18  ;;  %v606_v29 = vld [vmem:[%s800_s22 + $0x4] sm:$0x3]  ;;  %v608_v31 = vld [vmem:[%s800_s22 + $0x6] sm:$0x3]  ;;  %v288_v39 = vmul.f32 %v594_v24, %v593_v25  ;;  %v610_v40 = vld [vmem:[%s800_s22 + $0x9] sm:$0x3]  ;;  %v428_v44 = vmul.f32 %v609_v37, %v592_v15 }
  0x13   : > { %v607_v30 = vld [vmem:[%s800_s22 + $0x5] sm:$0x3]  ;;  %v419_v34 = vmul.f32 %v606_v29, %v588_v10  ;;  %v425_v36 = vmul.f32 %v608_v31, %v590_v12  ;;  %v597_v42 = vld [vmem:[%s800_s22 + $0x8] sm:$0x3]  ;;  %v611_v47 = vld [vmem:[%s800_s22 + $0xa] sm:$0x3]  ;;  %v431_v51 = vmul.f32 %v610_v40, %v594_v24 }
  0x14   : > { %v261_v27 = vadd.f32 %v260_v21, %v251_v20  ;;  %v595_v33 = vld [vmem:[%s800_s22 + $0x6] sm:$0x3]  ;;  %v422_v35 = vmul.f32 %v607_v30, %v589_v11  ;;  %688 = vmatpush3.bf16.msra.mxu0 %v687_v26  ;;  %700 = vmatpush3.bf16.msra.mxu1 %v687_v26  ;;  %v599_v49 = vld [vmem:[%s800_s22 + $0x9] sm:$0x3]  ;;  %v307_v53 = vmul.f32 %v598_v41, %v597_v42  ;;  %v612_v54 = vld [vmem:[%s800_s22 + $0xc] sm:$0x3] }
  0x15   : > { %v297_v46 = vmul.f32 %v596_v32, %v595_v33  ;;  %v601_v56 = vld [vmem:[%s800_s22 + $0xa] sm:$0x3]  ;;  %v434_v58 = vmul.f32 %v611_v47, %v596_v32  ;;  %v316_v60 = vmul.f32 %v600_v48, %v599_v49  ;;  %v613_v61 = vld [vmem:[%s800_s22 + $0xd] sm:$0x3]  ;;  %v438_v63 = vmul.f32 %v612_v54, %v598_v41  ;;  %v604_v16 = vld [vmem:[%s855_s4] ss:$0 sm:$0xff] }
  0x16   : > { %v270_v38 = vadd.f32 %v269_v22, %v261_v27  ;;  %v423_v43 = vadd.f32 %v422_v35, %v419_v34  ;;  %v325_v1 = vmul.f32 %v602_v55, %v601_v56  ;;  %v614_v2 = vld [vmem:[%s800_s22 + $0xe] sm:$0x3]  ;;  %v441_v4 = vmul.f32 %v613_v61, %v600_v48 }
  0x17   : > { %v444_v8 = vmul.f32 %v614_v2, %v602_v55 }
  0x18   : > { %v280_v45 = vadd.f32 %v279_v28, %v270_v38  ;;  %v426_v50 = vadd.f32 %v425_v36, %v423_v43 }
  0x1a   : > { %v289_v52 = vadd.f32 %v288_v39, %v280_v45  ;;  %v429_v57 = vadd.f32 %v428_v44, %v426_v50 }
  0x1c   : > { %v298_v59 = vadd.f32 %v297_v46, %v289_v52  ;;  %v432_v62 = vadd.f32 %v431_v51, %v429_v57 }
  0x1e   : > { %v308_v0 = vadd.f32 %v307_v53, %v298_v59  ;;  %v435_v3 = vadd.f32 %v434_v58, %v432_v62 }
  0x20   : > { %v317_v5 = vadd.f32 %v316_v60, %v308_v0  ;;  %v439_v7 = vadd.f32 %v438_v63, %v435_v3 }
  0x22   : > { %v326_v9 = vadd.f32 %v325_v1, %v317_v5  ;;  %v442_v10 = vadd.f32 %v441_v4, %v439_v7 }
  0x24   : > { %v333_v11 = vadd.f32 %v603_v6, %v326_v9  ;;  %v445_v12 = vadd.f32 %v444_v8, %v442_v10 }
  0x26   : > { %v334_v13 = vmax.f32 %v333_v11, 0.0  ;;  %v446_v14 = vadd.f32 %v603_v6, %v445_v12 }
  0x28   : > { %656 = vmatmul.mubr.msk.f32.vlgmr.msra.gmra.mrb[0].mxu0 %vm341_vm1, %v334_v13  ;;  %v447_v15 = vmax.f32 %v446_v14, 0.0 }
  0x2a   : > { %675 = vmatmul.mubr.msk.f32.vlgmr.msra.gmra.mrb[0].mxu1 %vm341_vm1, %v447_v15 }
  0xfb   : > { %v411_v17 = vpop.f32.mrb[0].mxu0 }
  0xfc   : > { %v412_v18 = vadd.f32 %v604_v16, %v411_v17  ;;  %v657_v19 = vpop.f32.mrb[1].mxu0 }
  0xfd   : > { %v517_v21 = vpop.f32.mrb[0].mxu1 }
  0xfe   : > { %v415_v20 = vmax.f32 %v412_v18, 0.0  ;;  %v518_v22 = vadd.f32 %v604_v16, %v517_v21  ;;  %v676_v23 = vpop.f32.mrb[1].mxu1 }
 0x100   : > { %417 = vst.msk [vmem:[%s224_s17] sm:$0x3] %vm416_vm2, %v415_v20  ;;  %v521_v24 = vmax.f32 %v518_v22, 0.0 }
 0x102   : > { %616 = vst.msk [vmem:[%s224_s17 + $0x2] sm:$0x3] %vm416_vm2, %v521_v24 }
 0x103 PF: > { %s15_s18 = sadd.s32 1, %s718_s18  }
 0x104   : > { %p12_p4 = scmp.ge.s32.totalorder %s15_s18, 4  }
 0x106   :  { %14 = sbr.rel (!%p12_p4) target bundleno = 1 (0x1), region = 74 }

// kernel: mobilenet_v1_forward.20
= control target key start
LH: loop header
LB: loop body
LE: loop exit
PB: predicated region body
PF: predicated region fallthrough
CT: control target
= control target key end

     0   :  { %s752_s18 = smov 0   ;;  %s850_s0 = inlined_call_operand.vmem [shape: f32[2,4,4,64], index: 0, kind: input, shape index: {}]   ;;  %s851_s1 = inlined_call_operand.vmem [shape: f32[9,1,64], index: 1, kind: input, shape index: {}]   ;;  %s852_s2 = inlined_call_operand.vmem [shape: f32[1,64], index: 2, kind: input, shape index: {}]   ;;  %s853_s3 = inlined_call_operand.vmem [shape: f32[64,128], index: 3, kind: input, shape index: {}]   ;;  %s854_s4 = inlined_call_operand.vmem [shape: f32[1,128], index: 4, kind: input, shape index: {}]   ;;  %s855_s5 = inlined_call_operand.vmem [shape: f32[2,2,2,128], index: 5, kind: output, shape index: {}]  }
   0x1 LB: > { %s578_s19 = sadd.s32 4294967295, %s717_s18   ;;  %p582_p0 = scmp.ge.s32.totalorder %s717_s18, 1  ;;  %s717_s18 = sphi %s752_s18, %s15_s18  }
   0x2   : > { %p187_p1 = scmp.lt.s32.totalorder %s717_s18, 3 }
   0x4   : > { %p188_p2 = pnand %p582_p0, %p187_p1 }
   0x5   : > { %v235_v0 = vld [vmem:[%s853_s3] sm:$0xff] (!%p188_p2)  ;;  %v236_v1 = vld [vmem:[%s853_s3 + $0x8] sm:$0xff] (!%p188_p2)  ;;  %v237_v2 = vld [vmem:[%s853_s3 + $0x10] sm:$0xff] (!%p188_p2)  ;;  %v719_v3 = vmov (!%p188_p2), 0.0|0.0   ;;  %p215_p3 = scmp.lt.s32.totalorder (!%p188_p2), %s578_s19, 1  ;;  %vm720_vm0 = vmmov (!%p188_p2), 0  }
   0x6   : > { %191 = sbr.rel (%p188_p2) target bundleno = 259 (0x103), region = 40  ;;  %676 = vmatprep.subr.bf16.mxu0 (!%p188_p2), %v719_v3  ;;  %688 = vmatprep.subr.bf16.mxu1 (!%p188_p2), %v719_v3  ;;  %v677_v4 = vpack.c.bf16 (!%p188_p2), %v236_v1, %v235_v0  ;;  %v238_v5 = vld [vmem:[%s853_s3 + $0x18] sm:$0xff] (!%p188_p2)  ;;  %v721_v6 = vmov (!%p188_p2), 0.0   ;;  %v239_v8 = vld [vmem:[%s853_s3 + $0x20] sm:$0xff] (!%p188_p2)  ;;  %v240_v9 = vld [vmem:[%s853_s3 + $0x28] sm:$0xff] (!%p188_p2)  ;;  %vm341_vm1 = vcmask (!%p188_p2), 523264  }
   0x7   : > { %654 = vmatprep.mubr.msk.f32.mxu0 (!%p188_p2), %vm720_vm0, %v721_v6  ;;  %673 = vmatprep.mubr.msk.f32.mxu1 (!%p188_p2), %vm720_vm0, %v721_v6  ;;  %v680_v7 = vpack.c.bf16 (!%p188_p2), %v238_v5, %v237_v2  ;;  %v587_v10 = vld [vmem:[%s851_s1] ss:$0 sm:$0xff] (!%p188_p2)  ;;  %v588_v11 = vld [vmem:[%s851_s1 + $0x1] ss:$0 sm:$0xff] (!%p188_p2)  ;;  %v589_v12 = vld [vmem:[%s851_s1 + $0x2] ss:$0 sm:$0xff] (!%p188_p2)  ;;  %v683_v16 = vpack.c.bf16 (!%p188_p2), %v240_v9, %v239_v8 }
   0x8   : > { %678 = vmatpush3.bf16.msra.mxu0 (!%p188_p2), %v677_v4  ;;  %690 = vmatpush3.bf16.msra.mxu1 (!%p188_p2), %v677_v4  ;;  %v241_v13 = vld [vmem:[%s853_s3 + $0x30] sm:$0xff] (!%p188_p2)  ;;  %v242_v14 = vld [vmem:[%s853_s3 + $0x38] sm:$0xff] (!%p188_p2)  ;;  %v591_v15 = vld [vmem:[%s851_s1 + $0x3] ss:$0 sm:$0xff] (!%p188_p2) }
   0x9   : > { %679 = vmatprep.subr.bf16.mxu0 (!%p188_p2), %v719_v3  ;;  %691 = vmatprep.subr.bf16.mxu1 (!%p188_p2), %v719_v3  ;;  %v593_v24 = vld [vmem:[%s851_s1 + $0x4] ss:$0 sm:$0xff] (!%p188_p2)  ;;  %v686_v26 = vpack.c.bf16 (!%p188_p2), %v242_v14, %v241_v13  ;;  %v595_v32 = vld [vmem:[%s851_s1 + $0x5] ss:$0 sm:$0xff] (!%p188_p2)  ;;  %v597_v41 = vld [vmem:[%s851_s1 + $0x6] ss:$0 sm:$0xff] (!%p188_p2) }
   0xa   : > { %v599_v48 = vld [vmem:[%s851_s1 + $0x7] ss:$0 sm:$0xff] (!%p188_p2)  ;;  %v601_v55 = vld [vmem:[%s851_s1 + $0x8] ss:$0 sm:$0xff] (!%p188_p2)  ;;  %v602_v6 = vld [vmem:[%s852_s2] ss:$0 sm:$0xff] (!%p188_p2) }
   0xc   : > { %681 = vmatpush3.bf16.msra.mxu0 (!%p188_p2), %v680_v7  ;;  %693 = vmatpush3.bf16.msra.mxu1 (!%p188_p2), %v680_v7 }
   0xd   : > { %s857_s19 = smov (!%p215_p3, %s578_s19), 1  ;;  %682 = vmatprep.subr.bf16.mxu0 %v719_v3  ;;  %694 = vmatprep.subr.bf16.mxu1 %v719_v3 }
   0xe   : > { %s618_s9 = sshll.u32 %s857_s19, 4  ;;  %s619_s14 = sshll.u32 %s857_s19, 2 }
   0xf   : > { %s799_s22 = scalar_lea.vmem %s850_s0, %s618_s9  ;;  %s224_s17 = scalar_lea.vmem %s855_s5, %s619_s14 }
  0x10   : > { %v244_v17 = vld [vmem:[%s799_s22] sm:$0x3]  ;;  %v262_v19 = vld [vmem:[%s799_s22 + $0x2] sm:$0x3]  ;;  %v590_v23 = vld [vmem:[%s799_s22 + $0x4] sm:$0x3]  ;;  %684 = vmatpush3.bf16.msra.mxu0 %v683_v16  ;;  %696 = vmatpush3.bf16.msra.mxu1 %v683_v16 }
  0x11   : > { %v253_v18 = vld [vmem:[%s799_s22 + $0x1] sm:$0x3]  ;;  %v251_v20 = vmul.f32 %v587_v10, %v244_v17  ;;  %v269_v22 = vmul.f32 %v589_v12, %v262_v19  ;;  %v592_v25 = vld [vmem:[%s799_s22 + $0x5] sm:$0x3]  ;;  %v279_v28 = vmul.f32 %v591_v15, %v590_v23  ;;  %v608_v37 = vld [vmem:[%s799_s22 + $0x8] sm:$0x3]  ;;  %685 = vmatprep.subr.bf16.mxu0 %v719_v3  ;;  %697 = vmatprep.subr.bf16.mxu1 %v719_v3 }
  0x12   : > { %v260_v21 = vmul.f32 %v588_v11, %v253_v18  ;;  %v605_v29 = vld [vmem:[%s799_s22 + $0x4] sm:$0x3]  ;;  %v607_v31 = vld [vmem:[%s799_s22 + $0x6] sm:$0x3]  ;;  %v288_v39 = vmul.f32 %v593_v24, %v592_v25  ;;  %v609_v40 = vld [vmem:[%s799_s22 + $0x9] sm:$0x3]  ;;  %v427_v44 = vmul.f32 %v608_v37, %v591_v15 }
  0x13   : > { %v606_v30 = vld [vmem:[%s799_s22 + $0x5] sm:$0x3]  ;;  %v418_v34 = vmul.f32 %v605_v29, %v587_v10  ;;  %v424_v36 = vmul.f32 %v607_v31, %v589_v12  ;;  %v596_v42 = vld [vmem:[%s799_s22 + $0x8] sm:$0x3]  ;;  %v610_v47 = vld [vmem:[%s799_s22 + $0xa] sm:$0x3]  ;;  %v430_v51 = vmul.f32 %v609_v40, %v593_v24 }
  0x14   : > { %v261_v27 = vadd.f32 %v260_v21, %v251_v20  ;;  %v594_v33 = vld [vmem:[%s799_s22 + $0x6] sm:$0x3]  ;;  %v421_v35 = vmul.f32 %v606_v30, %v588_v11  ;;  %687 = vmatpush3.bf16.msra.mxu0 %v686_v26  ;;  %699 = vmatpush3.bf16.msra.mxu1 %v686_v26  ;;  %v598_v49 = vld [vmem:[%s799_s22 + $0x9] sm:$0x3]  ;;  %v307_v53 = vmul.f32 %v597_v41, %v596_v42  ;;  %v611_v54 = vld [vmem:[%s799_s22 + $0xc] sm:$0x3] }
  0x15   : > { %v297_v46 = vmul.f32 %v595_v32, %v594_v33  ;;  %v600_v56 = vld [vmem:[%s799_s22 + $0xa] sm:$0x3]  ;;  %v433_v58 = vmul.f32 %v610_v47, %v595_v32  ;;  %v316_v60 = vmul.f32 %v599_v48, %v598_v49  ;;  %v612_v61 = vld [vmem:[%s799_s22 + $0xd] sm:$0x3]  ;;  %v437_v63 = vmul.f32 %v611_v54, %v597_v41  ;;  %v603_v16 = vld [vmem:[%s854_s4] ss:$0 sm:$0xff] }
  0x16   : > { %v270_v38 = vadd.f32 %v269_v22, %v261_v27  ;;  %v422_v43 = vadd.f32 %v421_v35, %v418_v34  ;;  %v325_v1 = vmul.f32 %v601_v55, %v600_v56  ;;  %v613_v2 = vld [vmem:[%s799_s22 + $0xe] sm:$0x3]  ;;  %v440_v4 = vmul.f32 %v612_v61, %v599_v48 }
  0x17   : > { %v443_v8 = vmul.f32 %v613_v2, %v601_v55 }
  0x18   : > { %v280_v45 = vadd.f32 %v279_v28, %v270_v38  ;;  %v425_v50 = vadd.f32 %v424_v36, %v422_v43 }
  0x1a   : > { %v289_v52 = vadd.f32 %v288_v39, %v280_v45  ;;  %v428_v57 = vadd.f32 %v427_v44, %v425_v50 }
  0x1c   : > { %v298_v59 = vadd.f32 %v297_v46, %v289_v52  ;;  %v431_v62 = vadd.f32 %v430_v51, %v428_v57 }
  0x1e   : > { %v308_v0 = vadd.f32 %v307_v53, %v298_v59  ;;  %v434_v3 = vadd.f32 %v433_v58, %v431_v62 }
  0x20   : > { %v317_v5 = vadd.f32 %v316_v60, %v308_v0  ;;  %v438_v7 = vadd.f32 %v437_v63, %v434_v3 }
  0x22   : > { %v326_v9 = vadd.f32 %v325_v1, %v317_v5  ;;  %v441_v10 = vadd.f32 %v440_v4, %v438_v7 }
  0x24   : > { %v333_v11 = vadd.f32 %v602_v6, %v326_v9  ;;  %v444_v12 = vadd.f32 %v443_v8, %v441_v10 }
  0x26   : > { %v334_v13 = vmax.f32 %v333_v11, 0.0  ;;  %v445_v14 = vadd.f32 %v602_v6, %v444_v12 }
  0x28   : > { %655 = vmatmul.mubr.msk.f32.vlgmr.msra.gmra.mrb[0].mxu0 %vm341_vm1, %v334_v13  ;;  %v446_v15 = vmax.f32 %v445_v14, 0.0 }
  0x2a   : > { %674 = vmatmul.mubr.msk.f32.vlgmr.msra.gmra.mrb[0].mxu1 %vm341_vm1, %v446_v15 }
  0xfb   : > { %v411_v17 = vpop.f32.mrb[0].mxu0 }
  0xfc   : > { %v412_v18 = vadd.f32 %v603_v16, %v411_v17  ;;  %v656_v19 = vpop.f32.mrb[1].mxu0 }
  0xfd   : > { %v516_v21 = vpop.f32.mrb[0].mxu1 }
  0xfe   : > { %v415_v20 = vmax.f32 %v412_v18, 0.0  ;;  %v517_v22 = vadd.f32 %v603_v16, %v516_v21  ;;  %v675_v23 = vpop.f32.mrb[1].mxu1 }
 0x100   : > { %416 = vst [vmem:[%s224_s17] sm:$0x3] %v415_v20  ;;  %v520_v24 = vmax.f32 %v517_v22, 0.0 }
 0x102   : > { %615 = vst [vmem:[%s224_s17 + $0x2] sm:$0x3] %v520_v24 }
 0x103 PF: > { %s15_s18 = sadd.s32 1, %s717_s18  }
 0x104   : > { %p12_p4 = scmp.ge.s32.totalorder %s15_s18, 4  }
 0x106   :  { %14 = sbr.rel (!%p12_p4) target bundleno = 1 (0x1), region = 74 }

// kernel: mobilenet_v1_forward.21
= control target key start
LH: loop header
LB: loop body
LE: loop exit
PB: predicated region body
PF: predicated region fallthrough
CT: control target
= control target key end

     0   :  { %s541_s18 = smov 0   ;;  %s662_s0 = inlined_call_operand.vmem [shape: f32[2,3,3,128], index: 0, kind: input, shape index: {}]   ;;  %s663_s1 = inlined_call_operand.vmem [shape: f32[9,1,128], index: 1, kind: input, shape index: {}]   ;;  %s664_s2 = inlined_call_operand.vmem [shape: f32[1,128], index: 2, kind: input, shape index: {}]   ;;  %s665_s3 = inlined_call_operand.vmem [shape: f32[128,128], index: 3, kind: input, shape index: {}]   ;;  %s666_s4 = inlined_call_operand.vmem [shape: f32[1,128], index: 4, kind: input, shape index: {}]   ;;  %s667_s5 = inlined_call_operand.vmem [shape: f32[2,1,1,128], index: 5, kind: output, shape index: {}]  }
   0x1 LB: > { %s398_s19 = sadd.s32 4294967295, %s506_s18   ;;  %p402_p0 = scmp.ge.s32.totalorder %s506_s18, 1  ;;  %s506_s18 = sphi %s541_s18, %s15_s18  }
   0x2   : > { %p187_p1 = scmp.lt.s32.totalorder %s506_s18, 3 }
   0x4   : > { %p188_p2 = pnand %p402_p0, %p187_p1 }
   0x5   : > { %v231_v0 = vld [vmem:[%s665_s3] sm:$0xff] (!%p188_p2)  ;;  %v232_v1 = vld [vmem:[%s665_s3 + $0x8] sm:$0xff] (!%p188_p2)  ;;  %v233_v2 = vld [vmem:[%s665_s3 + $0x10] sm:$0xff] (!%p188_p2)  ;;  %v508_v3 = vmov (!%p188_p2), 0.0|0.0   ;;  %vm509_vm0 = vmmov (!%p188_p2), 0   ;;  %v510_v6 = vmov (!%p188_p2), 0.0  }
   0x6   : > { %191 = sbr.rel (%p188_p2) target bundleno = 257 (0x101), region = 40  ;;  %464 = vmatprep.subr.bf16.mxu0 (!%p188_p2), %v508_v3  ;;  %v465_v4 = vpack.c.bf16 (!%p188_p2), %v232_v1, %v231_v0  ;;  %v234_v5 = vld [vmem:[%s665_s3 + $0x18] sm:$0xff] (!%p188_p2)  ;;  %461 = vmatprep.mubr.msk.f32.mxu0 (!%p188_p2), %vm509_vm0, %v510_v6  ;;  %p213_p3 = scmp.lt.s32.totalorder (!%p188_p2), %s398_s19, 1  ;;  %v235_v8 = vld [vmem:[%s665_s3 + $0x20] sm:$0xff] (!%p188_p2)  ;;  %v236_v9 = vld [vmem:[%s665_s3 + $0x28] sm:$0xff] (!%p188_p2) }
   0x7   : > { %v468_v7 = vpack.c.bf16 (!%p188_p2), %v234_v5, %v233_v2  ;;  %v221_v10 = vld [vmem:[%s663_s1] sm:$0x1] (!%p188_p2)  ;;  %v471_v11 = vpack.c.bf16 (!%p188_p2), %v236_v9, %v235_v8  ;;  %v237_v12 = vld [vmem:[%s665_s3 + $0x30] sm:$0xff] (!%p188_p2)  ;;  %v222_v13 = vld [vmem:[%s663_s1 + $0x1] sm:$0x1] (!%p188_p2) }
   0x8   : > { %466 = vmatpush3.bf16.msra.mxu0 (!%p188_p2), %v465_v4  ;;  %v223_v14 = vld [vmem:[%s663_s1 + $0x2] sm:$0x1] (!%p188_p2)  ;;  %v238_v15 = vld [vmem:[%s665_s3 + $0x38] sm:$0xff] (!%p188_p2)  ;;  %v224_v16 = vld [vmem:[%s663_s1 + $0x3] sm:$0x1] (!%p188_p2) }
   0x9   : > { %467 = vmatprep.subr.bf16.mxu0 (!%p188_p2), %v508_v3  ;;  %v474_v24 = vpack.c.bf16 (!%p188_p2), %v238_v15, %v237_v12  ;;  %v225_v25 = vld [vmem:[%s663_s1 + $0x4] sm:$0x1] (!%p188_p2)  ;;  %v240_v28 = vld [vmem:[%s665_s3 + $0x48] sm:$0xff] (!%p188_p2)  ;;  %v226_v31 = vld [vmem:[%s663_s1 + $0x5] sm:$0x1] (!%p188_p2) }
   0xa   : > { %v239_v27 = vld [vmem:[%s665_s3 + $0x40] sm:$0xff] (!%p188_p2)  ;;  %v241_v38 = vld [vmem:[%s665_s3 + $0x50] sm:$0xff] (!%p188_p2)  ;;  %v242_v39 = vld [vmem:[%s665_s3 + $0x58] sm:$0xff] (!%p188_p2) }
   0xb   : > { %v477_v35 = vpack.c.bf16 (!%p188_p2), %v240_v28, %v239_v27  ;;  %v227_v36 = vld [vmem:[%s663_s1 + $0x6] sm:$0x1] (!%p188_p2)  ;;  %v228_v42 = vld [vmem:[%s663_s1 + $0x7] sm:$0x1] (!%p188_p2)  ;;  %v480_v46 = vpack.c.bf16 (!%p188_p2), %v242_v39, %v241_v38  ;;  %v229_v47 = vld [vmem:[%s663_s1 + $0x8] sm:$0x1] (!%p188_p2) }
   0xc   : > { %469 = vmatpush3.bf16.msra.mxu0 (!%p188_p2), %v468_v7  ;;  %v243_v49 = vld [vmem:[%s665_s3 + $0x60] sm:$0xff] (!%p188_p2)  ;;  %v244_v50 = vld [vmem:[%s665_s3 + $0x68] sm:$0xff] (!%p188_p2)  ;;  %v245_v56 = vld [vmem:[%s665_s3 + $0x70] sm:$0xff] (!%p188_p2) }
   0xd   : > { %s669_s19 = smov (!%p213_p3, %s398_s19), 1  ;;  %470 = vmatprep.subr.bf16.mxu0 %v508_v3  ;;  %v483_v55 = vpack.c.bf16 %v244_v50, %v243_v49  ;;  %v246_v57 = vld [vmem:[%s665_s3 + $0x78] sm:$0xff]  ;;  %v230_v59 = vld [vmem:[%s664_s2] sm:$0x1] }
   0xe   : > { %s488_s7 = smul.u32 12, %s669_s19  ;;  %v486_v61 = vpack.c.bf16 %v246_v57, %v245_v56  ;;  %v247_v0 = vld [vmem:[%s666_s4] sm:$0x1]  ;;  %s220_s9 = scalar_lea.vmem %s667_s5, %s669_s19 }
  0x10   : > { %s581_s14 = scalar_lea.vmem %s662_s0, %s488_s7  ;;  %472 = vmatpush3.bf16.msra.mxu0 %v471_v11 }
  0x11   : > { %v248_v17 = vld [vmem:[%s581_s14] sm:$0x1]  ;;  %v251_v19 = vld [vmem:[%s581_s14 + $0x1] sm:$0x1]  ;;  %v254_v20 = vld [vmem:[%s581_s14 + $0x2] sm:$0x1]  ;;  %473 = vmatprep.subr.bf16.mxu0 %v508_v3 }
  0x12   : > { %v249_v18 = vmul.f32 %v248_v17, %v221_v10  ;;  %v404_v21 = vld [vmem:[%s581_s14 + $0x4] sm:$0x1]  ;;  %v252_v22 = vmul.f32 %v251_v19, %v222_v13  ;;  %v255_v23 = vmul.f32 %v254_v20, %v223_v14  ;;  %v405_v26 = vld [vmem:[%s581_s14 + $0x5] sm:$0x1]  ;;  %v406_v32 = vld [vmem:[%s581_s14 + $0x6] sm:$0x1] }
  0x13   : > { %v259_v30 = vmul.f32 %v404_v21, %v224_v16  ;;  %v262_v34 = vmul.f32 %v405_v26, %v225_v25  ;;  %v407_v37 = vld [vmem:[%s581_s14 + $0x8] sm:$0x1]  ;;  %v265_v41 = vmul.f32 %v406_v32, %v226_v31  ;;  %v408_v43 = vld [vmem:[%s581_s14 + $0x9] sm:$0x1]  ;;  %v409_v48 = vld [vmem:[%s581_s14 + $0xa] sm:$0x1] }
  0x14   : > { %v253_v29 = vadd.f32 %v252_v22, %v249_v18  ;;  %475 = vmatpush3.bf16.msra.mxu0 %v474_v24  ;;  %v269_v45 = vmul.f32 %v407_v37, %v227_v36  ;;  %v272_v52 = vmul.f32 %v408_v43, %v228_v42  ;;  %v275_v54 = vmul.f32 %v409_v48, %v229_v47 }
  0x15   : > { %476 = vmatprep.subr.bf16.mxu0 %v508_v3 }
  0x16   : > { %v256_v33 = vadd.f32 %v255_v23, %v253_v29 }
  0x18   : > { %v260_v40 = vadd.f32 %v259_v30, %v256_v33  ;;  %478 = vmatpush3.bf16.msra.mxu0 %v477_v35 }
  0x19   : > { %479 = vmatprep.subr.bf16.mxu0 %v508_v3 }
  0x1a   : > { %v263_v44 = vadd.f32 %v262_v34, %v260_v40 }
  0x1c   : > { %v266_v51 = vadd.f32 %v265_v41, %v263_v44  ;;  %481 = vmatpush3.bf16.msra.mxu0 %v480_v46 }
  0x1d   : > { %482 = vmatprep.subr.bf16.mxu0 %v508_v3 }
  0x1e   : > { %v270_v53 = vadd.f32 %v269_v45, %v266_v51 }
  0x20   : > { %v273_v58 = vadd.f32 %v272_v52, %v270_v53  ;;  %484 = vmatpush3.bf16.msra.mxu0 %v483_v55 }
  0x21   : > { %485 = vmatprep.subr.bf16.mxu0 %v508_v3 }
  0x22   : > { %v276_v60 = vadd.f32 %v275_v54, %v273_v58 }
  0x24   : > { %v277_v62 = vadd.f32 %v276_v60, %v230_v59  ;;  %487 = vmatpush3.bf16.msra.mxu0 %v486_v61 }
  0x26   : > { %v278_v63 = vmax.f32 %v277_v62, 0.0 }
  0x28   : > { %462 = vmatmul.mubr.f32.vlgmr.msra.gmra.mrb[0].mxu0 %v278_v63 }
  0xfb   : > { %v345_v1 = vpop.f32.mrb[0].mxu0 }
  0xfc   : > { %v346_v2 = vadd.f32 %v345_v1, %v247_v0  ;;  %v463_v4 = vpop.f32.mrb[1].mxu0 }
  0xfe   : > { %v349_v5 = vmax.f32 %v346_v2, 0.0 }
 0x100   : > { %350 = vst [vmem:[%s220_s9] sm:$0x1] %v349_v5 }
 0x101 PF: > { %s15_s18 = sadd.s32 1, %s506_s18  }
 0x102   : > { %p12_p4 = scmp.ge.s32.totalorder %s15_s18, 4  }
 0x104   :  { %14 = sbr.rel (!%p12_p4) target bundleno = 1 (0x1), region = 72 }

// kernel: mobilenet_v1_forward.26
= control target key start
LH: loop header
LB: loop body
LE: loop exit
PB: predicated region body
PF: predicated region fallthrough
CT: control target
= control target key end

     0   :  { %s555_s18 = smov 0   ;;  %s722_s0 = inlined_call_operand.vmem [shape: f32[2,3,3,128], index: 0, kind: input, shape index: {}]   ;;  %s723_s1 = inlined_call_operand.vmem [shape: f32[9,1,128], index: 1, kind: input, shape index: {}]   ;;  %s724_s2 = inlined_call_operand.vmem [shape: f32[1,128], index: 2, kind: input, shape index: {}]   ;;  %s725_s3 = inlined_call_operand.vmem [shape: f32[128,256], index: 3, kind: input, shape index: {}]   ;;  %s726_s4 = inlined_call_operand.vmem [shape: f32[1,256], index: 4, kind: input, shape index: {}]   ;;  %s727_s5 = inlined_call_operand.vmem [shape: f32[2,1,1,256], index: 5, kind: output, shape index: {}]  }
   0x1 LB: > { %s457_s19 = sadd.s32 4294967295, %s521_s18   ;;  %p461_p0 = scmp.ge.s32.totalorder %s521_s18, 1  ;;  %s521_s18 = sphi %s555_s18, %s15_s18  }
   0x2   : > { %p187_p1 = scmp.lt.s32.totalorder %s521_s18, 3 }
   0x4   : > { %p188_p2 = pnand %p461_p0, %p187_p1 }
   0x5   : > { %v234_v0 = vld [vmem:[%s725_s3 + $0x8] sm:$0xff] (!%p188_p2)  ;;  %v236_v1 = vld [vmem:[%s725_s3 + $0x18] sm:$0xff] (!%p188_p2)  ;;  %v233_v2 = vld [vmem:[%s725_s3] sm:$0xff] (!%p188_p2)  ;;  %p572_p3 = scmp.lt.s32.totalorder (!%p188_p2), %s457_s19, 1  ;;  %v523_v7 = vmov (!%p188_p2), 0.0  }
   0x6   : > { %191 = sbr.rel (%p188_p2) target bundleno = 264 (0x108), region = 40  ;;  %v472_v3 = vpack.c.bf16 (!%p188_p2), %v236_v1, %v234_v0  ;;  %v235_v4 = vld [vmem:[%s725_s3 + $0x10] sm:$0xff] (!%p188_p2)  ;;  %v238_v5 = vld [vmem:[%s725_s3 + $0x28] sm:$0xff] (!%p188_p2)  ;;  %v240_v6 = vld [vmem:[%s725_s3 + $0x38] sm:$0xff] (!%p188_p2)  ;;  %372 = vmatprep.mubr.f32.mxu0 (!%p188_p2), %v523_v7 }
   0x7   : > { %v474_v8 = vpack.c.bf16 (!%p188_p2), %v235_v4, %v233_v2  ;;  %v476_v9 = vpack.c.bf16 (!%p188_p2), %v240_v6, %v238_v5  ;;  %v237_v10 = vld [vmem:[%s725_s3 + $0x20] sm:$0xff] (!%p188_p2)  ;;  %v239_v11 = vld [vmem:[%s725_s3 + $0x30] sm:$0xff] (!%p188_p2)  ;;  %v242_v12 = vld [vmem:[%s725_s3 + $0x48] sm:$0xff] (!%p188_p2) }
   0x8   : > { %473 = vmatprep.subr.bf16.mxu0 (!%p188_p2), %v472_v3  ;;  %v244_v13 = vld [vmem:[%s725_s3 + $0x58] sm:$0xff] (!%p188_p2)  ;;  %v478_v14 = vpack.c.bf16 (!%p188_p2), %v239_v11, %v237_v10  ;;  %v241_v16 = vld [vmem:[%s725_s3 + $0x40] sm:$0xff] (!%p188_p2)  ;;  %v243_v17 = vld [vmem:[%s725_s3 + $0x50] sm:$0xff] (!%p188_p2) }
   0x9   : > { %475 = vmatpush1.bf16.msra.mxu0 (!%p188_p2), %v474_v8  ;;  %v480_v15 = vpack.c.bf16 (!%p188_p2), %v244_v13, %v242_v12  ;;  %v246_v18 = vld [vmem:[%s725_s3 + $0x68] sm:$0xff] (!%p188_p2)  ;;  %v248_v19 = vld [vmem:[%s725_s3 + $0x78] sm:$0xff] (!%p188_p2)  ;;  %v482_v20 = vpack.c.bf16 (!%p188_p2), %v243_v17, %v241_v16  ;;  %v245_v22 = vld [vmem:[%s725_s3 + $0x60] sm:$0xff] (!%p188_p2) }
   0xa   : > { %477 = vmatprep.subr.bf16.mxu0 (!%p188_p2), %v476_v9  ;;  %v484_v21 = vpack.c.bf16 (!%p188_p2), %v248_v19, %v246_v18  ;;  %v247_v23 = vld [vmem:[%s725_s3 + $0x70] sm:$0xff] (!%p188_p2)  ;;  %v250_v24 = vld [vmem:[%s725_s3 + $0x88] sm:$0xff] (!%p188_p2)  ;;  %v252_v25 = vld [vmem:[%s725_s3 + $0x98] sm:$0xff] (!%p188_p2) }
   0xb   : > { %v249_v26 = vld [vmem:[%s725_s3 + $0x80] sm:$0xff] (!%p188_p2)  ;;  %v251_v27 = vld [vmem:[%s725_s3 + $0x90] sm:$0xff] (!%p188_p2)  ;;  %v486_v28 = vpack.c.bf16 (!%p188_p2), %v247_v23, %v245_v22  ;;  %v488_v32 = vpack.c.bf16 (!%p188_p2), %v252_v25, %v250_v24  ;;  %v254_v33 = vld [vmem:[%s725_s3 + $0xa8] sm:$0xff] (!%p188_p2)  ;;  %v298_v23 = vlaneseq (!%p188_p2) }
   0xc   : > { %v223_v29 = vld [vmem:[%s723_s1] sm:$0x1] (!%p188_p2)  ;;  %v224_v30 = vld [vmem:[%s723_s1 + $0x1] sm:$0x1] (!%p188_p2)  ;;  %v225_v31 = vld [vmem:[%s723_s1 + $0x2] sm:$0x1] (!%p188_p2)  ;;  %v490_v43 = vpack.c.bf16 (!%p188_p2), %v251_v27, %v249_v26 }
   0xd   : > { %s730_s19 = smov (!%p572_p3, %s457_s19), 1  ;;  %479 = vmatpush1.bf16.msra.mxu0 %v478_v14  ;;  %v256_v34 = vld [vmem:[%s725_s3 + $0xb8] sm:$0xff]  ;;  %v226_v35 = vld [vmem:[%s723_s1 + $0x3] sm:$0x1]  ;;  %v227_v44 = vld [vmem:[%s723_s1 + $0x4] sm:$0x1] }
   0xe   : > { %s504_s26 = smul.u32 12, %s730_s19  ;;  %481 = vmatprep.subr.bf16.mxu0 %v480_v15  ;;  %v492_v46 = vpack.c.bf16 %v256_v34, %v254_v33  ;;  %v253_v47 = vld [vmem:[%s725_s3 + $0xa0] sm:$0xff]  ;;  %v255_v48 = vld [vmem:[%s725_s3 + $0xb0] sm:$0xff]  ;;  %v258_v49 = vld [vmem:[%s725_s3 + $0xc8] sm:$0xff]  ;;  %v299_v24 = vshrl.u32 %v298_v23, 7  ;;  %s463_s20 = sshll.u32 %s730_s19, 1 }
   0xf   : > { %v260_v52 = vld [vmem:[%s725_s3 + $0xd8] sm:$0xff]  ;;  %v228_v53 = vld [vmem:[%s723_s1 + $0x5] sm:$0x1]  ;;  %v494_v57 = vpack.c.bf16 %v255_v48, %v253_v47  ;;  %v229_v58 = vld [vmem:[%s723_s1 + $0x6] sm:$0x1]  ;;  %vm401_vm0 = vcmp.lt.s32.totalorder %v298_v23, 256  ;;  %s222_s23 = scalar_lea.vmem %s727_s5, %s463_s20 }
  0x10   : > { %s635_s16 = scalar_lea.vmem %s722_s0, %s504_s26  ;;  %v496_v60 = vpack.c.bf16 %v260_v52, %v258_v49  ;;  %v257_v61 = vld [vmem:[%s725_s3 + $0xc0] sm:$0xff]  ;;  %v259_v62 = vld [vmem:[%s725_s3 + $0xd0] sm:$0xff]  ;;  %v262_v63 = vld [vmem:[%s725_s3 + $0xe8] sm:$0xff]  ;;  %v300_v25 = vsub.s32 0, %v299_v24  ;;  %v304_v27 = vsub.s32 1, %v299_v24 }
  0x11   : > { %483 = vmatpush1.bf16.msra.mxu0 %v482_v20  ;;  %v266_v36 = vld [vmem:[%s635_s16] sm:$0x1]  ;;  %v269_v37 = vld [vmem:[%s635_s16 + $0x1] sm:$0x1]  ;;  %v272_v38 = vld [vmem:[%s635_s16 + $0x2] sm:$0x1]  ;;  %v498_v7 = vpack.c.bf16 %v259_v62, %v257_v61 }
  0x12   : > { %485 = vmatprep.subr.bf16.mxu0 %v484_v21  ;;  %v267_v39 = vmul.f32 %v266_v36, %v223_v29  ;;  %v270_v40 = vmul.f32 %v269_v37, %v224_v30  ;;  %v273_v41 = vmul.f32 %v272_v38, %v225_v31  ;;  %v464_v42 = vld [vmem:[%s635_s16 + $0x4] sm:$0x1]  ;;  %v465_v45 = vld [vmem:[%s635_s16 + $0x5] sm:$0x1]  ;;  %v466_v54 = vld [vmem:[%s635_s16 + $0x6] sm:$0x1] }
  0x13   : > { %v277_v51 = vmul.f32 %v464_v42, %v226_v35  ;;  %v280_v56 = vmul.f32 %v465_v45, %v227_v44  ;;  %v467_v59 = vld [vmem:[%s635_s16 + $0x8] sm:$0x1]  ;;  %v283_v1 = vmul.f32 %v466_v54, %v228_v53  ;;  %v264_v2 = vld [vmem:[%s725_s3 + $0xf8] sm:$0xff]  ;;  %v230_v3 = vld [vmem:[%s723_s1 + $0x7] sm:$0x1] }
  0x14   : > { %v271_v50 = vadd.f32 %v270_v40, %v267_v39  ;;  %v468_v4 = vld [vmem:[%s635_s16 + $0x9] sm:$0x1]  ;;  %v287_v6 = vmul.f32 %v467_v59, %v229_v58  ;;  %v231_v8 = vld [vmem:[%s723_s1 + $0x8] sm:$0x1]  ;;  %v469_v9 = vld [vmem:[%s635_s16 + $0xa] sm:$0x1]  ;;  %v500_v10 = vpack.c.bf16 %v264_v2, %v262_v63 }
  0x15   : > { %487 = vmatpush1.bf16.msra.mxu0 %v486_v28  ;;  %v261_v11 = vld [vmem:[%s725_s3 + $0xe0] sm:$0xff]  ;;  %v263_v12 = vld [vmem:[%s725_s3 + $0xf0] sm:$0xff]  ;;  %v290_v14 = vmul.f32 %v468_v4, %v230_v3  ;;  %v293_v16 = vmul.f32 %v469_v9, %v231_v8  ;;  %v524_v28 = vmov 1966171168  }
  0x16   : > { %489 = vmatprep.subr.bf16.mxu0 %v488_v32  ;;  %v274_v55 = vadd.f32 %v273_v41, %v271_v50  ;;  %v502_v17 = vpack.c.bf16 %v263_v12, %v261_v11  ;;  %v232_v19 = vld [vmem:[%s724_s2] sm:$0x1]  ;;  %v385_v29 = vunpack.c.l.s4 %v524_v28 }
  0x17   : > { %v265_v26 = vld [vmem:[%s726_s4] sm:$0x3] }
  0x18   : > { %v278_v0 = vadd.f32 %v277_v51, %v274_v55  ;;  %v301_v30 = vrot.slane %v265_v26, %v300_v25  ;;  %v305_v31 = vrot.slane %v265_v26, %v304_v27  ;;  %v386_v33 = vunpack.c.0.s8 %v385_v29 }
  0x19   : > { %491 = vmatpush1.bf16.msra.mxu0 %v490_v43 }
  0x1a   : > { %493 = vmatprep.subr.bf16.mxu0 %v492_v46  ;;  %v281_v5 = vadd.f32 %v280_v56, %v278_v0  ;;  %v389_v39 = vsub.s32 %v386_v33, %v299_v24 }
  0x1c   : > { %v284_v13 = vadd.f32 %v283_v1, %v281_v5 }
  0x1d   : > { %495 = vmatpush1.bf16.msra.mxu0 %v494_v57 }
  0x1e   : > { %497 = vmatprep.subr.bf16.mxu0 %v496_v60  ;;  %v288_v15 = vadd.f32 %v287_v6, %v284_v13 }
  0x20   : > { %v291_v18 = vadd.f32 %v290_v14, %v288_v15 }
  0x21   : > { %499 = vmatpush1.bf16.msra.mxu0 %v498_v7 }
  0x22   : > { %501 = vmatprep.subr.bf16.mxu0 %v500_v10  ;;  %v294_v20 = vadd.f32 %v293_v16, %v291_v18 }
  0x24   : > { %v295_v21 = vadd.f32 %v294_v20, %v232_v19 }
  0x25   : > { %503 = vmatpush1.bf16.msra.mxu0 %v502_v17 }
  0x26   : > { %v296_v22 = vmax.f32 %v295_v21, 0.0 }
  0x28   : > { %373 = vmatmul.mubr.f32.vlgmr.msra.gmra.mrb[0].mxu0 %v296_v22 }
  0xfb   : > { %v374_v32 = vpop.f32.mrb[0].mxu0 }
  0xfc   : > { %v375_v34 = vadd.f32 %v374_v32, %v301_v30  ;;  %v376_v35 = vpop.f32.mrb[1].mxu0 }
  0xfd   : > { %v377_v36 = vadd.f32 %v376_v35, %v305_v31 }
  0xfe   : > { %v379_v37 = vmax.f32 %v375_v34, 0.0 }
  0xff   : > { %v380_v38 = vmax.f32 %v377_v36, 0.0 }
 0x101   : > { %v383_v40 = vcombine.low %v379_v37, %v380_v38 }
 0x103   : > { %v390_v41 = vrot.slane %v383_v40, %v389_v39 }
 0x105   : > { %v397_v42 = vrot.slane %v390_v41, %v389_v39 }
 0x107   : > { %403 = vst.msk [vmem:[%s222_s23] sm:$0x3] %vm401_vm0, %v397_v42 }
 0x108 PF: > { %s15_s18 = sadd.s32 1, %s521_s18  }
 0x109   : > { %p12_p4 = scmp.ge.s32.totalorder %s15_s18, 4  }
 0x10b   :  { %14 = sbr.rel (!%p12_p4) target bundleno = 1 (0x1), region = 72 }

// kernel: mobilenet_v1_forward.27
= control target key start
LH: loop header
LB: loop body
LE: loop exit
PB: predicated region body
PF: predicated region fallthrough
CT: control target
= control target key end

     0   :  { %12 = vsyncpa [#allocation3], 0  ;;  %s1417_s0 = inlined_call_operand.vmem [shape: f32[2,3,3,256], index: 0, kind: input, shape index: {}]   ;;  %s1418_s1 = inlined_call_operand.vmem [shape: f32[9,1,256], index: 1, kind: input, shape index: {}]   ;;  %s1419_s2 = inlined_call_operand.vmem [shape: f32[1,256], index: 2, kind: input, shape index: {}]   ;;  %s1420_s3 = inlined_call_operand.vmem [shape: f32[256,256], index: 3, kind: input, shape index: {}]   ;;  %s1421_s4 = inlined_call_operand.vmem [shape: f32[1,256], index: 4, kind: input, shape index: {}]   ;;  %s1422_s5 = inlined_call_operand.vmem [shape: f32[256,2], index: 5, kind: input, shape index: {}]   ;;  %s1423_s6 = inlined_call_operand.vmem [shape: f32[1,2], index: 6, kind: input, shape index: {}]   ;;  %s1424_s7 = inlined_call_operand.hbm [shape: f32[2,1,2], index: 7, kind: output, shape index: {}]  }
   0x1   :  { %14 = vsyncpa [#allocation3 + $0x1], 0  ;;  %s971_s24 = smov 0   ;;  %s973_s25 = smov 0  }
   0x2   :  { %s975_s26 = smov 0   ;;  %s977_s27 = smov 0  }
   0x3 LB: > { %s992_s28 = sadd.s32 4294967295, %s928_s27   ;;  %s675_s29 = sadd.s32 4294967294, %s928_s27   ;;  %s928_s27 = sphi %s977_s27, %s1430_s27   ;;  %s924_s26 = sphi %s975_s26, %s1429_s26   ;;  %s920_s25 = sphi %s973_s25, %s1428_s25   ;;  %s916_s24 = sphi %s971_s24, %s1427_s24  }
   0x4   : > { %s996_s30 = sadd.s32 1, %s928_s27   ;;  %s179_s8 = sadd.s32 1, %s924_s26 }
   0x5   : > { %s176_s9 = ssub.s32 %s928_s27, %s996_s30  ;;  %p189_p0 = scmp.ne.s32.totalorder %s924_s26, %s920_s25 }
   0x6   : > { %p177_p1 = scmp.eq.s32.totalorder %s176_s9, 0  ;;  %p190_p2 = scmp.eq.s32.totalorder %s992_s28, 1 }
   0x7   : > { %p195_p3 = scmp.ne.s32.totalorder %s920_s25, %s916_s24  ;;  %p196_p4 = scmp.eq.s32.totalorder %s675_s29, 1 }
   0x8   : > { %s1007_s10 = scalar_select %p177_p1, %s924_s26, %s179_s8  }
   0x9   : > { %p1009_p5 = por %p190_p2, %p189_p0  ;;  %p1013_p6 = por %p196_p4, %p195_p3 }
   0xa   : > { %p678_p7 = scmp.ge.s32.totalorder %s928_s27, 1  ;;  %p240_p8 = scmp.lt.s32.totalorder %s928_s27, 3 }
   0xc   : > { %p241_p9 = pnand %p678_p7, %p240_p8 }
   0xd   : > { %v287_v0 = vld [vmem:[%s1420_s3 + $0x8] sm:$0xff] (!%p241_p9)  ;;  %v289_v1 = vld [vmem:[%s1420_s3 + $0x18] sm:$0xff] (!%p241_p9)  ;;  %v286_v2 = vld [vmem:[%s1420_s3] sm:$0xff] (!%p241_p9)  ;;  %p271_p10 = scmp.lt.s32.totalorder (!%p241_p9), %s992_s28, 1  ;;  %vm590_vm0 = vcmask (!%p241_p9), 8192   ;;  %s688_s17 = sshll.u32 (!%p241_p9), %s992_s28, 4 }
   0xe   : > { %244 = sbr.rel (%p241_p9) target bundleno = 843 (0x34b), region = 48  ;;  %v726_v3 = vpack.c.bf16 (!%p241_p9), %v289_v1, %v287_v0  ;;  %v288_v4 = vld [vmem:[%s1420_s3 + $0x10] sm:$0xff] (!%p241_p9)  ;;  %v291_v5 = vld [vmem:[%s1420_s3 + $0x28] sm:$0xff] (!%p241_p9)  ;;  %v293_v6 = vld [vmem:[%s1420_s3 + $0x38] sm:$0xff] (!%p241_p9)  ;;  %s1374_s20 = scalar_lea.hbm (!%p241_p9), %s1424_s7, %s688_s17 }
   0xf   : > { %v728_v7 = vpack.c.bf16 (!%p241_p9), %v288_v4, %v286_v2  ;;  %v730_v8 = vpack.c.bf16 (!%p241_p9), %v293_v6, %v291_v5  ;;  %v290_v9 = vld [vmem:[%s1420_s3 + $0x20] sm:$0xff] (!%p241_p9)  ;;  %v292_v10 = vld [vmem:[%s1420_s3 + $0x30] sm:$0xff] (!%p241_p9)  ;;  %v295_v11 = vld [vmem:[%s1420_s3 + $0x48] sm:$0xff] (!%p241_p9) }
  0x10   : > { %727 = vmatprep.subr.bf16.mxu0 (!%p241_p9), %v726_v3  ;;  %v297_v12 = vld [vmem:[%s1420_s3 + $0x58] sm:$0xff] (!%p241_p9)  ;;  %v732_v13 = vpack.c.bf16 (!%p241_p9), %v292_v10, %v290_v9  ;;  %v294_v15 = vld [vmem:[%s1420_s3 + $0x40] sm:$0xff] (!%p241_p9)  ;;  %v296_v16 = vld [vmem:[%s1420_s3 + $0x50] sm:$0xff] (!%p241_p9) }
  0x11   : > { %729 = vmatpush1.bf16.msra.mxu0 (!%p241_p9), %v728_v7  ;;  %v734_v14 = vpack.c.bf16 (!%p241_p9), %v297_v12, %v295_v11  ;;  %v299_v17 = vld [vmem:[%s1420_s3 + $0x68] sm:$0xff] (!%p241_p9)  ;;  %v301_v18 = vld [vmem:[%s1420_s3 + $0x78] sm:$0xff] (!%p241_p9)  ;;  %v736_v19 = vpack.c.bf16 (!%p241_p9), %v296_v16, %v294_v15  ;;  %v298_v21 = vld [vmem:[%s1420_s3 + $0x60] sm:$0xff] (!%p241_p9) }
  0x12   : > { %731 = vmatprep.subr.bf16.mxu0 (!%p241_p9), %v730_v8  ;;  %v738_v20 = vpack.c.bf16 (!%p241_p9), %v301_v18, %v299_v17  ;;  %v300_v22 = vld [vmem:[%s1420_s3 + $0x70] sm:$0xff] (!%p241_p9)  ;;  %v303_v23 = vld [vmem:[%s1420_s3 + $0x88] sm:$0xff] (!%p241_p9)  ;;  %v305_v24 = vld [vmem:[%s1420_s3 + $0x98] sm:$0xff] (!%p241_p9) }
  0x13   : > { %v740_v25 = vpack.c.bf16 (!%p241_p9), %v300_v22, %v298_v21  ;;  %v742_v26 = vpack.c.bf16 (!%p241_p9), %v305_v24, %v303_v23  ;;  %v302_v27 = vld [vmem:[%s1420_s3 + $0x80] sm:$0xff] (!%p241_p9)  ;;  %v304_v28 = vld [vmem:[%s1420_s3 + $0x90] sm:$0xff] (!%p241_p9)  ;;  %v307_v29 = vld [vmem:[%s1420_s3 + $0xa8] sm:$0xff] (!%p241_p9) }
  0x14   : > { %v309_v30 = vld [vmem:[%s1420_s3 + $0xb8] sm:$0xff] (!%p241_p9)  ;;  %v744_v31 = vpack.c.bf16 (!%p241_p9), %v304_v28, %v302_v27  ;;  %v306_v33 = vld [vmem:[%s1420_s3 + $0xa0] sm:$0xff] (!%p241_p9)  ;;  %v308_v34 = vld [vmem:[%s1420_s3 + $0xb0] sm:$0xff] (!%p241_p9) }
  0x15   : > { %733 = vmatpush1.bf16.msra.mxu0 %v732_v13  ;;  %s272_s15 = scalar_select %p271_p10, %s992_s28, 1  ;;  %v746_v32 = vpack.c.bf16 %v309_v30, %v307_v29  ;;  %v311_v35 = vld [vmem:[%s1420_s3 + $0xc8] sm:$0xff]  ;;  %v313_v36 = vld [vmem:[%s1420_s3 + $0xd8] sm:$0xff]  ;;  %v748_v37 = vpack.c.bf16 %v308_v34, %v306_v33  ;;  %v310_v39 = vld [vmem:[%s1420_s3 + $0xc0] sm:$0xff] }
  0x16   : > { %735 = vmatprep.subr.bf16.mxu0 %v734_v14  ;;  %v750_v38 = vpack.c.bf16 %v313_v36, %v311_v35  ;;  %v312_v40 = vld [vmem:[%s1420_s3 + $0xd0] sm:$0xff]  ;;  %v315_v41 = vld [vmem:[%s1420_s3 + $0xe8] sm:$0xff]  ;;  %v317_v42 = vld [vmem:[%s1420_s3 + $0xf8] sm:$0xff]  ;;  %s930_s28 = smov [#allocation2]  }
  0x17   : > { %s822_s29 = smul.u32 24, %s272_s15  ;;  %v314_v43 = vld [vmem:[%s1420_s3 + $0xe0] sm:$0xff]  ;;  %v316_v44 = vld [vmem:[%s1420_s3 + $0xf0] sm:$0xff]  ;;  %v752_v47 = vpack.c.bf16 %v312_v40, %v310_v39  ;;  %v319_v48 = vld [vmem:[%s1420_s3 + $0x108] sm:$0xff]  ;;  %v754_v52 = vpack.c.bf16 %v317_v42, %v315_v41  ;;  %s870_s8 = sshll.u32 %s930_s28, 4  ;;  %s871_s8 = int_to_ptr.vmem [resolvable:$false] %s870_s8 }
  0x18   : > { %v276_v45 = vld [vmem:[%s1418_s1] sm:$0x3]  ;;  %v277_v46 = vld [vmem:[%s1418_s1 + $0x2] sm:$0x3]  ;;  %v321_v49 = vld [vmem:[%s1420_s3 + $0x118] sm:$0xff]  ;;  %v756_v1 = vpack.c.bf16 %v316_v44, %v314_v43  ;;  %s872_s9 = scalar_lea.vmem %s871_s8, 32 }
  0x19   : > { %737 = vmatpush1.bf16.msra.mxu0 %v736_v19  ;;  %s1114_s21 = scalar_lea.vmem %s1417_s0, %s822_s29  ;;  %v278_v50 = vld [vmem:[%s1418_s1 + $0x4] sm:$0x3]  ;;  %v279_v51 = vld [vmem:[%s1418_s1 + $0x6] sm:$0x3]  ;;  %v320_v60 = vld [vmem:[%s1420_s3 + $0x110] sm:$0xff]  ;;  %v758_v8 = vpack.c.bf16 %v321_v49, %v319_v48  ;;  %v389_v48 = vlaneseq }
  0x1a   : > { %739 = vmatprep.subr.bf16.mxu0 %v738_v20  ;;  %v351_v53 = vld [vmem:[%s1114_s21] ss:$4 sm:$0x3]  ;;  %v680_v54 = vld [vmem:[%s1114_s21 + $0x1] ss:$4 sm:$0x3] }
  0x1b   : > { %v352_v55 = vmul.f32 %v351_v53, %v276_v45  ;;  %v356_v56 = vmul.f32 %v680_v54, %v277_v46  ;;  %v681_v57 = vld [vmem:[%s1114_s21 + $0x2] ss:$4 sm:$0x3]  ;;  %v682_v58 = vld [vmem:[%s1114_s21 + $0x8] ss:$4 sm:$0x3] }
  0x1c   : > { %v318_v59 = vld [vmem:[%s1420_s3 + $0x100] sm:$0xff]  ;;  %v280_v61 = vld [vmem:[%s1418_s1 + $0x8] sm:$0x3]  ;;  %v360_v62 = vmul.f32 %v681_v57, %v278_v50  ;;  %v325_v3 = vld [vmem:[%s1420_s3 + $0x138] sm:$0xff]  ;;  %v364_v6 = vmul.f32 %v682_v58, %v279_v51 }
  0x1d   : > { %741 = vmatpush1.bf16.msra.mxu0 %v740_v25  ;;  %v683_v63 = vld [vmem:[%s1114_s21 + $0x9] ss:$4 sm:$0x3]  ;;  %v503_v0 = vld [vmem:[%s1422_s5 + $0x80] sm:$0xff]  ;;  %v281_v4 = vld [vmem:[%s1418_s1 + $0xa] sm:$0x3]  ;;  %v357_v5 = vadd.f32 %v356_v56, %v352_v55  ;;  %v760_v25 = vpack.c.bf16 %v320_v60, %v318_v59 }
  0x1e   : > { %743 = vmatprep.subr.bf16.mxu0 %v742_v26  ;;  %v323_v2 = vld [vmem:[%s1420_s3 + $0x128] sm:$0xff]  ;;  %v685_v10 = vld [vmem:[%s1114_s21 + $0x10] ss:$4 sm:$0x3]  ;;  %v487_v12 = vld [vmem:[%s1422_s5] sm:$0xff]  ;;  %v368_v14 = vmul.f32 %v683_v63, %v280_v61 }
  0x1f   : > { %v684_v7 = vld [vmem:[%s1114_s21 + $0xa] ss:$4 sm:$0x3]  ;;  %v282_v9 = vld [vmem:[%s1418_s1 + $0xc] sm:$0x3]  ;;  %v361_v13 = vadd.f32 %v360_v62, %v357_v5  ;;  %v505_v17 = vld [vmem:[%s1422_s5 + $0x90] sm:$0xff] }
  0x20   : > { %v504_v11 = vld [vmem:[%s1422_s5 + $0x88] sm:$0xff]  ;;  %v506_v18 = vld [vmem:[%s1422_s5 + $0x98] sm:$0xff]  ;;  %v322_v19 = vld [vmem:[%s1420_s3 + $0x120] sm:$0xff]  ;;  %v372_v29 = vmul.f32 %v684_v7, %v281_v4 }
  0x21   : > { %745 = vmatpush1.bf16.msra.mxu0 %v744_v31  ;;  %v790_v15 = vpack.c.bf16 %v504_v11, %v503_v0  ;;  %v488_v16 = vld [vmem:[%s1422_s5 + $0x8] sm:$0xff]  ;;  %v794_v21 = vpack.c.bf16 %v506_v18, %v505_v17  ;;  %v489_v22 = vld [vmem:[%s1422_s5 + $0x10] sm:$0xff]  ;;  %v490_v23 = vld [vmem:[%s1422_s5 + $0x18] sm:$0xff]  ;;  %v365_v28 = vadd.f32 %v364_v6, %v361_v13  ;;  %v762_v31 = vpack.c.bf16 %v325_v3, %v323_v2 }
  0x22   : > { %747 = vmatprep.subr.bf16.mxu0 %v746_v32  ;;  %v792_v20 = vpack.c.bf16 %v488_v16, %v487_v12  ;;  %v507_v24 = vld [vmem:[%s1422_s5 + $0xa0] sm:$0xff]  ;;  %v324_v26 = vld [vmem:[%s1420_s3 + $0x130] sm:$0xff]  ;;  %v327_v27 = vld [vmem:[%s1420_s3 + $0x148] sm:$0xff]  ;;  %v796_v35 = vpack.c.bf16 %v490_v23, %v489_v22 }
  0x23   : > { %791 = vmatprep.subr.bf16.mxu1 %v790_v15  ;;  %v508_v30 = vld [vmem:[%s1422_s5 + $0xa8] sm:$0xff]  ;;  %v329_v32 = vld [vmem:[%s1420_s3 + $0x158] sm:$0xff]  ;;  %v686_v34 = vld [vmem:[%s1114_s21 + $0x11] ss:$4 sm:$0x3]  ;;  %v764_v45 = vpack.c.bf16 %v324_v26, %v322_v19 }
  0x24   : > { %v283_v33 = vld [vmem:[%s1418_s1 + $0xe] sm:$0x3]  ;;  %793 = vmatpush3.bf16.msra.mxu1 %v792_v20  ;;  %v284_v36 = vld [vmem:[%s1418_s1 + $0x10] sm:$0x3]  ;;  %v798_v39 = vpack.c.bf16 %v508_v30, %v507_v24  ;;  %v491_v40 = vld [vmem:[%s1422_s5 + $0x20] sm:$0xff]  ;;  %v766_v49 = vpack.c.bf16 %v329_v32, %v327_v27 }
  0x25   : > { %749 = vmatpush1.bf16.msra.mxu0 %v748_v37  ;;  %v369_v37 = vadd.f32 %v368_v14, %v365_v28  ;;  %795 = vmatprep.subr.bf16.mxu1 %v794_v21  ;;  %v492_v41 = vld [vmem:[%s1422_s5 + $0x28] sm:$0xff]  ;;  %v687_v42 = vld [vmem:[%s1114_s21 + $0x12] ss:$4 sm:$0x3]  ;;  %v510_v44 = vld [vmem:[%s1422_s5 + $0xb8] sm:$0xff]  ;;  %s269_s21 = sand.u32 1, %s920_s25  }
  0x26   : > { %751 = vmatprep.subr.bf16.mxu0 %v750_v38  ;;  %v376_v38 = vmul.f32 %v685_v10, %v282_v9  ;;  %v509_v43 = vld [vmem:[%s1422_s5 + $0xb0] sm:$0xff]  ;;  %v326_v50 = vld [vmem:[%s1420_s3 + $0x140] sm:$0xff]  ;;  %v800_v53 = vpack.c.bf16 %v492_v41, %v491_v40  ;;  %v333_v54 = vld [vmem:[%s1420_s3 + $0x178] sm:$0xff]  ;;  %v384_v56 = vmul.f32 %v687_v42, %v284_v36  ;;  %s270_s29 = scalar_lea.vmem [#allocation2], %s269_s21  ;;  %s604_s22 = scalar_lea.sflag [#allocation3], %s269_s21 }
  0x27   : > { %v373_v46 = vadd.f32 %v372_v29, %v369_v37  ;;  %v328_v51 = vld [vmem:[%s1420_s3 + $0x150] sm:$0xff]  ;;  %v802_v57 = vpack.c.bf16 %v510_v44, %v509_v43  ;;  %v494_v59 = vld [vmem:[%s1422_s5 + $0x38] sm:$0xff]  ;;  %v511_v60 = vld [vmem:[%s1422_s5 + $0xc0] sm:$0xff]  ;;  %s616_s18 = sshll.u32 %s270_s29, 4  ;;  %s1376_s18 = int_to_ptr.vmem [resolvable:$true] %s616_s18 }
  0x28   : > { %797 = vmatpush3.bf16.msra.mxu1 %v796_v35  ;;  %v493_v58 = vld [vmem:[%s1422_s5 + $0x30] sm:$0xff]  ;;  %v512_v61 = vld [vmem:[%s1422_s5 + $0xc8] sm:$0xff]  ;;  %v768_v62 = vpack.c.bf16 %v328_v51, %v326_v50  ;;  %v330_v63 = vld [vmem:[%s1420_s3 + $0x160] sm:$0xff]  ;;  %s866_s23 = scalar_lea.vmem %s1376_s18, 16  ;;  %p873_p0 = scmp.lt.s32.totalorder %s1376_s18, %s871_s8 }
  0x29   : > { %753 = vmatpush1.bf16.msra.mxu0 %v752_v47  ;;  %v380_v47 = vmul.f32 %v686_v34, %v283_v33  ;;  %v377_v55 = vadd.f32 %v376_v38, %v373_v46  ;;  %799 = vmatprep.subr.bf16.mxu1 %v798_v39  ;;  %v332_v3 = vld [vmem:[%s1420_s3 + $0x170] sm:$0xff]  ;;  %v335_v4 = vld [vmem:[%s1420_s3 + $0x188] sm:$0xff]  ;;  %v285_v5 = vld [vmem:[%s1419_s2] sm:$0x3]  ;;  %v804_v6 = vpack.c.bf16 %v494_v59, %v493_v58  ;;  %p867_p11 = scmp.ne.s32.totalorder %s1376_s18, %s866_s23  ;;  %p874_p1 = scmp.lt.s32.totalorder %s872_s9, %s866_s23 }
  0x2a   : > { %755 = vmatprep.subr.bf16.mxu0 %v754_v52  ;;  %v331_v52 = vld [vmem:[%s1420_s3 + $0x168] sm:$0xff]  ;;  %v337_v7 = vld [vmem:[%s1420_s3 + $0x198] sm:$0xff]  ;;  %v806_v9 = vpack.c.bf16 %v512_v61, %v511_v60  ;;  %v495_v10 = vld [vmem:[%s1422_s5 + $0x40] sm:$0xff]  ;;  %v772_v14 = vpack.c.bf16 %v332_v3, %v330_v63 }
  0x2b   : > { %v381_v0 = vadd.f32 %v380_v47, %v377_v55  ;;  %v770_v2 = vpack.c.bf16 %v333_v54, %v331_v52  ;;  %v496_v11 = vld [vmem:[%s1422_s5 + $0x48] sm:$0xff]  ;;  %v513_v12 = vld [vmem:[%s1422_s5 + $0xd0] sm:$0xff]  ;;  %v514_v13 = vld [vmem:[%s1422_s5 + $0xd8] sm:$0xff]  ;;  %v774_v17 = vpack.c.bf16 %v337_v7, %v335_v4  ;;  %p868_p12 = pnand %p867_p11, %p1009_p5  ;;  %p875_p2 = por %p874_p1, %p873_p0 }
  0x2c   : > { %801 = vmatpush3.bf16.msra.mxu1 %v800_v53  ;;  %v334_v18 = vld [vmem:[%s1420_s3 + $0x180] sm:$0xff]  ;;  %v336_v19 = vld [vmem:[%s1420_s3 + $0x190] sm:$0xff]  ;;  %v339_v20 = vld [vmem:[%s1420_s3 + $0x1a8] sm:$0xff]  ;;  %v808_v21 = vpack.c.bf16 %v496_v11, %v495_v10  ;;  %v810_v24 = vpack.c.bf16 %v514_v13, %v513_v12 }
  0x2d   : > { %757 = vmatpush1.bf16.msra.mxu0 %v756_v1  ;;  %v1257_v1 = vshrl.u32 %v389_v48, 7  ;;  %803 = vmatprep.subr.bf16.mxu1 %v802_v57  ;;  %v341_v22 = vld [vmem:[%s1420_s3 + $0x1b8] sm:$0xff]  ;;  %v515_v27 = vld [vmem:[%s1422_s5 + $0xe0] sm:$0xff]  ;;  %v516_v28 = vld [vmem:[%s1422_s5 + $0xe8] sm:$0xff]  ;;  %v776_v29 = vpack.c.bf16 %v336_v19, %v334_v18  ;;  %p869_p13 = pneg %p868_p12 }
  0x2e   : > { %759 = vmatprep.subr.bf16.mxu0 %v758_v8  ;;  %v385_v8 = vadd.f32 %v384_v56, %v381_v0  ;;  %v498_v26 = vld [vmem:[%s1422_s5 + $0x58] sm:$0xff]  ;;  %v338_v32 = vld [vmem:[%s1420_s3 + $0x1a0] sm:$0xff]  ;;  %v340_v33 = vld [vmem:[%s1420_s3 + $0x1b0] sm:$0xff]  ;;  %v814_v37 = vpack.c.bf16 %v516_v28, %v515_v27 }
  0x2f   : > { %v395_v16 = vsub.s32 1, %v1257_v1  ;;  %v343_v35 = vld [vmem:[%s1420_s3 + $0x1c8] sm:$0xff]  ;;  %v345_v36 = vld [vmem:[%s1420_s3 + $0x1d8] sm:$0xff]  ;;  %v780_v38 = vpack.c.bf16 %v340_v33, %v338_v32  ;;  %v342_v40 = vld [vmem:[%s1420_s3 + $0x1c0] sm:$0xff]  ;;  %v391_v48 = vsub.s32 0, %v1257_v1  ;;  %p876_p3 = pnand %p875_p2, %p869_p13 }
  0x30   : > { %v386_v15 = vadd.f32 %v385_v8, %v285_v5  ;;  %805 = vmatpush3.bf16.msra.mxu1 %v804_v6  ;;  %v782_v39 = vpack.c.bf16 %v345_v36, %v343_v35  ;;  %v344_v41 = vld [vmem:[%s1420_s3 + $0x1d0] sm:$0xff]  ;;  %v347_v42 = vld [vmem:[%s1420_s3 + $0x1e8] sm:$0xff]  ;;  %v349_v43 = vld [vmem:[%s1420_s3 + $0x1f8] sm:$0xff] }
  0x31   : > { %761 = vmatpush1.bf16.msra.mxu0 %v760_v25  ;;  %807 = vmatprep.subr.bf16.mxu1 %v806_v9  ;;  %v497_v25 = vld [vmem:[%s1422_s5 + $0x50] sm:$0xff]  ;;  %v784_v44 = vpack.c.bf16 %v344_v41, %v342_v40  ;;  %v346_v46 = vld [vmem:[%s1420_s3 + $0x1e0] sm:$0xff]  ;;  %v500_v52 = vld [vmem:[%s1422_s5 + $0x68] sm:$0xff] }
  0x32   : > { %763 = vmatprep.subr.bf16.mxu0 %v762_v31  ;;  %v387_v23 = vmax.f32 %v386_v15, 0.0  ;;  %v778_v31 = vpack.c.bf16 %v341_v22, %v339_v20  ;;  %v812_v34 = vpack.c.bf16 %v498_v26, %v497_v25  ;;  %v348_v47 = vld [vmem:[%s1420_s3 + $0x1f0] sm:$0xff]  ;;  %v499_v51 = vld [vmem:[%s1422_s5 + $0x60] sm:$0xff]  ;;  %v518_v55 = vld [vmem:[%s1422_s5 + $0xf8] sm:$0xff] }
  0x33   : > { %v816_v53 = vpack.c.bf16 %v500_v52, %v499_v51  ;;  %v517_v54 = vld [vmem:[%s1422_s5 + $0xf0] sm:$0xff]  ;;  %v502_v58 = vld [vmem:[%s1422_s5 + $0x78] sm:$0xff]  ;;  %v350_v60 = vld [vmem:[%s1421_s4] sm:$0x3] }
  0x34   : > { %v396_v30 = vrot.slane %v387_v23, %v395_v16  ;;  %809 = vmatpush3.bf16.msra.mxu1 %v808_v21  ;;  %v392_v50 = vrot.slane %v387_v23, %v391_v48  ;;  %v818_v56 = vpack.c.bf16 %v518_v55, %v517_v54  ;;  %v501_v57 = vld [vmem:[%s1422_s5 + $0x70] sm:$0xff]  ;;  %v403_v61 = vrot.slane %v350_v60, %v391_v48  ;;  %v519_v8 = vld [vmem:[%s1423_s6] sm:$0x1] }
  0x35   : > { %765 = vmatpush1.bf16.msra.mxu0 %v764_v45  ;;  %811 = vmatprep.subr.bf16.mxu1 %v810_v24  ;;  %v786_v45 = vpack.c.bf16 %v349_v43, %v347_v42  ;;  %v820_v59 = vpack.c.bf16 %v502_v58, %v501_v57 }
  0x36   : > { %767 = vmatprep.subr.bf16.mxu0 %v766_v49  ;;  %474 = vmatprep.mubr.f32.mxu0 %v396_v30  ;;  %v788_v49 = vpack.c.bf16 %v348_v47, %v346_v46 }
  0x38   : > { %813 = vmatpush3.bf16.msra.mxu1 %v812_v34 }
  0x39   : > { %769 = vmatpush1.bf16.msra.mxu0 %v768_v62  ;;  %815 = vmatprep.subr.bf16.mxu1 %v814_v37  ;;  %v407_v62 = vrot.slane %v350_v60, %v395_v16 }
  0x3a   : > { %771 = vmatprep.subr.bf16.mxu0 %v770_v2 }
  0x3c   : > { %817 = vmatpush3.bf16.msra.mxu1 %v816_v53 }
  0x3d   : > { %773 = vmatpush1.bf16.msra.mxu0 %v772_v14  ;;  %819 = vmatprep.subr.bf16.mxu1 %v818_v56 }
  0x3e   : > { %775 = vmatprep.subr.bf16.mxu0 %v774_v17 }
  0x40   : > { %821 = vmatpush3.bf16.msra.mxu1 %v820_v59 }
  0x41   : > { %777 = vmatpush1.bf16.msra.mxu0 %v776_v29 }
  0x42   : > { %779 = vmatprep.subr.bf16.mxu0 %v778_v31 }
  0x45   : > { %781 = vmatpush1.bf16.msra.mxu0 %v780_v38 }
  0x46   : > { %783 = vmatprep.subr.bf16.mxu0 %v782_v39 }
  0x49   : > { %785 = vmatpush1.bf16.msra.mxu0 %v784_v44 }
  0x4a   : > { %787 = vmatprep.subr.bf16.mxu0 %v786_v45 }
  0x4d   : > { %789 = vmatpush1.bf16.msra.mxu0 %v788_v49 }
  0x50   : > { %475 = vmatmul.mubr.f32.vlgmr.msra.gmra.mrb[0].mxu0 %v392_v50 }
 0x123   : > { %v476_v63 = vpop.f32.mrb[0].mxu0 }
 0x124   : > { %v477_v0 = vadd.f32 %v476_v63, %v403_v61  ;;  %v478_v2 = vpop.f32.mrb[1].mxu0 }
 0x125   : > { %v479_v3 = vadd.f32 %v478_v2, %v407_v62 }
 0x126   : > { %v481_v5 = vmax.f32 %v477_v0, 0.0 }
 0x127   : > { %v482_v4 = vmax.f32 %v479_v3, 0.0 }
 0x129   : > { %584 = vmatprep.mubr.f32.mxu1 %v482_v4 }
 0x12a   : > { %585 = vmatmul.mubr.f32.vlgmr.msra.gmra.mrb[0].mxu1 %v481_v5 }
 0x1fd   : > { %v723_v6 = vpop.f32.mrb[0].mxu1 }
 0x1fe   : > { %v724_v7 = vpop.f32.mrb[1].mxu1 }
 0x1ff   : > { %v725_v9 = vadd.f32 %v724_v7, %v723_v6 }
 0x201   : > { %v587_v1 = vadd.f32 %v725_v9, %v519_v8 }
 0x203   : > { %v591_v10 = vsel %vm590_vm0, %v587_v1, -inf }
 0x204   : > { %592 = vmax.xlane.f32.xlu0 %v591_v10 }
 0x291   : > { %v593_v11 = vpop.xlane.xlu0 %592 }
 0x292   : > { %v594_v12 = vsub.f32 %v587_v1, %v593_v11 }
 0x294   : > { %v595_v13 = vmul.f32 1.442695, %v594_v12 }
 0x296   : > { %862 = vpow2.f32 %v595_v13 }
 0x2a0   : > { %v863_v14 = vpop.eup %862 }
 0x2a1   : > { %v597_v15 = vsel %vm590_vm0, %v863_v14, 0.0 }
 0x2a2   : > { %598 = vadd.xlane.f32.xlu0 %v597_v15 }
 0x32f   : > { %v599_v16 = vpop.xlane.xlu0 %598 }
 0x330   : > { %864 = vrcp.f32 %v599_v16 }
 0x33a   : > { %v865_v17 = vpop.eup %864 }
 0x33b   : > { %v601_v18 = vmul.f32 %v865_v17, %v863_v14 }
 0x33d   : > { %602 = vst.msk [vmem:[%s270_s29] sm:$0x1] %vm590_vm0, %v601_v18 }
 0x33e   : > { %879 = shalt.err (!%p876_p3)
}
 0x33f   : > { %s880_s13 = scalar_lea.hbm %s1374_s20, 16  ;;  %s884_s21 = scalar_lea.hbm %s1424_s7, 32 }
 0x340   : > { %p881_p4 = scmp.ne.s32.totalorder %s1374_s20, %s880_s13  ;;  %p885_p9 = scmp.lt.u32.totalorder %s1374_s20, %s1424_s7 }
 0x341   : > { %p886_p10 = scmp.lt.u32.totalorder %s884_s21, %s880_s13  ;;  %p888_p12 = scmp.lt.u32.totalorder %s880_s13, %s1374_s20 }
 0x342   : > { %p882_p7 = pnand %p881_p4, %p1009_p5 }
 0x343   : > { %p887_p11 = por %p886_p10, %p885_p9 }
 0x344   : > { %p883_p8 = pneg %p882_p7 }
 0x345   : > { %p889_p13 = por %p888_p12, %p887_p11 }
 0x347   : > { %p890_p0 = pnand %p889_p13, %p883_p8 }
 0x349   : > { %893 = shalt.err (!%p890_p0)
}
 0x34a   : > { %823 = dma.vmem_to_hbm [thread:$0]  (%p1009_p5), %s1376_s18, 16, %s1374_s20, %s604_s22  }
 0x34b PF: > { %p829_p1 = scmp.ge.s32.totalorder %s928_s27, 2  ;;  %s628_s19 = sand.u32 1, %s916_s24  }
 0x34c   : > { %s629_s15 = scalar_lea.sflag [#allocation3], %s628_s19 }
 0x34d   : > { %p826_p2 = pnand %p829_p1, %p1013_p6 }
 0x34f   : > { %911 = dma.done.wait (!%p826_p2), %s629_s15, 16  }
 0x350   : > { %913 = vsyncadd (!%p826_p2), %s629_s15, 4294967280  ;;  %p17_p3 = scmp.ge.s32.totalorder %s996_s30, 4   ;;  %s1427_s24 = smov %s920_s25 }
 0x351   : > { %s1428_s25 = smov %s924_s26  ;;  %s1429_s26 = smov %s1007_s10 }
 0x352   : > { %s1430_s27 = smov %s996_s30  ;;  %19 = sbr.rel (!%p17_p3) target bundleno = 3 (0x3), region = 91 }
 0x359   :  { %633 = vsyncpa [#allocation3], 1 }
 0x35a   :  { %635 = vsyncpa [#allocation3 + $0x1], 1 }

</bundles_post_ra>
